<compile_context>
chip_gen: v7x
topology: tpu7x:2x2x1
jax: 0.10.0
libtpu: 0.0.40
codegen_flags: <defaults>
</compile_context>

<pallas_src>
import functools

import jax
import jax.numpy as jnp
from jax import lax
from jax.experimental import pallas as pl
from jax.experimental.pallas import tpu as pltpu


def _decoder_kernel(xp_ref, wtp_ref, btp_ref, wg2_ref, bg2_ref, wg1_ref, bg1_ref,
                    o_ref,
                    col1_sc, col2_sc, col3_sc, hupad_sc, hpad_sc,
                    *, K, p, Cin, C0, C1, gate_off,
                    Ho, Wo, H2, W2, H1, W1):
    """Fused ConvTranspose2d -> GLU-conv -> GLU-conv for one batch element."""

    def im2col(tap, Hout, Wout, Cs, col_ref):
        # Fold the K*K taps into the contraction dim:
        # col[:, t*Cs:(t+1)*Cs] = tap (kh, kw) flattened to (Hout*Wout, Cs).
        for kh in range(K):
            for kw in range(K):
                t = kh * K + kw
                col_ref[:, t * Cs:(t + 1) * Cs] = (
                    tap(kh, kw).reshape(Hout * Wout, Cs))

    # ---- stage 1: ConvTranspose2d == stride-1 conv on dilated+padded input ----
    im2col(lambda kh, kw: xp_ref[0, kh:kh + Ho, kw:kw + Wo, :], Ho, Wo, Cin,
           col1_sc)
    hu = jnp.dot(col1_sc[...], wtp_ref[...],
                 preferred_element_type=jnp.float32) + btp_ref[...]  # (Ho*Wo, C0)
    # Zero halo every grid step (megacore-safe), then write the interior.
    hupad_sc[...] = jnp.zeros_like(hupad_sc)
    hupad_sc[p:p + Ho, p:p + Wo, :] = hu.reshape(Ho, Wo, C0)

    # ---- stage 2: glu2d_2 (stride-1 conv + GLU over channels) -----------------
    im2col(lambda kh, kw: hupad_sc[kh:kh + H2, kw:kw + W2, :], H2, W2, C0,
           col2_sc)
    g2 = jnp.dot(col2_sc[...], wg2_ref[...],
                 preferred_element_type=jnp.float32) + bg2_ref[...]  # (H2*W2, 2*C0)
    h = g2[:, :C0] * jax.nn.sigmoid(g2[:, C0:])                      # (H2*W2, C0)
    hpad_sc[...] = jnp.zeros_like(hpad_sc)
    hpad_sc[p:p + H2, p:p + W2, :] = h.reshape(H2, W2, C0)

    # ---- stage 3: glu2d_1, output stored channels-first (lane-dense) ----------
    im2col(lambda kh, kw: hpad_sc[kh:kh + H1, kw:kw + W1, :], H1, W1, C0,
           col3_sc)
    g1 = jnp.dot(col3_sc[...], wg1_ref[...],
                 preferred_element_type=jnp.float32) + bg1_ref[...]  # (H1*W1, 128)
    g1t = jnp.transpose(g1, (1, 0))                                  # (128, H1*W1)
    out = g1t[:C1, :] * jax.nn.sigmoid(g1t[gate_off:gate_off + C1, :])
    o_ref[...] = out.reshape(1, C1, H1 * W1).astype(o_ref.dtype)


def _fused_decoder(x_pad, w_tp, b_tp, w_g2, b_g2, w_g1p, b_g1p,
                   *, K, p, C0, C1, gate_off, Ho, Wo, H2, W2, H1, W1):
    N, Hp, Wp, Cin = x_pad.shape
    npad = w_g1p.shape[-1]
    kern = functools.partial(
        _decoder_kernel, K=K, p=p, Cin=Cin, C0=C0, C1=C1, gate_off=gate_off,
        Ho=Ho, Wo=Wo, H2=H2, W2=W2, H1=H1, W1=W1)
    return pl.pallas_call(
        kern,
        out_shape=jax.ShapeDtypeStruct((N, C1, H1 * W1), jnp.float32),
        grid=(N,),
        in_specs=[
            pl.BlockSpec((1, Hp, Wp, Cin), lambda n: (n, 0, 0, 0)),
            pl.BlockSpec((K * K * Cin, C0), lambda n: (0, 0)),
            pl.BlockSpec((1, C0), lambda n: (0, 0)),
            pl.BlockSpec((K * K * C0, 2 * C0), lambda n: (0, 0)),
            pl.BlockSpec((1, 2 * C0), lambda n: (0, 0)),
            pl.BlockSpec((K * K * C0, npad), lambda n: (0, 0)),
            pl.BlockSpec((1, npad), lambda n: (0, 0)),
        ],
        out_specs=pl.BlockSpec((1, C1, H1 * W1), lambda n: (n, 0, 0)),
        scratch_shapes=[
            pltpu.VMEM((Ho * Wo, K * K * Cin), jnp.float32),   # im2col stage 1
            pltpu.VMEM((H2 * W2, K * K * C0), jnp.float32),    # im2col stage 2
            pltpu.VMEM((H1 * W1, K * K * C0), jnp.float32),    # im2col stage 3
            pltpu.VMEM((Ho + 2 * p, Wo + 2 * p, C0), jnp.float32),  # padded hu
            pltpu.VMEM((H2 + 2 * p, W2 + 2 * p, C0), jnp.float32),  # padded h
        ],
        compiler_params=pltpu.CompilerParams(
            dimension_semantics=("parallel",)),   # one batch element per TC (v7x)
    )(x_pad, w_tp, b_tp, w_g2, b_g2, w_g1p, b_g1p)


class GCUNet3DecoderPallas:
    def __init__(self, in_channels, out_channels, kernel_size, stride=1,
                 padding=0, out_padding=0, aux_dim=0, key=None):
        assert isinstance(out_channels, list) and len(out_channels) == 2
        # TODO(synk): aux_dim > 0 changes glu2d_2's input channels; the fused
        # kernel only implements the aux_dim=0 path exercised here.
        assert aux_dim == 0
        self.k = int(kernel_size)
        self.stride = int(stride)
        self.padding = int(padding)
        self.out_padding = int(out_padding)
        self.c0, self.c1 = out_channels
        k, c0, c1 = self.k, self.c0, self.c1
        keys = jax.random.split(key, 6)

        # ConvTranspose2d: torch weight layout (Cin, Cout, KH, KW).  Equivalent
        # stride-1 conv on the zero-dilated + padded input: HWIO, spatially flipped.
        w_tp = 0.1 * jax.random.normal(keys[0], (in_channels, c0, k, k), jnp.float32)
        self.w_tp_hwio = jnp.transpose(w_tp, (2, 3, 0, 1))[::-1, ::-1]
        self.b_tp = 0.1 * jax.random.normal(keys[1], (c0,), jnp.float32)
        # Glu2d_2: Conv2d(c0, 2*c0, k, stride=1, padding) then GLU(dim=C)
        self.w_g2_hwio = 0.1 * jax.random.normal(keys[2], (k, k, c0, 2 * c0), jnp.float32)
        self.b_g2 = 0.1 * jax.random.normal(keys[3], (2 * c0,), jnp.float32)
        # Glu2d_1: Conv2d(c0, 2*c1, k, stride=1, padding) then GLU(dim=C)
        self.w_g1_hwio = 0.1 * jax.random.normal(keys[4], (k, k, c0, 2 * c1), jnp.float32)
        self.b_g1 = 0.1 * jax.random.normal(keys[5], (2 * c1,), jnp.float32)

        # ---- kernel-side (im2col) weight layouts: (K*K*Cin, Cout) -------------
        self.w_tp_2d = self.w_tp_hwio.reshape(k * k * in_channels, c0)
        self.w_g2_2d = self.w_g2_hwio.reshape(k * k * c0, 2 * c0)
        # Last stage: pad output columns to a full 128-lane tile; park the two GLU
        # halves at sublane-aligned offsets 0 / gate_off so the kernel can do a
        # tile-aligned (HW,128) transpose and slice the halves as sublane rows.
        self.gate_off = max(8, ((c1 + 7) // 8) * 8)
        npad = max(128, ((self.gate_off + c1 + 127) // 128) * 128)
        w_g1_2d = self.w_g1_hwio.reshape(k * k * c0, 2 * c1)
        wp = jnp.zeros((k * k * c0, npad), jnp.float32)
        wp = wp.at[:, :c1].set(w_g1_2d[:, :c1])
        wp = wp.at[:, self.gate_off:self.gate_off + c1].set(w_g1_2d[:, c1:])
        self.w_g1_pad = wp
        bp = jnp.zeros((npad,), jnp.float32)
        bp = bp.at[:c1].set(self.b_g1[:c1])
        bp = bp.at[self.gate_off:self.gate_off + c1].set(self.b_g1[c1:])
        self.b_g1_pad = bp

    def forward(self, x_nchw, input_aux=None, drop=0.0):
        # TODO(synk): dropout (drop>0) and input_aux concat are not implemented
        # in the fused kernel (tested config uses drop=0.0, input_aux=None).
        assert input_aux is None and drop == 0.0
        k, s, p, op = self.k, self.stride, self.padding, self.out_padding
        assert k - 1 - p >= 0, "padding > kernel_size - 1 not supported"
        x = jnp.transpose(x_nchw, (0, 2, 3, 1))            # NCHW -> NHWC
        N, H, W, Cin = x.shape

        # ConvTranspose2d output size and the dilated+padded input slab for the
        # equivalent stride-1 'valid' conv, built by ONE strided scatter.
        Ho = (H - 1) * s - 2 * p + k + op
        Wo = (W - 1) * s - 2 * p + k + op
        Hp, Wp = Ho + k - 1, Wo + k - 1
        lo = k - 1 - p
        x_pad = jnp.zeros((N, Hp, Wp, Cin), x.dtype)
        x_pad = x_pad.at[:, lo:lo + (H - 1) * s + 1:s,
                         lo:lo + (W - 1) * s + 1:s, :].set(x)

        H2, W2 = Ho + 2 * p - k + 1, Wo + 2 * p - k + 1
        H1, W1 = H2 + 2 * p - k + 1, W2 + 2 * p - k + 1

        out = _fused_decoder(
            x_pad, self.w_tp_2d, self.b_tp.reshape(1, -1),
            self.w_g2_2d, self.b_g2.reshape(1, -1),
            self.w_g1_pad, self.b_g1_pad.reshape(1, -1),
            K=k, p=p, C0=self.c0, C1=self.c1, gate_off=self.gate_off,
            Ho=Ho, Wo=Wo, H2=H2, W2=W2, H1=H1, W1=W1)
        # Kernel already emits channels-first; reshape to NCHW is free.
        return out.reshape(N, self.c1, H1, W1)


def ref_forward(x_nchw, dec):
    """Pure-JAX reference (lax conv) with identical semantics."""
    dn = ('NHWC', 'HWIO', 'NHWC')
    k, s, p, op = dec.k, dec.stride, dec.padding, dec.out_padding
    x = jnp.transpose(x_nchw, (0, 2, 3, 1))
    y = lax.conv_general_dilated(x, dec.w_tp_hwio, (1, 1),
                                 [(k - 1 - p, k - 1 - p + op)] * 2,
                                 lhs_dilation=(s, s), dimension_numbers=dn,
                                 precision=lax.Precision.HIGHEST)
    y = y + dec.b_tp

    def glu_conv(z, w, b):
        o = lax.conv_general_dilated(z, w, (1, 1), [(p, p)] * 2,
                                     dimension_numbers=dn,
                                     precision=lax.Precision.HIGHEST) + b
        c = o.shape[-1] // 2
        return o[..., :c] * jax.nn.sigmoid(o[..., c:])

    y = glu_conv(y, dec.w_g2_hwio, dec.b_g2)
    y = glu_conv(y, dec.w_g1_hwio, dec.b_g1)
    return jnp.transpose(y, (0, 3, 1, 2))


if __name__ == "__main__":
    key = jax.random.PRNGKey(0)
    kx, kp = jax.random.split(key)
    N, Cin, H, W = 2, 4, 8, 8
    out_channels = [8, 4]
    x = jax.random.normal(kx, (N, Cin, H, W), jnp.float32)

    dec = GCUNet3DecoderPallas(Cin, out_channels, kernel_size=3, stride=2,
                               padding=1, out_padding=1, aux_dim=0, key=kp)

    out = jax.block_until_ready(dec.forward(x))
    assert out.shape == (N, out_channels[1], 2 * H, 2 * W), out.shape

    ref = ref_forward(x, dec)
    err = float(jnp.max(jnp.abs(out - ref)))
    assert err < 1e-3, f"max abs error {err}"
    print("KERNEL_OK")
</pallas_src>

<mosaic_0001>
module attributes {stable_mosaic.version = 11 : i64} {
  func.func @_decoder_kernel(%arg0: i32, %arg1: memref<1x18x18x4xf32, #tpu.memory_space<vmem>>, %arg2: memref<36x8xf32, #tpu.memory_space<vmem>>, %arg3: memref<1x8xf32, #tpu.memory_space<vmem>>, %arg4: memref<72x16xf32, #tpu.memory_space<vmem>>, %arg5: memref<1x16xf32, #tpu.memory_space<vmem>>, %arg6: memref<72x128xf32, #tpu.memory_space<vmem>>, %arg7: memref<1x128xf32, #tpu.memory_space<vmem>>, %arg8: memref<1x4x256xf32, #tpu.memory_space<vmem>>, %arg9: memref<256x36xf32, #tpu.memory_space<vmem>>, %arg10: memref<256x72xf32, #tpu.memory_space<vmem>>, %arg11: memref<256x72xf32, #tpu.memory_space<vmem>>, %arg12: memref<18x18x8xf32, #tpu.memory_space<vmem>>, %arg13: memref<18x18x8xf32, #tpu.memory_space<vmem>>) attributes {dimension_semantics = [#tpu.dimension_semantics<parallel>], iteration_bounds = array<i64: 2>, scalar_prefetch = 0 : i64, scratch_operands = 5 : i64, tpu.core_type = #tpu.core_type<tc>, window_params = [{transform_indices = @transform_0, window_bounds = array<i64: 1, 18, 18, 4>}, {pipeline_mode = #tpu.pipeline_mode<synchronous>, transform_indices = @transform_1, window_bounds = array<i64: 36, 8>}, {pipeline_mode = #tpu.pipeline_mode<synchronous>, transform_indices = @transform_2, window_bounds = array<i64: 1, 8>}, {pipeline_mode = #tpu.pipeline_mode<synchronous>, transform_indices = @transform_3, window_bounds = array<i64: 72, 16>}, {pipeline_mode = #tpu.pipeline_mode<synchronous>, transform_indices = @transform_4, window_bounds = array<i64: 1, 16>}, {pipeline_mode = #tpu.pipeline_mode<synchronous>, transform_indices = @transform_5, window_bounds = array<i64: 72, 128>}, {pipeline_mode = #tpu.pipeline_mode<synchronous>, transform_indices = @transform_6, window_bounds = array<i64: 1, 128>}, {transform_indices = @transform_7, window_bounds = array<i64: 1, 4, 256>}]} {
    %c0 = arith.constant 0 : index
    %c0_0 = arith.constant 0 : index
    %c0_1 = arith.constant 0 : index
    %c0_2 = arith.constant 0 : index
    %0 = vector.load %arg1[%c0, %c0_0, %c0_1, %c0_2] : memref<1x18x18x4xf32, #tpu.memory_space<vmem>>, vector<1x16x16x4xf32>
    %1 = vector.shape_cast %0 : vector<1x16x16x4xf32> to vector<16x16x4xf32>
    %2 = vector.shape_cast %1 : vector<16x16x4xf32> to vector<256x4xf32>
    %c0_3 = arith.constant 0 : index
    %c0_4 = arith.constant 0 : index
    %3 = vector.load %arg9[%c0_3, %c0_4] : memref<256x36xf32, #tpu.memory_space<vmem>>, vector<256x4xf32>
    tpu.vector_store %arg9[%c0_3, %c0_4], %2 {strides = array<i32>} : memref<256x36xf32, #tpu.memory_space<vmem>>, vector<256x4xf32>,
    %c0_5 = arith.constant 0 : index
    %c0_6 = arith.constant 0 : index
    %c1 = arith.constant 1 : index
    %c0_7 = arith.constant 0 : index
    %4 = vector.load %arg1[%c0_5, %c0_6, %c1, %c0_7] : memref<1x18x18x4xf32, #tpu.memory_space<vmem>>, vector<1x16x16x4xf32>
    %5 = vector.shape_cast %4 : vector<1x16x16x4xf32> to vector<16x16x4xf32>
    %6 = vector.shape_cast %5 : vector<16x16x4xf32> to vector<256x4xf32>
    %c0_8 = arith.constant 0 : index
    %c4 = arith.constant 4 : index
    %7 = vector.load %arg9[%c0_8, %c4] : memref<256x36xf32, #tpu.memory_space<vmem>>, vector<256x4xf32>
    tpu.vector_store %arg9[%c0_8, %c4], %6 {strides = array<i32>} : memref<256x36xf32, #tpu.memory_space<vmem>>, vector<256x4xf32>,
    %c0_9 = arith.constant 0 : index
    %c0_10 = arith.constant 0 : index
    %c2 = arith.constant 2 : index
    %c0_11 = arith.constant 0 : index
    %8 = vector.load %arg1[%c0_9, %c0_10, %c2, %c0_11] : memref<1x18x18x4xf32, #tpu.memory_space<vmem>>, vector<1x16x16x4xf32>
    %9 = vector.shape_cast %8 : vector<1x16x16x4xf32> to vector<16x16x4xf32>
    %10 = vector.shape_cast %9 : vector<16x16x4xf32> to vector<256x4xf32>
    %c0_12 = arith.constant 0 : index
    %c8 = arith.constant 8 : index
    %11 = vector.load %arg9[%c0_12, %c8] : memref<256x36xf32, #tpu.memory_space<vmem>>, vector<256x4xf32>
    tpu.vector_store %arg9[%c0_12, %c8], %10 {strides = array<i32>} : memref<256x36xf32, #tpu.memory_space<vmem>>, vector<256x4xf32>,
    %c0_13 = arith.constant 0 : index
    %c1_14 = arith.constant 1 : index
    %c0_15 = arith.constant 0 : index
    %c0_16 = arith.constant 0 : index
    %12 = vector.load %arg1[%c0_13, %c1_14, %c0_15, %c0_16] : memref<1x18x18x4xf32, #tpu.memory_space<vmem>>, vector<1x16x16x4xf32>
    %13 = vector.shape_cast %12 : vector<1x16x16x4xf32> to vector<16x16x4xf32>
    %14 = vector.shape_cast %13 : vector<16x16x4xf32> to vector<256x4xf32>
    %c0_17 = arith.constant 0 : index
    %c12 = arith.constant 12 : index
    %15 = vector.load %arg9[%c0_17, %c12] : memref<256x36xf32, #tpu.memory_space<vmem>>, vector<256x4xf32>
    tpu.vector_store %arg9[%c0_17, %c12], %14 {strides = array<i32>} : memref<256x36xf32, #tpu.memory_space<vmem>>, vector<256x4xf32>,
    %c0_18 = arith.constant 0 : index
    %c1_19 = arith.constant 1 : index
    %c1_20 = arith.constant 1 : index
    %c0_21 = arith.constant 0 : index
    %16 = vector.load %arg1[%c0_18, %c1_19, %c1_20, %c0_21] : memref<1x18x18x4xf32, #tpu.memory_space<vmem>>, vector<1x16x16x4xf32>
    %17 = vector.shape_cast %16 : vector<1x16x16x4xf32> to vector<16x16x4xf32>
    %18 = vector.shape_cast %17 : vector<16x16x4xf32> to vector<256x4xf32>
    %c0_22 = arith.constant 0 : index
    %c16 = arith.constant 16 : index
    %19 = vector.load %arg9[%c0_22, %c16] : memref<256x36xf32, #tpu.memory_space<vmem>>, vector<256x4xf32>
    tpu.vector_store %arg9[%c0_22, %c16], %18 {strides = array<i32>} : memref<256x36xf32, #tpu.memory_space<vmem>>, vector<256x4xf32>,
    %c0_23 = arith.constant 0 : index
    %c1_24 = arith.constant 1 : index
    %c2_25 = arith.constant 2 : index
    %c0_26 = arith.constant 0 : index
    %20 = vector.load %arg1[%c0_23, %c1_24, %c2_25, %c0_26] : memref<1x18x18x4xf32, #tpu.memory_space<vmem>>, vector<1x16x16x4xf32>
    %21 = vector.shape_cast %20 : vector<1x16x16x4xf32> to vector<16x16x4xf32>
    %22 = vector.shape_cast %21 : vector<16x16x4xf32> to vector<256x4xf32>
    %c0_27 = arith.constant 0 : index
    %c20 = arith.constant 20 : index
    %23 = vector.load %arg9[%c0_27, %c20] : memref<256x36xf32, #tpu.memory_space<vmem>>, vector<256x4xf32>
    tpu.vector_store %arg9[%c0_27, %c20], %22 {strides = array<i32>} : memref<256x36xf32, #tpu.memory_space<vmem>>, vector<256x4xf32>,
    %c0_28 = arith.constant 0 : index
    %c2_29 = arith.constant 2 : index
    %c0_30 = arith.constant 0 : index
    %c0_31 = arith.constant 0 : index
    %24 = vector.load %arg1[%c0_28, %c2_29, %c0_30, %c0_31] : memref<1x18x18x4xf32, #tpu.memory_space<vmem>>, vector<1x16x16x4xf32>
    %25 = vector.shape_cast %24 : vector<1x16x16x4xf32> to vector<16x16x4xf32>
    %26 = vector.shape_cast %25 : vector<16x16x4xf32> to vector<256x4xf32>
    %c0_32 = arith.constant 0 : index
    %c24 = arith.constant 24 : index
    %27 = vector.load %arg9[%c0_32, %c24] : memref<256x36xf32, #tpu.memory_space<vmem>>, vector<256x4xf32>
    tpu.vector_store %arg9[%c0_32, %c24], %26 {strides = array<i32>} : memref<256x36xf32, #tpu.memory_space<vmem>>, vector<256x4xf32>,
    %c0_33 = arith.constant 0 : index
    %c2_34 = arith.constant 2 : index
    %c1_35 = arith.constant 1 : index
    %c0_36 = arith.constant 0 : index
    %28 = vector.load %arg1[%c0_33, %c2_34, %c1_35, %c0_36] : memref<1x18x18x4xf32, #tpu.memory_space<vmem>>, vector<1x16x16x4xf32>
    %29 = vector.shape_cast %28 : vector<1x16x16x4xf32> to vector<16x16x4xf32>
    %30 = vector.shape_cast %29 : vector<16x16x4xf32> to vector<256x4xf32>
    %c0_37 = arith.constant 0 : index
    %c28 = arith.constant 28 : index
    %31 = vector.load %arg9[%c0_37, %c28] : memref<256x36xf32, #tpu.memory_space<vmem>>, vector<256x4xf32>
    tpu.vector_store %arg9[%c0_37, %c28], %30 {strides = array<i32>} : memref<256x36xf32, #tpu.memory_space<vmem>>, vector<256x4xf32>,
    %c0_38 = arith.constant 0 : index
    %c2_39 = arith.constant 2 : index
    %c2_40 = arith.constant 2 : index
    %c0_41 = arith.constant 0 : index
    %32 = vector.load %arg1[%c0_38, %c2_39, %c2_40, %c0_41] : memref<1x18x18x4xf32, #tpu.memory_space<vmem>>, vector<1x16x16x4xf32>
    %33 = vector.shape_cast %32 : vector<1x16x16x4xf32> to vector<16x16x4xf32>
    %34 = vector.shape_cast %33 : vector<16x16x4xf32> to vector<256x4xf32>
    %c0_42 = arith.constant 0 : index
    %c32 = arith.constant 32 : index
    %35 = vector.load %arg9[%c0_42, %c32] : memref<256x36xf32, #tpu.memory_space<vmem>>, vector<256x4xf32>
    tpu.vector_store %arg9[%c0_42, %c32], %34 {strides = array<i32>} : memref<256x36xf32, #tpu.memory_space<vmem>>, vector<256x4xf32>,
    %c0_43 = arith.constant 0 : index
    %c0_44 = arith.constant 0 : index
    %36 = vector.load %arg9[%c0_43, %c0_44] : memref<256x36xf32, #tpu.memory_space<vmem>>, vector<256x36xf32>
    %c0_45 = arith.constant 0 : index
    %c0_46 = arith.constant 0 : index
    %37 = vector.load %arg2[%c0_45, %c0_46] : memref<36x8xf32, #tpu.memory_space<vmem>>, vector<36x8xf32>
    %cst = arith.constant dense<0.000000e+00> : vector<256x8xf32>
    %38 = tpu.matmul %36, %37, %cst {dimension_numbers = #tpu.dot_dimension_numbers<[1], [0], [0], [1], [0, 0, 1, 1], [], []>} : vector<256x36xf32>, vector<36x8xf32>, vector<256x8xf32> -> vector<256x8xf32>
    %c0_47 = arith.constant 0 : index
    %c0_48 = arith.constant 0 : index
    %39 = vector.load %arg3[%c0_47, %c0_48] : memref<1x8xf32, #tpu.memory_space<vmem>>, vector<1x8xf32>
    %40 = vector.broadcast %39 : vector<1x8xf32> to vector<256x8xf32>
    %41 = arith.addf %38, %40 : vector<256x8xf32>
    %cst_49 = arith.constant 0.000000e+00 : f32
    %42 = vector.broadcast %cst_49 : f32 to vector<18x18x8xf32>
    %c0_50 = arith.constant 0 : index
    %c0_51 = arith.constant 0 : index
    %c0_52 = arith.constant 0 : index
    %43 = vector.load %arg12[%c0_50, %c0_51, %c0_52] : memref<18x18x8xf32, #tpu.memory_space<vmem>>, vector<18x18x8xf32>
    tpu.vector_store %arg12[%c0_50, %c0_51, %c0_52], %42 {strides = array<i32>} : memref<18x18x8xf32, #tpu.memory_space<vmem>>, vector<18x18x8xf32>,
    %44 = vector.shape_cast %41 : vector<256x8xf32> to vector<16x16x8xf32>
    %c1_53 = arith.constant 1 : index
    %c1_54 = arith.constant 1 : index
    %c0_55 = arith.constant 0 : index
    %45 = vector.load %arg12[%c1_53, %c1_54, %c0_55] : memref<18x18x8xf32, #tpu.memory_space<vmem>>, vector<16x16x8xf32>
    tpu.vector_store %arg12[%c1_53, %c1_54, %c0_55], %44 {strides = array<i32>} : memref<18x18x8xf32, #tpu.memory_space<vmem>>, vector<16x16x8xf32>,
    %c0_56 = arith.constant 0 : index
    %c0_57 = arith.constant 0 : index
    %c0_58 = arith.constant 0 : index
    %46 = vector.load %arg12[%c0_56, %c0_57, %c0_58] : memref<18x18x8xf32, #tpu.memory_space<vmem>>, vector<16x16x8xf32>
    %47 = vector.shape_cast %46 : vector<16x16x8xf32> to vector<256x8xf32>
    %c0_59 = arith.constant 0 : index
    %c0_60 = arith.constant 0 : index
    %48 = vector.load %arg10[%c0_59, %c0_60] : memref<256x72xf32, #tpu.memory_space<vmem>>, vector<256x8xf32>
    tpu.vector_store %arg10[%c0_59, %c0_60], %47 {strides = array<i32>} : memref<256x72xf32, #tpu.memory_space<vmem>>, vector<256x8xf32>,
    %c0_61 = arith.constant 0 : index
    %c1_62 = arith.constant 1 : index
    %c0_63 = arith.constant 0 : index
    %49 = vector.load %arg12[%c0_61, %c1_62, %c0_63] : memref<18x18x8xf32, #tpu.memory_space<vmem>>, vector<16x16x8xf32>
    %50 = vector.shape_cast %49 : vector<16x16x8xf32> to vector<256x8xf32>
    %c0_64 = arith.constant 0 : index
    %c8_65 = arith.constant 8 : index
    %51 = vector.load %arg10[%c0_64, %c8_65] : memref<256x72xf32, #tpu.memory_space<vmem>>, vector<256x8xf32>
    tpu.vector_store %arg10[%c0_64, %c8_65], %50 {strides = array<i32>} : memref<256x72xf32, #tpu.memory_space<vmem>>, vector<256x8xf32>,
    %c0_66 = arith.constant 0 : index
    %c2_67 = arith.constant 2 : index
    %c0_68 = arith.constant 0 : index
    %52 = vector.load %arg12[%c0_66, %c2_67, %c0_68] : memref<18x18x8xf32, #tpu.memory_space<vmem>>, vector<16x16x8xf32>
    %53 = vector.shape_cast %52 : vector<16x16x8xf32> to vector<256x8xf32>
    %c0_69 = arith.constant 0 : index
    %c16_70 = arith.constant 16 : index
    %54 = vector.load %arg10[%c0_69, %c16_70] : memref<256x72xf32, #tpu.memory_space<vmem>>, vector<256x8xf32>
    tpu.vector_store %arg10[%c0_69, %c16_70], %53 {strides = array<i32>} : memref<256x72xf32, #tpu.memory_space<vmem>>, vector<256x8xf32>,
    %c1_71 = arith.constant 1 : index
    %c0_72 = arith.constant 0 : index
    %c0_73 = arith.constant 0 : index
    %55 = vector.load %arg12[%c1_71, %c0_72, %c0_73] : memref<18x18x8xf32, #tpu.memory_space<vmem>>, vector<16x16x8xf32>
    %56 = vector.shape_cast %55 : vector<16x16x8xf32> to vector<256x8xf32>
    %c0_74 = arith.constant 0 : index
    %c24_75 = arith.constant 24 : index
    %57 = vector.load %arg10[%c0_74, %c24_75] : memref<256x72xf32, #tpu.memory_space<vmem>>, vector<256x8xf32>
    tpu.vector_store %arg10[%c0_74, %c24_75], %56 {strides = array<i32>} : memref<256x72xf32, #tpu.memory_space<vmem>>, vector<256x8xf32>,
    %c1_76 = arith.constant 1 : index
    %c1_77 = arith.constant 1 : index
    %c0_78 = arith.constant 0 : index
    %58 = vector.load %arg12[%c1_76, %c1_77, %c0_78] : memref<18x18x8xf32, #tpu.memory_space<vmem>>, vector<16x16x8xf32>
    %59 = vector.shape_cast %58 : vector<16x16x8xf32> to vector<256x8xf32>
    %c0_79 = arith.constant 0 : index
    %c32_80 = arith.constant 32 : index
    %60 = vector.load %arg10[%c0_79, %c32_80] : memref<256x72xf32, #tpu.memory_space<vmem>>, vector<256x8xf32>
    tpu.vector_store %arg10[%c0_79, %c32_80], %59 {strides = array<i32>} : memref<256x72xf32, #tpu.memory_space<vmem>>, vector<256x8xf32>,
    %c1_81 = arith.constant 1 : index
    %c2_82 = arith.constant 2 : index
    %c0_83 = arith.constant 0 : index
    %61 = vector.load %arg12[%c1_81, %c2_82, %c0_83] : memref<18x18x8xf32, #tpu.memory_space<vmem>>, vector<16x16x8xf32>
    %62 = vector.shape_cast %61 : vector<16x16x8xf32> to vector<256x8xf32>
    %c0_84 = arith.constant 0 : index
    %c40 = arith.constant 40 : index
    %63 = vector.load %arg10[%c0_84, %c40] : memref<256x72xf32, #tpu.memory_space<vmem>>, vector<256x8xf32>
    tpu.vector_store %arg10[%c0_84, %c40], %62 {strides = array<i32>} : memref<256x72xf32, #tpu.memory_space<vmem>>, vector<256x8xf32>,
    %c2_85 = arith.constant 2 : index
    %c0_86 = arith.constant 0 : index
    %c0_87 = arith.constant 0 : index
    %64 = vector.load %arg12[%c2_85, %c0_86, %c0_87] : memref<18x18x8xf32, #tpu.memory_space<vmem>>, vector<16x16x8xf32>
    %65 = vector.shape_cast %64 : vector<16x16x8xf32> to vector<256x8xf32>
    %c0_88 = arith.constant 0 : index
    %c48 = arith.constant 48 : index
    %66 = vector.load %arg10[%c0_88, %c48] : memref<256x72xf32, #tpu.memory_space<vmem>>, vector<256x8xf32>
    tpu.vector_store %arg10[%c0_88, %c48], %65 {strides = array<i32>} : memref<256x72xf32, #tpu.memory_space<vmem>>, vector<256x8xf32>,
    %c2_89 = arith.constant 2 : index
    %c1_90 = arith.constant 1 : index
    %c0_91 = arith.constant 0 : index
    %67 = vector.load %arg12[%c2_89, %c1_90, %c0_91] : memref<18x18x8xf32, #tpu.memory_space<vmem>>, vector<16x16x8xf32>
    %68 = vector.shape_cast %67 : vector<16x16x8xf32> to vector<256x8xf32>
    %c0_92 = arith.constant 0 : index
    %c56 = arith.constant 56 : index
    %69 = vector.load %arg10[%c0_92, %c56] : memref<256x72xf32, #tpu.memory_space<vmem>>, vector<256x8xf32>
    tpu.vector_store %arg10[%c0_92, %c56], %68 {strides = array<i32>} : memref<256x72xf32, #tpu.memory_space<vmem>>, vector<256x8xf32>,
    %c2_93 = arith.constant 2 : index
    %c2_94 = arith.constant 2 : index
    %c0_95 = arith.constant 0 : index
    %70 = vector.load %arg12[%c2_93, %c2_94, %c0_95] : memref<18x18x8xf32, #tpu.memory_space<vmem>>, vector<16x16x8xf32>
    %71 = vector.shape_cast %70 : vector<16x16x8xf32> to vector<256x8xf32>
    %c0_96 = arith.constant 0 : index
    %c64 = arith.constant 64 : index
    %72 = vector.load %arg10[%c0_96, %c64] : memref<256x72xf32, #tpu.memory_space<vmem>>, vector<256x8xf32>
    tpu.vector_store %arg10[%c0_96, %c64], %71 {strides = array<i32>} : memref<256x72xf32, #tpu.memory_space<vmem>>, vector<256x8xf32>,
    %c0_97 = arith.constant 0 : index
    %c0_98 = arith.constant 0 : index
    %73 = vector.load %arg10[%c0_97, %c0_98] : memref<256x72xf32, #tpu.memory_space<vmem>>, vector<256x72xf32>
    %c0_99 = arith.constant 0 : index
    %c0_100 = arith.constant 0 : index
    %74 = vector.load %arg4[%c0_99, %c0_100] : memref<72x16xf32, #tpu.memory_space<vmem>>, vector<72x16xf32>
    %cst_101 = arith.constant dense<0.000000e+00> : vector<256x16xf32>
    %75 = tpu.matmul %73, %74, %cst_101 {dimension_numbers = #tpu.dot_dimension_numbers<[1], [0], [0], [1], [0, 0, 1, 1], [], []>} : vector<256x72xf32>, vector<72x16xf32>, vector<256x16xf32> -> vector<256x16xf32>
    %c0_102 = arith.constant 0 : index
    %c0_103 = arith.constant 0 : index
    %76 = vector.load %arg5[%c0_102, %c0_103] : memref<1x16xf32, #tpu.memory_space<vmem>>, vector<1x16xf32>
    %77 = vector.broadcast %76 : vector<1x16xf32> to vector<256x16xf32>
    %78 = arith.addf %75, %77 : vector<256x16xf32>
    %79 = vector.extract_strided_slice %78 {offsets = [0, 0], sizes = [256, 8], strides = [1, 1]} : vector<256x16xf32> to vector<256x8xf32>
    %80 = vector.extract_strided_slice %78 {offsets = [0, 8], sizes = [256, 8], strides = [1, 1]} : vector<256x16xf32> to vector<256x8xf32>
    %81 = arith.negf %80 : vector<256x8xf32>
    %82 = math.exp %81 : vector<256x8xf32>
    %cst_104 = arith.constant 1.000000e+00 : f32
    %83 = vector.broadcast %cst_104 : f32 to vector<256x8xf32>
    %84 = arith.addf %83, %82 : vector<256x8xf32>
    %85 = arith.divf %83, %84 : vector<256x8xf32>
    %86 = arith.mulf %79, %85 : vector<256x8xf32>
    %cst_105 = arith.constant 0.000000e+00 : f32
    %87 = vector.broadcast %cst_105 : f32 to vector<18x18x8xf32>
    %c0_106 = arith.constant 0 : index
    %c0_107 = arith.constant 0 : index
    %c0_108 = arith.constant 0 : index
    %88 = vector.load %arg13[%c0_106, %c0_107, %c0_108] : memref<18x18x8xf32, #tpu.memory_space<vmem>>, vector<18x18x8xf32>
    tpu.vector_store %arg13[%c0_106, %c0_107, %c0_108], %87 {strides = array<i32>} : memref<18x18x8xf32, #tpu.memory_space<vmem>>, vector<18x18x8xf32>,
    %89 = vector.shape_cast %86 : vector<256x8xf32> to vector<16x16x8xf32>
    %c1_109 = arith.constant 1 : index
    %c1_110 = arith.constant 1 : index
    %c0_111 = arith.constant 0 : index
    %90 = vector.load %arg13[%c1_109, %c1_110, %c0_111] : memref<18x18x8xf32, #tpu.memory_space<vmem>>, vector<16x16x8xf32>
    tpu.vector_store %arg13[%c1_109, %c1_110, %c0_111], %89 {strides = array<i32>} : memref<18x18x8xf32, #tpu.memory_space<vmem>>, vector<16x16x8xf32>,
    %c0_112 = arith.constant 0 : index
    %c0_113 = arith.constant 0 : index
    %c0_114 = arith.constant 0 : index
    %91 = vector.load %arg13[%c0_112, %c0_113, %c0_114] : memref<18x18x8xf32, #tpu.memory_space<vmem>>, vector<16x16x8xf32>
    %92 = vector.shape_cast %91 : vector<16x16x8xf32> to vector<256x8xf32>
    %c0_115 = arith.constant 0 : index
    %c0_116 = arith.constant 0 : index
    %93 = vector.load %arg11[%c0_115, %c0_116] : memref<256x72xf32, #tpu.memory_space<vmem>>, vector<256x8xf32>
    tpu.vector_store %arg11[%c0_115, %c0_116], %92 {strides = array<i32>} : memref<256x72xf32, #tpu.memory_space<vmem>>, vector<256x8xf32>,
    %c0_117 = arith.constant 0 : index
    %c1_118 = arith.constant 1 : index
    %c0_119 = arith.constant 0 : index
    %94 = vector.load %arg13[%c0_117, %c1_118, %c0_119] : memref<18x18x8xf32, #tpu.memory_space<vmem>>, vector<16x16x8xf32>
    %95 = vector.shape_cast %94 : vector<16x16x8xf32> to vector<256x8xf32>
    %c0_120 = arith.constant 0 : index
    %c8_121 = arith.constant 8 : index
    %96 = vector.load %arg11[%c0_120, %c8_121] : memref<256x72xf32, #tpu.memory_space<vmem>>, vector<256x8xf32>
    tpu.vector_store %arg11[%c0_120, %c8_121], %95 {strides = array<i32>} : memref<256x72xf32, #tpu.memory_space<vmem>>, vector<256x8xf32>,
    %c0_122 = arith.constant 0 : index
    %c2_123 = arith.constant 2 : index
    %c0_124 = arith.constant 0 : index
    %97 = vector.load %arg13[%c0_122, %c2_123, %c0_124] : memref<18x18x8xf32, #tpu.memory_space<vmem>>, vector<16x16x8xf32>
    %98 = vector.shape_cast %97 : vector<16x16x8xf32> to vector<256x8xf32>
    %c0_125 = arith.constant 0 : index
    %c16_126 = arith.constant 16 : index
    %99 = vector.load %arg11[%c0_125, %c16_126] : memref<256x72xf32, #tpu.memory_space<vmem>>, vector<256x8xf32>
    tpu.vector_store %arg11[%c0_125, %c16_126], %98 {strides = array<i32>} : memref<256x72xf32, #tpu.memory_space<vmem>>, vector<256x8xf32>,
    %c1_127 = arith.constant 1 : index
    %c0_128 = arith.constant 0 : index
    %c0_129 = arith.constant 0 : index
    %100 = vector.load %arg13[%c1_127, %c0_128, %c0_129] : memref<18x18x8xf32, #tpu.memory_space<vmem>>, vector<16x16x8xf32>
    %101 = vector.shape_cast %100 : vector<16x16x8xf32> to vector<256x8xf32>
    %c0_130 = arith.constant 0 : index
    %c24_131 = arith.constant 24 : index
    %102 = vector.load %arg11[%c0_130, %c24_131] : memref<256x72xf32, #tpu.memory_space<vmem>>, vector<256x8xf32>
    tpu.vector_store %arg11[%c0_130, %c24_131], %101 {strides = array<i32>} : memref<256x72xf32, #tpu.memory_space<vmem>>, vector<256x8xf32>,
    %c1_132 = arith.constant 1 : index
    %c1_133 = arith.constant 1 : index
    %c0_134 = arith.constant 0 : index
    %103 = vector.load %arg13[%c1_132, %c1_133, %c0_134] : memref<18x18x8xf32, #tpu.memory_space<vmem>>, vector<16x16x8xf32>
    %104 = vector.shape_cast %103 : vector<16x16x8xf32> to vector<256x8xf32>
    %c0_135 = arith.constant 0 : index
    %c32_136 = arith.constant 32 : index
    %105 = vector.load %arg11[%c0_135, %c32_136] : memref<256x72xf32, #tpu.memory_space<vmem>>, vector<256x8xf32>
    tpu.vector_store %arg11[%c0_135, %c32_136], %104 {strides = array<i32>} : memref<256x72xf32, #tpu.memory_space<vmem>>, vector<256x8xf32>,
    %c1_137 = arith.constant 1 : index
    %c2_138 = arith.constant 2 : index
    %c0_139 = arith.constant 0 : index
    %106 = vector.load %arg13[%c1_137, %c2_138, %c0_139] : memref<18x18x8xf32, #tpu.memory_space<vmem>>, vector<16x16x8xf32>
    %107 = vector.shape_cast %106 : vector<16x16x8xf32> to vector<256x8xf32>
    %c0_140 = arith.constant 0 : index
    %c40_141 = arith.constant 40 : index
    %108 = vector.load %arg11[%c0_140, %c40_141] : memref<256x72xf32, #tpu.memory_space<vmem>>, vector<256x8xf32>
    tpu.vector_store %arg11[%c0_140, %c40_141], %107 {strides = array<i32>} : memref<256x72xf32, #tpu.memory_space<vmem>>, vector<256x8xf32>,
    %c2_142 = arith.constant 2 : index
    %c0_143 = arith.constant 0 : index
    %c0_144 = arith.constant 0 : index
    %109 = vector.load %arg13[%c2_142, %c0_143, %c0_144] : memref<18x18x8xf32, #tpu.memory_space<vmem>>, vector<16x16x8xf32>
    %110 = vector.shape_cast %109 : vector<16x16x8xf32> to vector<256x8xf32>
    %c0_145 = arith.constant 0 : index
    %c48_146 = arith.constant 48 : index
    %111 = vector.load %arg11[%c0_145, %c48_146] : memref<256x72xf32, #tpu.memory_space<vmem>>, vector<256x8xf32>
    tpu.vector_store %arg11[%c0_145, %c48_146], %110 {strides = array<i32>} : memref<256x72xf32, #tpu.memory_space<vmem>>, vector<256x8xf32>,
    %c2_147 = arith.constant 2 : index
    %c1_148 = arith.constant 1 : index
    %c0_149 = arith.constant 0 : index
    %112 = vector.load %arg13[%c2_147, %c1_148, %c0_149] : memref<18x18x8xf32, #tpu.memory_space<vmem>>, vector<16x16x8xf32>
    %113 = vector.shape_cast %112 : vector<16x16x8xf32> to vector<256x8xf32>
    %c0_150 = arith.constant 0 : index
    %c56_151 = arith.constant 56 : index
    %114 = vector.load %arg11[%c0_150, %c56_151] : memref<256x72xf32, #tpu.memory_space<vmem>>, vector<256x8xf32>
    tpu.vector_store %arg11[%c0_150, %c56_151], %113 {strides = array<i32>} : memref<256x72xf32, #tpu.memory_space<vmem>>, vector<256x8xf32>,
    %c2_152 = arith.constant 2 : index
    %c2_153 = arith.constant 2 : index
    %c0_154 = arith.constant 0 : index
    %115 = vector.load %arg13[%c2_152, %c2_153, %c0_154] : memref<18x18x8xf32, #tpu.memory_space<vmem>>, vector<16x16x8xf32>
    %116 = vector.shape_cast %115 : vector<16x16x8xf32> to vector<256x8xf32>
    %c0_155 = arith.constant 0 : index
    %c64_156 = arith.constant 64 : index
    %117 = vector.load %arg11[%c0_155, %c64_156] : memref<256x72xf32, #tpu.memory_space<vmem>>, vector<256x8xf32>
    tpu.vector_store %arg11[%c0_155, %c64_156], %116 {strides = array<i32>} : memref<256x72xf32, #tpu.memory_space<vmem>>, vector<256x8xf32>,
    %c0_157 = arith.constant 0 : index
    %c0_158 = arith.constant 0 : index
    %118 = vector.load %arg11[%c0_157, %c0_158] : memref<256x72xf32, #tpu.memory_space<vmem>>, vector<256x72xf32>
    %c0_159 = arith.constant 0 : index
    %c0_160 = arith.constant 0 : index
    %119 = vector.load %arg6[%c0_159, %c0_160] : memref<72x128xf32, #tpu.memory_space<vmem>>, vector<72x128xf32>
    %cst_161 = arith.constant dense<0.000000e+00> : vector<256x128xf32>
    %120 = tpu.matmul %118, %119, %cst_161 {dimension_numbers = #tpu.dot_dimension_numbers<[1], [0], [0], [1], [0, 0, 1, 1], [], []>} : vector<256x72xf32>, vector<72x128xf32>, vector<256x128xf32> -> vector<256x128xf32>
    %c0_162 = arith.constant 0 : index
    %c0_163 = arith.constant 0 : index
    %121 = vector.load %arg7[%c0_162, %c0_163] : memref<1x128xf32, #tpu.memory_space<vmem>>, vector<1x128xf32>
    %122 = vector.broadcast %121 : vector<1x128xf32> to vector<256x128xf32>
    %123 = arith.addf %120, %122 : vector<256x128xf32>
    %124 = tpu.transpose %123, [1, 0] : vector<256x128xf32> -> vector<128x256xf32>
    %125 = vector.extract_strided_slice %124 {offsets = [0, 0], sizes = [4, 256], strides = [1, 1]} : vector<128x256xf32> to vector<4x256xf32>
    %126 = vector.extract_strided_slice %124 {offsets = [8, 0], sizes = [4, 256], strides = [1, 1]} : vector<128x256xf32> to vector<4x256xf32>
    %127 = arith.negf %126 : vector<4x256xf32>
    %128 = math.exp %127 : vector<4x256xf32>
    %cst_164 = arith.constant 1.000000e+00 : f32
    %129 = vector.broadcast %cst_164 : f32 to vector<4x256xf32>
    %130 = arith.addf %129, %128 : vector<4x256xf32>
    %131 = arith.divf %129, %130 : vector<4x256xf32>
    %132 = arith.mulf %125, %131 : vector<4x256xf32>
    %133 = vector.shape_cast %132 : vector<4x256xf32> to vector<1x4x256xf32>
    %c0_165 = arith.constant 0 : index
    %c0_166 = arith.constant 0 : index
    %c0_167 = arith.constant 0 : index
    %134 = vector.load %arg8[%c0_165, %c0_166, %c0_167] : memref<1x4x256xf32, #tpu.memory_space<vmem>>, vector<1x4x256xf32>
    tpu.vector_store %arg8[%c0_165, %c0_166, %c0_167], %133 {strides = array<i32>} : memref<1x4x256xf32, #tpu.memory_space<vmem>>, vector<1x4x256xf32>,
    return
  }
  func.func @transform_0(%arg0: i32) -> (i32, i32, i32, i32) {
    %c0_i32 = arith.constant 0 : i32
    %c0_i32_0 = arith.constant 0 : i32
    %c0_i32_1 = arith.constant 0 : i32
    %c0_i32_2 = arith.constant 0 : i32
    return %arg0, %c0_i32, %c0_i32_0, %c0_i32_1 : i32, i32, i32, i32
  }
  func.func @transform_1(%arg0: i32) -> (i32, i32) {
    %c0_i32 = arith.constant 0 : i32
    %c0_i32_0 = arith.constant 0 : i32
    %c0_i32_1 = arith.constant 0 : i32
    return %c0_i32, %c0_i32_0 : i32, i32
  }
  func.func @transform_2(%arg0: i32) -> (i32, i32) {
    %c0_i32 = arith.constant 0 : i32
    %c0_i32_0 = arith.constant 0 : i32
    %c0_i32_1 = arith.constant 0 : i32
    return %c0_i32, %c0_i32_0 : i32, i32
  }
  func.func @transform_3(%arg0: i32) -> (i32, i32) {
    %c0_i32 = arith.constant 0 : i32
    %c0_i32_0 = arith.constant 0 : i32
    %c0_i32_1 = arith.constant 0 : i32
    return %c0_i32, %c0_i32_0 : i32, i32
  }
  func.func @transform_4(%arg0: i32) -> (i32, i32) {
    %c0_i32 = arith.constant 0 : i32
    %c0_i32_0 = arith.constant 0 : i32
    %c0_i32_1 = arith.constant 0 : i32
    return %c0_i32, %c0_i32_0 : i32, i32
  }
  func.func @transform_5(%arg0: i32) -> (i32, i32) {
    %c0_i32 = arith.constant 0 : i32
    %c0_i32_0 = arith.constant 0 : i32
    %c0_i32_1 = arith.constant 0 : i32
    return %c0_i32, %c0_i32_0 : i32, i32
  }
  func.func @transform_6(%arg0: i32) -> (i32, i32) {
    %c0_i32 = arith.constant 0 : i32
    %c0_i32_0 = arith.constant 0 : i32
    %c0_i32_1 = arith.constant 0 : i32
    return %c0_i32, %c0_i32_0 : i32, i32
  }
  func.func @transform_7(%arg0: i32) -> (i32, i32, i32) {
    %c0_i32 = arith.constant 0 : i32
    %c0_i32_0 = arith.constant 0 : i32
    %c0_i32_1 = arith.constant 0 : i32
    return %arg0, %c0_i32, %c0_i32_0 : i32, i32, i32
  }
}

</mosaic_0001>

<bundles_post_ra>
// kernel: tpu_custom_call.1
= control target key start
LH: loop header
LB: loop body
LE: loop exit
PB: predicated region body
PF: predicated region fallthrough
CT: control target
= control target key end

     0   :  { %12 = vsyncpa [#allocation8], 0  ;;  %s11574_s0 = inlined_call_operand.vmem [shape: f32[2,18,18,4], index: 0, kind: input, shape index: {}]   ;;  %s11575_s1 = inlined_call_operand.vmem [shape: f32[36,8], index: 1, kind: input, shape index: {}]   ;;  %s11576_s2 = inlined_call_operand.vmem [shape: f32[1,8], index: 2, kind: input, shape index: {}]   ;;  %s11577_s3 = inlined_call_operand.vmem [shape: f32[72,16], index: 3, kind: input, shape index: {}]   ;;  %s11578_s4 = inlined_call_operand.vmem [shape: f32[1,16], index: 4, kind: input, shape index: {}]   ;;  %s11579_s5 = inlined_call_operand.vmem [shape: f32[72,128], index: 5, kind: input, shape index: {}]   ;;  %s11580_s6 = inlined_call_operand.vmem [shape: f32[1,128], index: 6, kind: input, shape index: {}]   ;;  %s11581_s7 = inlined_call_operand.hbm [shape: f32[2,4,256], index: 7, kind: output, shape index: {}]  }
   0x1   :  { %14 = vsyncpa [#allocation8 + $0x1], 0  ;;  %s7894_s24 = smov 0   ;;  %s7896_s25 = smov 0  }
   0x2   :  { %s7898_s26 = smov 0   ;;  %s7900_s27 = smov 0  }
   0x3 LB: > { %s7915_s28 = sadd.s32 4294967295, %s7837_s27   ;;  %s6892_s29 = sadd.s32 4294967294, %s7837_s27   ;;  %s7837_s27 = sphi %s7900_s27, %s11767_s27   ;;  %s7833_s26 = sphi %s7898_s26, %s11766_s26   ;;  %s7829_s25 = sphi %s7896_s25, %s11765_s25   ;;  %s7825_s24 = sphi %s7894_s24, %s11764_s24  }
   0x4   : > { %s7919_s30 = sadd.s32 1, %s7837_s27   ;;  %s179_s8 = sadd.s32 1, %s7833_s26 }
   0x5   : > { %s176_s9 = ssub.s32 %s7837_s27, %s7919_s30  ;;  %p189_p0 = scmp.ne.s32.totalorder %s7833_s26, %s7829_s25 }
   0x6   : > { %p177_p1 = scmp.eq.s32.totalorder %s176_s9, 0  ;;  %p190_p2 = scmp.eq.s32.totalorder %s7915_s28, 1 }
   0x7   : > { %p195_p3 = scmp.ne.s32.totalorder %s7829_s25, %s7825_s24  ;;  %p196_p4 = scmp.eq.s32.totalorder %s6892_s29, 1 }
   0x8   : > { %s7930_s10 = scalar_select %p177_p1, %s7833_s26, %s179_s8  }
   0x9   : > { %p7932_p5 = por %p190_p2, %p189_p0  ;;  %p7936_p6 = por %p196_p4, %p195_p3 }
   0xa   : > { %p6895_p7 = scmp.ge.s32.totalorder %s7837_s27, 1  ;;  %p240_p8 = scmp.lt.s32.totalorder %s7837_s27, 3 }
   0xc   : > { %p241_p9 = pnand %p6895_p7, %p240_p8 }
   0xe   : > { %244 = sbr.rel (%p241_p9) target bundleno = 2715 (0xa9b), region = 48 }
  0x15   : > { %p272_p10 = scmp.lt.s32.totalorder %s7915_s28, 1  ;;  %s7839_s18 = smov 4   ;;  %vm309_vm0 = vcmask 31744   ;;  %vm502_vm1 = vcmask 64544   ;;  %vm695_vm2 = vcmask 97344   ;;  %vm889_vm3 = vcmask 130144  }
  0x16   : > { %s7840_s19 = smov 8   ;;  %s7841_s20 = smov 12   ;;  %vm1082_vm4 = vcmask 162944   ;;  %vm1275_vm5 = vcmask 195744   ;;  %vm1469_vm6 = vcmask 228544   ;;  %vm2029_vm7 = vcmask 1043456  }
  0x17   : > { %s273_s13 = scalar_select %p272_p10, %s7915_s28, 1  ;;  %vm1662_vm8 = vcmask 261344   ;;  %vm1855_vm9 = vcmask 294144   ;;  %vm1932_vm10 = vcmask 293888   ;;  %vm2258_vm11 = vcmask 64512  }
  0x18   : > { %s7842_s21 = smov 16   ;;  %s7843_s22 = smov 20   ;;  %vm2261_vm12 = vcmask 58368   ;;  %vm2571_vm13 = vcmask 130112   ;;  %vm2764_vm14 = vcmask 195712   ;;  %vm2957_vm15 = vcmask 261312  }
  0x19   : > { %s7585_s14 = smul.u32 432, %s273_s13  ;;  %s7844_s23 = smov 24  }
  0x1a   : > { %s7845_s29 = smov 28   ;;  %s7846_s9 = smov 32  }
  0x1b   : > { %s7947_s17 = scalar_lea.vmem %s11574_s0, %s7585_s14  ;;  %s7848_s13 = smov 40  }
  0x1c   : > { %v342_v0 = vld [vmem:[%s7947_s17 + $0x1] sm:$0xff]  ;;  %v7951_v1 = vld [vmem:[%s7947_s17 + $0x19] sm:$0xff]  ;;  %v343_v2 = vld [vmem:[%s7947_s17 + $0x9] sm:$0xff]  ;;  %s7849_s14 = smov 48   ;;  %s7850_s15 = smov 56  }
  0x1d   : > { %406 = vrot.lane.b32.xlu0 %v342_v0, %s7839_s18  ;;  %410 = vrot.lane.b32.xlu1 %v7951_v1, %s7839_s18  ;;  %v7958_v3 = vld [vmem:[%s7947_s17 + $0x21] sm:$0xff]  ;;  %v7964_v4 = vld [vmem:[%s7947_s17 + $0x31] sm:$0xff] }
  0x1e   : > { %v7967_v5 = vld [vmem:[%s7947_s17 + $0x39] sm:$0xff]  ;;  %v7974_v6 = vld [vmem:[%s7947_s17 + $0x49] sm:$0xff]  ;;  %v7977_v7 = vld [vmem:[%s7947_s17 + $0x51] sm:$0xff] }
  0x1f   : > { %v7984_v8 = vld [vmem:[%s7947_s17 + $0x61] sm:$0xff]  ;;  %v7987_v9 = vld [vmem:[%s7947_s17 + $0x69] sm:$0xff]  ;;  %v7994_v10 = vld [vmem:[%s7947_s17 + $0x79] sm:$0xff] }
  0x20   : > { %v7997_v11 = vld [vmem:[%s7947_s17 + $0x81] sm:$0xff]  ;;  %v8005_v13 = vld [vmem:[%s7947_s17 + $0x18] sm:$0xff]  ;;  %v8022_v18 = vld [vmem:[%s7947_s17 + $0xa9] sm:$0xff] }
  0x21   : > { %408 = vrot.lane.b32.xlu0 %v343_v2, %s7839_s18  ;;  %412 = vrot.lane.b32.xlu1 %v7958_v3, %s7839_s18  ;;  %v277_v12 = vld [vmem:[%s7947_s17] sm:$0xff]  ;;  %v8008_v14 = vld [vmem:[%s7947_s17 + $0x91] sm:$0xff]  ;;  %312 = vst.msk [vmem:[#allocation2 + $0x10] sm:$0xff] %vm309_vm0, %v8005_v13 }
  0x22   : > { %v8011_v15 = vld [vmem:[%s7947_s17 + $0x99] sm:$0xff]  ;;  %310 = vst.msk [vmem:[#allocation2] sm:$0xff] %vm309_vm0, %v277_v12  ;;  %v278_v16 = vld [vmem:[%s7947_s17 + $0x8] sm:$0xff]  ;;  %v8027_v19 = vld [vmem:[%s7947_s17 + $0x30] sm:$0xff] }
  0x23   : > { %311 = vst.msk [vmem:[#allocation2 + $0x8] sm:$0xff] %vm309_vm0, %v278_v16  ;;  %v8019_v17 = vld [vmem:[%s7947_s17 + $0x20] sm:$0xff]  ;;  %v8030_v20 = vld [vmem:[%s7947_s17 + $0x38] sm:$0xff]  ;;  %314 = vst.msk [vmem:[#allocation2 + $0x20] sm:$0xff] %vm309_vm0, %v8027_v19 }
  0x24   : > { %313 = vst.msk [vmem:[#allocation2 + $0x18] sm:$0xff] %vm309_vm0, %v8019_v17  ;;  %v8037_v21 = vld [vmem:[%s7947_s17 + $0xb1] sm:$0xff]  ;;  %315 = vst.msk [vmem:[#allocation2 + $0x28] sm:$0xff] %vm309_vm0, %v8030_v20  ;;  %v8044_v22 = vld [vmem:[%s7947_s17 + $0x48] sm:$0xff] }
  0x25   : > { %414 = vrot.lane.b32.xlu0 %v7964_v4, %s7839_s18  ;;  %416 = vrot.lane.b32.xlu1 %v7967_v5, %s7839_s18  ;;  %316 = vst.msk [vmem:[#allocation2 + $0x30] sm:$0xff] %vm309_vm0, %v8044_v22  ;;  %v8049_v23 = vld [vmem:[%s7947_s17 + $0x50] sm:$0xff]  ;;  %v8052_v24 = vld [vmem:[%s7947_s17 + $0x60] sm:$0xff] }
  0x26   : > { %v8055_v25 = vld [vmem:[%s7947_s17 + $0x68] sm:$0xff]  ;;  %317 = vst.msk [vmem:[#allocation2 + $0x38] sm:$0xff] %vm309_vm0, %v8049_v23  ;;  %318 = vst.msk [vmem:[#allocation2 + $0x40] sm:$0xff] %vm309_vm0, %v8052_v24  ;;  %v8064_v26 = vld [vmem:[%s7947_s17 + $0x78] sm:$0xff] }
  0x27   : > { %319 = vst.msk [vmem:[#allocation2 + $0x48] sm:$0xff] %vm309_vm0, %v8055_v25  ;;  %v8067_v27 = vld [vmem:[%s7947_s17 + $0x80] sm:$0xff]  ;;  %v8070_v28 = vld [vmem:[%s7947_s17 + $0x90] sm:$0xff]  ;;  %320 = vst.msk [vmem:[#allocation2 + $0x50] sm:$0xff] %vm309_vm0, %v8064_v26 }
  0x28   : > { %v8073_v29 = vld [vmem:[%s7947_s17 + $0xc1] sm:$0xff]  ;;  %v8076_v30 = vld [vmem:[%s7947_s17 + $0xc9] sm:$0xff]  ;;  %321 = vst.msk [vmem:[#allocation2 + $0x58] sm:$0xff] %vm309_vm0, %v8067_v27  ;;  %322 = vst.msk [vmem:[#allocation2 + $0x60] sm:$0xff] %vm309_vm0, %v8070_v28 }
  0x29   : > { %418 = vrot.lane.b32.xlu0 %v7974_v6, %s7839_s18  ;;  %420 = vrot.lane.b32.xlu1 %v7977_v7, %s7839_s18  ;;  %v8085_v31 = vld [vmem:[%s7947_s17 + $0x98] sm:$0xff]  ;;  %v8088_v32 = vld [vmem:[%s7947_s17 + $0xa8] sm:$0xff] }
  0x2a   : > { %v8091_v33 = vld [vmem:[%s7947_s17 + $0xb0] sm:$0xff]  ;;  %323 = vst.msk [vmem:[#allocation2 + $0x68] sm:$0xff] %vm309_vm0, %v8085_v31  ;;  %324 = vst.msk [vmem:[#allocation2 + $0x70] sm:$0xff] %vm309_vm0, %v8088_v32  ;;  %v8104_v34 = vld [vmem:[%s7947_s17 + $0xc0] sm:$0xff] }
  0x2b   : > { %325 = vst.msk [vmem:[#allocation2 + $0x78] sm:$0xff] %vm309_vm0, %v8091_v33  ;;  %v8107_v35 = vld [vmem:[%s7947_s17 + $0xc8] sm:$0xff]  ;;  %326 = vst.msk [vmem:[#allocation2 + $0x80] sm:$0xff] %vm309_vm0, %v8104_v34  ;;  %v8114_v36 = vld [vmem:[%s7947_s17 + $0xd8] sm:$0xff] }
  0x2c   : > { %327 = vst.msk [vmem:[#allocation2 + $0x88] sm:$0xff] %vm309_vm0, %v8107_v35  ;;  %v8117_v37 = vld [vmem:[%s7947_s17 + $0xe0] sm:$0xff]  ;;  %v8120_v38 = vld [vmem:[%s7947_s17 + $0xf0] sm:$0xff]  ;;  %328 = vst.msk [vmem:[#allocation2 + $0x90] sm:$0xff] %vm309_vm0, %v8114_v36 }
  0x2d   : > { %422 = vrot.lane.b32.xlu0 %v7984_v8, %s7839_s18  ;;  %424 = vrot.lane.b32.xlu1 %v7987_v9, %s7839_s18  ;;  %329 = vst.msk [vmem:[#allocation2 + $0x98] sm:$0xff] %vm309_vm0, %v8117_v37  ;;  %330 = vst.msk [vmem:[#allocation2 + $0xa0] sm:$0xff] %vm309_vm0, %v8120_v38  ;;  %v8129_v39 = vld [vmem:[%s7947_s17 + $0xf8] sm:$0xff]  ;;  %v8132_v40 = vld [vmem:[%s7947_s17 + $0x108] sm:$0xff] }
  0x2e   : > { %v8135_v41 = vld [vmem:[%s7947_s17 + $0x110] sm:$0xff]  ;;  %331 = vst.msk [vmem:[#allocation2 + $0xa8] sm:$0xff] %vm309_vm0, %v8129_v39  ;;  %332 = vst.msk [vmem:[#allocation2 + $0xb0] sm:$0xff] %vm309_vm0, %v8132_v40  ;;  %v8148_v42 = vld [vmem:[%s7947_s17 + $0xd9] sm:$0xff] }
  0x2f   : > { %333 = vst.msk [vmem:[#allocation2 + $0xb8] sm:$0xff] %vm309_vm0, %v8135_v41  ;;  %v8151_v43 = vld [vmem:[%s7947_s17 + $0xe1] sm:$0xff]  ;;  %v8168_v46 = vld [vmem:[%s7947_s17 + $0xf1] sm:$0xff]  ;;  %v8171_v47 = vld [vmem:[%s7947_s17 + $0xf9] sm:$0xff] }
  0x30   : > { %v8154_v44 = vld [vmem:[%s7947_s17 + $0x120] sm:$0xff]  ;;  %v8159_v45 = vld [vmem:[%s7947_s17 + $0x128] sm:$0xff]  ;;  %v8174_v48 = vld [vmem:[%s7947_s17 + $0x138] sm:$0xff] }
  0x31   : > { %426 = vrot.lane.b32.xlu0 %v7994_v10, %s7839_s18  ;;  %428 = vrot.lane.b32.xlu1 %v7997_v11, %s7839_s18  ;;  %334 = vst.msk [vmem:[#allocation2 + $0xc0] sm:$0xff] %vm309_vm0, %v8154_v44  ;;  %335 = vst.msk [vmem:[#allocation2 + $0xc8] sm:$0xff] %vm309_vm0, %v8159_v45  ;;  %v8179_v49 = vld [vmem:[%s7947_s17 + $0x140] sm:$0xff]  ;;  %v8188_v50 = vld [vmem:[%s7947_s17 + $0x109] sm:$0xff] }
  0x32   : > { %336 = vst.msk [vmem:[#allocation2 + $0xd0] sm:$0xff] %vm309_vm0, %v8174_v48  ;;  %337 = vst.msk [vmem:[#allocation2 + $0xd8] sm:$0xff] %vm309_vm0, %v8179_v49  ;;  %v8191_v51 = vld [vmem:[%s7947_s17 + $0x111] sm:$0xff]  ;;  %v8208_v54 = vld [vmem:[%s7947_s17 + $0x121] sm:$0xff] }
  0x33   : > { %v8194_v52 = vld [vmem:[%s7947_s17 + $0x150] sm:$0xff]  ;;  %v8199_v53 = vld [vmem:[%s7947_s17 + $0x158] sm:$0xff]  ;;  %v8214_v56 = vld [vmem:[%s7947_s17 + $0x168] sm:$0xff] }
  0x34   : > { %338 = vst.msk [vmem:[#allocation2 + $0xe0] sm:$0xff] %vm309_vm0, %v8194_v52  ;;  %339 = vst.msk [vmem:[#allocation2 + $0xe8] sm:$0xff] %vm309_vm0, %v8199_v53  ;;  %v8211_v55 = vld [vmem:[%s7947_s17 + $0x129] sm:$0xff]  ;;  %v8228_v58 = vld [vmem:[%s7947_s17 + $0x139] sm:$0xff] }
  0x35   : > { %430 = vrot.lane.b32.xlu0 %v8008_v14, %s7839_s18  ;;  %432 = vrot.lane.b32.xlu1 %v8011_v15, %s7839_s18  ;;  %340 = vst.msk [vmem:[#allocation2 + $0xf0] sm:$0xff] %vm309_vm0, %v8214_v56  ;;  %v8219_v57 = vld [vmem:[%s7947_s17 + $0x170] sm:$0xff]  ;;  %v8231_v59 = vld [vmem:[%s7947_s17 + $0x141] sm:$0xff] }
  0x36   : > { %341 = vst.msk [vmem:[#allocation2 + $0xf8] sm:$0xff] %vm309_vm0, %v8219_v57  ;;  %v8238_v60 = vld [vmem:[%s7947_s17 + $0x151] sm:$0xff]  ;;  %v8241_v61 = vld [vmem:[%s7947_s17 + $0x159] sm:$0xff]  ;;  %v8248_v62 = vld [vmem:[%s7947_s17 + $0x169] sm:$0xff]  ;;  %vm3150_vm0 = vcmask 326912  }
  0x37   : > { %11644 = vst [vmem:[#allocation10_spill] sm:$0xff] %v8238_v60  ;;  %11645 = vst [vmem:[#allocation11_spill] sm:$0xff] %v8241_v61  ;;  %v8251_v63 = vld [vmem:[%s7947_s17 + $0x171] sm:$0xff]  ;;  %v535_v0 = vld [vmem:[%s7947_s17 + $0x2] sm:$0xff] }
  0x38   : > { %11646 = vst [vmem:[#allocation12_spill] sm:$0xff] %v8248_v62  ;;  %11647 = vst [vmem:[#allocation13_spill] sm:$0xff] %v8251_v63  ;;  %v536_v2 = vld [vmem:[%s7947_s17 + $0xa] sm:$0xff]  ;;  %v8262_v12 = vld [vmem:[%s7947_s17 + $0x1a] sm:$0xff] }
  0x39   : > { %434 = vrot.lane.b32.xlu0 %v8022_v18, %s7839_s18  ;;  %436 = vrot.lane.b32.xlu1 %v8037_v21, %s7839_s18  ;;  %11648 = vst [vmem:[#allocation14_spill] sm:$0xff] %v8262_v12  ;;  %v8265_v16 = vld [vmem:[%s7947_s17 + $0x22] sm:$0xff] }
  0x3a   : > { %11649 = vst [vmem:[#allocation15_spill] sm:$0xff] %v8265_v16 }
  0x3d   : > { %438 = vrot.lane.b32.xlu0 %v8073_v29, %s7839_s18  ;;  %440 = vrot.lane.b32.xlu1 %v8076_v30, %s7839_s18 }
  0x41   : > { %442 = vrot.lane.b32.xlu0 %v8148_v42, %s7839_s18  ;;  %444 = vrot.lane.b32.xlu1 %v8151_v43, %s7839_s18 }
  0x45   : > { %446 = vrot.lane.b32.xlu0 %v8168_v46, %s7839_s18  ;;  %448 = vrot.lane.b32.xlu1 %v8171_v47, %s7839_s18 }
  0x49   : > { %450 = vrot.lane.b32.xlu0 %v8188_v50, %s7839_s18  ;;  %452 = vrot.lane.b32.xlu1 %v8191_v51, %s7839_s18 }
  0x4d   : > { %454 = vrot.lane.b32.xlu0 %v8208_v54, %s7839_s18  ;;  %456 = vrot.lane.b32.xlu1 %v8211_v55, %s7839_s18 }
  0x51   : > { %458 = vrot.lane.b32.xlu0 %v8228_v58, %s7839_s18  ;;  %460 = vrot.lane.b32.xlu1 %v8231_v59, %s7839_s18 }
  0x55   : > { %462 = vrot.lane.b32.xlu0 %v8238_v60, %s7839_s18  ;;  %464 = vrot.lane.b32.xlu1 %v8241_v61, %s7839_s18 }
  0x59   : > { %466 = vrot.lane.b32.xlu0 %v8248_v62, %s7839_s18  ;;  %468 = vrot.lane.b32.xlu1 %v8251_v63, %s7839_s18  ;;  %v8272_v63 = vld [vmem:[%s7947_s17 + $0x32] sm:$0xff]  ;;  %v8275_v62 = vld [vmem:[%s7947_s17 + $0x3a] sm:$0xff] }
  0x5a   : > { %11650 = vst [vmem:[#allocation16_spill] sm:$0xff] %v8272_v63  ;;  %11651 = vst [vmem:[#allocation17_spill] sm:$0xff] %v8275_v62 }
  0x5d   : > { %599 = vrot.lane.b32.xlu0 %v535_v0, %s7840_s19  ;;  %601 = vrot.lane.b32.xlu1 %v536_v2, %s7840_s19  ;;  %v8282_v0 = vld [vmem:[%s7947_s17 + $0x4a] sm:$0xff]  ;;  %v8285_v2 = vld [vmem:[%s7947_s17 + $0x52] sm:$0xff] }
  0x5e   : > { %11652 = vst [vmem:[#allocation18_spill] sm:$0xff] %v8282_v0  ;;  %11653 = vst [vmem:[#allocation19_spill] sm:$0xff] %v8285_v2 }
  0x61   : > { %603 = vrot.lane.b32.xlu0 %v8262_v12, %s7840_s19  ;;  %605 = vrot.lane.b32.xlu1 %v8265_v16, %s7840_s19  ;;  %v8292_v16 = vld [vmem:[%s7947_s17 + $0x62] sm:$0xff]  ;;  %v8295_v12 = vld [vmem:[%s7947_s17 + $0x6a] sm:$0xff] }
  0x62   : > { %11654 = vst [vmem:[#allocation20_spill] sm:$0xff] %v8292_v16  ;;  %11655 = vst [vmem:[#allocation21_spill] sm:$0xff] %v8295_v12 }
  0x65   : > { %607 = vrot.lane.b32.xlu0 %v8272_v63, %s7840_s19  ;;  %609 = vrot.lane.b32.xlu1 %v8275_v62, %s7840_s19  ;;  %v8302_v62 = vld [vmem:[%s7947_s17 + $0x7a] sm:$0xff]  ;;  %v8305_v63 = vld [vmem:[%s7947_s17 + $0x82] sm:$0xff] }
  0x66   : > { %11656 = vst [vmem:[#allocation22_spill] sm:$0xff] %v8302_v62  ;;  %11657 = vst [vmem:[#allocation23_spill] sm:$0xff] %v8305_v63 }
  0x69   : > { %611 = vrot.lane.b32.xlu0 %v8282_v0, %s7840_s19  ;;  %613 = vrot.lane.b32.xlu1 %v8285_v2, %s7840_s19  ;;  %v8312_v2 = vld [vmem:[%s7947_s17 + $0x92] sm:$0xff]  ;;  %v8315_v0 = vld [vmem:[%s7947_s17 + $0x9a] sm:$0xff] }
  0x6a   : > { %11658 = vst [vmem:[#allocation24_spill] sm:$0xff] %v8312_v2  ;;  %11659 = vst [vmem:[#allocation25_spill] sm:$0xff] %v8315_v0 }
  0x6d   : > { %615 = vrot.lane.b32.xlu0 %v8292_v16, %s7840_s19  ;;  %617 = vrot.lane.b32.xlu1 %v8295_v12, %s7840_s19  ;;  %v8322_v12 = vld [vmem:[%s7947_s17 + $0xaa] sm:$0xff]  ;;  %v8325_v16 = vld [vmem:[%s7947_s17 + $0xb2] sm:$0xff] }
  0x6e   : > { %11660 = vst [vmem:[#allocation26_spill] sm:$0xff] %v8322_v12  ;;  %11661 = vst [vmem:[#allocation27_spill] sm:$0xff] %v8325_v16 }
  0x71   : > { %619 = vrot.lane.b32.xlu0 %v8302_v62, %s7840_s19  ;;  %621 = vrot.lane.b32.xlu1 %v8305_v63, %s7840_s19  ;;  %v8332_v63 = vld [vmem:[%s7947_s17 + $0xc2] sm:$0xff]  ;;  %v8335_v62 = vld [vmem:[%s7947_s17 + $0xca] sm:$0xff] }
  0x72   : > { %11662 = vst [vmem:[#allocation28_spill] sm:$0xff] %v8332_v63  ;;  %11663 = vst [vmem:[#allocation29_spill] sm:$0xff] %v8335_v62 }
  0x75   : > { %623 = vrot.lane.b32.xlu0 %v8312_v2, %s7840_s19  ;;  %625 = vrot.lane.b32.xlu1 %v8315_v0, %s7840_s19  ;;  %v8342_v0 = vld [vmem:[%s7947_s17 + $0xda] sm:$0xff]  ;;  %v8345_v2 = vld [vmem:[%s7947_s17 + $0xe2] sm:$0xff] }
  0x76   : > { %11664 = vst [vmem:[#allocation30_spill] sm:$0xff] %v8342_v0  ;;  %11665 = vst [vmem:[#allocation31_spill] sm:$0xff] %v8345_v2 }
  0x79   : > { %627 = vrot.lane.b32.xlu0 %v8322_v12, %s7840_s19  ;;  %629 = vrot.lane.b32.xlu1 %v8325_v16, %s7840_s19  ;;  %v8352_v16 = vld [vmem:[%s7947_s17 + $0xf2] sm:$0xff]  ;;  %v8355_v12 = vld [vmem:[%s7947_s17 + $0xfa] sm:$0xff] }
  0x7a   : > { %11666 = vst [vmem:[#allocation32_spill] sm:$0xff] %v8352_v16  ;;  %11667 = vst [vmem:[#allocation33_spill] sm:$0xff] %v8355_v12 }
  0x7d   : > { %631 = vrot.lane.b32.xlu0 %v8332_v63, %s7840_s19  ;;  %633 = vrot.lane.b32.xlu1 %v8335_v62, %s7840_s19  ;;  %v8362_v62 = vld [vmem:[%s7947_s17 + $0x10a] sm:$0xff]  ;;  %v8365_v63 = vld [vmem:[%s7947_s17 + $0x112] sm:$0xff] }
  0x7e   : > { %11668 = vst [vmem:[#allocation34_spill] sm:$0xff] %v8362_v62  ;;  %11669 = vst [vmem:[#allocation35_spill] sm:$0xff] %v8365_v63 }
  0x81   : > { %635 = vrot.lane.b32.xlu0 %v8342_v0, %s7840_s19  ;;  %637 = vrot.lane.b32.xlu1 %v8345_v2, %s7840_s19  ;;  %v8372_v2 = vld [vmem:[%s7947_s17 + $0x122] sm:$0xff]  ;;  %v8375_v0 = vld [vmem:[%s7947_s17 + $0x12a] sm:$0xff] }
  0x82   : > { %11670 = vst [vmem:[#allocation36_spill] sm:$0xff] %v8372_v2  ;;  %11671 = vst [vmem:[#allocation37_spill] sm:$0xff] %v8375_v0 }
  0x85   : > { %639 = vrot.lane.b32.xlu0 %v8352_v16, %s7840_s19  ;;  %641 = vrot.lane.b32.xlu1 %v8355_v12, %s7840_s19  ;;  %v8382_v12 = vld [vmem:[%s7947_s17 + $0x13a] sm:$0xff]  ;;  %v8385_v16 = vld [vmem:[%s7947_s17 + $0x142] sm:$0xff] }
  0x86   : > { %11672 = vst [vmem:[#allocation38_spill] sm:$0xff] %v8382_v12  ;;  %11673 = vst [vmem:[#allocation39_spill] sm:$0xff] %v8385_v16 }
  0x89   : > { %643 = vrot.lane.b32.xlu0 %v8362_v62, %s7840_s19  ;;  %645 = vrot.lane.b32.xlu1 %v8365_v63, %s7840_s19 }
  0x8d   : > { %647 = vrot.lane.b32.xlu0 %v8372_v2, %s7840_s19  ;;  %649 = vrot.lane.b32.xlu1 %v8375_v0, %s7840_s19  ;;  %v8394_v0 = vld [vmem:[%s7947_s17 + $0x152] sm:$0xff]  ;;  %v8397_v2 = vld [vmem:[%s7947_s17 + $0x15a] sm:$0xff] }
  0x8f   : > { %v407_v62 = vpop.permute.xlu0 %406  ;;  %v411_v61 = vpop.permute.xlu1 %410 }
  0x90   : > { %503 = vst.msk [vmem:[#allocation2] sm:$0xff] %vm502_vm1, %v407_v62  ;;  %505 = vst.msk [vmem:[#allocation2 + $0x10] sm:$0xff] %vm502_vm1, %v411_v61  ;;  %v8406_v61 = vld [vmem:[%s7947_s17 + $0x16a] sm:$0xff]  ;;  %v8409_v62 = vld [vmem:[%s7947_s17 + $0x172] sm:$0xff] }
  0x91   : > { %651 = vrot.lane.b32.xlu0 %v8382_v12, %s7840_s19  ;;  %653 = vrot.lane.b32.xlu1 %v8385_v16, %s7840_s19 }
  0x93   : > { %v409_v63 = vpop.permute.xlu0 %408  ;;  %v413_v60 = vpop.permute.xlu1 %412 }
  0x94   : > { %504 = vst.msk [vmem:[#allocation2 + $0x8] sm:$0xff] %vm502_vm1, %v409_v63  ;;  %506 = vst.msk [vmem:[#allocation2 + $0x18] sm:$0xff] %vm502_vm1, %v413_v60 }
  0x95   : > { %655 = vrot.lane.b32.xlu0 %v8394_v0, %s7840_s19  ;;  %657 = vrot.lane.b32.xlu1 %v8397_v2, %s7840_s19 }
  0x97   : > { %v415_v16 = vpop.permute.xlu0 %414  ;;  %v417_v12 = vpop.permute.xlu1 %416 }
  0x98   : > { %507 = vst.msk [vmem:[#allocation2 + $0x20] sm:$0xff] %vm502_vm1, %v415_v16  ;;  %508 = vst.msk [vmem:[#allocation2 + $0x28] sm:$0xff] %vm502_vm1, %v417_v12 }
  0x99   : > { %659 = vrot.lane.b32.xlu0 %v8406_v61, %s7840_s19  ;;  %661 = vrot.lane.b32.xlu1 %v8409_v62, %s7840_s19 }
  0x9b   : > { %v419_v60 = vpop.permute.xlu0 %418  ;;  %v421_v63 = vpop.permute.xlu1 %420 }
  0x9c   : > { %509 = vst.msk [vmem:[#allocation2 + $0x30] sm:$0xff] %vm502_vm1, %v419_v60  ;;  %510 = vst.msk [vmem:[#allocation2 + $0x38] sm:$0xff] %vm502_vm1, %v421_v63 }
  0x9d   : > { %793 = vrot.lane.b32.xlu0 %v8005_v13, %s7841_s20  ;;  %795 = vrot.lane.b32.xlu1 %v8019_v17, %s7841_s20 }
  0x9f   : > { %v423_v12 = vpop.permute.xlu0 %422  ;;  %v425_v16 = vpop.permute.xlu1 %424 }
  0xa0   : > { %511 = vst.msk [vmem:[#allocation2 + $0x40] sm:$0xff] %vm502_vm1, %v423_v12  ;;  %512 = vst.msk [vmem:[#allocation2 + $0x48] sm:$0xff] %vm502_vm1, %v425_v16 }
  0xa1   : > { %797 = vrot.lane.b32.xlu0 %v8027_v19, %s7841_s20  ;;  %799 = vrot.lane.b32.xlu1 %v8030_v20, %s7841_s20 }
  0xa3   : > { %v427_v60 = vpop.permute.xlu0 %426  ;;  %v429_v63 = vpop.permute.xlu1 %428 }
  0xa4   : > { %513 = vst.msk [vmem:[#allocation2 + $0x50] sm:$0xff] %vm502_vm1, %v427_v60  ;;  %514 = vst.msk [vmem:[#allocation2 + $0x58] sm:$0xff] %vm502_vm1, %v429_v63 }
  0xa5   : > { %801 = vrot.lane.b32.xlu0 %v8044_v22, %s7841_s20  ;;  %803 = vrot.lane.b32.xlu1 %v8049_v23, %s7841_s20 }
  0xa7   : > { %v431_v13 = vpop.permute.xlu0 %430  ;;  %v433_v17 = vpop.permute.xlu1 %432 }
  0xa8   : > { %515 = vst.msk [vmem:[#allocation2 + $0x60] sm:$0xff] %vm502_vm1, %v431_v13  ;;  %516 = vst.msk [vmem:[#allocation2 + $0x68] sm:$0xff] %vm502_vm1, %v433_v17 }
  0xa9   : > { %805 = vrot.lane.b32.xlu0 %v8052_v24, %s7841_s20  ;;  %807 = vrot.lane.b32.xlu1 %v8055_v25, %s7841_s20 }
  0xab   : > { %v435_v12 = vpop.permute.xlu0 %434  ;;  %v437_v16 = vpop.permute.xlu1 %436 }
  0xac   : > { %517 = vst.msk [vmem:[#allocation2 + $0x70] sm:$0xff] %vm502_vm1, %v435_v12  ;;  %518 = vst.msk [vmem:[#allocation2 + $0x78] sm:$0xff] %vm502_vm1, %v437_v16 }
  0xad   : > { %809 = vrot.lane.b32.xlu0 %v8064_v26, %s7841_s20  ;;  %811 = vrot.lane.b32.xlu1 %v8067_v27, %s7841_s20 }
  0xaf   : > { %v439_v60 = vpop.permute.xlu0 %438  ;;  %v441_v63 = vpop.permute.xlu1 %440 }
  0xb0   : > { %519 = vst.msk [vmem:[#allocation2 + $0x80] sm:$0xff] %vm502_vm1, %v439_v60  ;;  %520 = vst.msk [vmem:[#allocation2 + $0x88] sm:$0xff] %vm502_vm1, %v441_v63 }
  0xb1   : > { %813 = vrot.lane.b32.xlu0 %v8070_v28, %s7841_s20  ;;  %815 = vrot.lane.b32.xlu1 %v8085_v31, %s7841_s20 }
  0xb3   : > { %v443_v13 = vpop.permute.xlu0 %442  ;;  %v445_v17 = vpop.permute.xlu1 %444 }
  0xb4   : > { %521 = vst.msk [vmem:[#allocation2 + $0x90] sm:$0xff] %vm502_vm1, %v443_v13  ;;  %522 = vst.msk [vmem:[#allocation2 + $0x98] sm:$0xff] %vm502_vm1, %v445_v17 }
  0xb5   : > { %817 = vrot.lane.b32.xlu0 %v8088_v32, %s7841_s20  ;;  %819 = vrot.lane.b32.xlu1 %v8091_v33, %s7841_s20 }
  0xb7   : > { %v447_v12 = vpop.permute.xlu0 %446  ;;  %v449_v16 = vpop.permute.xlu1 %448 }
  0xb8   : > { %523 = vst.msk [vmem:[#allocation2 + $0xa0] sm:$0xff] %vm502_vm1, %v447_v12  ;;  %524 = vst.msk [vmem:[#allocation2 + $0xa8] sm:$0xff] %vm502_vm1, %v449_v16 }
  0xb9   : > { %821 = vrot.lane.b32.xlu0 %v8104_v34, %s7841_s20  ;;  %823 = vrot.lane.b32.xlu1 %v8107_v35, %s7841_s20 }
  0xbb   : > { %v451_v60 = vpop.permute.xlu0 %450  ;;  %v453_v63 = vpop.permute.xlu1 %452 }
  0xbc   : > { %525 = vst.msk [vmem:[#allocation2 + $0xb0] sm:$0xff] %vm502_vm1, %v451_v60  ;;  %526 = vst.msk [vmem:[#allocation2 + $0xb8] sm:$0xff] %vm502_vm1, %v453_v63 }
  0xbd   : > { %825 = vrot.lane.b32.xlu0 %v8114_v36, %s7841_s20  ;;  %827 = vrot.lane.b32.xlu1 %v8117_v37, %s7841_s20 }
  0xbf   : > { %v455_v13 = vpop.permute.xlu0 %454  ;;  %v457_v17 = vpop.permute.xlu1 %456 }
  0xc0   : > { %527 = vst.msk [vmem:[#allocation2 + $0xc0] sm:$0xff] %vm502_vm1, %v455_v13  ;;  %528 = vst.msk [vmem:[#allocation2 + $0xc8] sm:$0xff] %vm502_vm1, %v457_v17 }
  0xc1   : > { %829 = vrot.lane.b32.xlu0 %v8120_v38, %s7841_s20  ;;  %831 = vrot.lane.b32.xlu1 %v8129_v39, %s7841_s20 }
  0xc3   : > { %v459_v12 = vpop.permute.xlu0 %458  ;;  %v461_v16 = vpop.permute.xlu1 %460 }
  0xc4   : > { %529 = vst.msk [vmem:[#allocation2 + $0xd0] sm:$0xff] %vm502_vm1, %v459_v12  ;;  %530 = vst.msk [vmem:[#allocation2 + $0xd8] sm:$0xff] %vm502_vm1, %v461_v16 }
  0xc5   : > { %833 = vrot.lane.b32.xlu0 %v8132_v40, %s7841_s20  ;;  %835 = vrot.lane.b32.xlu1 %v8135_v41, %s7841_s20 }
  0xc7   : > { %v463_v60 = vpop.permute.xlu0 %462  ;;  %v465_v63 = vpop.permute.xlu1 %464 }
  0xc8   : > { %531 = vst.msk [vmem:[#allocation2 + $0xe0] sm:$0xff] %vm502_vm1, %v463_v60  ;;  %532 = vst.msk [vmem:[#allocation2 + $0xe8] sm:$0xff] %vm502_vm1, %v465_v63 }
  0xc9   : > { %837 = vrot.lane.b32.xlu0 %v8154_v44, %s7841_s20  ;;  %839 = vrot.lane.b32.xlu1 %v8159_v45, %s7841_s20 }
  0xcb   : > { %v467_v13 = vpop.permute.xlu0 %466  ;;  %v469_v17 = vpop.permute.xlu1 %468 }
  0xcc   : > { %533 = vst.msk [vmem:[#allocation2 + $0xf0] sm:$0xff] %vm502_vm1, %v467_v13  ;;  %534 = vst.msk [vmem:[#allocation2 + $0xf8] sm:$0xff] %vm502_vm1, %v469_v17  ;;  %v8508_v13 = vld [vmem:[%s7947_s17 + $0x180] sm:$0xff]  ;;  %v8511_v17 = vld [vmem:[%s7947_s17 + $0x188] sm:$0xff]  ;;  %vm3343_vm1 = vcmask 392512  }
  0xcd   : > { %841 = vrot.lane.b32.xlu0 %v8174_v48, %s7841_s20  ;;  %843 = vrot.lane.b32.xlu1 %v8179_v49, %s7841_s20 }
  0xcf   : > { %v600_v12 = vpop.permute.xlu0 %599  ;;  %v602_v16 = vpop.permute.xlu1 %601 }
  0xd0   : > { %696 = vst.msk [vmem:[#allocation2] sm:$0xff] %vm695_vm2, %v600_v12  ;;  %697 = vst.msk [vmem:[#allocation2 + $0x8] sm:$0xff] %vm695_vm2, %v602_v16 }
  0xd1   : > { %845 = vrot.lane.b32.xlu0 %v8194_v52, %s7841_s20  ;;  %847 = vrot.lane.b32.xlu1 %v8199_v53, %s7841_s20 }
  0xd3   : > { %v604_v60 = vpop.permute.xlu0 %603  ;;  %v606_v63 = vpop.permute.xlu1 %605 }
  0xd4   : > { %698 = vst.msk [vmem:[#allocation2 + $0x10] sm:$0xff] %vm695_vm2, %v604_v60  ;;  %699 = vst.msk [vmem:[#allocation2 + $0x18] sm:$0xff] %vm695_vm2, %v606_v63 }
  0xd5   : > { %849 = vrot.lane.b32.xlu0 %v8214_v56, %s7841_s20  ;;  %851 = vrot.lane.b32.xlu1 %v8219_v57, %s7841_s20 }
  0xd7   : > { %v608_v12 = vpop.permute.xlu0 %607  ;;  %v610_v16 = vpop.permute.xlu1 %609 }
  0xd8   : > { %700 = vst.msk [vmem:[#allocation2 + $0x20] sm:$0xff] %vm695_vm2, %v608_v12  ;;  %701 = vst.msk [vmem:[#allocation2 + $0x28] sm:$0xff] %vm695_vm2, %v610_v16 }
  0xd9   : > { %853 = vrot.lane.b32.xlu0 %v8508_v13, %s7841_s20  ;;  %855 = vrot.lane.b32.xlu1 %v8511_v17, %s7841_s20  ;;  %s7851_s20 = smov 64  }
  0xdb   : > { %v612_v60 = vpop.permute.xlu0 %611  ;;  %v614_v63 = vpop.permute.xlu1 %613 }
  0xdc   : > { %702 = vst.msk [vmem:[#allocation2 + $0x30] sm:$0xff] %vm695_vm2, %v612_v60  ;;  %703 = vst.msk [vmem:[#allocation2 + $0x38] sm:$0xff] %vm695_vm2, %v614_v63 }
  0xdd   : > { %986 = vrot.lane.b32.xlu0 %v7951_v1, %s7842_s21  ;;  %988 = vrot.lane.b32.xlu1 %v7958_v3, %s7842_s21 }
  0xdf   : > { %v616_v12 = vpop.permute.xlu0 %615  ;;  %v618_v16 = vpop.permute.xlu1 %617 }
  0xe0   : > { %704 = vst.msk [vmem:[#allocation2 + $0x40] sm:$0xff] %vm695_vm2, %v616_v12  ;;  %705 = vst.msk [vmem:[#allocation2 + $0x48] sm:$0xff] %vm695_vm2, %v618_v16 }
  0xe1   : > { %990 = vrot.lane.b32.xlu0 %v7964_v4, %s7842_s21  ;;  %992 = vrot.lane.b32.xlu1 %v7967_v5, %s7842_s21 }
  0xe3   : > { %v620_v60 = vpop.permute.xlu0 %619  ;;  %v622_v63 = vpop.permute.xlu1 %621 }
  0xe4   : > { %706 = vst.msk [vmem:[#allocation2 + $0x50] sm:$0xff] %vm695_vm2, %v620_v60  ;;  %707 = vst.msk [vmem:[#allocation2 + $0x58] sm:$0xff] %vm695_vm2, %v622_v63  ;;  %v8610_v60 = vld [vmem:[%s7947_s17 + $0x181] sm:$0xff]  ;;  %v8613_v63 = vld [vmem:[%s7947_s17 + $0x189] sm:$0xff] }
  0xe5   : > { %994 = vrot.lane.b32.xlu0 %v7974_v6, %s7842_s21  ;;  %996 = vrot.lane.b32.xlu1 %v7977_v7, %s7842_s21 }
  0xe7   : > { %v624_v1 = vpop.permute.xlu0 %623  ;;  %v626_v3 = vpop.permute.xlu1 %625 }
  0xe8   : > { %708 = vst.msk [vmem:[#allocation2 + $0x60] sm:$0xff] %vm695_vm2, %v624_v1  ;;  %709 = vst.msk [vmem:[#allocation2 + $0x68] sm:$0xff] %vm695_vm2, %v626_v3 }
  0xe9   : > { %998 = vrot.lane.b32.xlu0 %v7984_v8, %s7842_s21  ;;  %1000 = vrot.lane.b32.xlu1 %v7987_v9, %s7842_s21 }
  0xeb   : > { %v628_v4 = vpop.permute.xlu0 %627  ;;  %v630_v5 = vpop.permute.xlu1 %629 }
  0xec   : > { %710 = vst.msk [vmem:[#allocation2 + $0x70] sm:$0xff] %vm695_vm2, %v628_v4  ;;  %711 = vst.msk [vmem:[#allocation2 + $0x78] sm:$0xff] %vm695_vm2, %v630_v5 }
  0xed   : > { %1002 = vrot.lane.b32.xlu0 %v7994_v10, %s7842_s21  ;;  %1004 = vrot.lane.b32.xlu1 %v7997_v11, %s7842_s21 }
  0xef   : > { %v632_v6 = vpop.permute.xlu0 %631  ;;  %v634_v7 = vpop.permute.xlu1 %633 }
  0xf0   : > { %712 = vst.msk [vmem:[#allocation2 + $0x80] sm:$0xff] %vm695_vm2, %v632_v6  ;;  %713 = vst.msk [vmem:[#allocation2 + $0x88] sm:$0xff] %vm695_vm2, %v634_v7  ;;  %v11678_v6 = vld [vmem:[#allocation14_spill] sm:$0xff]  ;;  %v11679_v7 = vld [vmem:[#allocation15_spill] sm:$0xff] }
  0xf1   : > { %1006 = vrot.lane.b32.xlu0 %v8008_v14, %s7842_s21  ;;  %1008 = vrot.lane.b32.xlu1 %v8011_v15, %s7842_s21 }
  0xf3   : > { %v636_v8 = vpop.permute.xlu0 %635  ;;  %v638_v9 = vpop.permute.xlu1 %637 }
  0xf4   : > { %714 = vst.msk [vmem:[#allocation2 + $0x90] sm:$0xff] %vm695_vm2, %v636_v8  ;;  %715 = vst.msk [vmem:[#allocation2 + $0x98] sm:$0xff] %vm695_vm2, %v638_v9 }
  0xf5   : > { %1010 = vrot.lane.b32.xlu0 %v8022_v18, %s7842_s21  ;;  %1012 = vrot.lane.b32.xlu1 %v8037_v21, %s7842_s21 }
  0xf7   : > { %v640_v10 = vpop.permute.xlu0 %639  ;;  %v642_v11 = vpop.permute.xlu1 %641 }
  0xf8   : > { %716 = vst.msk [vmem:[#allocation2 + $0xa0] sm:$0xff] %vm695_vm2, %v640_v10  ;;  %717 = vst.msk [vmem:[#allocation2 + $0xa8] sm:$0xff] %vm695_vm2, %v642_v11  ;;  %v11680_v10 = vld [vmem:[#allocation16_spill] sm:$0xff]  ;;  %v11681_v11 = vld [vmem:[#allocation17_spill] sm:$0xff] }
  0xf9   : > { %1014 = vrot.lane.b32.xlu0 %v8073_v29, %s7842_s21  ;;  %1016 = vrot.lane.b32.xlu1 %v8076_v30, %s7842_s21 }
  0xfb   : > { %v644_v14 = vpop.permute.xlu0 %643  ;;  %v646_v15 = vpop.permute.xlu1 %645 }
  0xfc   : > { %718 = vst.msk [vmem:[#allocation2 + $0xb0] sm:$0xff] %vm695_vm2, %v644_v14  ;;  %719 = vst.msk [vmem:[#allocation2 + $0xb8] sm:$0xff] %vm695_vm2, %v646_v15 }
  0xfd   : > { %1018 = vrot.lane.b32.xlu0 %v8148_v42, %s7842_s21  ;;  %1020 = vrot.lane.b32.xlu1 %v8151_v43, %s7842_s21 }
  0xff   : > { %v648_v18 = vpop.permute.xlu0 %647  ;;  %v650_v21 = vpop.permute.xlu1 %649 }
 0x100   : > { %720 = vst.msk [vmem:[#allocation2 + $0xc0] sm:$0xff] %vm695_vm2, %v648_v18  ;;  %721 = vst.msk [vmem:[#allocation2 + $0xc8] sm:$0xff] %vm695_vm2, %v650_v21  ;;  %v11682_v18 = vld [vmem:[#allocation18_spill] sm:$0xff]  ;;  %v11683_v21 = vld [vmem:[#allocation19_spill] sm:$0xff] }
 0x101   : > { %1022 = vrot.lane.b32.xlu0 %v8168_v46, %s7842_s21  ;;  %1024 = vrot.lane.b32.xlu1 %v8171_v47, %s7842_s21 }
 0x103   : > { %v652_v29 = vpop.permute.xlu0 %651  ;;  %v654_v30 = vpop.permute.xlu1 %653 }
 0x104   : > { %722 = vst.msk [vmem:[#allocation2 + $0xd0] sm:$0xff] %vm695_vm2, %v652_v29  ;;  %723 = vst.msk [vmem:[#allocation2 + $0xd8] sm:$0xff] %vm695_vm2, %v654_v30 }
 0x105   : > { %1026 = vrot.lane.b32.xlu0 %v8188_v50, %s7842_s21  ;;  %1028 = vrot.lane.b32.xlu1 %v8191_v51, %s7842_s21 }
 0x107   : > { %v656_v42 = vpop.permute.xlu0 %655  ;;  %v658_v43 = vpop.permute.xlu1 %657 }
 0x108   : > { %724 = vst.msk [vmem:[#allocation2 + $0xe0] sm:$0xff] %vm695_vm2, %v656_v42  ;;  %725 = vst.msk [vmem:[#allocation2 + $0xe8] sm:$0xff] %vm695_vm2, %v658_v43  ;;  %v11684_v42 = vld [vmem:[#allocation20_spill] sm:$0xff]  ;;  %v11685_v43 = vld [vmem:[#allocation21_spill] sm:$0xff] }
 0x109   : > { %1030 = vrot.lane.b32.xlu0 %v8208_v54, %s7842_s21  ;;  %1032 = vrot.lane.b32.xlu1 %v8211_v55, %s7842_s21  ;;  %v11674_v54 = vld [vmem:[#allocation10_spill] sm:$0xff]  ;;  %v11675_v55 = vld [vmem:[#allocation11_spill] sm:$0xff] }
 0x10b   : > { %v660_v46 = vpop.permute.xlu0 %659  ;;  %v662_v47 = vpop.permute.xlu1 %661 }
 0x10c   : > { %726 = vst.msk [vmem:[#allocation2 + $0xf0] sm:$0xff] %vm695_vm2, %v660_v46  ;;  %727 = vst.msk [vmem:[#allocation2 + $0xf8] sm:$0xff] %vm695_vm2, %v662_v47  ;;  %vm3537_vm2 = vcmask 458112  }
 0x10d   : > { %1034 = vrot.lane.b32.xlu0 %v8228_v58, %s7842_s21  ;;  %1036 = vrot.lane.b32.xlu1 %v8231_v59, %s7842_s21  ;;  %v11676_v58 = vld [vmem:[#allocation12_spill] sm:$0xff]  ;;  %v11677_v59 = vld [vmem:[#allocation13_spill] sm:$0xff] }
 0x10f   : > { %v794_v50 = vpop.permute.xlu0 %793  ;;  %v796_v51 = vpop.permute.xlu1 %795 }
 0x110   : > { %890 = vst.msk [vmem:[#allocation2] sm:$0xff] %vm889_vm3, %v794_v50  ;;  %891 = vst.msk [vmem:[#allocation2 + $0x8] sm:$0xff] %vm889_vm3, %v796_v51  ;;  %v11686_v50 = vld [vmem:[#allocation22_spill] sm:$0xff]  ;;  %v11687_v51 = vld [vmem:[#allocation23_spill] sm:$0xff] }
 0x111   : > { %1038 = vrot.lane.b32.xlu0 %v11674_v54, %s7842_s21  ;;  %1040 = vrot.lane.b32.xlu1 %v11675_v55, %s7842_s21 }
 0x113   : > { %v798_v12 = vpop.permute.xlu0 %797  ;;  %v800_v16 = vpop.permute.xlu1 %799 }
 0x114   : > { %892 = vst.msk [vmem:[#allocation2 + $0x10] sm:$0xff] %vm889_vm3, %v798_v12  ;;  %893 = vst.msk [vmem:[#allocation2 + $0x18] sm:$0xff] %vm889_vm3, %v800_v16  ;;  %v11688_v12 = vld [vmem:[#allocation24_spill] sm:$0xff]  ;;  %v11689_v16 = vld [vmem:[#allocation25_spill] sm:$0xff] }
 0x115   : > { %1042 = vrot.lane.b32.xlu0 %v11676_v58, %s7842_s21  ;;  %1044 = vrot.lane.b32.xlu1 %v11677_v59, %s7842_s21 }
 0x117   : > { %v802_v1 = vpop.permute.xlu0 %801  ;;  %v804_v3 = vpop.permute.xlu1 %803 }
 0x118   : > { %894 = vst.msk [vmem:[#allocation2 + $0x20] sm:$0xff] %vm889_vm3, %v802_v1  ;;  %895 = vst.msk [vmem:[#allocation2 + $0x28] sm:$0xff] %vm889_vm3, %v804_v3  ;;  %v11690_v1 = vld [vmem:[#allocation26_spill] sm:$0xff]  ;;  %v11691_v3 = vld [vmem:[#allocation27_spill] sm:$0xff] }
 0x119   : > { %1046 = vrot.lane.b32.xlu0 %v8610_v60, %s7842_s21  ;;  %1048 = vrot.lane.b32.xlu1 %v8613_v63, %s7842_s21 }
 0x11b   : > { %v806_v4 = vpop.permute.xlu0 %805  ;;  %v808_v5 = vpop.permute.xlu1 %807 }
 0x11c   : > { %896 = vst.msk [vmem:[#allocation2 + $0x30] sm:$0xff] %vm889_vm3, %v806_v4  ;;  %897 = vst.msk [vmem:[#allocation2 + $0x38] sm:$0xff] %vm889_vm3, %v808_v5 }
 0x11d   : > { %1179 = vrot.lane.b32.xlu0 %v11678_v6, %s7843_s22  ;;  %1181 = vrot.lane.b32.xlu1 %v11679_v7, %s7843_s22  ;;  %v11692_v6 = vld [vmem:[#allocation28_spill] sm:$0xff]  ;;  %v11693_v7 = vld [vmem:[#allocation29_spill] sm:$0xff] }
 0x11f   : > { %v810_v8 = vpop.permute.xlu0 %809  ;;  %v812_v9 = vpop.permute.xlu1 %811 }
 0x120   : > { %898 = vst.msk [vmem:[#allocation2 + $0x40] sm:$0xff] %vm889_vm3, %v810_v8  ;;  %899 = vst.msk [vmem:[#allocation2 + $0x48] sm:$0xff] %vm889_vm3, %v812_v9 }
 0x121   : > { %1183 = vrot.lane.b32.xlu0 %v11680_v10, %s7843_s22  ;;  %1185 = vrot.lane.b32.xlu1 %v11681_v11, %s7843_s22  ;;  %v11694_v10 = vld [vmem:[#allocation30_spill] sm:$0xff]  ;;  %v11695_v11 = vld [vmem:[#allocation31_spill] sm:$0xff] }
 0x123   : > { %v814_v14 = vpop.permute.xlu0 %813  ;;  %v816_v15 = vpop.permute.xlu1 %815 }
 0x124   : > { %900 = vst.msk [vmem:[#allocation2 + $0x50] sm:$0xff] %vm889_vm3, %v814_v14  ;;  %901 = vst.msk [vmem:[#allocation2 + $0x58] sm:$0xff] %vm889_vm3, %v816_v15 }
 0x125   : > { %1187 = vrot.lane.b32.xlu0 %v11682_v18, %s7843_s22  ;;  %1189 = vrot.lane.b32.xlu1 %v11683_v21, %s7843_s22  ;;  %v11696_v18 = vld [vmem:[#allocation32_spill] sm:$0xff]  ;;  %v11697_v21 = vld [vmem:[#allocation33_spill] sm:$0xff] }
 0x127   : > { %v818_v29 = vpop.permute.xlu0 %817  ;;  %v820_v30 = vpop.permute.xlu1 %819 }
 0x128   : > { %902 = vst.msk [vmem:[#allocation2 + $0x60] sm:$0xff] %vm889_vm3, %v818_v29  ;;  %903 = vst.msk [vmem:[#allocation2 + $0x68] sm:$0xff] %vm889_vm3, %v820_v30 }
 0x129   : > { %1191 = vrot.lane.b32.xlu0 %v11684_v42, %s7843_s22  ;;  %1193 = vrot.lane.b32.xlu1 %v11685_v43, %s7843_s22  ;;  %v11698_v42 = vld [vmem:[#allocation34_spill] sm:$0xff]  ;;  %v11699_v43 = vld [vmem:[#allocation35_spill] sm:$0xff] }
 0x12b   : > { %v822_v46 = vpop.permute.xlu0 %821  ;;  %v824_v47 = vpop.permute.xlu1 %823 }
 0x12c   : > { %904 = vst.msk [vmem:[#allocation2 + $0x70] sm:$0xff] %vm889_vm3, %v822_v46  ;;  %905 = vst.msk [vmem:[#allocation2 + $0x78] sm:$0xff] %vm889_vm3, %v824_v47 }
 0x12d   : > { %1195 = vrot.lane.b32.xlu0 %v11686_v50, %s7843_s22  ;;  %1197 = vrot.lane.b32.xlu1 %v11687_v51, %s7843_s22  ;;  %v11700_v50 = vld [vmem:[#allocation36_spill] sm:$0xff]  ;;  %v11701_v51 = vld [vmem:[#allocation37_spill] sm:$0xff] }
 0x12f   : > { %v826_v54 = vpop.permute.xlu0 %825  ;;  %v828_v55 = vpop.permute.xlu1 %827 }
 0x130   : > { %906 = vst.msk [vmem:[#allocation2 + $0x80] sm:$0xff] %vm889_vm3, %v826_v54  ;;  %907 = vst.msk [vmem:[#allocation2 + $0x88] sm:$0xff] %vm889_vm3, %v828_v55 }
 0x131   : > { %1199 = vrot.lane.b32.xlu0 %v11688_v12, %s7843_s22  ;;  %1201 = vrot.lane.b32.xlu1 %v11689_v16, %s7843_s22  ;;  %v11702_v12 = vld [vmem:[#allocation38_spill] sm:$0xff]  ;;  %v11703_v16 = vld [vmem:[#allocation39_spill] sm:$0xff] }
 0x133   : > { %v830_v58 = vpop.permute.xlu0 %829  ;;  %v832_v59 = vpop.permute.xlu1 %831 }
 0x134   : > { %908 = vst.msk [vmem:[#allocation2 + $0x90] sm:$0xff] %vm889_vm3, %v830_v58  ;;  %909 = vst.msk [vmem:[#allocation2 + $0x98] sm:$0xff] %vm889_vm3, %v832_v59 }
 0x135   : > { %1203 = vrot.lane.b32.xlu0 %v11690_v1, %s7843_s22  ;;  %1205 = vrot.lane.b32.xlu1 %v11691_v3, %s7843_s22 }
 0x137   : > { %v834_v4 = vpop.permute.xlu0 %833  ;;  %v836_v5 = vpop.permute.xlu1 %835 }
 0x138   : > { %910 = vst.msk [vmem:[#allocation2 + $0xa0] sm:$0xff] %vm889_vm3, %v834_v4  ;;  %911 = vst.msk [vmem:[#allocation2 + $0xa8] sm:$0xff] %vm889_vm3, %v836_v5  ;;  %v8712_v4 = vld [vmem:[%s7947_s17 + $0x182] sm:$0xff]  ;;  %v8715_v5 = vld [vmem:[%s7947_s17 + $0x18a] sm:$0xff] }
 0x139   : > { %1207 = vrot.lane.b32.xlu0 %v11692_v6, %s7843_s22  ;;  %1209 = vrot.lane.b32.xlu1 %v11693_v7, %s7843_s22 }
 0x13b   : > { %v838_v8 = vpop.permute.xlu0 %837  ;;  %v840_v9 = vpop.permute.xlu1 %839 }
 0x13c   : > { %912 = vst.msk [vmem:[#allocation2 + $0xb0] sm:$0xff] %vm889_vm3, %v838_v8  ;;  %913 = vst.msk [vmem:[#allocation2 + $0xb8] sm:$0xff] %vm889_vm3, %v840_v9 }
 0x13d   : > { %1211 = vrot.lane.b32.xlu0 %v11694_v10, %s7843_s22  ;;  %1213 = vrot.lane.b32.xlu1 %v11695_v11, %s7843_s22  ;;  %v7027_v11 = vld [vmem:[%s7947_s17 + $0x39] sm:$0xff] }
 0x13f   : > { %v842_v14 = vpop.permute.xlu0 %841  ;;  %v844_v15 = vpop.permute.xlu1 %843 }
 0x140   : > { %914 = vst.msk [vmem:[#allocation2 + $0xc0] sm:$0xff] %vm889_vm3, %v842_v14  ;;  %915 = vst.msk [vmem:[#allocation2 + $0xc8] sm:$0xff] %vm889_vm3, %v844_v15  ;;  %v7028_v14 = vld [vmem:[%s7947_s17 + $0x49] sm:$0xff]  ;;  %v7029_v15 = vld [vmem:[%s7947_s17 + $0x51] sm:$0xff] }
 0x141   : > { %1215 = vrot.lane.b32.xlu0 %v11696_v18, %s7843_s22  ;;  %1217 = vrot.lane.b32.xlu1 %v11697_v21, %s7843_s22 }
 0x143   : > { %v846_v29 = vpop.permute.xlu0 %845  ;;  %v848_v30 = vpop.permute.xlu1 %847 }
 0x144   : > { %916 = vst.msk [vmem:[#allocation2 + $0xd0] sm:$0xff] %vm889_vm3, %v846_v29  ;;  %917 = vst.msk [vmem:[#allocation2 + $0xd8] sm:$0xff] %vm889_vm3, %v848_v30  ;;  %v7030_v29 = vld [vmem:[%s7947_s17 + $0x61] sm:$0xff]  ;;  %v7031_v30 = vld [vmem:[%s7947_s17 + $0x69] sm:$0xff] }
 0x145   : > { %1219 = vrot.lane.b32.xlu0 %v11698_v42, %s7843_s22  ;;  %1221 = vrot.lane.b32.xlu1 %v11699_v43, %s7843_s22 }
 0x147   : > { %v850_v46 = vpop.permute.xlu0 %849  ;;  %v852_v47 = vpop.permute.xlu1 %851 }
 0x148   : > { %918 = vst.msk [vmem:[#allocation2 + $0xe0] sm:$0xff] %vm889_vm3, %v850_v46  ;;  %919 = vst.msk [vmem:[#allocation2 + $0xe8] sm:$0xff] %vm889_vm3, %v852_v47  ;;  %v7032_v46 = vld [vmem:[%s7947_s17 + $0x79] sm:$0xff]  ;;  %v7033_v47 = vld [vmem:[%s7947_s17 + $0x81] sm:$0xff] }
 0x149   : > { %1223 = vrot.lane.b32.xlu0 %v11700_v50, %s7843_s22  ;;  %1225 = vrot.lane.b32.xlu1 %v11701_v51, %s7843_s22 }
 0x14b   : > { %v854_v54 = vpop.permute.xlu0 %853  ;;  %v856_v55 = vpop.permute.xlu1 %855 }
 0x14c   : > { %920 = vst.msk [vmem:[#allocation2 + $0xf0] sm:$0xff] %vm889_vm3, %v854_v54  ;;  %921 = vst.msk [vmem:[#allocation2 + $0xf8] sm:$0xff] %vm889_vm3, %v856_v55  ;;  %v7034_v54 = vld [vmem:[%s7947_s17 + $0x91] sm:$0xff]  ;;  %v7035_v55 = vld [vmem:[%s7947_s17 + $0x99] sm:$0xff]  ;;  %vm3730_vm3 = vcmask 523712  }
 0x14d   : > { %1227 = vrot.lane.b32.xlu0 %v11702_v12, %s7843_s22  ;;  %1229 = vrot.lane.b32.xlu1 %v11703_v16, %s7843_s22 }
 0x14f   : > { %v987_v58 = vpop.permute.xlu0 %986  ;;  %v989_v59 = vpop.permute.xlu1 %988 }
 0x150   : > { %1083 = vst.msk [vmem:[#allocation2] sm:$0xff] %vm1082_vm4, %v987_v58  ;;  %1084 = vst.msk [vmem:[#allocation2 + $0x8] sm:$0xff] %vm1082_vm4, %v989_v59  ;;  %v7036_v58 = vld [vmem:[%s7947_s17 + $0xa9] sm:$0xff]  ;;  %v7037_v59 = vld [vmem:[%s7947_s17 + $0xb1] sm:$0xff] }
 0x151   : > { %1231 = vrot.lane.b32.xlu0 %v8394_v0, %s7843_s22  ;;  %1233 = vrot.lane.b32.xlu1 %v8397_v2, %s7843_s22 }
 0x153   : > { %v991_v1 = vpop.permute.xlu0 %990  ;;  %v993_v3 = vpop.permute.xlu1 %992 }
 0x154   : > { %1085 = vst.msk [vmem:[#allocation2 + $0x10] sm:$0xff] %vm1082_vm4, %v991_v1  ;;  %1086 = vst.msk [vmem:[#allocation2 + $0x18] sm:$0xff] %vm1082_vm4, %v993_v3 }
 0x155   : > { %1235 = vrot.lane.b32.xlu0 %v8406_v61, %s7843_s22  ;;  %1237 = vrot.lane.b32.xlu1 %v8409_v62, %s7843_s22 }
 0x157   : > { %v995_v0 = vpop.permute.xlu0 %994  ;;  %v997_v6 = vpop.permute.xlu1 %996 }
 0x158   : > { %1087 = vst.msk [vmem:[#allocation2 + $0x20] sm:$0xff] %vm1082_vm4, %v995_v0  ;;  %1088 = vst.msk [vmem:[#allocation2 + $0x28] sm:$0xff] %vm1082_vm4, %v997_v6  ;;  %v7038_v0 = vld [vmem:[%s7947_s17 + $0xc1] sm:$0xff]  ;;  %v7039_v6 = vld [vmem:[%s7947_s17 + $0xc9] sm:$0xff] }
 0x159   : > { %1239 = vrot.lane.b32.xlu0 %v8712_v4, %s7843_s22  ;;  %1241 = vrot.lane.b32.xlu1 %v8715_v5, %s7843_s22 }
 0x15b   : > { %v999_v2 = vpop.permute.xlu0 %998  ;;  %v1001_v61 = vpop.permute.xlu1 %1000 }
 0x15c   : > { %1089 = vst.msk [vmem:[#allocation2 + $0x30] sm:$0xff] %vm1082_vm4, %v999_v2  ;;  %1090 = vst.msk [vmem:[#allocation2 + $0x38] sm:$0xff] %vm1082_vm4, %v1001_v61 }
 0x15d   : > { %1373 = vrot.lane.b32.xlu0 %v8027_v19, %s7844_s23  ;;  %1375 = vrot.lane.b32.xlu1 %v8030_v20, %s7844_s23 }
 0x15f   : > { %v1003_v62 = vpop.permute.xlu0 %1002  ;;  %v1005_v7 = vpop.permute.xlu1 %1004 }
 0x160   : > { %1091 = vst.msk [vmem:[#allocation2 + $0x40] sm:$0xff] %vm1082_vm4, %v1003_v62  ;;  %1092 = vst.msk [vmem:[#allocation2 + $0x48] sm:$0xff] %vm1082_vm4, %v1005_v7  ;;  %v7040_v62 = vld [vmem:[%s7947_s17 + $0xd9] sm:$0xff]  ;;  %v7041_v7 = vld [vmem:[%s7947_s17 + $0xe1] sm:$0xff] }
 0x161   : > { %1377 = vrot.lane.b32.xlu0 %v8044_v22, %s7844_s23  ;;  %1379 = vrot.lane.b32.xlu1 %v8049_v23, %s7844_s23 }
 0x163   : > { %v1007_v8 = vpop.permute.xlu0 %1006  ;;  %v1009_v9 = vpop.permute.xlu1 %1008 }
 0x164   : > { %1093 = vst.msk [vmem:[#allocation2 + $0x50] sm:$0xff] %vm1082_vm4, %v1007_v8  ;;  %1094 = vst.msk [vmem:[#allocation2 + $0x58] sm:$0xff] %vm1082_vm4, %v1009_v9 }
 0x165   : > { %1381 = vrot.lane.b32.xlu0 %v8052_v24, %s7844_s23  ;;  %1383 = vrot.lane.b32.xlu1 %v8055_v25, %s7844_s23 }
 0x167   : > { %v1011_v19 = vpop.permute.xlu0 %1010  ;;  %v1013_v20 = vpop.permute.xlu1 %1012 }
 0x168   : > { %1095 = vst.msk [vmem:[#allocation2 + $0x60] sm:$0xff] %vm1082_vm4, %v1011_v19  ;;  %1096 = vst.msk [vmem:[#allocation2 + $0x68] sm:$0xff] %vm1082_vm4, %v1013_v20  ;;  %v7042_v19 = vld [vmem:[%s7947_s17 + $0xf1] sm:$0xff]  ;;  %v7043_v20 = vld [vmem:[%s7947_s17 + $0xf9] sm:$0xff] }
 0x169   : > { %1385 = vrot.lane.b32.xlu0 %v8064_v26, %s7844_s23  ;;  %1387 = vrot.lane.b32.xlu1 %v8067_v27, %s7844_s23 }
 0x16b   : > { %v1015_v22 = vpop.permute.xlu0 %1014  ;;  %v1017_v23 = vpop.permute.xlu1 %1016 }
 0x16c   : > { %1097 = vst.msk [vmem:[#allocation2 + $0x70] sm:$0xff] %vm1082_vm4, %v1015_v22  ;;  %1098 = vst.msk [vmem:[#allocation2 + $0x78] sm:$0xff] %vm1082_vm4, %v1017_v23 }
 0x16d   : > { %1389 = vrot.lane.b32.xlu0 %v8070_v28, %s7844_s23  ;;  %1391 = vrot.lane.b32.xlu1 %v8085_v31, %s7844_s23 }
 0x16f   : > { %v1019_v24 = vpop.permute.xlu0 %1018  ;;  %v1021_v25 = vpop.permute.xlu1 %1020 }
 0x170   : > { %1099 = vst.msk [vmem:[#allocation2 + $0x80] sm:$0xff] %vm1082_vm4, %v1019_v24  ;;  %1100 = vst.msk [vmem:[#allocation2 + $0x88] sm:$0xff] %vm1082_vm4, %v1021_v25  ;;  %v7044_v24 = vld [vmem:[%s7947_s17 + $0x109] sm:$0xff]  ;;  %v7045_v25 = vld [vmem:[%s7947_s17 + $0x111] sm:$0xff] }
 0x171   : > { %1393 = vrot.lane.b32.xlu0 %v8088_v32, %s7844_s23  ;;  %1395 = vrot.lane.b32.xlu1 %v8091_v33, %s7844_s23 }
 0x173   : > { %v1023_v26 = vpop.permute.xlu0 %1022  ;;  %v1025_v27 = vpop.permute.xlu1 %1024 }
 0x174   : > { %1101 = vst.msk [vmem:[#allocation2 + $0x90] sm:$0xff] %vm1082_vm4, %v1023_v26  ;;  %1102 = vst.msk [vmem:[#allocation2 + $0x98] sm:$0xff] %vm1082_vm4, %v1025_v27 }
 0x175   : > { %1397 = vrot.lane.b32.xlu0 %v8104_v34, %s7844_s23  ;;  %1399 = vrot.lane.b32.xlu1 %v8107_v35, %s7844_s23 }
 0x177   : > { %v1027_v28 = vpop.permute.xlu0 %1026  ;;  %v1029_v31 = vpop.permute.xlu1 %1028 }
 0x178   : > { %1103 = vst.msk [vmem:[#allocation2 + $0xa0] sm:$0xff] %vm1082_vm4, %v1027_v28  ;;  %1104 = vst.msk [vmem:[#allocation2 + $0xa8] sm:$0xff] %vm1082_vm4, %v1029_v31  ;;  %v7046_v28 = vld [vmem:[%s7947_s17 + $0x121] sm:$0xff]  ;;  %v7047_v31 = vld [vmem:[%s7947_s17 + $0x129] sm:$0xff] }
 0x179   : > { %1401 = vrot.lane.b32.xlu0 %v8114_v36, %s7844_s23  ;;  %1403 = vrot.lane.b32.xlu1 %v8117_v37, %s7844_s23 }
 0x17b   : > { %v1031_v32 = vpop.permute.xlu0 %1030  ;;  %v1033_v33 = vpop.permute.xlu1 %1032 }
 0x17c   : > { %1105 = vst.msk [vmem:[#allocation2 + $0xb0] sm:$0xff] %vm1082_vm4, %v1031_v32  ;;  %1106 = vst.msk [vmem:[#allocation2 + $0xb8] sm:$0xff] %vm1082_vm4, %v1033_v33 }
 0x17d   : > { %1405 = vrot.lane.b32.xlu0 %v8120_v38, %s7844_s23  ;;  %1407 = vrot.lane.b32.xlu1 %v8129_v39, %s7844_s23 }
 0x17f   : > { %v1035_v34 = vpop.permute.xlu0 %1034  ;;  %v1037_v35 = vpop.permute.xlu1 %1036 }
 0x180   : > { %1107 = vst.msk [vmem:[#allocation2 + $0xc0] sm:$0xff] %vm1082_vm4, %v1035_v34  ;;  %1108 = vst.msk [vmem:[#allocation2 + $0xc8] sm:$0xff] %vm1082_vm4, %v1037_v35  ;;  %v7048_v34 = vld [vmem:[%s7947_s17 + $0x139] sm:$0xff]  ;;  %v7049_v35 = vld [vmem:[%s7947_s17 + $0x141] sm:$0xff] }
 0x181   : > { %1409 = vrot.lane.b32.xlu0 %v8132_v40, %s7844_s23  ;;  %1411 = vrot.lane.b32.xlu1 %v8135_v41, %s7844_s23 }
 0x183   : > { %v1039_v36 = vpop.permute.xlu0 %1038  ;;  %v1041_v37 = vpop.permute.xlu1 %1040 }
 0x184   : > { %1109 = vst.msk [vmem:[#allocation2 + $0xd0] sm:$0xff] %vm1082_vm4, %v1039_v36  ;;  %1110 = vst.msk [vmem:[#allocation2 + $0xd8] sm:$0xff] %vm1082_vm4, %v1041_v37 }
 0x185   : > { %1413 = vrot.lane.b32.xlu0 %v8154_v44, %s7844_s23  ;;  %1415 = vrot.lane.b32.xlu1 %v8159_v45, %s7844_s23 }
 0x187   : > { %v1043_v38 = vpop.permute.xlu0 %1042  ;;  %v1045_v39 = vpop.permute.xlu1 %1044 }
 0x188   : > { %1111 = vst.msk [vmem:[#allocation2 + $0xe0] sm:$0xff] %vm1082_vm4, %v1043_v38  ;;  %1112 = vst.msk [vmem:[#allocation2 + $0xe8] sm:$0xff] %vm1082_vm4, %v1045_v39  ;;  %v7050_v38 = vld [vmem:[%s7947_s17 + $0x151] sm:$0xff]  ;;  %v7051_v39 = vld [vmem:[%s7947_s17 + $0x159] sm:$0xff] }
 0x189   : > { %1417 = vrot.lane.b32.xlu0 %v8174_v48, %s7844_s23  ;;  %1419 = vrot.lane.b32.xlu1 %v8179_v49, %s7844_s23 }
 0x18b   : > { %v1047_v40 = vpop.permute.xlu0 %1046  ;;  %v1049_v41 = vpop.permute.xlu1 %1048 }
 0x18c   : > { %1113 = vst.msk [vmem:[#allocation2 + $0xf0] sm:$0xff] %vm1082_vm4, %v1047_v40  ;;  %1114 = vst.msk [vmem:[#allocation2 + $0xf8] sm:$0xff] %vm1082_vm4, %v1049_v41  ;;  %vm3923_vm4 = vcmask 589312  }
 0x18d   : > { %1421 = vrot.lane.b32.xlu0 %v8194_v52, %s7844_s23  ;;  %1423 = vrot.lane.b32.xlu1 %v8199_v53, %s7844_s23  ;;  %v7024_v52 = vld [vmem:[%s7947_s17 + $0x198] sm:$0xff]  ;;  %v7025_v53 = vld [vmem:[%s7947_s17 + $0x1a0] sm:$0xff] }
 0x18f   : > { %v1180_v44 = vpop.permute.xlu0 %1179  ;;  %v1182_v45 = vpop.permute.xlu1 %1181 }
 0x190   : > { %1276 = vst.msk [vmem:[#allocation2] sm:$0xff] %vm1275_vm5, %v1180_v44  ;;  %1277 = vst.msk [vmem:[#allocation2 + $0x8] sm:$0xff] %vm1275_vm5, %v1182_v45  ;;  %v1920_v44 = vld [vmem:[%s11575_s1] sm:$0xff]  ;;  %v1921_v45 = vld [vmem:[%s11575_s1 + $0x8] sm:$0xff] }
 0x191   : > { %1425 = vrot.lane.b32.xlu0 %v8214_v56, %s7844_s23  ;;  %1427 = vrot.lane.b32.xlu1 %v8219_v57, %s7844_s23  ;;  %v7026_v57 = vld [vmem:[%s7947_s17 + $0x31] sm:$0xff] }
 0x193   : > { %v1184_v48 = vpop.permute.xlu0 %1183  ;;  %v1186_v49 = vpop.permute.xlu1 %1185 }
 0x194   : > { %1278 = vst.msk [vmem:[#allocation2 + $0x10] sm:$0xff] %vm1275_vm5, %v1184_v48  ;;  %1279 = vst.msk [vmem:[#allocation2 + $0x18] sm:$0xff] %vm1275_vm5, %v1186_v49  ;;  %v7539_v48 = vpack.c.bf16 %v1921_v45, %v1920_v44  ;;  %v7052_v49 = vld [vmem:[%s7947_s17 + $0x169] sm:$0xff] }
 0x195   : > { %1429 = vrot.lane.b32.xlu0 %v8508_v13, %s7844_s23  ;;  %1431 = vrot.lane.b32.xlu1 %v8511_v17, %s7844_s23  ;;  %v7081_v44 = vld [vmem:[%s7947_s17 + $0x142] sm:$0xff] }
 0x196   : > { %7540 = vmatprep.subr.bf16.mxu0 %v7539_v48  ;;  %7579 = vmatprep.subr.bf16.mxu1 %v7539_v48 }
 0x197   : > { %v1188_v56 = vpop.permute.xlu0 %1187  ;;  %v1190_v10 = vpop.permute.xlu1 %1189  ;;  %7542 = vmatpush3.bf16.msra.mxu0 %v7539_v48  ;;  %7582 = vmatpush3.bf16.msra.mxu1 %v7539_v48 }
 0x198   : > { %1280 = vst.msk [vmem:[#allocation2 + $0x20] sm:$0xff] %vm1275_vm5, %v1188_v56  ;;  %1281 = vst.msk [vmem:[#allocation2 + $0x28] sm:$0xff] %vm1275_vm5, %v1190_v10  ;;  %v1922_v10 = vld [vmem:[%s11575_s1 + $0x10] sm:$0xff] }
 0x199   : > { %1433 = vrot.lane.b32.xlu0 %v7024_v52, %s7844_s23  ;;  %1435 = vrot.lane.b32.xlu1 %v7025_v53, %s7844_s23  ;;  %v7053_v52 = vld [vmem:[%s7947_s17 + $0x171] sm:$0xff] }
 0x19b   : > { %v1192_v13 = vpop.permute.xlu0 %1191  ;;  %v1194_v17 = vpop.permute.xlu1 %1193 }
 0x19c   : > { %1282 = vst.msk [vmem:[#allocation2 + $0x30] sm:$0xff] %vm1275_vm5, %v1192_v13  ;;  %1283 = vst.msk [vmem:[#allocation2 + $0x38] sm:$0xff] %vm1275_vm5, %v1194_v17 }
 0x19d   : > { %1566 = vrot.lane.b32.xlu0 %v7026_v57, %s7845_s29  ;;  %1568 = vrot.lane.b32.xlu1 %v7027_v11, %s7845_s29  ;;  %v1923_v57 = vld [vmem:[%s11575_s1 + $0x18] sm:$0xff] }
 0x19e   : > { %v7543_v11 = vpack.c.bf16 %v1923_v57, %v1922_v10  ;;  %v7084_v10 = vld [vmem:[%s7947_s17 + $0x16a] sm:$0xff]  ;;  %v7085_v57 = vld [vmem:[%s7947_s17 + $0x172] sm:$0xff] }
 0x19f   : > { %v1196_v18 = vpop.permute.xlu0 %1195  ;;  %v1198_v21 = vpop.permute.xlu1 %1197 }
 0x1a0   : > { %1284 = vst.msk [vmem:[#allocation2 + $0x40] sm:$0xff] %vm1275_vm5, %v1196_v18  ;;  %1285 = vst.msk [vmem:[#allocation2 + $0x48] sm:$0xff] %vm1275_vm5, %v1198_v21  ;;  %7544 = vmatprep.subr.bf16.mxu0 %v7543_v11  ;;  %7580 = vmatprep.subr.bf16.mxu1 %v7543_v11  ;;  %v7057_v18 = vld [vmem:[%s7947_s17 + $0x1a1] sm:$0xff] }
 0x1a1   : > { %1570 = vrot.lane.b32.xlu0 %v7028_v14, %s7845_s29  ;;  %1572 = vrot.lane.b32.xlu1 %v7029_v15, %s7845_s29  ;;  %v1924_v14 = vld [vmem:[%s11575_s1 + $0x20] sm:$0xf] }
 0x1a2   : > { %7546 = vmatpush3.bf16.msra.mxu0 %v7543_v11  ;;  %7583 = vmatpush3.bf16.msra.mxu1 %v7543_v11  ;;  %v7056_v15 = vld [vmem:[%s7947_s17 + $0x199] sm:$0xff] }
 0x1a3   : > { %v1200_v42 = vpop.permute.xlu0 %1199  ;;  %v1202_v43 = vpop.permute.xlu1 %1201  ;;  %7357 = vmatprep.subr.msk.mxu0 %vm2029_vm7, %v1924_v14  ;;  %7581 = vmatprep.subr.msk.mxu1 %vm2029_vm7, %v1924_v14 }
 0x1a4   : > { %1286 = vst.msk [vmem:[#allocation2 + $0x50] sm:$0xff] %vm1275_vm5, %v1200_v42  ;;  %1287 = vst.msk [vmem:[#allocation2 + $0x58] sm:$0xff] %vm1275_vm5, %v1202_v43  ;;  %v7060_v43 = vld [vmem:[%s7947_s17 + $0x4a] sm:$0xff] }
 0x1a5   : > { %1574 = vrot.lane.b32.xlu0 %v7030_v29, %s7845_s29  ;;  %1576 = vrot.lane.b32.xlu1 %v7031_v30, %s7845_s29 }
 0x1a6   : > { %7358 = vmatpush3.msk.msra.mxu0 %vm2029_vm7, %v1924_v14  ;;  %7584 = vmatpush3.msk.msra.mxu1 %vm2029_vm7, %v1924_v14 }
 0x1a7   : > { %v1204_v50 = vpop.permute.xlu0 %1203  ;;  %v1206_v51 = vpop.permute.xlu1 %1205 }
 0x1a8   : > { %1288 = vst.msk [vmem:[#allocation2 + $0x60] sm:$0xff] %vm1275_vm5, %v1204_v50  ;;  %1289 = vst.msk [vmem:[#allocation2 + $0x68] sm:$0xff] %vm1275_vm5, %v1206_v51  ;;  %v7062_v51 = vld [vmem:[%s7947_s17 + $0x62] sm:$0xff] }
 0x1a9   : > { %1578 = vrot.lane.b32.xlu0 %v7032_v46, %s7845_s29  ;;  %1580 = vrot.lane.b32.xlu1 %v7033_v47, %s7845_s29  ;;  %v7061_v46 = vld [vmem:[%s7947_s17 + $0x52] sm:$0xff] }
 0x1ab   : > { %v1208_v12 = vpop.permute.xlu0 %1207  ;;  %v1210_v16 = vpop.permute.xlu1 %1209 }
 0x1ac   : > { %1290 = vst.msk [vmem:[#allocation2 + $0x70] sm:$0xff] %vm1275_vm5, %v1208_v12  ;;  %1291 = vst.msk [vmem:[#allocation2 + $0x78] sm:$0xff] %vm1275_vm5, %v1210_v16  ;;  %v7064_v16 = vld [vmem:[%s7947_s17 + $0x7a] sm:$0xff] }
 0x1ad   : > { %1582 = vrot.lane.b32.xlu0 %v7034_v54, %s7845_s29  ;;  %1584 = vrot.lane.b32.xlu1 %v7035_v55, %s7845_s29  ;;  %v7063_v54 = vld [vmem:[%s7947_s17 + $0x6a] sm:$0xff] }
 0x1af   : > { %v1212_v1 = vpop.permute.xlu0 %1211  ;;  %v1214_v3 = vpop.permute.xlu1 %1213 }
 0x1b0   : > { %1292 = vst.msk [vmem:[#allocation2 + $0x80] sm:$0xff] %vm1275_vm5, %v1212_v1  ;;  %1293 = vst.msk [vmem:[#allocation2 + $0x88] sm:$0xff] %vm1275_vm5, %v1214_v3  ;;  %v7066_v3 = vld [vmem:[%s7947_s17 + $0x92] sm:$0xff] }
 0x1b1   : > { %1586 = vrot.lane.b32.xlu0 %v7036_v58, %s7845_s29  ;;  %1588 = vrot.lane.b32.xlu1 %v7037_v59, %s7845_s29  ;;  %v7065_v58 = vld [vmem:[%s7947_s17 + $0x82] sm:$0xff] }
 0x1b3   : > { %v1216_v2 = vpop.permute.xlu0 %1215  ;;  %v1218_v61 = vpop.permute.xlu1 %1217 }
 0x1b4   : > { %1294 = vst.msk [vmem:[#allocation2 + $0x90] sm:$0xff] %vm1275_vm5, %v1216_v2  ;;  %1295 = vst.msk [vmem:[#allocation2 + $0x98] sm:$0xff] %vm1275_vm5, %v1218_v61  ;;  %v7068_v61 = vld [vmem:[%s7947_s17 + $0xaa] sm:$0xff] }
 0x1b5   : > { %1590 = vrot.lane.b32.xlu0 %v7038_v0, %s7845_s29  ;;  %1592 = vrot.lane.b32.xlu1 %v7039_v6, %s7845_s29  ;;  %v7067_v0 = vld [vmem:[%s7947_s17 + $0x9a] sm:$0xff] }
 0x1b7   : > { %v1220_v8 = vpop.permute.xlu0 %1219  ;;  %v1222_v9 = vpop.permute.xlu1 %1221 }
 0x1b8   : > { %1296 = vst.msk [vmem:[#allocation2 + $0xa0] sm:$0xff] %vm1275_vm5, %v1220_v8  ;;  %1297 = vst.msk [vmem:[#allocation2 + $0xa8] sm:$0xff] %vm1275_vm5, %v1222_v9  ;;  %v7070_v9 = vld [vmem:[%s7947_s17 + $0xc2] sm:$0xff] }
 0x1b9   : > { %1594 = vrot.lane.b32.xlu0 %v7040_v62, %s7845_s29  ;;  %1596 = vrot.lane.b32.xlu1 %v7041_v7, %s7845_s29  ;;  %v7069_v62 = vld [vmem:[%s7947_s17 + $0xb2] sm:$0xff] }
 0x1bb   : > { %v1224_v22 = vpop.permute.xlu0 %1223  ;;  %v1226_v23 = vpop.permute.xlu1 %1225 }
 0x1bc   : > { %1298 = vst.msk [vmem:[#allocation2 + $0xb0] sm:$0xff] %vm1275_vm5, %v1224_v22  ;;  %1299 = vst.msk [vmem:[#allocation2 + $0xb8] sm:$0xff] %vm1275_vm5, %v1226_v23  ;;  %v7072_v23 = vld [vmem:[%s7947_s17 + $0xda] sm:$0xff] }
 0x1bd   : > { %1598 = vrot.lane.b32.xlu0 %v7042_v19, %s7845_s29  ;;  %1600 = vrot.lane.b32.xlu1 %v7043_v20, %s7845_s29  ;;  %v7071_v19 = vld [vmem:[%s7947_s17 + $0xca] sm:$0xff] }
 0x1bf   : > { %v1228_v26 = vpop.permute.xlu0 %1227  ;;  %v1230_v27 = vpop.permute.xlu1 %1229 }
 0x1c0   : > { %1300 = vst.msk [vmem:[#allocation2 + $0xc0] sm:$0xff] %vm1275_vm5, %v1228_v26  ;;  %1301 = vst.msk [vmem:[#allocation2 + $0xc8] sm:$0xff] %vm1275_vm5, %v1230_v27  ;;  %v7074_v27 = vld [vmem:[%s7947_s17 + $0xf2] sm:$0xff] }
 0x1c1   : > { %1602 = vrot.lane.b32.xlu0 %v7044_v24, %s7845_s29  ;;  %1604 = vrot.lane.b32.xlu1 %v7045_v25, %s7845_s29  ;;  %v7073_v24 = vld [vmem:[%s7947_s17 + $0xe2] sm:$0xff] }
 0x1c3   : > { %v1232_v32 = vpop.permute.xlu0 %1231  ;;  %v1234_v33 = vpop.permute.xlu1 %1233 }
 0x1c4   : > { %1302 = vst.msk [vmem:[#allocation2 + $0xd0] sm:$0xff] %vm1275_vm5, %v1232_v32  ;;  %1303 = vst.msk [vmem:[#allocation2 + $0xd8] sm:$0xff] %vm1275_vm5, %v1234_v33  ;;  %v7076_v33 = vld [vmem:[%s7947_s17 + $0x10a] sm:$0xff] }
 0x1c5   : > { %1606 = vrot.lane.b32.xlu0 %v7046_v28, %s7845_s29  ;;  %1608 = vrot.lane.b32.xlu1 %v7047_v31, %s7845_s29  ;;  %v7075_v28 = vld [vmem:[%s7947_s17 + $0xfa] sm:$0xff] }
 0x1c7   : > { %v1236_v36 = vpop.permute.xlu0 %1235  ;;  %v1238_v37 = vpop.permute.xlu1 %1237 }
 0x1c8   : > { %1304 = vst.msk [vmem:[#allocation2 + $0xe0] sm:$0xff] %vm1275_vm5, %v1236_v36  ;;  %1305 = vst.msk [vmem:[#allocation2 + $0xe8] sm:$0xff] %vm1275_vm5, %v1238_v37  ;;  %v7078_v37 = vld [vmem:[%s7947_s17 + $0x122] sm:$0xff] }
 0x1c9   : > { %1610 = vrot.lane.b32.xlu0 %v7048_v34, %s7845_s29  ;;  %1612 = vrot.lane.b32.xlu1 %v7049_v35, %s7845_s29  ;;  %v7077_v34 = vld [vmem:[%s7947_s17 + $0x112] sm:$0xff] }
 0x1cb   : > { %v1240_v40 = vpop.permute.xlu0 %1239  ;;  %v1242_v41 = vpop.permute.xlu1 %1241 }
 0x1cc   : > { %1306 = vst.msk [vmem:[#allocation2 + $0xf0] sm:$0xff] %vm1275_vm5, %v1240_v40  ;;  %1307 = vst.msk [vmem:[#allocation2 + $0xf8] sm:$0xff] %vm1275_vm5, %v1242_v41  ;;  %v7080_v41 = vld [vmem:[%s7947_s17 + $0x13a] sm:$0xff]  ;;  %vm4004_vm5 = vcmask 588800  }
 0x1cd   : > { %1614 = vrot.lane.b32.xlu0 %v7050_v38, %s7845_s29  ;;  %1616 = vrot.lane.b32.xlu1 %v7051_v39, %s7845_s29  ;;  %v7079_v38 = vld [vmem:[%s7947_s17 + $0x12a] sm:$0xff] }
 0x1cf   : > { %v1374_v53 = vpop.permute.xlu0 %1373  ;;  %v1376_v56 = vpop.permute.xlu1 %1375 }
 0x1d0   : > { %1470 = vst.msk [vmem:[#allocation2] sm:$0xff] %vm1469_vm6, %v1374_v53  ;;  %1471 = vst.msk [vmem:[#allocation2 + $0x8] sm:$0xff] %vm1469_vm6, %v1376_v56 }
 0x1d1   : > { %1618 = vrot.lane.b32.xlu0 %v7052_v49, %s7845_s29  ;;  %1620 = vrot.lane.b32.xlu1 %v7053_v52, %s7845_s29  ;;  %v7082_v49 = vld [vmem:[%s7947_s17 + $0x152] sm:$0xff]  ;;  %v7083_v52 = vld [vmem:[%s7947_s17 + $0x15a] sm:$0xff] }
 0x1d3   : > { %v1378_v13 = vpop.permute.xlu0 %1377  ;;  %v1380_v17 = vpop.permute.xlu1 %1379 }
 0x1d4   : > { %1472 = vst.msk [vmem:[#allocation2 + $0x10] sm:$0xff] %vm1469_vm6, %v1378_v13  ;;  %1473 = vst.msk [vmem:[#allocation2 + $0x18] sm:$0xff] %vm1469_vm6, %v1380_v17 }
 0x1d5   : > { %1622 = vrot.lane.b32.xlu0 %v8610_v60, %s7845_s29  ;;  %1624 = vrot.lane.b32.xlu1 %v8613_v63, %s7845_s29  ;;  %v7058_v60 = vld [vmem:[%s7947_s17 + $0x32] sm:$0xff]  ;;  %v7059_v63 = vld [vmem:[%s7947_s17 + $0x3a] sm:$0xff] }
 0x1d7   : > { %v1382_v21 = vpop.permute.xlu0 %1381  ;;  %v1384_v29 = vpop.permute.xlu1 %1383 }
 0x1d8   : > { %1474 = vst.msk [vmem:[#allocation2 + $0x20] sm:$0xff] %vm1469_vm6, %v1382_v21  ;;  %1475 = vst.msk [vmem:[#allocation2 + $0x28] sm:$0xff] %vm1469_vm6, %v1384_v29 }
 0x1d9   : > { %1626 = vrot.lane.b32.xlu0 %v7056_v15, %s7845_s29  ;;  %1628 = vrot.lane.b32.xlu1 %v7057_v18, %s7845_s29  ;;  %v7088_v15 = vld [vmem:[%s7947_s17 + $0x19a] sm:$0xff]  ;;  %v7089_v18 = vld [vmem:[%s7947_s17 + $0x1a2] sm:$0xff]  ;;  %s7852_s17 = smov 120  }
 0x1db   : > { %v1386_v30 = vpop.permute.xlu0 %1385  ;;  %v1388_v42 = vpop.permute.xlu1 %1387 }
 0x1dc   : > { %1476 = vst.msk [vmem:[#allocation2 + $0x30] sm:$0xff] %vm1469_vm6, %v1386_v30  ;;  %1477 = vst.msk [vmem:[#allocation2 + $0x38] sm:$0xff] %vm1469_vm6, %v1388_v42 }
 0x1dd   : > { %1759 = vrot.lane.b32.xlu0 %v7058_v60, %s7846_s9  ;;  %1761 = vrot.lane.b32.xlu1 %v7059_v63, %s7846_s9 }
 0x1df   : > { %v1390_v47 = vpop.permute.xlu0 %1389  ;;  %v1392_v50 = vpop.permute.xlu1 %1391 }
 0x1e0   : > { %1478 = vst.msk [vmem:[#allocation2 + $0x40] sm:$0xff] %vm1469_vm6, %v1390_v47  ;;  %1479 = vst.msk [vmem:[#allocation2 + $0x48] sm:$0xff] %vm1469_vm6, %v1392_v50 }
 0x1e1   : > { %1763 = vrot.lane.b32.xlu0 %v7060_v43, %s7846_s9  ;;  %1765 = vrot.lane.b32.xlu1 %v7061_v46, %s7846_s9 }
 0x1e3   : > { %v1394_v55 = vpop.permute.xlu0 %1393  ;;  %v1396_v12 = vpop.permute.xlu1 %1395 }
 0x1e4   : > { %1480 = vst.msk [vmem:[#allocation2 + $0x50] sm:$0xff] %vm1469_vm6, %v1394_v55  ;;  %1481 = vst.msk [vmem:[#allocation2 + $0x58] sm:$0xff] %vm1469_vm6, %v1396_v12 }
 0x1e5   : > { %1767 = vrot.lane.b32.xlu0 %v7062_v51, %s7846_s9  ;;  %1769 = vrot.lane.b32.xlu1 %v7063_v54, %s7846_s9 }
 0x1e7   : > { %v1398_v59 = vpop.permute.xlu0 %1397  ;;  %v1400_v1 = vpop.permute.xlu1 %1399 }
 0x1e8   : > { %1482 = vst.msk [vmem:[#allocation2 + $0x60] sm:$0xff] %vm1469_vm6, %v1398_v59  ;;  %1483 = vst.msk [vmem:[#allocation2 + $0x68] sm:$0xff] %vm1469_vm6, %v1400_v1 }
 0x1e9   : > { %1771 = vrot.lane.b32.xlu0 %v7064_v16, %s7846_s9  ;;  %1773 = vrot.lane.b32.xlu1 %v7065_v58, %s7846_s9 }
 0x1eb   : > { %v1402_v6 = vpop.permute.xlu0 %1401  ;;  %v1404_v2 = vpop.permute.xlu1 %1403 }
 0x1ec   : > { %1484 = vst.msk [vmem:[#allocation2 + $0x70] sm:$0xff] %vm1469_vm6, %v1402_v6  ;;  %1485 = vst.msk [vmem:[#allocation2 + $0x78] sm:$0xff] %vm1469_vm6, %v1404_v2 }
 0x1ed   : > { %1775 = vrot.lane.b32.xlu0 %v7066_v3, %s7846_s9  ;;  %1777 = vrot.lane.b32.xlu1 %v7067_v0, %s7846_s9 }
 0x1ef   : > { %v1406_v7 = vpop.permute.xlu0 %1405  ;;  %v1408_v8 = vpop.permute.xlu1 %1407 }
 0x1f0   : > { %1486 = vst.msk [vmem:[#allocation2 + $0x80] sm:$0xff] %vm1469_vm6, %v1406_v7  ;;  %1487 = vst.msk [vmem:[#allocation2 + $0x88] sm:$0xff] %vm1469_vm6, %v1408_v8 }
 0x1f1   : > { %1779 = vrot.lane.b32.xlu0 %v7068_v61, %s7846_s9  ;;  %1781 = vrot.lane.b32.xlu1 %v7069_v62, %s7846_s9 }
 0x1f3   : > { %v1410_v20 = vpop.permute.xlu0 %1409  ;;  %v1412_v22 = vpop.permute.xlu1 %1411 }
 0x1f4   : > { %1488 = vst.msk [vmem:[#allocation2 + $0x90] sm:$0xff] %vm1469_vm6, %v1410_v20  ;;  %1489 = vst.msk [vmem:[#allocation2 + $0x98] sm:$0xff] %vm1469_vm6, %v1412_v22 }
 0x1f5   : > { %1783 = vrot.lane.b32.xlu0 %v7070_v9, %s7846_s9  ;;  %1785 = vrot.lane.b32.xlu1 %v7071_v19, %s7846_s9 }
 0x1f7   : > { %v1414_v25 = vpop.permute.xlu0 %1413  ;;  %v1416_v26 = vpop.permute.xlu1 %1415 }
 0x1f8   : > { %1490 = vst.msk [vmem:[#allocation2 + $0xa0] sm:$0xff] %vm1469_vm6, %v1414_v25  ;;  %1491 = vst.msk [vmem:[#allocation2 + $0xa8] sm:$0xff] %vm1469_vm6, %v1416_v26 }
 0x1f9   : > { %1787 = vrot.lane.b32.xlu0 %v7072_v23, %s7846_s9  ;;  %1789 = vrot.lane.b32.xlu1 %v7073_v24, %s7846_s9 }
 0x1fb   : > { %v1418_v31 = vpop.permute.xlu0 %1417  ;;  %v1420_v32 = vpop.permute.xlu1 %1419 }
 0x1fc   : > { %1492 = vst.msk [vmem:[#allocation2 + $0xb0] sm:$0xff] %vm1469_vm6, %v1418_v31  ;;  %1493 = vst.msk [vmem:[#allocation2 + $0xb8] sm:$0xff] %vm1469_vm6, %v1420_v32 }
 0x1fd   : > { %1791 = vrot.lane.b32.xlu0 %v7074_v27, %s7846_s9  ;;  %1793 = vrot.lane.b32.xlu1 %v7075_v28, %s7846_s9 }
 0x1ff   : > { %v1422_v35 = vpop.permute.xlu0 %1421  ;;  %v1424_v36 = vpop.permute.xlu1 %1423 }
 0x200   : > { %1494 = vst.msk [vmem:[#allocation2 + $0xc0] sm:$0xff] %vm1469_vm6, %v1422_v35  ;;  %1495 = vst.msk [vmem:[#allocation2 + $0xc8] sm:$0xff] %vm1469_vm6, %v1424_v36 }
 0x201   : > { %1795 = vrot.lane.b32.xlu0 %v7076_v33, %s7846_s9  ;;  %1797 = vrot.lane.b32.xlu1 %v7077_v34, %s7846_s9 }
 0x203   : > { %v1426_v39 = vpop.permute.xlu0 %1425  ;;  %v1428_v40 = vpop.permute.xlu1 %1427 }
 0x204   : > { %1496 = vst.msk [vmem:[#allocation2 + $0xd0] sm:$0xff] %vm1469_vm6, %v1426_v39  ;;  %1497 = vst.msk [vmem:[#allocation2 + $0xd8] sm:$0xff] %vm1469_vm6, %v1428_v40 }
 0x205   : > { %1799 = vrot.lane.b32.xlu0 %v7078_v37, %s7846_s9  ;;  %1801 = vrot.lane.b32.xlu1 %v7079_v38, %s7846_s9 }
 0x207   : > { %v1430_v45 = vpop.permute.xlu0 %1429  ;;  %v1432_v48 = vpop.permute.xlu1 %1431 }
 0x208   : > { %1498 = vst.msk [vmem:[#allocation2 + $0xe0] sm:$0xff] %vm1469_vm6, %v1430_v45  ;;  %1499 = vst.msk [vmem:[#allocation2 + $0xe8] sm:$0xff] %vm1469_vm6, %v1432_v48 }
 0x209   : > { %1803 = vrot.lane.b32.xlu0 %v7080_v41, %s7846_s9  ;;  %1805 = vrot.lane.b32.xlu1 %v7081_v44, %s7846_s9 }
 0x20b   : > { %v1434_v53 = vpop.permute.xlu0 %1433  ;;  %v1436_v56 = vpop.permute.xlu1 %1435 }
 0x20c   : > { %1500 = vst.msk [vmem:[#allocation2 + $0xf0] sm:$0xff] %vm1469_vm6, %v1434_v53  ;;  %1501 = vst.msk [vmem:[#allocation2 + $0xf8] sm:$0xff] %vm1469_vm6, %v1436_v56 }
 0x20d   : > { %1807 = vrot.lane.b32.xlu0 %v7082_v49, %s7846_s9  ;;  %1809 = vrot.lane.b32.xlu1 %v7083_v52, %s7846_s9 }
 0x20f   : > { %v1567_v11 = vpop.permute.xlu0 %1566  ;;  %v1569_v13 = vpop.permute.xlu1 %1568 }
 0x210   : > { %1663 = vst.msk [vmem:[#allocation2] sm:$0xff] %vm1662_vm8, %v1567_v11  ;;  %1664 = vst.msk [vmem:[#allocation2 + $0x8] sm:$0xff] %vm1662_vm8, %v1569_v13 }
 0x211   : > { %1811 = vrot.lane.b32.xlu0 %v7084_v10, %s7846_s9  ;;  %1813 = vrot.lane.b32.xlu1 %v7085_v57, %s7846_s9 }
 0x213   : > { %v1571_v17 = vpop.permute.xlu0 %1570  ;;  %v1573_v14 = vpop.permute.xlu1 %1572 }
 0x214   : > { %1665 = vst.msk [vmem:[#allocation2 + $0x10] sm:$0xff] %vm1662_vm8, %v1571_v17  ;;  %1666 = vst.msk [vmem:[#allocation2 + $0x18] sm:$0xff] %vm1662_vm8, %v1573_v14 }
 0x215   : > { %1815 = vrot.lane.b32.xlu0 %v8712_v4, %s7846_s9  ;;  %1817 = vrot.lane.b32.xlu1 %v8715_v5, %s7846_s9 }
 0x217   : > { %v1575_v21 = vpop.permute.xlu0 %1574  ;;  %v1577_v29 = vpop.permute.xlu1 %1576 }
 0x218   : > { %1667 = vst.msk [vmem:[#allocation2 + $0x20] sm:$0xff] %vm1662_vm8, %v1575_v21  ;;  %1668 = vst.msk [vmem:[#allocation2 + $0x28] sm:$0xff] %vm1662_vm8, %v1577_v29 }
 0x219   : > { %1819 = vrot.lane.b32.xlu0 %v7088_v15, %s7846_s9  ;;  %1821 = vrot.lane.b32.xlu1 %v7089_v18, %s7846_s9 }
 0x21b   : > { %v1579_v60 = vpop.permute.xlu0 %1578  ;;  %v1581_v63 = vpop.permute.xlu1 %1580 }
 0x21c   : > { %1669 = vst.msk [vmem:[#allocation2 + $0x30] sm:$0xff] %vm1662_vm8, %v1579_v60  ;;  %1670 = vst.msk [vmem:[#allocation2 + $0x38] sm:$0xff] %vm1662_vm8, %v1581_v63 }
 0x21f   : > { %v1583_v4 = vpop.permute.xlu0 %1582  ;;  %v1585_v5 = vpop.permute.xlu1 %1584 }
 0x220   : > { %1671 = vst.msk [vmem:[#allocation2 + $0x40] sm:$0xff] %vm1662_vm8, %v1583_v4  ;;  %1672 = vst.msk [vmem:[#allocation2 + $0x48] sm:$0xff] %vm1662_vm8, %v1585_v5 }
 0x223   : > { %v1587_v30 = vpop.permute.xlu0 %1586  ;;  %v1589_v42 = vpop.permute.xlu1 %1588 }
 0x224   : > { %1673 = vst.msk [vmem:[#allocation2 + $0x50] sm:$0xff] %vm1662_vm8, %v1587_v30  ;;  %1674 = vst.msk [vmem:[#allocation2 + $0x58] sm:$0xff] %vm1662_vm8, %v1589_v42 }
 0x227   : > { %v1591_v43 = vpop.permute.xlu0 %1590  ;;  %v1593_v46 = vpop.permute.xlu1 %1592 }
 0x228   : > { %1675 = vst.msk [vmem:[#allocation2 + $0x60] sm:$0xff] %vm1662_vm8, %v1591_v43  ;;  %1676 = vst.msk [vmem:[#allocation2 + $0x68] sm:$0xff] %vm1662_vm8, %v1593_v46 }
 0x22b   : > { %v1595_v47 = vpop.permute.xlu0 %1594  ;;  %v1597_v50 = vpop.permute.xlu1 %1596 }
 0x22c   : > { %1677 = vst.msk [vmem:[#allocation2 + $0x70] sm:$0xff] %vm1662_vm8, %v1595_v47  ;;  %1678 = vst.msk [vmem:[#allocation2 + $0x78] sm:$0xff] %vm1662_vm8, %v1597_v50 }
 0x22f   : > { %v1599_v51 = vpop.permute.xlu0 %1598  ;;  %v1601_v54 = vpop.permute.xlu1 %1600 }
 0x230   : > { %1679 = vst.msk [vmem:[#allocation2 + $0x80] sm:$0xff] %vm1662_vm8, %v1599_v51  ;;  %1680 = vst.msk [vmem:[#allocation2 + $0x88] sm:$0xff] %vm1662_vm8, %v1601_v54 }
 0x233   : > { %v1603_v55 = vpop.permute.xlu0 %1602  ;;  %v1605_v12 = vpop.permute.xlu1 %1604 }
 0x234   : > { %1681 = vst.msk [vmem:[#allocation2 + $0x90] sm:$0xff] %vm1662_vm8, %v1603_v55  ;;  %1682 = vst.msk [vmem:[#allocation2 + $0x98] sm:$0xff] %vm1662_vm8, %v1605_v12 }
 0x237   : > { %v1607_v16 = vpop.permute.xlu0 %1606  ;;  %v1609_v58 = vpop.permute.xlu1 %1608 }
 0x238   : > { %1683 = vst.msk [vmem:[#allocation2 + $0xa0] sm:$0xff] %vm1662_vm8, %v1607_v16  ;;  %1684 = vst.msk [vmem:[#allocation2 + $0xa8] sm:$0xff] %vm1662_vm8, %v1609_v58 }
 0x23b   : > { %v1611_v59 = vpop.permute.xlu0 %1610  ;;  %v1613_v1 = vpop.permute.xlu1 %1612 }
 0x23c   : > { %1685 = vst.msk [vmem:[#allocation2 + $0xb0] sm:$0xff] %vm1662_vm8, %v1611_v59  ;;  %1686 = vst.msk [vmem:[#allocation2 + $0xb8] sm:$0xff] %vm1662_vm8, %v1613_v1 }
 0x23f   : > { %v1615_v3 = vpop.permute.xlu0 %1614  ;;  %v1617_v0 = vpop.permute.xlu1 %1616 }
 0x240   : > { %1687 = vst.msk [vmem:[#allocation2 + $0xc0] sm:$0xff] %vm1662_vm8, %v1615_v3  ;;  %1688 = vst.msk [vmem:[#allocation2 + $0xc8] sm:$0xff] %vm1662_vm8, %v1617_v0 }
 0x243   : > { %v1619_v6 = vpop.permute.xlu0 %1618  ;;  %v1621_v2 = vpop.permute.xlu1 %1620 }
 0x244   : > { %1689 = vst.msk [vmem:[#allocation2 + $0xd0] sm:$0xff] %vm1662_vm8, %v1619_v6  ;;  %1690 = vst.msk [vmem:[#allocation2 + $0xd8] sm:$0xff] %vm1662_vm8, %v1621_v2 }
 0x247   : > { %v1623_v61 = vpop.permute.xlu0 %1622  ;;  %v1625_v62 = vpop.permute.xlu1 %1624 }
 0x248   : > { %1691 = vst.msk [vmem:[#allocation2 + $0xe0] sm:$0xff] %vm1662_vm8, %v1623_v61  ;;  %1692 = vst.msk [vmem:[#allocation2 + $0xe8] sm:$0xff] %vm1662_vm8, %v1625_v62 }
 0x24b   : > { %v1627_v7 = vpop.permute.xlu0 %1626  ;;  %v1629_v8 = vpop.permute.xlu1 %1628 }
 0x24c   : > { %1693 = vst.msk [vmem:[#allocation2 + $0xf0] sm:$0xff] %vm1662_vm8, %v1627_v7  ;;  %1694 = vst.msk [vmem:[#allocation2 + $0xf8] sm:$0xff] %vm1662_vm8, %v1629_v8 }
 0x24f   : > { %v1760_v9 = vpop.permute.xlu0 %1759  ;;  %v1762_v19 = vpop.permute.xlu1 %1761 }
 0x250   : > { %1856 = vst.msk [vmem:[#allocation2] sm:$0xff] %vm1855_vm9, %v1760_v9  ;;  %1857 = vst.msk [vmem:[#allocation2 + $0x8] sm:$0xff] %vm1855_vm9, %v1762_v19  ;;  %v7847_v9 = vmov 0.0  }
 0x251   : > { %2264 = vst.msk [vmem:[#allocation5 + $0x20] sm:$0xff] %vm2258_vm11, %v7847_v9  ;;  %2259 = vst.msk [vmem:[#allocation5] sm:$0xff] %vm2258_vm11, %v7847_v9 }
 0x252   : > { %2265 = vst.msk [vmem:[#allocation5 + $0x28] sm:$0x3] %vm2261_vm12, %v7847_v9  ;;  %2262 = vst.msk [vmem:[#allocation5 + $0x10] sm:$0x3] %vm2261_vm12, %v7847_v9 }
 0x253   : > { %v1764_v20 = vpop.permute.xlu0 %1763  ;;  %v1766_v22 = vpop.permute.xlu1 %1765  ;;  %2260 = vst.msk [vmem:[#allocation5 + $0x8] sm:$0xff] %vm2258_vm11, %v7847_v9  ;;  %2263 = vst.msk [vmem:[#allocation5 + $0x18] sm:$0xff] %vm2258_vm11, %v7847_v9 }
 0x254   : > { %1858 = vst.msk [vmem:[#allocation2 + $0x10] sm:$0xff] %vm1855_vm9, %v1764_v20  ;;  %1859 = vst.msk [vmem:[#allocation2 + $0x18] sm:$0xff] %vm1855_vm9, %v1766_v22 }
 0x255   : > { %2266 = vst.msk [vmem:[#allocation5 + $0x30] sm:$0xff] %vm2258_vm11, %v7847_v9  ;;  %2267 = vst.msk [vmem:[#allocation5 + $0x38] sm:$0xff] %vm2258_vm11, %v7847_v9 }
 0x256   : > { %2268 = vst.msk [vmem:[#allocation5 + $0x40] sm:$0x3] %vm2261_vm12, %v7847_v9  ;;  %2271 = vst.msk [vmem:[#allocation5 + $0x58] sm:$0x3] %vm2261_vm12, %v7847_v9 }
 0x257   : > { %v1768_v23 = vpop.permute.xlu0 %1767  ;;  %v1770_v24 = vpop.permute.xlu1 %1769  ;;  %v1888_v25 = vld [vmem:[#allocation2] sm:$0xff]  ;;  %v1889_v26 = vld [vmem:[#allocation2 + $0x8] sm:$0xff]  ;;  %2269 = vst.msk [vmem:[#allocation5 + $0x48] sm:$0xff] %vm2258_vm11, %v7847_v9  ;;  %2270 = vst.msk [vmem:[#allocation5 + $0x50] sm:$0xff] %vm2258_vm11, %v7847_v9 }
 0x258   : > { %1860 = vst.msk [vmem:[#allocation2 + $0x20] sm:$0xff] %vm1855_vm9, %v1768_v23  ;;  %1861 = vst.msk [vmem:[#allocation2 + $0x28] sm:$0xff] %vm1855_vm9, %v1770_v24  ;;  %7359 = vmatprep.mubr.msk.f32.mxu0 %vm1932_vm10, %v1888_v25  ;;  %v2347_v23 = vld [vmem:[#allocation5] sm:$0xff] }
 0x259   : > { %7360 = vmatmul.mubr.msk.f32.vlgmr.msra.gmra.mrb[0].mxu0 %vm1932_vm10, %v1889_v26  ;;  %2272 = vst.msk [vmem:[#allocation5 + $0x60] sm:$0xff] %vm2258_vm11, %v7847_v9  ;;  %2273 = vst.msk [vmem:[#allocation5 + $0x68] sm:$0xff] %vm2258_vm11, %v7847_v9  ;;  %v9341_v26 = vld [vmem:[%s11576_s2] ss:$0 sm:$0xff] }
 0x25a   : > { %2274 = vst.msk [vmem:[#allocation5 + $0x70] sm:$0x3] %vm2261_vm12, %v7847_v9  ;;  %2277 = vst.msk [vmem:[#allocation5 + $0x88] sm:$0x3] %vm2261_vm12, %v7847_v9  ;;  %v2412_v19 = vld [vmem:[#allocation5 + $0x9] sm:$0xff]  ;;  %v2411_v20 = vld [vmem:[#allocation5 + $0x1] sm:$0xff] }
 0x25b   : > { %v1772_v27 = vpop.permute.xlu0 %1771  ;;  %v1774_v28 = vpop.permute.xlu1 %1773  ;;  %v1890_v31 = vld [vmem:[#allocation2 + $0x10] sm:$0xff]  ;;  %v1891_v32 = vld [vmem:[#allocation2 + $0x18] sm:$0xff]  ;;  %2275 = vst.msk [vmem:[#allocation5 + $0x78] sm:$0xff] %vm2258_vm11, %v7847_v9  ;;  %2276 = vst.msk [vmem:[#allocation5 + $0x80] sm:$0xff] %vm2258_vm11, %v7847_v9  ;;  %2477 = vrot.lane.b32.xlu1 %v2412_v19, %s7840_s19  ;;  %2475 = vrot.lane.b32.xlu0 %v2411_v20, %s7840_s19 }
 0x25c   : > { %1862 = vst.msk [vmem:[#allocation2 + $0x30] sm:$0xff] %vm1855_vm9, %v1772_v27  ;;  %1863 = vst.msk [vmem:[#allocation2 + $0x38] sm:$0xff] %vm1855_vm9, %v1774_v28  ;;  %7362 = vmatprep.mubr.msk.f32.mxu0 %vm1932_vm10, %v1890_v31  ;;  %v2348_v22 = vld [vmem:[#allocation5 + $0x8] sm:$0xff] }
 0x25d   : > { %7363 = vmatmul.mubr.msk.f32.gmra.mrb[2].mxu0 %vm1932_vm10, %v1891_v32  ;;  %2278 = vst.msk [vmem:[#allocation5 + $0x90] sm:$0xff] %vm2258_vm11, %v7847_v9  ;;  %2279 = vst.msk [vmem:[#allocation5 + $0x98] sm:$0xff] %vm2258_vm11, %v7847_v9 }
 0x25e   : > { %2280 = vst.msk [vmem:[#allocation5 + $0xa0] sm:$0x3] %vm2261_vm12, %v7847_v9  ;;  %2283 = vst.msk [vmem:[#allocation5 + $0xb8] sm:$0x3] %vm2261_vm12, %v7847_v9 }
 0x25f   : > { %v1776_v33 = vpop.permute.xlu0 %1775  ;;  %v1778_v34 = vpop.permute.xlu1 %1777  ;;  %v1892_v35 = vld [vmem:[#allocation2 + $0x20] sm:$0xff]  ;;  %v1893_v36 = vld [vmem:[#allocation2 + $0x28] sm:$0xff]  ;;  %2281 = vst.msk [vmem:[#allocation5 + $0xa8] sm:$0xff] %vm2258_vm11, %v7847_v9  ;;  %2282 = vst.msk [vmem:[#allocation5 + $0xb0] sm:$0xff] %vm2258_vm11, %v7847_v9 }
 0x260   : > { %1864 = vst.msk [vmem:[#allocation2 + $0x40] sm:$0xff] %vm1855_vm9, %v1776_v33  ;;  %1865 = vst.msk [vmem:[#allocation2 + $0x48] sm:$0xff] %vm1855_vm9, %v1778_v34  ;;  %7365 = vmatprep.mubr.msk.f32.mxu0 %vm1932_vm10, %v1892_v35 }
 0x261   : > { %7366 = vmatmul.mubr.msk.f32.gmra.mrb[4].mxu0 %vm1932_vm10, %v1893_v36  ;;  %2284 = vst.msk [vmem:[#allocation5 + $0xc0] sm:$0xff] %vm2258_vm11, %v7847_v9  ;;  %2285 = vst.msk [vmem:[#allocation5 + $0xc8] sm:$0xff] %vm2258_vm11, %v7847_v9 }
 0x262   : > { %2286 = vst.msk [vmem:[#allocation5 + $0xd0] sm:$0x3] %vm2261_vm12, %v7847_v9  ;;  %2289 = vst.msk [vmem:[#allocation5 + $0xe8] sm:$0x3] %vm2261_vm12, %v7847_v9 }
 0x263   : > { %v1780_v37 = vpop.permute.xlu0 %1779  ;;  %v1782_v38 = vpop.permute.xlu1 %1781  ;;  %v1894_v39 = vld [vmem:[#allocation2 + $0x30] sm:$0xff]  ;;  %v1895_v40 = vld [vmem:[#allocation2 + $0x38] sm:$0xff]  ;;  %2287 = vst.msk [vmem:[#allocation5 + $0xd8] sm:$0xff] %vm2258_vm11, %v7847_v9  ;;  %2288 = vst.msk [vmem:[#allocation5 + $0xe0] sm:$0xff] %vm2258_vm11, %v7847_v9 }
 0x264   : > { %1866 = vst.msk [vmem:[#allocation2 + $0x50] sm:$0xff] %vm1855_vm9, %v1780_v37  ;;  %1867 = vst.msk [vmem:[#allocation2 + $0x58] sm:$0xff] %vm1855_vm9, %v1782_v38  ;;  %7368 = vmatprep.mubr.msk.f32.mxu0 %vm1932_vm10, %v1894_v39 }
 0x265   : > { %7369 = vmatmul.mubr.msk.f32.gmra.mrb[6].mxu0 %vm1932_vm10, %v1895_v40  ;;  %2290 = vst.msk [vmem:[#allocation5 + $0xf0] sm:$0xff] %vm2258_vm11, %v7847_v9  ;;  %2291 = vst.msk [vmem:[#allocation5 + $0xf8] sm:$0xff] %vm2258_vm11, %v7847_v9 }
 0x266   : > { %2292 = vst.msk [vmem:[#allocation5 + $0x100] sm:$0x3] %vm2261_vm12, %v7847_v9  ;;  %2295 = vst.msk [vmem:[#allocation5 + $0x118] sm:$0x3] %vm2261_vm12, %v7847_v9 }
 0x267   : > { %v1784_v41 = vpop.permute.xlu0 %1783  ;;  %v1786_v44 = vpop.permute.xlu1 %1785  ;;  %v1896_v45 = vld [vmem:[#allocation2 + $0x40] sm:$0xff]  ;;  %v1897_v48 = vld [vmem:[#allocation2 + $0x48] sm:$0xff]  ;;  %2293 = vst.msk [vmem:[#allocation5 + $0x108] sm:$0xff] %vm2258_vm11, %v7847_v9  ;;  %2294 = vst.msk [vmem:[#allocation5 + $0x110] sm:$0xff] %vm2258_vm11, %v7847_v9 }
 0x268   : > { %1868 = vst.msk [vmem:[#allocation2 + $0x60] sm:$0xff] %vm1855_vm9, %v1784_v41  ;;  %1869 = vst.msk [vmem:[#allocation2 + $0x68] sm:$0xff] %vm1855_vm9, %v1786_v44  ;;  %7371 = vmatprep.mubr.msk.f32.mxu0 %vm1932_vm10, %v1896_v45 }
 0x269   : > { %7372 = vmatmul.mubr.msk.f32.gmra.mrb[8].mxu0 %vm1932_vm10, %v1897_v48  ;;  %2296 = vst.msk [vmem:[#allocation5 + $0x120] sm:$0xff] %vm2258_vm11, %v7847_v9  ;;  %2297 = vst.msk [vmem:[#allocation5 + $0x128] sm:$0xff] %vm2258_vm11, %v7847_v9 }
 0x26a   : > { %2298 = vst.msk [vmem:[#allocation5 + $0x130] sm:$0x3] %vm2261_vm12, %v7847_v9  ;;  %2301 = vst.msk [vmem:[#allocation5 + $0x148] sm:$0x3] %vm2261_vm12, %v7847_v9 }
 0x26b   : > { %v1788_v49 = vpop.permute.xlu0 %1787  ;;  %v1790_v52 = vpop.permute.xlu1 %1789  ;;  %v1898_v53 = vld [vmem:[#allocation2 + $0x50] sm:$0xff]  ;;  %v1899_v56 = vld [vmem:[#allocation2 + $0x58] sm:$0xff]  ;;  %2299 = vst.msk [vmem:[#allocation5 + $0x138] sm:$0xff] %vm2258_vm11, %v7847_v9  ;;  %2300 = vst.msk [vmem:[#allocation5 + $0x140] sm:$0xff] %vm2258_vm11, %v7847_v9 }
 0x26c   : > { %1870 = vst.msk [vmem:[#allocation2 + $0x70] sm:$0xff] %vm1855_vm9, %v1788_v49  ;;  %1871 = vst.msk [vmem:[#allocation2 + $0x78] sm:$0xff] %vm1855_vm9, %v1790_v52  ;;  %7374 = vmatprep.mubr.msk.f32.mxu0 %vm1932_vm10, %v1898_v53 }
 0x26d   : > { %7375 = vmatmul.mubr.msk.f32.gmra.mrb[10].mxu0 %vm1932_vm10, %v1899_v56  ;;  %2302 = vst.msk [vmem:[#allocation5 + $0x150] sm:$0xff] %vm2258_vm11, %v7847_v9  ;;  %2303 = vst.msk [vmem:[#allocation5 + $0x158] sm:$0xff] %vm2258_vm11, %v7847_v9 }
 0x26e   : > { %2304 = vst.msk [vmem:[#allocation5 + $0x160] sm:$0x3] %vm2261_vm12, %v7847_v9  ;;  %2307 = vst.msk [vmem:[#allocation5 + $0x178] sm:$0x3] %vm2261_vm12, %v7847_v9 }
 0x26f   : > { %v1792_v10 = vpop.permute.xlu0 %1791  ;;  %v1794_v57 = vpop.permute.xlu1 %1793  ;;  %v1900_v11 = vld [vmem:[#allocation2 + $0x60] sm:$0xff]  ;;  %v1901_v13 = vld [vmem:[#allocation2 + $0x68] sm:$0xff]  ;;  %2305 = vst.msk [vmem:[#allocation5 + $0x168] sm:$0xff] %vm2258_vm11, %v7847_v9  ;;  %2306 = vst.msk [vmem:[#allocation5 + $0x170] sm:$0xff] %vm2258_vm11, %v7847_v9 }
 0x270   : > { %1872 = vst.msk [vmem:[#allocation2 + $0x80] sm:$0xff] %vm1855_vm9, %v1792_v10  ;;  %1873 = vst.msk [vmem:[#allocation2 + $0x88] sm:$0xff] %vm1855_vm9, %v1794_v57  ;;  %7377 = vmatprep.mubr.msk.f32.mxu0 %vm1932_vm10, %v1900_v11 }
 0x271   : > { %7378 = vmatmul.mubr.msk.f32.gmra.mrb[12].mxu0 %vm1932_vm10, %v1901_v13  ;;  %2308 = vst.msk [vmem:[#allocation5 + $0x180] sm:$0xff] %vm2258_vm11, %v7847_v9  ;;  %2309 = vst.msk [vmem:[#allocation5 + $0x188] sm:$0xff] %vm2258_vm11, %v7847_v9 }
 0x272   : > { %2310 = vst.msk [vmem:[#allocation5 + $0x190] sm:$0x3] %vm2261_vm12, %v7847_v9  ;;  %2313 = vst.msk [vmem:[#allocation5 + $0x1a8] sm:$0x3] %vm2261_vm12, %v7847_v9 }
 0x273   : > { %v1796_v17 = vpop.permute.xlu0 %1795  ;;  %v1798_v14 = vpop.permute.xlu1 %1797  ;;  %v1902_v15 = vld [vmem:[#allocation2 + $0x70] sm:$0xff]  ;;  %v1903_v18 = vld [vmem:[#allocation2 + $0x78] sm:$0xff]  ;;  %2311 = vst.msk [vmem:[#allocation5 + $0x198] sm:$0xff] %vm2258_vm11, %v7847_v9  ;;  %2312 = vst.msk [vmem:[#allocation5 + $0x1a0] sm:$0xff] %vm2258_vm11, %v7847_v9 }
 0x274   : > { %1874 = vst.msk [vmem:[#allocation2 + $0x90] sm:$0xff] %vm1855_vm9, %v1796_v17  ;;  %1875 = vst.msk [vmem:[#allocation2 + $0x98] sm:$0xff] %vm1855_vm9, %v1798_v14  ;;  %7380 = vmatprep.mubr.msk.f32.mxu0 %vm1932_vm10, %v1902_v15 }
 0x275   : > { %7381 = vmatmul.mubr.msk.f32.gmra.mrb[14].mxu0 %vm1932_vm10, %v1903_v18  ;;  %4678 = vst.msk [vmem:[#allocation6] sm:$0xff] %vm2258_vm11, %v7847_v9  ;;  %4679 = vst.msk [vmem:[#allocation6 + $0x8] sm:$0xff] %vm2258_vm11, %v7847_v9 }
 0x276   : > { %4680 = vst.msk [vmem:[#allocation6 + $0x10] sm:$0x3] %vm2261_vm12, %v7847_v9  ;;  %4683 = vst.msk [vmem:[#allocation6 + $0x28] sm:$0x3] %vm2261_vm12, %v7847_v9 }
 0x277   : > { %v1800_v21 = vpop.permute.xlu0 %1799  ;;  %v1802_v29 = vpop.permute.xlu1 %1801  ;;  %v1904_v60 = vld [vmem:[#allocation2 + $0x80] sm:$0xff]  ;;  %v1905_v63 = vld [vmem:[#allocation2 + $0x88] sm:$0xff]  ;;  %4681 = vst.msk [vmem:[#allocation6 + $0x18] sm:$0xff] %vm2258_vm11, %v7847_v9  ;;  %4682 = vst.msk [vmem:[#allocation6 + $0x20] sm:$0xff] %vm2258_vm11, %v7847_v9 }
 0x278   : > { %1876 = vst.msk [vmem:[#allocation2 + $0xa0] sm:$0xff] %vm1855_vm9, %v1800_v21  ;;  %1877 = vst.msk [vmem:[#allocation2 + $0xa8] sm:$0xff] %vm1855_vm9, %v1802_v29  ;;  %7383 = vmatprep.mubr.msk.f32.mxu1 %vm1932_vm10, %v1904_v60 }
 0x279   : > { %7384 = vmatmul.mubr.msk.f32.vlgmr.msra.gmra.mrb[0].mxu1 %vm1932_vm10, %v1905_v63  ;;  %4684 = vst.msk [vmem:[#allocation6 + $0x30] sm:$0xff] %vm2258_vm11, %v7847_v9  ;;  %4685 = vst.msk [vmem:[#allocation6 + $0x38] sm:$0xff] %vm2258_vm11, %v7847_v9 }
 0x27a   : > { %4686 = vst.msk [vmem:[#allocation6 + $0x40] sm:$0x3] %vm2261_vm12, %v7847_v9  ;;  %4689 = vst.msk [vmem:[#allocation6 + $0x58] sm:$0x3] %vm2261_vm12, %v7847_v9 }
 0x27b   : > { %v1804_v4 = vpop.permute.xlu0 %1803  ;;  %v1806_v5 = vpop.permute.xlu1 %1805  ;;  %v1906_v30 = vld [vmem:[#allocation2 + $0x90] sm:$0xff]  ;;  %v1907_v42 = vld [vmem:[#allocation2 + $0x98] sm:$0xff]  ;;  %4687 = vst.msk [vmem:[#allocation6 + $0x48] sm:$0xff] %vm2258_vm11, %v7847_v9  ;;  %4688 = vst.msk [vmem:[#allocation6 + $0x50] sm:$0xff] %vm2258_vm11, %v7847_v9 }
 0x27c   : > { %1878 = vst.msk [vmem:[#allocation2 + $0xb0] sm:$0xff] %vm1855_vm9, %v1804_v4  ;;  %1879 = vst.msk [vmem:[#allocation2 + $0xb8] sm:$0xff] %vm1855_vm9, %v1806_v5  ;;  %7386 = vmatprep.mubr.msk.f32.mxu1 %vm1932_vm10, %v1906_v30 }
 0x27d   : > { %7387 = vmatmul.mubr.msk.f32.gmra.mrb[2].mxu1 %vm1932_vm10, %v1907_v42  ;;  %4690 = vst.msk [vmem:[#allocation6 + $0x60] sm:$0xff] %vm2258_vm11, %v7847_v9  ;;  %4691 = vst.msk [vmem:[#allocation6 + $0x68] sm:$0xff] %vm2258_vm11, %v7847_v9 }
 0x27e   : > { %4692 = vst.msk [vmem:[#allocation6 + $0x70] sm:$0x3] %vm2261_vm12, %v7847_v9  ;;  %4695 = vst.msk [vmem:[#allocation6 + $0x88] sm:$0x3] %vm2261_vm12, %v7847_v9 }
 0x27f   : > { %v1808_v43 = vpop.permute.xlu0 %1807  ;;  %v1810_v46 = vpop.permute.xlu1 %1809  ;;  %v1908_v47 = vld [vmem:[#allocation2 + $0xa0] sm:$0xff]  ;;  %v1909_v50 = vld [vmem:[#allocation2 + $0xa8] sm:$0xff]  ;;  %4693 = vst.msk [vmem:[#allocation6 + $0x78] sm:$0xff] %vm2258_vm11, %v7847_v9  ;;  %4694 = vst.msk [vmem:[#allocation6 + $0x80] sm:$0xff] %vm2258_vm11, %v7847_v9 }
 0x280   : > { %1880 = vst.msk [vmem:[#allocation2 + $0xc0] sm:$0xff] %vm1855_vm9, %v1808_v43  ;;  %1881 = vst.msk [vmem:[#allocation2 + $0xc8] sm:$0xff] %vm1855_vm9, %v1810_v46  ;;  %7389 = vmatprep.mubr.msk.f32.mxu1 %vm1932_vm10, %v1908_v47 }
 0x281   : > { %7390 = vmatmul.mubr.msk.f32.gmra.mrb[4].mxu1 %vm1932_vm10, %v1909_v50  ;;  %4696 = vst.msk [vmem:[#allocation6 + $0x90] sm:$0xff] %vm2258_vm11, %v7847_v9  ;;  %4697 = vst.msk [vmem:[#allocation6 + $0x98] sm:$0xff] %vm2258_vm11, %v7847_v9 }
 0x282   : > { %4698 = vst.msk [vmem:[#allocation6 + $0xa0] sm:$0x3] %vm2261_vm12, %v7847_v9  ;;  %4701 = vst.msk [vmem:[#allocation6 + $0xb8] sm:$0x3] %vm2261_vm12, %v7847_v9 }
 0x283   : > { %v1812_v51 = vpop.permute.xlu0 %1811  ;;  %v1814_v54 = vpop.permute.xlu1 %1813  ;;  %v1910_v55 = vld [vmem:[#allocation2 + $0xb0] sm:$0xff]  ;;  %v1911_v12 = vld [vmem:[#allocation2 + $0xb8] sm:$0xff]  ;;  %4699 = vst.msk [vmem:[#allocation6 + $0xa8] sm:$0xff] %vm2258_vm11, %v7847_v9  ;;  %4700 = vst.msk [vmem:[#allocation6 + $0xb0] sm:$0xff] %vm2258_vm11, %v7847_v9 }
 0x284   : > { %1882 = vst.msk [vmem:[#allocation2 + $0xd0] sm:$0xff] %vm1855_vm9, %v1812_v51  ;;  %1883 = vst.msk [vmem:[#allocation2 + $0xd8] sm:$0xff] %vm1855_vm9, %v1814_v54  ;;  %7392 = vmatprep.mubr.msk.f32.mxu1 %vm1932_vm10, %v1910_v55 }
 0x285   : > { %7393 = vmatmul.mubr.msk.f32.gmra.mrb[6].mxu1 %vm1932_vm10, %v1911_v12  ;;  %4702 = vst.msk [vmem:[#allocation6 + $0xc0] sm:$0xff] %vm2258_vm11, %v7847_v9  ;;  %4703 = vst.msk [vmem:[#allocation6 + $0xc8] sm:$0xff] %vm2258_vm11, %v7847_v9 }
 0x286   : > { %4704 = vst.msk [vmem:[#allocation6 + $0xd0] sm:$0x3] %vm2261_vm12, %v7847_v9  ;;  %4707 = vst.msk [vmem:[#allocation6 + $0xe8] sm:$0x3] %vm2261_vm12, %v7847_v9 }
 0x287   : > { %v1816_v16 = vpop.permute.xlu0 %1815  ;;  %v1818_v58 = vpop.permute.xlu1 %1817  ;;  %v1912_v59 = vld [vmem:[#allocation2 + $0xc0] sm:$0xff]  ;;  %v1913_v1 = vld [vmem:[#allocation2 + $0xc8] sm:$0xff]  ;;  %4705 = vst.msk [vmem:[#allocation6 + $0xd8] sm:$0xff] %vm2258_vm11, %v7847_v9  ;;  %4706 = vst.msk [vmem:[#allocation6 + $0xe0] sm:$0xff] %vm2258_vm11, %v7847_v9 }
 0x288   : > { %1884 = vst.msk [vmem:[#allocation2 + $0xe0] sm:$0xff] %vm1855_vm9, %v1816_v16  ;;  %1885 = vst.msk [vmem:[#allocation2 + $0xe8] sm:$0xff] %vm1855_vm9, %v1818_v58  ;;  %7395 = vmatprep.mubr.msk.f32.mxu1 %vm1932_vm10, %v1912_v59 }
 0x289   : > { %7396 = vmatmul.mubr.msk.f32.gmra.mrb[8].mxu1 %vm1932_vm10, %v1913_v1  ;;  %4708 = vst.msk [vmem:[#allocation6 + $0xf0] sm:$0xff] %vm2258_vm11, %v7847_v9  ;;  %4709 = vst.msk [vmem:[#allocation6 + $0xf8] sm:$0xff] %vm2258_vm11, %v7847_v9 }
 0x28a   : > { %4710 = vst.msk [vmem:[#allocation6 + $0x100] sm:$0x3] %vm2261_vm12, %v7847_v9  ;;  %4713 = vst.msk [vmem:[#allocation6 + $0x118] sm:$0x3] %vm2261_vm12, %v7847_v9 }
 0x28b   : > { %v1914_v3 = vld [vmem:[#allocation2 + $0xd0] sm:$0xff]  ;;  %v1915_v0 = vld [vmem:[#allocation2 + $0xd8] sm:$0xff]  ;;  %v1820_v6 = vpop.permute.xlu0 %1819  ;;  %v1822_v2 = vpop.permute.xlu1 %1821  ;;  %4711 = vst.msk [vmem:[#allocation6 + $0x108] sm:$0xff] %vm2258_vm11, %v7847_v9  ;;  %4712 = vst.msk [vmem:[#allocation6 + $0x110] sm:$0xff] %vm2258_vm11, %v7847_v9 }
 0x28c   : > { %7398 = vmatprep.mubr.msk.f32.mxu1 %vm1932_vm10, %v1914_v3  ;;  %1886 = vst.msk [vmem:[#allocation2 + $0xf0] sm:$0xff] %vm1855_vm9, %v1820_v6  ;;  %1887 = vst.msk [vmem:[#allocation2 + $0xf8] sm:$0xff] %vm1855_vm9, %v1822_v2 }
 0x28d   : > { %7399 = vmatmul.mubr.msk.f32.gmra.mrb[10].mxu1 %vm1932_vm10, %v1915_v0  ;;  %4714 = vst.msk [vmem:[#allocation6 + $0x120] sm:$0xff] %vm2258_vm11, %v7847_v9  ;;  %4715 = vst.msk [vmem:[#allocation6 + $0x128] sm:$0xff] %vm2258_vm11, %v7847_v9 }
 0x28e   : > { %4716 = vst.msk [vmem:[#allocation6 + $0x130] sm:$0x3] %vm2261_vm12, %v7847_v9  ;;  %4719 = vst.msk [vmem:[#allocation6 + $0x148] sm:$0x3] %vm2261_vm12, %v7847_v9 }
 0x28f   : > { %v1916_v61 = vld [vmem:[#allocation2 + $0xe0] sm:$0xff]  ;;  %v1917_v62 = vld [vmem:[#allocation2 + $0xe8] sm:$0xff]  ;;  %4717 = vst.msk [vmem:[#allocation6 + $0x138] sm:$0xff] %vm2258_vm11, %v7847_v9  ;;  %4718 = vst.msk [vmem:[#allocation6 + $0x140] sm:$0xff] %vm2258_vm11, %v7847_v9 }
 0x290   : > { %7401 = vmatprep.mubr.msk.f32.mxu1 %vm1932_vm10, %v1916_v61  ;;  %4720 = vst.msk [vmem:[#allocation6 + $0x150] sm:$0xff] %vm2258_vm11, %v7847_v9  ;;  %4721 = vst.msk [vmem:[#allocation6 + $0x158] sm:$0xff] %vm2258_vm11, %v7847_v9 }
 0x291   : > { %7402 = vmatmul.mubr.msk.f32.gmra.mrb[12].mxu1 %vm1932_vm10, %v1917_v62  ;;  %4722 = vst.msk [vmem:[#allocation6 + $0x160] sm:$0x3] %vm2261_vm12, %v7847_v9  ;;  %4725 = vst.msk [vmem:[#allocation6 + $0x178] sm:$0x3] %vm2261_vm12, %v7847_v9 }
 0x292   : > { %4723 = vst.msk [vmem:[#allocation6 + $0x168] sm:$0xff] %vm2258_vm11, %v7847_v9  ;;  %4724 = vst.msk [vmem:[#allocation6 + $0x170] sm:$0xff] %vm2258_vm11, %v7847_v9 }
 0x293   : > { %v1918_v7 = vld [vmem:[#allocation2 + $0xf0] sm:$0xff]  ;;  %v1919_v8 = vld [vmem:[#allocation2 + $0xf8] sm:$0xff]  ;;  %4726 = vst.msk [vmem:[#allocation6 + $0x180] sm:$0xff] %vm2258_vm11, %v7847_v9  ;;  %4727 = vst.msk [vmem:[#allocation6 + $0x188] sm:$0xff] %vm2258_vm11, %v7847_v9 }
 0x294   : > { %7404 = vmatprep.mubr.msk.f32.mxu1 %vm1932_vm10, %v1918_v7  ;;  %4728 = vst.msk [vmem:[#allocation6 + $0x190] sm:$0x3] %vm2261_vm12, %v7847_v9  ;;  %4731 = vst.msk [vmem:[#allocation6 + $0x1a8] sm:$0x3] %vm2261_vm12, %v7847_v9 }
 0x295   : > { %7405 = vmatmul.mubr.msk.f32.gmra.mrb[14].mxu1 %vm1932_vm10, %v1919_v8  ;;  %4729 = vst.msk [vmem:[#allocation6 + $0x198] sm:$0xff] %vm2258_vm11, %v7847_v9  ;;  %4730 = vst.msk [vmem:[#allocation6 + $0x1a0] sm:$0xff] %vm2258_vm11, %v7847_v9 }
 0x296   : > { %2380 = vst.msk [vmem:[#allocation3 + $0x8] sm:$0xff] %vm2258_vm11, %v2348_v22  ;;  %2379 = vst.msk [vmem:[#allocation3] sm:$0xff] %vm2258_vm11, %v2347_v23 }
 0x2cd   : > { %v2478_v24 = vpop.permute.xlu1 %2477  ;;  %v2476_v25 = vpop.permute.xlu0 %2475 }
 0x2ce   : > { %2573 = vst.msk [vmem:[#allocation3 + $0x8] sm:$0xff] %vm2571_vm13, %v2478_v24  ;;  %2572 = vst.msk [vmem:[#allocation3] sm:$0xff] %vm2571_vm13, %v2476_v25 }
 0x32c   : > { %v7361_v27 = vpop.f32.mrb[0].mxu0 }
 0x32d   : > { %v2105_v28 = vadd.f32 %v7361_v27, %v9341_v26  ;;  %v2099_v31 = vpop.f32.mrb[1].mxu0 }
 0x32e   : > { %v2100_v32 = vadd.f32 %v9341_v26, %v2099_v31 }
 0x32f   : > { %2316 = vst.msk [vmem:[#allocation5 + $0x21] sm:$0xff] %vm2258_vm11, %v2105_v28 }
 0x330   : > { %2315 = vst.msk [vmem:[#allocation5 + $0x19] sm:$0xff] %vm2258_vm11, %v2100_v32  ;;  %v7364_v33 = vpop.f32.mrb[2].mxu0 }
 0x331   : > { %v2115_v34 = vadd.f32 %v7364_v33, %v9341_v26  ;;  %v2109_v35 = vpop.f32.mrb[3].mxu0 }
 0x332   : > { %v2110_v36 = vadd.f32 %v9341_v26, %v2109_v35 }
 0x333   : > { %2318 = vst.msk [vmem:[#allocation5 + $0x39] sm:$0xff] %vm2258_vm11, %v2115_v34 }
 0x334   : > { %2317 = vst.msk [vmem:[#allocation5 + $0x31] sm:$0xff] %vm2258_vm11, %v2110_v36  ;;  %v7367_v37 = vpop.f32.mrb[4].mxu0 }
 0x335   : > { %v2125_v38 = vadd.f32 %v7367_v37, %v9341_v26  ;;  %v2119_v39 = vpop.f32.mrb[5].mxu0 }
 0x336   : > { %v2120_v40 = vadd.f32 %v9341_v26, %v2119_v39  ;;  %v9353_v41 = vld [vmem:[#allocation5 + $0x21] sm:$0xff] }
 0x337   : > { %2320 = vst.msk [vmem:[#allocation5 + $0x51] sm:$0xff] %vm2258_vm11, %v2125_v38  ;;  %2481 = vrot.lane.b32.xlu1 %v9353_v41, %s7840_s19  ;;  %v9358_v44 = vld [vmem:[#allocation5 + $0x19] sm:$0xff] }
 0x338   : > { %v9360_v45 = vld [vmem:[#allocation5 + $0x20] sm:$0xff]  ;;  %2319 = vst.msk [vmem:[#allocation5 + $0x49] sm:$0xff] %vm2258_vm11, %v2120_v40  ;;  %v7370_v48 = vpop.f32.mrb[6].mxu0  ;;  %2479 = vrot.lane.b32.xlu0 %v9358_v44, %s7840_s19  ;;  %v9367_v49 = vld [vmem:[#allocation5 + $0x18] sm:$0xff] }
 0x339   : > { %2382 = vst.msk [vmem:[#allocation3 + $0x18] sm:$0xff] %vm2258_vm11, %v9360_v45  ;;  %v2135_v52 = vadd.f32 %v7370_v48, %v9341_v26  ;;  %v2129_v53 = vpop.f32.mrb[7].mxu0  ;;  %2381 = vst.msk [vmem:[#allocation3 + $0x10] sm:$0xff] %vm2258_vm11, %v9367_v49 }
 0x33a   : > { %v2130_v56 = vadd.f32 %v9341_v26, %v2129_v53  ;;  %v9373_v10 = vld [vmem:[#allocation5 + $0x39] sm:$0xff] }
 0x33b   : > { %2322 = vst.msk [vmem:[#allocation5 + $0x69] sm:$0xff] %vm2258_vm11, %v2135_v52  ;;  %2485 = vrot.lane.b32.xlu1 %v9373_v10, %s7840_s19  ;;  %v9378_v57 = vld [vmem:[#allocation5 + $0x31] sm:$0xff] }
 0x33c   : > { %v9380_v11 = vld [vmem:[#allocation5 + $0x38] sm:$0xff]  ;;  %2321 = vst.msk [vmem:[#allocation5 + $0x61] sm:$0xff] %vm2258_vm11, %v2130_v56  ;;  %v7373_v13 = vpop.f32.mrb[8].mxu0  ;;  %2483 = vrot.lane.b32.xlu0 %v9378_v57, %s7840_s19  ;;  %v9387_v17 = vld [vmem:[#allocation5 + $0x30] sm:$0xff] }
 0x33d   : > { %2384 = vst.msk [vmem:[#allocation3 + $0x28] sm:$0xff] %vm2258_vm11, %v9380_v11  ;;  %v2145_v14 = vadd.f32 %v7373_v13, %v9341_v26  ;;  %v2139_v15 = vpop.f32.mrb[9].mxu0  ;;  %2383 = vst.msk [vmem:[#allocation3 + $0x20] sm:$0xff] %vm2258_vm11, %v9387_v17 }
 0x33e   : > { %v2140_v18 = vadd.f32 %v9341_v26, %v2139_v15  ;;  %v9393_v21 = vld [vmem:[#allocation5 + $0x51] sm:$0xff] }
 0x33f   : > { %2324 = vst.msk [vmem:[#allocation5 + $0x81] sm:$0xff] %vm2258_vm11, %v2145_v14  ;;  %2489 = vrot.lane.b32.xlu1 %v9393_v21, %s7840_s19  ;;  %v9398_v29 = vld [vmem:[#allocation5 + $0x49] sm:$0xff] }
 0x340   : > { %v9400_v60 = vld [vmem:[#allocation5 + $0x50] sm:$0xff]  ;;  %2323 = vst.msk [vmem:[#allocation5 + $0x79] sm:$0xff] %vm2258_vm11, %v2140_v18  ;;  %v7376_v63 = vpop.f32.mrb[10].mxu0  ;;  %2487 = vrot.lane.b32.xlu0 %v9398_v29, %s7840_s19  ;;  %v9407_v4 = vld [vmem:[#allocation5 + $0x48] sm:$0xff] }
 0x341   : > { %2386 = vst.msk [vmem:[#allocation3 + $0x38] sm:$0xff] %vm2258_vm11, %v9400_v60  ;;  %v2155_v5 = vadd.f32 %v7376_v63, %v9341_v26  ;;  %v2149_v30 = vpop.f32.mrb[11].mxu0  ;;  %2385 = vst.msk [vmem:[#allocation3 + $0x30] sm:$0xff] %vm2258_vm11, %v9407_v4 }
 0x342   : > { %v2150_v42 = vadd.f32 %v9341_v26, %v2149_v30  ;;  %v9413_v43 = vld [vmem:[#allocation5 + $0x69] sm:$0xff] }
 0x343   : > { %2326 = vst.msk [vmem:[#allocation5 + $0x99] sm:$0xff] %vm2258_vm11, %v2155_v5  ;;  %2493 = vrot.lane.b32.xlu1 %v9413_v43, %s7840_s19  ;;  %v9418_v46 = vld [vmem:[#allocation5 + $0x61] sm:$0xff] }
 0x344   : > { %v9420_v47 = vld [vmem:[#allocation5 + $0x68] sm:$0xff]  ;;  %2325 = vst.msk [vmem:[#allocation5 + $0x91] sm:$0xff] %vm2258_vm11, %v2150_v42  ;;  %v7379_v50 = vpop.f32.mrb[12].mxu0  ;;  %2491 = vrot.lane.b32.xlu0 %v9418_v46, %s7840_s19  ;;  %v9427_v51 = vld [vmem:[#allocation5 + $0x60] sm:$0xff] }
 0x345   : > { %2388 = vst.msk [vmem:[#allocation3 + $0x48] sm:$0xff] %vm2258_vm11, %v9420_v47  ;;  %v2165_v54 = vadd.f32 %v7379_v50, %v9341_v26  ;;  %v2159_v55 = vpop.f32.mrb[13].mxu0  ;;  %2387 = vst.msk [vmem:[#allocation3 + $0x40] sm:$0xff] %vm2258_vm11, %v9427_v51 }
 0x346   : > { %v2160_v12 = vadd.f32 %v9341_v26, %v2159_v55  ;;  %v9433_v16 = vld [vmem:[#allocation5 + $0x81] sm:$0xff] }
 0x347   : > { %2328 = vst.msk [vmem:[#allocation5 + $0xb1] sm:$0xff] %vm2258_vm11, %v2165_v54  ;;  %2497 = vrot.lane.b32.xlu1 %v9433_v16, %s7840_s19  ;;  %v9438_v58 = vld [vmem:[#allocation5 + $0x79] sm:$0xff] }
 0x348   : > { %v9440_v59 = vld [vmem:[#allocation5 + $0x80] sm:$0xff]  ;;  %2327 = vst.msk [vmem:[#allocation5 + $0xa9] sm:$0xff] %vm2258_vm11, %v2160_v12  ;;  %v7382_v1 = vpop.f32.mrb[14].mxu0  ;;  %2495 = vrot.lane.b32.xlu0 %v9438_v58, %s7840_s19  ;;  %v9447_v3 = vld [vmem:[#allocation5 + $0x78] sm:$0xff] }
 0x349   : > { %2390 = vst.msk [vmem:[#allocation3 + $0x58] sm:$0xff] %vm2258_vm11, %v9440_v59  ;;  %v2175_v0 = vadd.f32 %v7382_v1, %v9341_v26  ;;  %v2169_v6 = vpop.f32.mrb[15].mxu0  ;;  %2389 = vst.msk [vmem:[#allocation3 + $0x50] sm:$0xff] %vm2258_vm11, %v9447_v3 }
 0x34a   : > { %v2170_v2 = vadd.f32 %v9341_v26, %v2169_v6  ;;  %v9453_v61 = vld [vmem:[#allocation5 + $0x99] sm:$0xff] }
 0x34b   : > { %2330 = vst.msk [vmem:[#allocation5 + $0xc9] sm:$0xff] %vm2258_vm11, %v2175_v0  ;;  %2501 = vrot.lane.b32.xlu1 %v9453_v61, %s7840_s19  ;;  %v9458_v62 = vld [vmem:[#allocation5 + $0x91] sm:$0xff] }
 0x34c   : > { %v9460_v7 = vld [vmem:[#allocation5 + $0x98] sm:$0xff]  ;;  %2329 = vst.msk [vmem:[#allocation5 + $0xc1] sm:$0xff] %vm2258_vm11, %v2170_v2  ;;  %v7385_v8 = vpop.f32.mrb[0].mxu1  ;;  %2499 = vrot.lane.b32.xlu0 %v9458_v62, %s7840_s19  ;;  %v9467_v9 = vld [vmem:[#allocation5 + $0x90] sm:$0xff] }
 0x34d   : > { %2392 = vst.msk [vmem:[#allocation3 + $0x68] sm:$0xff] %vm2258_vm11, %v9460_v7  ;;  %v2185_v19 = vadd.f32 %v7385_v8, %v9341_v26  ;;  %v2179_v20 = vpop.f32.mrb[1].mxu1  ;;  %2391 = vst.msk [vmem:[#allocation3 + $0x60] sm:$0xff] %vm2258_vm11, %v9467_v9 }
 0x34e   : > { %v2180_v22 = vadd.f32 %v9341_v26, %v2179_v20  ;;  %v9473_v23 = vld [vmem:[#allocation5 + $0xb1] sm:$0xff] }
 0x34f   : > { %2332 = vst.msk [vmem:[#allocation5 + $0xe1] sm:$0xff] %vm2258_vm11, %v2185_v19  ;;  %2505 = vrot.lane.b32.xlu1 %v9473_v23, %s7840_s19  ;;  %v9478_v24 = vld [vmem:[#allocation5 + $0xa9] sm:$0xff] }
 0x350   : > { %v9480_v25 = vld [vmem:[#allocation5 + $0xb0] sm:$0xff]  ;;  %2331 = vst.msk [vmem:[#allocation5 + $0xd9] sm:$0xff] %vm2258_vm11, %v2180_v22  ;;  %v7388_v27 = vpop.f32.mrb[2].mxu1  ;;  %2503 = vrot.lane.b32.xlu0 %v9478_v24, %s7840_s19  ;;  %v9487_v28 = vld [vmem:[#allocation5 + $0xa8] sm:$0xff] }
 0x351   : > { %2394 = vst.msk [vmem:[#allocation3 + $0x78] sm:$0xff] %vm2258_vm11, %v9480_v25  ;;  %v2195_v31 = vadd.f32 %v7388_v27, %v9341_v26  ;;  %v2189_v32 = vpop.f32.mrb[3].mxu1  ;;  %2393 = vst.msk [vmem:[#allocation3 + $0x70] sm:$0xff] %vm2258_vm11, %v9487_v28 }
 0x352   : > { %v2190_v33 = vadd.f32 %v9341_v26, %v2189_v32  ;;  %v9493_v34 = vld [vmem:[#allocation5 + $0xc9] sm:$0xff] }
 0x353   : > { %2334 = vst.msk [vmem:[#allocation5 + $0xf9] sm:$0xff] %vm2258_vm11, %v2195_v31  ;;  %2509 = vrot.lane.b32.xlu1 %v9493_v34, %s7840_s19  ;;  %v9498_v35 = vld [vmem:[#allocation5 + $0xc1] sm:$0xff] }
 0x354   : > { %v9500_v36 = vld [vmem:[#allocation5 + $0xc8] sm:$0xff]  ;;  %2333 = vst.msk [vmem:[#allocation5 + $0xf1] sm:$0xff] %vm2258_vm11, %v2190_v33  ;;  %v7391_v37 = vpop.f32.mrb[4].mxu1  ;;  %2507 = vrot.lane.b32.xlu0 %v9498_v35, %s7840_s19  ;;  %v9507_v38 = vld [vmem:[#allocation5 + $0xc0] sm:$0xff] }
 0x355   : > { %2396 = vst.msk [vmem:[#allocation3 + $0x88] sm:$0xff] %vm2258_vm11, %v9500_v36  ;;  %v2205_v39 = vadd.f32 %v7391_v37, %v9341_v26  ;;  %v2199_v40 = vpop.f32.mrb[5].mxu1  ;;  %2395 = vst.msk [vmem:[#allocation3 + $0x80] sm:$0xff] %vm2258_vm11, %v9507_v38 }
 0x356   : > { %v2200_v48 = vadd.f32 %v9341_v26, %v2199_v40  ;;  %v9513_v52 = vld [vmem:[#allocation5 + $0xe1] sm:$0xff] }
 0x357   : > { %2336 = vst.msk [vmem:[#allocation5 + $0x111] sm:$0xff] %vm2258_vm11, %v2205_v39  ;;  %2513 = vrot.lane.b32.xlu1 %v9513_v52, %s7840_s19  ;;  %v9518_v53 = vld [vmem:[#allocation5 + $0xd9] sm:$0xff] }
 0x358   : > { %v9520_v56 = vld [vmem:[#allocation5 + $0xe0] sm:$0xff]  ;;  %2335 = vst.msk [vmem:[#allocation5 + $0x109] sm:$0xff] %vm2258_vm11, %v2200_v48  ;;  %v7394_v13 = vpop.f32.mrb[6].mxu1  ;;  %2511 = vrot.lane.b32.xlu0 %v9518_v53, %s7840_s19  ;;  %v9527_v14 = vld [vmem:[#allocation5 + $0xd8] sm:$0xff] }
 0x359   : > { %2398 = vst.msk [vmem:[#allocation3 + $0x98] sm:$0xff] %vm2258_vm11, %v9520_v56  ;;  %v2215_v15 = vadd.f32 %v7394_v13, %v9341_v26  ;;  %v2209_v18 = vpop.f32.mrb[7].mxu1  ;;  %2397 = vst.msk [vmem:[#allocation3 + $0x90] sm:$0xff] %vm2258_vm11, %v9527_v14 }
 0x35a   : > { %v2210_v63 = vadd.f32 %v9341_v26, %v2209_v18  ;;  %v9533_v5 = vld [vmem:[#allocation5 + $0xf9] sm:$0xff] }
 0x35b   : > { %2338 = vst.msk [vmem:[#allocation5 + $0x129] sm:$0xff] %vm2258_vm11, %v2215_v15  ;;  %2517 = vrot.lane.b32.xlu1 %v9533_v5, %s7840_s19  ;;  %v9538_v30 = vld [vmem:[#allocation5 + $0xf1] sm:$0xff] }
 0x35c   : > { %v9540_v42 = vld [vmem:[#allocation5 + $0xf8] sm:$0xff]  ;;  %2337 = vst.msk [vmem:[#allocation5 + $0x121] sm:$0xff] %vm2258_vm11, %v2210_v63  ;;  %v7397_v50 = vpop.f32.mrb[8].mxu1  ;;  %2515 = vrot.lane.b32.xlu0 %v9538_v30, %s7840_s19  ;;  %v9547_v54 = vld [vmem:[#allocation5 + $0xf0] sm:$0xff] }
 0x35d   : > { %2400 = vst.msk [vmem:[#allocation3 + $0xa8] sm:$0xff] %vm2258_vm11, %v9540_v42  ;;  %v2225_v55 = vadd.f32 %v7397_v50, %v9341_v26  ;;  %v2219_v12 = vpop.f32.mrb[9].mxu1  ;;  %2399 = vst.msk [vmem:[#allocation3 + $0xa0] sm:$0xff] %vm2258_vm11, %v9547_v54 }
 0x35e   : > { %v2220_v1 = vadd.f32 %v9341_v26, %v2219_v12  ;;  %v9553_v0 = vld [vmem:[#allocation5 + $0x111] sm:$0xff] }
 0x35f   : > { %2340 = vst.msk [vmem:[#allocation5 + $0x141] sm:$0xff] %vm2258_vm11, %v2225_v55  ;;  %2521 = vrot.lane.b32.xlu1 %v9553_v0, %s7840_s19  ;;  %v9558_v6 = vld [vmem:[#allocation5 + $0x109] sm:$0xff] }
 0x360   : > { %v9560_v2 = vld [vmem:[#allocation5 + $0x110] sm:$0xff]  ;;  %2339 = vst.msk [vmem:[#allocation5 + $0x139] sm:$0xff] %vm2258_vm11, %v2220_v1  ;;  %v7400_v8 = vpop.f32.mrb[10].mxu1  ;;  %2519 = vrot.lane.b32.xlu0 %v9558_v6, %s7840_s19  ;;  %v9567_v19 = vld [vmem:[#allocation5 + $0x108] sm:$0xff] }
 0x361   : > { %2402 = vst.msk [vmem:[#allocation3 + $0xb8] sm:$0xff] %vm2258_vm11, %v9560_v2  ;;  %v2235_v20 = vadd.f32 %v7400_v8, %v9341_v26  ;;  %v2229_v22 = vpop.f32.mrb[11].mxu1  ;;  %2401 = vst.msk [vmem:[#allocation3 + $0xb0] sm:$0xff] %vm2258_vm11, %v9567_v19 }
 0x362   : > { %v2230_v27 = vadd.f32 %v9341_v26, %v2229_v22  ;;  %v9573_v31 = vld [vmem:[#allocation5 + $0x129] sm:$0xff] }
 0x363   : > { %2342 = vst.msk [vmem:[#allocation5 + $0x159] sm:$0xff] %vm2258_vm11, %v2235_v20  ;;  %2525 = vrot.lane.b32.xlu1 %v9573_v31, %s7840_s19  ;;  %v9578_v32 = vld [vmem:[#allocation5 + $0x121] sm:$0xff] }
 0x364   : > { %v9580_v33 = vld [vmem:[#allocation5 + $0x128] sm:$0xff]  ;;  %2341 = vst.msk [vmem:[#allocation5 + $0x151] sm:$0xff] %vm2258_vm11, %v2230_v27  ;;  %v7403_v37 = vpop.f32.mrb[12].mxu1  ;;  %2523 = vrot.lane.b32.xlu0 %v9578_v32, %s7840_s19  ;;  %v9587_v39 = vld [vmem:[#allocation5 + $0x120] sm:$0xff] }
 0x365   : > { %2404 = vst.msk [vmem:[#allocation3 + $0xc8] sm:$0xff] %vm2258_vm11, %v9580_v33  ;;  %v2245_v40 = vadd.f32 %v7403_v37, %v9341_v26  ;;  %v2239_v48 = vpop.f32.mrb[13].mxu1  ;;  %2403 = vst.msk [vmem:[#allocation3 + $0xc0] sm:$0xff] %vm2258_vm11, %v9587_v39 }
 0x366   : > { %v2240_v13 = vadd.f32 %v9341_v26, %v2239_v48  ;;  %v9593_v15 = vld [vmem:[#allocation5 + $0x141] sm:$0xff] }
 0x367   : > { %2344 = vst.msk [vmem:[#allocation5 + $0x171] sm:$0xff] %vm2258_vm11, %v2245_v40  ;;  %2529 = vrot.lane.b32.xlu1 %v9593_v15, %s7840_s19  ;;  %v9598_v18 = vld [vmem:[#allocation5 + $0x139] sm:$0xff] }
 0x368   : > { %v9600_v63 = vld [vmem:[#allocation5 + $0x140] sm:$0xff]  ;;  %2343 = vst.msk [vmem:[#allocation5 + $0x169] sm:$0xff] %vm2258_vm11, %v2240_v13  ;;  %2527 = vrot.lane.b32.xlu0 %v9598_v18, %s7840_s19  ;;  %v9607_v50 = vld [vmem:[#allocation5 + $0x138] sm:$0xff]  ;;  %v7406_v55 = vpop.f32.mrb[14].mxu1  ;;  %v2605_v13 = vld [vmem:[#allocation5 + $0xa] sm:$0xff] }
 0x369   : > { %2406 = vst.msk [vmem:[#allocation3 + $0xd8] sm:$0xff] %vm2258_vm11, %v9600_v63  ;;  %2405 = vst.msk [vmem:[#allocation3 + $0xd0] sm:$0xff] %vm2258_vm11, %v9607_v50  ;;  %v2255_v12 = vadd.f32 %v7406_v55, %v9341_v26  ;;  %v2249_v1 = vpop.f32.mrb[15].mxu1 }
 0x36a   : > { %v9612_v8 = vld [vmem:[#allocation5 + $0x159] sm:$0xff]  ;;  %v2250_v20 = vadd.f32 %v9341_v26, %v2249_v1  ;;  %v9649_v1 = vld [vmem:[#allocation5 + $0x22] sm:$0xff] }
 0x36b   : > { %2533 = vrot.lane.b32.xlu1 %v9612_v8, %s7840_s19  ;;  %v9617_v22 = vld [vmem:[#allocation5 + $0x151] sm:$0xff]  ;;  %2346 = vst.msk [vmem:[#allocation5 + $0x189] sm:$0xff] %vm2258_vm11, %v2255_v12  ;;  %v2604_v12 = vld [vmem:[#allocation5 + $0x2] sm:$0xff]  ;;  %11707 = vst [vmem:[#allocation13_spill] sm:$0xff] %v9649_v1 }
 0x36c   : > { %11704 = vst [vmem:[#allocation10_spill] sm:$0xff] %v9617_v22  ;;  %v9619_v27 = vld [vmem:[#allocation5 + $0x158] sm:$0xff]  ;;  %2531 = vrot.lane.b32.xlu0 %v9617_v22, %s7840_s19  ;;  %v9626_v37 = vld [vmem:[#allocation5 + $0x150] sm:$0xff]  ;;  %2345 = vst.msk [vmem:[#allocation5 + $0x181] sm:$0xff] %vm2258_vm11, %v2250_v20 }
 0x36d   : > { %2408 = vst.msk [vmem:[#allocation3 + $0xe8] sm:$0xff] %vm2258_vm11, %v9619_v27  ;;  %2407 = vst.msk [vmem:[#allocation3 + $0xe0] sm:$0xff] %vm2258_vm11, %v9626_v37  ;;  %v9653_v20 = vld [vmem:[#allocation5 + $0x1a] sm:$0xff] }
 0x36e   : > { %v9631_v26 = vld [vmem:[#allocation5 + $0x171] sm:$0xff]  ;;  %11708 = vst [vmem:[#allocation14_spill] sm:$0xff] %v9653_v20 }
 0x36f   : > { %11705 = vst [vmem:[#allocation11_spill] sm:$0xff] %v9631_v26  ;;  %2537 = vrot.lane.b32.xlu1 %v9631_v26, %s7840_s19  ;;  %v9635_v40 = vld [vmem:[#allocation5 + $0x169] sm:$0xff]  ;;  %v9661_v26 = vld [vmem:[#allocation5 + $0x32] sm:$0xff] }
 0x370   : > { %11706 = vst [vmem:[#allocation12_spill] sm:$0xff] %v9635_v40  ;;  %v9637_v48 = vld [vmem:[#allocation5 + $0x170] sm:$0xff]  ;;  %2535 = vrot.lane.b32.xlu0 %v9635_v40, %s7840_s19  ;;  %v9643_v55 = vld [vmem:[#allocation5 + $0x168] sm:$0xff]  ;;  %v9657_v40 = vld [vmem:[#allocation5 + $0x3a] sm:$0xff] }
 0x371   : > { %2410 = vst.msk [vmem:[#allocation3 + $0xf8] sm:$0xff] %vm2258_vm11, %v9637_v48  ;;  %2409 = vst.msk [vmem:[#allocation3 + $0xf0] sm:$0xff] %vm2258_vm11, %v9643_v55  ;;  %v9764_v22 = vld [vmem:[#allocation5 + $0x172] sm:$0xff] }
 0x372   : > { %11709 = vst [vmem:[#allocation15_spill] sm:$0xff] %v9657_v40  ;;  %11710 = vst [vmem:[#allocation16_spill] sm:$0xff] %v9661_v26 }
 0x373   : > { %2670 = vrot.lane.b32.xlu1 %v2605_v13, %s7842_s21  ;;  %v9665_v13 = vld [vmem:[#allocation5 + $0x52] sm:$0xff] }
 0x374   : > { %2668 = vrot.lane.b32.xlu0 %v2604_v12, %s7842_s21  ;;  %11711 = vst [vmem:[#allocation17_spill] sm:$0xff] %v9665_v13  ;;  %v9669_v12 = vld [vmem:[#allocation5 + $0x4a] sm:$0xff] }
 0x375   : > { %11712 = vst [vmem:[#allocation18_spill] sm:$0xff] %v9669_v12 }
 0x377   : > { %2674 = vrot.lane.b32.xlu1 %v9649_v1, %s7842_s21 }
 0x378   : > { %2672 = vrot.lane.b32.xlu0 %v9653_v20, %s7842_s21  ;;  %v9673_v20 = vld [vmem:[#allocation5 + $0x6a] sm:$0xff] }
 0x379   : > { %11713 = vst [vmem:[#allocation19_spill] sm:$0xff] %v9673_v20 }
 0x37b   : > { %2678 = vrot.lane.b32.xlu1 %v9657_v40, %s7842_s21  ;;  %v9677_v40 = vld [vmem:[#allocation5 + $0x62] sm:$0xff] }
 0x37c   : > { %2676 = vrot.lane.b32.xlu0 %v9661_v26, %s7842_s21  ;;  %11714 = vst [vmem:[#allocation20_spill] sm:$0xff] %v9677_v40  ;;  %v9681_v26 = vld [vmem:[#allocation5 + $0x82] sm:$0xff] }
 0x37d   : > { %11715 = vst [vmem:[#allocation21_spill] sm:$0xff] %v9681_v26 }
 0x37f   : > { %2682 = vrot.lane.b32.xlu1 %v9665_v13, %s7842_s21  ;;  %v9685_v13 = vld [vmem:[#allocation5 + $0x7a] sm:$0xff] }
 0x380   : > { %2680 = vrot.lane.b32.xlu0 %v9669_v12, %s7842_s21  ;;  %11716 = vst [vmem:[#allocation22_spill] sm:$0xff] %v9685_v13  ;;  %v9689_v12 = vld [vmem:[#allocation5 + $0x9a] sm:$0xff] }
 0x381   : > { %11717 = vst [vmem:[#allocation23_spill] sm:$0xff] %v9689_v12 }
 0x383   : > { %2686 = vrot.lane.b32.xlu1 %v9673_v20, %s7842_s21  ;;  %v9693_v20 = vld [vmem:[#allocation5 + $0x92] sm:$0xff] }
 0x384   : > { %2684 = vrot.lane.b32.xlu0 %v9677_v40, %s7842_s21  ;;  %11718 = vst [vmem:[#allocation24_spill] sm:$0xff] %v9693_v20  ;;  %v9697_v40 = vld [vmem:[#allocation5 + $0xb2] sm:$0xff] }
 0x385   : > { %11719 = vst [vmem:[#allocation25_spill] sm:$0xff] %v9697_v40 }
 0x387   : > { %2690 = vrot.lane.b32.xlu1 %v9681_v26, %s7842_s21  ;;  %v9701_v26 = vld [vmem:[#allocation5 + $0xaa] sm:$0xff] }
 0x388   : > { %2688 = vrot.lane.b32.xlu0 %v9685_v13, %s7842_s21  ;;  %11720 = vst [vmem:[#allocation26_spill] sm:$0xff] %v9701_v26  ;;  %v9705_v13 = vld [vmem:[#allocation5 + $0xca] sm:$0xff] }
 0x389   : > { %11721 = vst [vmem:[#allocation27_spill] sm:$0xff] %v9705_v13 }
 0x38b   : > { %2694 = vrot.lane.b32.xlu1 %v9689_v12, %s7842_s21  ;;  %v9709_v12 = vld [vmem:[#allocation5 + $0xc2] sm:$0xff] }
 0x38c   : > { %2692 = vrot.lane.b32.xlu0 %v9693_v20, %s7842_s21  ;;  %11722 = vst [vmem:[#allocation28_spill] sm:$0xff] %v9709_v12  ;;  %v9713_v20 = vld [vmem:[#allocation5 + $0xe2] sm:$0xff] }
 0x38d   : > { %11723 = vst [vmem:[#allocation29_spill] sm:$0xff] %v9713_v20 }
 0x38f   : > { %2698 = vrot.lane.b32.xlu1 %v9697_v40, %s7842_s21  ;;  %v9717_v40 = vld [vmem:[#allocation5 + $0xda] sm:$0xff] }
 0x390   : > { %2696 = vrot.lane.b32.xlu0 %v9701_v26, %s7842_s21  ;;  %11724 = vst [vmem:[#allocation30_spill] sm:$0xff] %v9717_v40  ;;  %v9721_v26 = vld [vmem:[#allocation5 + $0xfa] sm:$0xff] }
 0x391   : > { %11725 = vst [vmem:[#allocation31_spill] sm:$0xff] %v9721_v26 }
 0x393   : > { %2702 = vrot.lane.b32.xlu1 %v9705_v13, %s7842_s21  ;;  %v9725_v13 = vld [vmem:[#allocation5 + $0xf2] sm:$0xff] }
 0x394   : > { %2700 = vrot.lane.b32.xlu0 %v9709_v12, %s7842_s21  ;;  %11726 = vst [vmem:[#allocation32_spill] sm:$0xff] %v9725_v13  ;;  %v9729_v12 = vld [vmem:[#allocation5 + $0x112] sm:$0xff] }
 0x395   : > { %11727 = vst [vmem:[#allocation33_spill] sm:$0xff] %v9729_v12 }
 0x397   : > { %2706 = vrot.lane.b32.xlu1 %v9713_v20, %s7842_s21  ;;  %v9733_v20 = vld [vmem:[#allocation5 + $0x10a] sm:$0xff] }
 0x398   : > { %2704 = vrot.lane.b32.xlu0 %v9717_v40, %s7842_s21  ;;  %11728 = vst [vmem:[#allocation34_spill] sm:$0xff] %v9733_v20  ;;  %v9737_v40 = vld [vmem:[#allocation5 + $0x12a] sm:$0xff] }
 0x399   : > { %11729 = vst [vmem:[#allocation35_spill] sm:$0xff] %v9737_v40 }
 0x39b   : > { %2710 = vrot.lane.b32.xlu1 %v9721_v26, %s7842_s21  ;;  %v9741_v26 = vld [vmem:[#allocation5 + $0x122] sm:$0xff] }
 0x39c   : > { %2708 = vrot.lane.b32.xlu0 %v9725_v13, %s7842_s21  ;;  %11730 = vst [vmem:[#allocation36_spill] sm:$0xff] %v9741_v26  ;;  %v9745_v13 = vld [vmem:[#allocation5 + $0x142] sm:$0xff] }
 0x39d   : > { %11731 = vst [vmem:[#allocation37_spill] sm:$0xff] %v9745_v13 }
 0x39f   : > { %2714 = vrot.lane.b32.xlu1 %v9729_v12, %s7842_s21  ;;  %v9749_v12 = vld [vmem:[#allocation5 + $0x13a] sm:$0xff] }
 0x3a0   : > { %2712 = vrot.lane.b32.xlu0 %v9733_v20, %s7842_s21  ;;  %11732 = vst [vmem:[#allocation38_spill] sm:$0xff] %v9749_v12 }
 0x3a3   : > { %2718 = vrot.lane.b32.xlu1 %v9737_v40, %s7842_s21  ;;  %v9754_v40 = vld [vmem:[#allocation5 + $0x15a] sm:$0xff] }
 0x3a4   : > { %2716 = vrot.lane.b32.xlu0 %v9741_v26, %s7842_s21  ;;  %v9759_v26 = vld [vmem:[#allocation5 + $0x152] sm:$0xff] }
 0x3a5   : > { %11733 = vst [vmem:[#allocation39_spill] sm:$0xff] %v9759_v26 }
 0x3a7   : > { %2722 = vrot.lane.b32.xlu1 %v9745_v13, %s7842_s21 }
 0x3a8   : > { %2720 = vrot.lane.b32.xlu0 %v9749_v12, %s7842_s21 }
 0x3a9   : > { %v2482_v20 = vpop.permute.xlu1 %2481 }
 0x3aa   : > { %2575 = vst.msk [vmem:[#allocation3 + $0x18] sm:$0xff] %vm2571_vm13, %v2482_v20  ;;  %v2480_v1 = vpop.permute.xlu0 %2479 }
 0x3ab   : > { %2574 = vst.msk [vmem:[#allocation3 + $0x10] sm:$0xff] %vm2571_vm13, %v2480_v1  ;;  %2726 = vrot.lane.b32.xlu1 %v9754_v40, %s7842_s21  ;;  %v9769_v1 = vld [vmem:[#allocation5 + $0x16a] sm:$0xff] }
 0x3ac   : > { %2724 = vrot.lane.b32.xlu0 %v9759_v26, %s7842_s21 }
 0x3ad   : > { %v2486_v13 = vpop.permute.xlu1 %2485 }
 0x3ae   : > { %2577 = vst.msk [vmem:[#allocation3 + $0x28] sm:$0xff] %vm2571_vm13, %v2486_v13  ;;  %v2484_v12 = vpop.permute.xlu0 %2483 }
 0x3af   : > { %2576 = vst.msk [vmem:[#allocation3 + $0x20] sm:$0xff] %vm2571_vm13, %v2484_v12  ;;  %2730 = vrot.lane.b32.xlu1 %v9764_v22, %s7842_s21 }
 0x3b0   : > { %2728 = vrot.lane.b32.xlu0 %v9769_v1, %s7842_s21 }
 0x3b1   : > { %v2490_v20 = vpop.permute.xlu1 %2489 }
 0x3b2   : > { %2579 = vst.msk [vmem:[#allocation3 + $0x38] sm:$0xff] %vm2571_vm13, %v2490_v20  ;;  %v2488_v26 = vpop.permute.xlu0 %2487 }
 0x3b3   : > { %2578 = vst.msk [vmem:[#allocation3 + $0x30] sm:$0xff] %vm2571_vm13, %v2488_v26  ;;  %2863 = vrot.lane.b32.xlu1 %v9360_v45, %s7844_s23 }
 0x3b4   : > { %2861 = vrot.lane.b32.xlu0 %v9367_v49, %s7844_s23 }
 0x3b5   : > { %v2494_v13 = vpop.permute.xlu1 %2493 }
 0x3b6   : > { %2581 = vst.msk [vmem:[#allocation3 + $0x48] sm:$0xff] %vm2571_vm13, %v2494_v13  ;;  %v2492_v12 = vpop.permute.xlu0 %2491 }
 0x3b7   : > { %2580 = vst.msk [vmem:[#allocation3 + $0x40] sm:$0xff] %vm2571_vm13, %v2492_v12  ;;  %2867 = vrot.lane.b32.xlu1 %v9380_v11, %s7844_s23 }
 0x3b8   : > { %2865 = vrot.lane.b32.xlu0 %v9387_v17, %s7844_s23 }
 0x3b9   : > { %v2498_v20 = vpop.permute.xlu1 %2497 }
 0x3ba   : > { %2583 = vst.msk [vmem:[#allocation3 + $0x58] sm:$0xff] %vm2571_vm13, %v2498_v20  ;;  %v2496_v26 = vpop.permute.xlu0 %2495 }
 0x3bb   : > { %2582 = vst.msk [vmem:[#allocation3 + $0x50] sm:$0xff] %vm2571_vm13, %v2496_v26  ;;  %2871 = vrot.lane.b32.xlu1 %v9400_v60, %s7844_s23 }
 0x3bc   : > { %2869 = vrot.lane.b32.xlu0 %v9407_v4, %s7844_s23 }
 0x3bd   : > { %v2502_v45 = vpop.permute.xlu1 %2501 }
 0x3be   : > { %2585 = vst.msk [vmem:[#allocation3 + $0x68] sm:$0xff] %vm2571_vm13, %v2502_v45  ;;  %v2500_v49 = vpop.permute.xlu0 %2499 }
 0x3bf   : > { %2584 = vst.msk [vmem:[#allocation3 + $0x60] sm:$0xff] %vm2571_vm13, %v2500_v49  ;;  %2875 = vrot.lane.b32.xlu1 %v9420_v47, %s7844_s23 }
 0x3c0   : > { %2873 = vrot.lane.b32.xlu0 %v9427_v51, %s7844_s23 }
 0x3c1   : > { %v2506_v13 = vpop.permute.xlu1 %2505 }
 0x3c2   : > { %2587 = vst.msk [vmem:[#allocation3 + $0x78] sm:$0xff] %vm2571_vm13, %v2506_v13  ;;  %v2504_v12 = vpop.permute.xlu0 %2503 }
 0x3c3   : > { %2586 = vst.msk [vmem:[#allocation3 + $0x70] sm:$0xff] %vm2571_vm13, %v2504_v12  ;;  %2879 = vrot.lane.b32.xlu1 %v9440_v59, %s7844_s23 }
 0x3c4   : > { %2877 = vrot.lane.b32.xlu0 %v9447_v3, %s7844_s23 }
 0x3c5   : > { %v2510_v20 = vpop.permute.xlu1 %2509 }
 0x3c6   : > { %2589 = vst.msk [vmem:[#allocation3 + $0x88] sm:$0xff] %vm2571_vm13, %v2510_v20  ;;  %v2508_v26 = vpop.permute.xlu0 %2507 }
 0x3c7   : > { %2588 = vst.msk [vmem:[#allocation3 + $0x80] sm:$0xff] %vm2571_vm13, %v2508_v26  ;;  %2883 = vrot.lane.b32.xlu1 %v9460_v7, %s7844_s23 }
 0x3c8   : > { %2881 = vrot.lane.b32.xlu0 %v9467_v9, %s7844_s23 }
 0x3c9   : > { %v2514_v45 = vpop.permute.xlu1 %2513 }
 0x3ca   : > { %2591 = vst.msk [vmem:[#allocation3 + $0x98] sm:$0xff] %vm2571_vm13, %v2514_v45  ;;  %v2512_v49 = vpop.permute.xlu0 %2511 }
 0x3cb   : > { %2590 = vst.msk [vmem:[#allocation3 + $0x90] sm:$0xff] %vm2571_vm13, %v2512_v49  ;;  %2887 = vrot.lane.b32.xlu1 %v9480_v25, %s7844_s23 }
 0x3cc   : > { %2885 = vrot.lane.b32.xlu0 %v9487_v28, %s7844_s23 }
 0x3cd   : > { %v2518_v13 = vpop.permute.xlu1 %2517 }
 0x3ce   : > { %2593 = vst.msk [vmem:[#allocation3 + $0xa8] sm:$0xff] %vm2571_vm13, %v2518_v13  ;;  %v2516_v12 = vpop.permute.xlu0 %2515 }
 0x3cf   : > { %2592 = vst.msk [vmem:[#allocation3 + $0xa0] sm:$0xff] %vm2571_vm13, %v2516_v12  ;;  %2891 = vrot.lane.b32.xlu1 %v9500_v36, %s7844_s23 }
 0x3d0   : > { %2889 = vrot.lane.b32.xlu0 %v9507_v38, %s7844_s23 }
 0x3d1   : > { %v2522_v20 = vpop.permute.xlu1 %2521 }
 0x3d2   : > { %2595 = vst.msk [vmem:[#allocation3 + $0xb8] sm:$0xff] %vm2571_vm13, %v2522_v20  ;;  %v2520_v26 = vpop.permute.xlu0 %2519 }
 0x3d3   : > { %2594 = vst.msk [vmem:[#allocation3 + $0xb0] sm:$0xff] %vm2571_vm13, %v2520_v26  ;;  %2895 = vrot.lane.b32.xlu1 %v9520_v56, %s7844_s23 }
 0x3d4   : > { %2893 = vrot.lane.b32.xlu0 %v9527_v14, %s7844_s23 }
 0x3d5   : > { %v2526_v45 = vpop.permute.xlu1 %2525 }
 0x3d6   : > { %2597 = vst.msk [vmem:[#allocation3 + $0xc8] sm:$0xff] %vm2571_vm13, %v2526_v45  ;;  %v2524_v49 = vpop.permute.xlu0 %2523 }
 0x3d7   : > { %2596 = vst.msk [vmem:[#allocation3 + $0xc0] sm:$0xff] %vm2571_vm13, %v2524_v49  ;;  %2899 = vrot.lane.b32.xlu1 %v9540_v42, %s7844_s23 }
 0x3d8   : > { %2897 = vrot.lane.b32.xlu0 %v9547_v54, %s7844_s23 }
 0x3d9   : > { %v2530_v13 = vpop.permute.xlu1 %2529 }
 0x3da   : > { %2599 = vst.msk [vmem:[#allocation3 + $0xd8] sm:$0xff] %vm2571_vm13, %v2530_v13  ;;  %v2528_v12 = vpop.permute.xlu0 %2527 }
 0x3db   : > { %2598 = vst.msk [vmem:[#allocation3 + $0xd0] sm:$0xff] %vm2571_vm13, %v2528_v12  ;;  %2903 = vrot.lane.b32.xlu1 %v9560_v2, %s7844_s23 }
 0x3dc   : > { %2901 = vrot.lane.b32.xlu0 %v9567_v19, %s7844_s23 }
 0x3dd   : > { %v2534_v20 = vpop.permute.xlu1 %2533 }
 0x3de   : > { %2601 = vst.msk [vmem:[#allocation3 + $0xe8] sm:$0xff] %vm2571_vm13, %v2534_v20  ;;  %v2532_v26 = vpop.permute.xlu0 %2531 }
 0x3df   : > { %2600 = vst.msk [vmem:[#allocation3 + $0xe0] sm:$0xff] %vm2571_vm13, %v2532_v26  ;;  %2907 = vrot.lane.b32.xlu1 %v9580_v33, %s7844_s23 }
 0x3e0   : > { %2905 = vrot.lane.b32.xlu0 %v9587_v39, %s7844_s23 }
 0x3e1   : > { %v2538_v45 = vpop.permute.xlu1 %2537 }
 0x3e2   : > { %2603 = vst.msk [vmem:[#allocation3 + $0xf8] sm:$0xff] %vm2571_vm13, %v2538_v45  ;;  %v2536_v49 = vpop.permute.xlu0 %2535  ;;  %v2828_v45 = vld [vmem:[#allocation5 + $0x188] sm:$0xff] }
 0x3e3   : > { %2602 = vst.msk [vmem:[#allocation3 + $0xf0] sm:$0xff] %vm2571_vm13, %v2536_v49  ;;  %2911 = vrot.lane.b32.xlu1 %v9600_v63, %s7844_s23 }
 0x3e4   : > { %2909 = vrot.lane.b32.xlu0 %v9607_v50, %s7844_s23 }
 0x3e5   : > { %v2671_v13 = vpop.permute.xlu1 %2670 }
 0x3e6   : > { %2766 = vst.msk [vmem:[#allocation3 + $0x8] sm:$0xff] %vm2764_vm14, %v2671_v13  ;;  %v2669_v12 = vpop.permute.xlu0 %2668  ;;  %v2827_v13 = vld [vmem:[#allocation5 + $0x180] sm:$0xff] }
 0x3e7   : > { %2765 = vst.msk [vmem:[#allocation3] sm:$0xff] %vm2764_vm14, %v2669_v12  ;;  %2915 = vrot.lane.b32.xlu1 %v9619_v27, %s7844_s23 }
 0x3e8   : > { %2913 = vrot.lane.b32.xlu0 %v9626_v37, %s7844_s23 }
 0x3e9   : > { %v2675_v20 = vpop.permute.xlu1 %2674 }
 0x3ea   : > { %2768 = vst.msk [vmem:[#allocation3 + $0x18] sm:$0xff] %vm2764_vm14, %v2675_v20  ;;  %v2673_v26 = vpop.permute.xlu0 %2672 }
 0x3eb   : > { %2767 = vst.msk [vmem:[#allocation3 + $0x10] sm:$0xff] %vm2764_vm14, %v2673_v26  ;;  %2919 = vrot.lane.b32.xlu1 %v9637_v48, %s7844_s23 }
 0x3ec   : > { %2917 = vrot.lane.b32.xlu0 %v9643_v55, %s7844_s23 }
 0x3ed   : > { %v2679_v49 = vpop.permute.xlu1 %2678 }
 0x3ee   : > { %2770 = vst.msk [vmem:[#allocation3 + $0x28] sm:$0xff] %vm2764_vm14, %v2679_v49  ;;  %v2677_v27 = vpop.permute.xlu0 %2676  ;;  %v11736_v49 = vld [vmem:[#allocation12_spill] sm:$0xff] }
 0x3ef   : > { %2769 = vst.msk [vmem:[#allocation3 + $0x20] sm:$0xff] %vm2764_vm14, %v2677_v27  ;;  %2923 = vrot.lane.b32.xlu1 %v2828_v45, %s7844_s23 }
 0x3f0   : > { %2921 = vrot.lane.b32.xlu0 %v2827_v13, %s7844_s23 }
 0x3f1   : > { %v2683_v12 = vpop.permute.xlu1 %2682 }
 0x3f2   : > { %2772 = vst.msk [vmem:[#allocation3 + $0x38] sm:$0xff] %vm2764_vm14, %v2683_v12  ;;  %v2681_v20 = vpop.permute.xlu0 %2680  ;;  %v9963_v12 = vld [vmem:[#allocation5 + $0x181] sm:$0xff] }
 0x3f3   : > { %2771 = vst.msk [vmem:[#allocation3 + $0x30] sm:$0xff] %vm2764_vm14, %v2681_v20  ;;  %3056 = vrot.lane.b32.xlu1 %v9353_v41, %s7846_s9 }
 0x3f4   : > { %3054 = vrot.lane.b32.xlu0 %v9358_v44, %s7846_s9 }
 0x3f5   : > { %v2687_v48 = vpop.permute.xlu1 %2686 }
 0x3f6   : > { %2774 = vst.msk [vmem:[#allocation3 + $0x48] sm:$0xff] %vm2764_vm14, %v2687_v48  ;;  %v2685_v55 = vpop.permute.xlu0 %2684 }
 0x3f7   : > { %2773 = vst.msk [vmem:[#allocation3 + $0x40] sm:$0xff] %vm2764_vm14, %v2685_v55  ;;  %3060 = vrot.lane.b32.xlu1 %v9373_v10, %s7846_s9  ;;  %v11737_v55 = vld [vmem:[#allocation13_spill] sm:$0xff] }
 0x3f8   : > { %3058 = vrot.lane.b32.xlu0 %v9378_v57, %s7846_s9 }
 0x3f9   : > { %v2691_v26 = vpop.permute.xlu1 %2690 }
 0x3fa   : > { %2776 = vst.msk [vmem:[#allocation3 + $0x58] sm:$0xff] %vm2764_vm14, %v2691_v26  ;;  %v2689_v45 = vpop.permute.xlu0 %2688  ;;  %v11738_v26 = vld [vmem:[#allocation14_spill] sm:$0xff] }
 0x3fb   : > { %2775 = vst.msk [vmem:[#allocation3 + $0x50] sm:$0xff] %vm2764_vm14, %v2689_v45  ;;  %3064 = vrot.lane.b32.xlu1 %v9393_v21, %s7846_s9 }
 0x3fc   : > { %3062 = vrot.lane.b32.xlu0 %v9398_v29, %s7846_s9 }
 0x3fd   : > { %v2695_v41 = vpop.permute.xlu1 %2694 }
 0x3fe   : > { %2778 = vst.msk [vmem:[#allocation3 + $0x68] sm:$0xff] %vm2764_vm14, %v2695_v41  ;;  %v2693_v44 = vpop.permute.xlu0 %2692 }
 0x3ff   : > { %2777 = vst.msk [vmem:[#allocation3 + $0x60] sm:$0xff] %vm2764_vm14, %v2693_v44  ;;  %3068 = vrot.lane.b32.xlu1 %v9413_v43, %s7846_s9  ;;  %v11739_v44 = vld [vmem:[#allocation15_spill] sm:$0xff] }
 0x400   : > { %3066 = vrot.lane.b32.xlu0 %v9418_v46, %s7846_s9 }
 0x401   : > { %v2699_v10 = vpop.permute.xlu1 %2698 }
 0x402   : > { %2780 = vst.msk [vmem:[#allocation3 + $0x78] sm:$0xff] %vm2764_vm14, %v2699_v10  ;;  %v2697_v57 = vpop.permute.xlu0 %2696  ;;  %v11740_v10 = vld [vmem:[#allocation16_spill] sm:$0xff] }
 0x403   : > { %2779 = vst.msk [vmem:[#allocation3 + $0x70] sm:$0xff] %vm2764_vm14, %v2697_v57  ;;  %3072 = vrot.lane.b32.xlu1 %v9433_v16, %s7846_s9 }
 0x404   : > { %3070 = vrot.lane.b32.xlu0 %v9438_v58, %s7846_s9 }
 0x405   : > { %v2703_v21 = vpop.permute.xlu1 %2702 }
 0x406   : > { %2782 = vst.msk [vmem:[#allocation3 + $0x88] sm:$0xff] %vm2764_vm14, %v2703_v21  ;;  %v2701_v29 = vpop.permute.xlu0 %2700 }
 0x407   : > { %2781 = vst.msk [vmem:[#allocation3 + $0x80] sm:$0xff] %vm2764_vm14, %v2701_v29  ;;  %3076 = vrot.lane.b32.xlu1 %v9453_v61, %s7846_s9  ;;  %v11741_v29 = vld [vmem:[#allocation17_spill] sm:$0xff] }
 0x408   : > { %3074 = vrot.lane.b32.xlu0 %v9458_v62, %s7846_s9 }
 0x409   : > { %v2707_v43 = vpop.permute.xlu1 %2706 }
 0x40a   : > { %2784 = vst.msk [vmem:[#allocation3 + $0x98] sm:$0xff] %vm2764_vm14, %v2707_v43  ;;  %v2705_v46 = vpop.permute.xlu0 %2704  ;;  %v11742_v43 = vld [vmem:[#allocation18_spill] sm:$0xff] }
 0x40b   : > { %2783 = vst.msk [vmem:[#allocation3 + $0x90] sm:$0xff] %vm2764_vm14, %v2705_v46  ;;  %3080 = vrot.lane.b32.xlu1 %v9473_v23, %s7846_s9 }
 0x40c   : > { %3078 = vrot.lane.b32.xlu0 %v9478_v24, %s7846_s9 }
 0x40d   : > { %v2711_v16 = vpop.permute.xlu1 %2710 }
 0x40e   : > { %2786 = vst.msk [vmem:[#allocation3 + $0xa8] sm:$0xff] %vm2764_vm14, %v2711_v16  ;;  %v2709_v58 = vpop.permute.xlu0 %2708 }
 0x40f   : > { %2785 = vst.msk [vmem:[#allocation3 + $0xa0] sm:$0xff] %vm2764_vm14, %v2709_v58  ;;  %3084 = vrot.lane.b32.xlu1 %v9493_v34, %s7846_s9  ;;  %v11743_v58 = vld [vmem:[#allocation19_spill] sm:$0xff] }
 0x410   : > { %3082 = vrot.lane.b32.xlu0 %v9498_v35, %s7846_s9 }
 0x411   : > { %v2715_v61 = vpop.permute.xlu1 %2714 }
 0x412   : > { %2788 = vst.msk [vmem:[#allocation3 + $0xb8] sm:$0xff] %vm2764_vm14, %v2715_v61  ;;  %v2713_v62 = vpop.permute.xlu0 %2712  ;;  %v11744_v61 = vld [vmem:[#allocation20_spill] sm:$0xff] }
 0x413   : > { %2787 = vst.msk [vmem:[#allocation3 + $0xb0] sm:$0xff] %vm2764_vm14, %v2713_v62  ;;  %3088 = vrot.lane.b32.xlu1 %v9513_v52, %s7846_s9 }
 0x414   : > { %3086 = vrot.lane.b32.xlu0 %v9518_v53, %s7846_s9 }
 0x415   : > { %v2719_v23 = vpop.permute.xlu1 %2718 }
 0x416   : > { %2790 = vst.msk [vmem:[#allocation3 + $0xc8] sm:$0xff] %vm2764_vm14, %v2719_v23  ;;  %v2717_v24 = vpop.permute.xlu0 %2716 }
 0x417   : > { %2789 = vst.msk [vmem:[#allocation3 + $0xc0] sm:$0xff] %vm2764_vm14, %v2717_v24  ;;  %3092 = vrot.lane.b32.xlu1 %v9533_v5, %s7846_s9  ;;  %v11745_v24 = vld [vmem:[#allocation21_spill] sm:$0xff] }
 0x418   : > { %3090 = vrot.lane.b32.xlu0 %v9538_v30, %s7846_s9 }
 0x419   : > { %v2723_v34 = vpop.permute.xlu1 %2722 }
 0x41a   : > { %2792 = vst.msk [vmem:[#allocation3 + $0xd8] sm:$0xff] %vm2764_vm14, %v2723_v34  ;;  %v2721_v35 = vpop.permute.xlu0 %2720  ;;  %v11746_v34 = vld [vmem:[#allocation22_spill] sm:$0xff] }
 0x41b   : > { %2791 = vst.msk [vmem:[#allocation3 + $0xd0] sm:$0xff] %vm2764_vm14, %v2721_v35  ;;  %3096 = vrot.lane.b32.xlu1 %v9553_v0, %s7846_s9 }
 0x41c   : > { %3094 = vrot.lane.b32.xlu0 %v9558_v6, %s7846_s9 }
 0x41d   : > { %v2727_v52 = vpop.permute.xlu1 %2726 }
 0x41e   : > { %2794 = vst.msk [vmem:[#allocation3 + $0xe8] sm:$0xff] %vm2764_vm14, %v2727_v52  ;;  %v2725_v53 = vpop.permute.xlu0 %2724 }
 0x41f   : > { %2793 = vst.msk [vmem:[#allocation3 + $0xe0] sm:$0xff] %vm2764_vm14, %v2725_v53  ;;  %3100 = vrot.lane.b32.xlu1 %v9573_v31, %s7846_s9  ;;  %v11734_v31 = vld [vmem:[#allocation10_spill] sm:$0xff]  ;;  %v11747_v53 = vld [vmem:[#allocation23_spill] sm:$0xff] }
 0x420   : > { %3098 = vrot.lane.b32.xlu0 %v9578_v32, %s7846_s9 }
 0x421   : > { %v2731_v5 = vpop.permute.xlu1 %2730 }
 0x422   : > { %2796 = vst.msk [vmem:[#allocation3 + $0xf8] sm:$0xff] %vm2764_vm14, %v2731_v5  ;;  %v2729_v30 = vpop.permute.xlu0 %2728  ;;  %v11748_v5 = vld [vmem:[#allocation24_spill] sm:$0xff] }
 0x423   : > { %2795 = vst.msk [vmem:[#allocation3 + $0xf0] sm:$0xff] %vm2764_vm14, %v2729_v30  ;;  %3104 = vrot.lane.b32.xlu1 %v9593_v15, %s7846_s9 }
 0x424   : > { %3102 = vrot.lane.b32.xlu0 %v9598_v18, %s7846_s9  ;;  %v11735_v18 = vld [vmem:[#allocation11_spill] sm:$0xff] }
 0x425   : > { %v2864_v0 = vpop.permute.xlu1 %2863 }
 0x426   : > { %2959 = vst.msk [vmem:[#allocation3 + $0x8] sm:$0xff] %vm2957_vm15, %v2864_v0  ;;  %v2862_v6 = vpop.permute.xlu0 %2861 }
 0x427   : > { %2958 = vst.msk [vmem:[#allocation3] sm:$0xff] %vm2957_vm15, %v2862_v6  ;;  %3108 = vrot.lane.b32.xlu1 %v9612_v8, %s7846_s9  ;;  %v9958_v8 = vld [vmem:[#allocation5 + $0x189] sm:$0xff] }
 0x428   : > { %3106 = vrot.lane.b32.xlu0 %v11734_v31, %s7846_s9  ;;  %v11749_v6 = vld [vmem:[#allocation25_spill] sm:$0xff]  ;;  %v11750_v31 = vld [vmem:[#allocation26_spill] sm:$0xff] }
 0x429   : > { %v2868_v32 = vpop.permute.xlu1 %2867 }
 0x42a   : > { %2961 = vst.msk [vmem:[#allocation3 + $0x18] sm:$0xff] %vm2957_vm15, %v2868_v32  ;;  %v2866_v15 = vpop.permute.xlu0 %2865 }
 0x42b   : > { %2960 = vst.msk [vmem:[#allocation3 + $0x10] sm:$0xff] %vm2957_vm15, %v2866_v15  ;;  %3112 = vrot.lane.b32.xlu1 %v11735_v18, %s7846_s9  ;;  %v11751_v18 = vld [vmem:[#allocation27_spill] sm:$0xff] }
 0x42c   : > { %3110 = vrot.lane.b32.xlu0 %v11736_v49, %s7846_s9  ;;  %v11752_v49 = vld [vmem:[#allocation28_spill] sm:$0xff] }
 0x42d   : > { %v2872_v13 = vpop.permute.xlu1 %2871 }
 0x42e   : > { %2963 = vst.msk [vmem:[#allocation3 + $0x28] sm:$0xff] %vm2957_vm15, %v2872_v13  ;;  %v2870_v27 = vpop.permute.xlu0 %2869 }
 0x42f   : > { %2962 = vst.msk [vmem:[#allocation3 + $0x20] sm:$0xff] %vm2957_vm15, %v2870_v27  ;;  %3116 = vrot.lane.b32.xlu1 %v9958_v8, %s7846_s9 }
 0x430   : > { %3114 = vrot.lane.b32.xlu0 %v9963_v12, %s7846_s9 }
 0x431   : > { %v2876_v20 = vpop.permute.xlu1 %2875 }
 0x432   : > { %2965 = vst.msk [vmem:[#allocation3 + $0x38] sm:$0xff] %vm2957_vm15, %v2876_v20  ;;  %v2874_v48 = vpop.permute.xlu0 %2873  ;;  %v11753_v20 = vld [vmem:[#allocation29_spill] sm:$0xff] }
 0x433   : > { %2964 = vst.msk [vmem:[#allocation3 + $0x30] sm:$0xff] %vm2957_vm15, %v2874_v48  ;;  %3249 = vrot.lane.b32.xlu1 %v11737_v55, %s7848_s13  ;;  %v11754_v48 = vld [vmem:[#allocation30_spill] sm:$0xff] }
 0x434   : > { %3247 = vrot.lane.b32.xlu0 %v11738_v26, %s7848_s13 }
 0x435   : > { %v2880_v45 = vpop.permute.xlu1 %2879 }
 0x436   : > { %2967 = vst.msk [vmem:[#allocation3 + $0x48] sm:$0xff] %vm2957_vm15, %v2880_v45  ;;  %v2878_v41 = vpop.permute.xlu0 %2877  ;;  %v11755_v45 = vld [vmem:[#allocation31_spill] sm:$0xff] }
 0x437   : > { %2966 = vst.msk [vmem:[#allocation3 + $0x40] sm:$0xff] %vm2957_vm15, %v2878_v41  ;;  %3253 = vrot.lane.b32.xlu1 %v11739_v44, %s7848_s13  ;;  %v11756_v41 = vld [vmem:[#allocation32_spill] sm:$0xff] }
 0x438   : > { %3251 = vrot.lane.b32.xlu0 %v11740_v10, %s7848_s13 }
 0x439   : > { %v2884_v57 = vpop.permute.xlu1 %2883 }
 0x43a   : > { %2969 = vst.msk [vmem:[#allocation3 + $0x58] sm:$0xff] %vm2957_vm15, %v2884_v57  ;;  %v2882_v21 = vpop.permute.xlu0 %2881  ;;  %v11757_v57 = vld [vmem:[#allocation33_spill] sm:$0xff] }
 0x43b   : > { %2968 = vst.msk [vmem:[#allocation3 + $0x50] sm:$0xff] %vm2957_vm15, %v2882_v21  ;;  %3257 = vrot.lane.b32.xlu1 %v11741_v29, %s7848_s13  ;;  %v11758_v21 = vld [vmem:[#allocation34_spill] sm:$0xff] }
 0x43c   : > { %3255 = vrot.lane.b32.xlu0 %v11742_v43, %s7848_s13 }
 0x43d   : > { %v2888_v46 = vpop.permute.xlu1 %2887 }
 0x43e   : > { %2971 = vst.msk [vmem:[#allocation3 + $0x68] sm:$0xff] %vm2957_vm15, %v2888_v46  ;;  %v2886_v16 = vpop.permute.xlu0 %2885  ;;  %v11759_v46 = vld [vmem:[#allocation35_spill] sm:$0xff] }
 0x43f   : > { %2970 = vst.msk [vmem:[#allocation3 + $0x60] sm:$0xff] %vm2957_vm15, %v2886_v16  ;;  %3261 = vrot.lane.b32.xlu1 %v11743_v58, %s7848_s13  ;;  %v11760_v16 = vld [vmem:[#allocation36_spill] sm:$0xff] }
 0x440   : > { %3259 = vrot.lane.b32.xlu0 %v11744_v61, %s7848_s13 }
 0x441   : > { %v2892_v62 = vpop.permute.xlu1 %2891 }
 0x442   : > { %2973 = vst.msk [vmem:[#allocation3 + $0x78] sm:$0xff] %vm2957_vm15, %v2892_v62  ;;  %v2890_v23 = vpop.permute.xlu0 %2889  ;;  %v11761_v62 = vld [vmem:[#allocation37_spill] sm:$0xff] }
 0x443   : > { %2972 = vst.msk [vmem:[#allocation3 + $0x70] sm:$0xff] %vm2957_vm15, %v2890_v23  ;;  %3265 = vrot.lane.b32.xlu1 %v11745_v24, %s7848_s13  ;;  %v11762_v23 = vld [vmem:[#allocation38_spill] sm:$0xff] }
 0x444   : > { %3263 = vrot.lane.b32.xlu0 %v11746_v34, %s7848_s13 }
 0x445   : > { %v2896_v35 = vpop.permute.xlu1 %2895 }
 0x446   : > { %2975 = vst.msk [vmem:[#allocation3 + $0x88] sm:$0xff] %vm2957_vm15, %v2896_v35  ;;  %v2894_v52 = vpop.permute.xlu0 %2893  ;;  %v11763_v35 = vld [vmem:[#allocation39_spill] sm:$0xff] }
 0x447   : > { %2974 = vst.msk [vmem:[#allocation3 + $0x80] sm:$0xff] %vm2957_vm15, %v2894_v52  ;;  %3269 = vrot.lane.b32.xlu1 %v11747_v53, %s7848_s13 }
 0x448   : > { %3267 = vrot.lane.b32.xlu0 %v11748_v5, %s7848_s13 }
 0x449   : > { %v2900_v30 = vpop.permute.xlu1 %2899 }
 0x44a   : > { %2977 = vst.msk [vmem:[#allocation3 + $0x98] sm:$0xff] %vm2957_vm15, %v2900_v30  ;;  %v2898_v0 = vpop.permute.xlu0 %2897 }
 0x44b   : > { %2976 = vst.msk [vmem:[#allocation3 + $0x90] sm:$0xff] %vm2957_vm15, %v2898_v0  ;;  %3273 = vrot.lane.b32.xlu1 %v11749_v6, %s7848_s13  ;;  %v10063_v0 = vld [vmem:[#allocation5 + $0x182] sm:$0xff] }
 0x44c   : > { %3271 = vrot.lane.b32.xlu0 %v11750_v31, %s7848_s13 }
 0x44d   : > { %v2904_v32 = vpop.permute.xlu1 %2903 }
 0x44e   : > { %2979 = vst.msk [vmem:[#allocation3 + $0xa8] sm:$0xff] %vm2957_vm15, %v2904_v32  ;;  %v2902_v15 = vpop.permute.xlu0 %2901 }
 0x44f   : > { %2978 = vst.msk [vmem:[#allocation3 + $0xa0] sm:$0xff] %vm2957_vm15, %v2902_v15  ;;  %3277 = vrot.lane.b32.xlu1 %v11751_v18, %s7848_s13 }
 0x450   : > { %3275 = vrot.lane.b32.xlu0 %v11752_v49, %s7848_s13 }
 0x451   : > { %v2908_v13 = vpop.permute.xlu1 %2907 }
 0x452   : > { %2981 = vst.msk [vmem:[#allocation3 + $0xb8] sm:$0xff] %vm2957_vm15, %v2908_v13  ;;  %v2906_v27 = vpop.permute.xlu0 %2905 }
 0x453   : > { %2980 = vst.msk [vmem:[#allocation3 + $0xb0] sm:$0xff] %vm2957_vm15, %v2906_v27  ;;  %3281 = vrot.lane.b32.xlu1 %v11753_v20, %s7848_s13 }
 0x454   : > { %3279 = vrot.lane.b32.xlu0 %v11754_v48, %s7848_s13 }
 0x455   : > { %v2912_v55 = vpop.permute.xlu1 %2911 }
 0x456   : > { %2983 = vst.msk [vmem:[#allocation3 + $0xc8] sm:$0xff] %vm2957_vm15, %v2912_v55  ;;  %v2910_v26 = vpop.permute.xlu0 %2909 }
 0x457   : > { %2982 = vst.msk [vmem:[#allocation3 + $0xc0] sm:$0xff] %vm2957_vm15, %v2910_v26  ;;  %3285 = vrot.lane.b32.xlu1 %v11755_v45, %s7848_s13 }
 0x458   : > { %3283 = vrot.lane.b32.xlu0 %v11756_v41, %s7848_s13 }
 0x459   : > { %v2916_v44 = vpop.permute.xlu1 %2915 }
 0x45a   : > { %2985 = vst.msk [vmem:[#allocation3 + $0xd8] sm:$0xff] %vm2957_vm15, %v2916_v44  ;;  %v2914_v10 = vpop.permute.xlu0 %2913  ;;  %v3570_v44 = vld [vmem:[#allocation5 + $0x31] sm:$0xff] }
 0x45b   : > { %2984 = vst.msk [vmem:[#allocation3 + $0xd0] sm:$0xff] %vm2957_vm15, %v2914_v10  ;;  %3289 = vrot.lane.b32.xlu1 %v11757_v57, %s7848_s13  ;;  %v3763_v57 = vld [vmem:[#allocation5 + $0x32] sm:$0xff] }
 0x45c   : > { %3287 = vrot.lane.b32.xlu0 %v11758_v21, %s7848_s13  ;;  %v3571_v21 = vld [vmem:[#allocation5 + $0x39] sm:$0xff] }
 0x45d   : > { %v2920_v29 = vpop.permute.xlu1 %2919 }
 0x45e   : > { %2987 = vst.msk [vmem:[#allocation3 + $0xe8] sm:$0xff] %vm2957_vm15, %v2920_v29  ;;  %v2918_v43 = vpop.permute.xlu0 %2917 }
 0x45f   : > { %2986 = vst.msk [vmem:[#allocation3 + $0xe0] sm:$0xff] %vm2957_vm15, %v2918_v43  ;;  %3293 = vrot.lane.b32.xlu1 %v11759_v46, %s7848_s13  ;;  %v3572_v43 = vld [vmem:[#allocation5 + $0x49] sm:$0xff]  ;;  %v3764_v46 = vld [vmem:[#allocation5 + $0x3a] sm:$0xff] }
 0x460   : > { %3291 = vrot.lane.b32.xlu0 %v11760_v16, %s7848_s13 }
 0x461   : > { %v2924_v58 = vpop.permute.xlu1 %2923 }
 0x462   : > { %2989 = vst.msk [vmem:[#allocation3 + $0xf8] sm:$0xff] %vm2957_vm15, %v2924_v58  ;;  %v2922_v61 = vpop.permute.xlu0 %2921 }
 0x463   : > { %2988 = vst.msk [vmem:[#allocation3 + $0xf0] sm:$0xff] %vm2957_vm15, %v2922_v61  ;;  %3297 = vrot.lane.b32.xlu1 %v11761_v62, %s7848_s13  ;;  %v3765_v61 = vld [vmem:[#allocation5 + $0x4a] sm:$0xff] }
 0x464   : > { %3295 = vrot.lane.b32.xlu0 %v11762_v23, %s7848_s13  ;;  %v3573_v62 = vld [vmem:[#allocation5 + $0x51] sm:$0xff] }
 0x465   : > { %v3057_v24 = vpop.permute.xlu1 %3056 }
 0x466   : > { %3152 = vst.msk [vmem:[#allocation3 + $0x8] sm:$0xff] %vm3150_vm0, %v3057_v24  ;;  %v3055_v34 = vpop.permute.xlu0 %3054 }
 0x467   : > { %3151 = vst.msk [vmem:[#allocation3] sm:$0xff] %vm3150_vm0, %v3055_v34  ;;  %3301 = vrot.lane.b32.xlu1 %v9754_v40, %s7848_s13  ;;  %v10058_v40 = vld [vmem:[#allocation5 + $0x18a] sm:$0xff]  ;;  %v3574_v34 = vld [vmem:[#allocation5 + $0x61] sm:$0xff] }
 0x468   : > { %3299 = vrot.lane.b32.xlu0 %v11763_v35, %s7848_s13  ;;  %v3766_v35 = vld [vmem:[#allocation5 + $0x52] sm:$0xff] }
 0x469   : > { %v3061_v52 = vpop.permute.xlu1 %3060 }
 0x46a   : > { %3154 = vst.msk [vmem:[#allocation3 + $0x18] sm:$0xff] %vm3150_vm0, %v3061_v52  ;;  %v3059_v53 = vpop.permute.xlu0 %3058 }
 0x46b   : > { %3153 = vst.msk [vmem:[#allocation3 + $0x10] sm:$0xff] %vm3150_vm0, %v3059_v53  ;;  %3305 = vrot.lane.b32.xlu1 %v9764_v22, %s7848_s13 }
 0x46c   : > { %3303 = vrot.lane.b32.xlu0 %v9769_v1, %s7848_s13 }
 0x46d   : > { %v3065_v5 = vpop.permute.xlu1 %3064 }
 0x46e   : > { %3156 = vst.msk [vmem:[#allocation3 + $0x28] sm:$0xff] %vm3150_vm0, %v3065_v5  ;;  %v3063_v30 = vpop.permute.xlu0 %3062  ;;  %v3767_v5 = vld [vmem:[#allocation5 + $0x62] sm:$0xff] }
 0x46f   : > { %3155 = vst.msk [vmem:[#allocation3 + $0x20] sm:$0xff] %vm3150_vm0, %v3063_v30  ;;  %3309 = vrot.lane.b32.xlu1 %v10058_v40, %s7848_s13  ;;  %v3575_v30 = vld [vmem:[#allocation5 + $0x69] sm:$0xff] }
 0x470   : > { %3307 = vrot.lane.b32.xlu0 %v10063_v0, %s7848_s13 }
 0x471   : > { %v3069_v22 = vpop.permute.xlu1 %3068 }
 0x472   : > { %3158 = vst.msk [vmem:[#allocation3 + $0x38] sm:$0xff] %vm3150_vm0, %v3069_v22  ;;  %v3067_v1 = vpop.permute.xlu0 %3066 }
 0x473   : > { %3157 = vst.msk [vmem:[#allocation3 + $0x30] sm:$0xff] %vm3150_vm0, %v3067_v1  ;;  %3443 = vrot.lane.b32.xlu1 %v9380_v11, %s7849_s14 }
 0x474   : > { %3441 = vrot.lane.b32.xlu0 %v9387_v17, %s7849_s14 }
 0x475   : > { %v3073_v6 = vpop.permute.xlu1 %3072 }
 0x476   : > { %3160 = vst.msk [vmem:[#allocation3 + $0x48] sm:$0xff] %vm3150_vm0, %v3073_v6  ;;  %v3071_v31 = vpop.permute.xlu0 %3070  ;;  %v3576_v6 = vld [vmem:[#allocation5 + $0x79] sm:$0xff] }
 0x477   : > { %3159 = vst.msk [vmem:[#allocation3 + $0x40] sm:$0xff] %vm3150_vm0, %v3071_v31  ;;  %3447 = vrot.lane.b32.xlu1 %v9400_v60, %s7849_s14  ;;  %v3768_v31 = vld [vmem:[#allocation5 + $0x6a] sm:$0xff] }
 0x478   : > { %3445 = vrot.lane.b32.xlu0 %v9407_v4, %s7849_s14 }
 0x479   : > { %v3077_v32 = vpop.permute.xlu1 %3076 }
 0x47a   : > { %3162 = vst.msk [vmem:[#allocation3 + $0x58] sm:$0xff] %vm3150_vm0, %v3077_v32  ;;  %v3075_v15 = vpop.permute.xlu0 %3074 }
 0x47b   : > { %3161 = vst.msk [vmem:[#allocation3 + $0x50] sm:$0xff] %vm3150_vm0, %v3075_v15  ;;  %3451 = vrot.lane.b32.xlu1 %v9420_v47, %s7849_s14 }
 0x47c   : > { %3449 = vrot.lane.b32.xlu0 %v9427_v51, %s7849_s14 }
 0x47d   : > { %v3081_v11 = vpop.permute.xlu1 %3080 }
 0x47e   : > { %3164 = vst.msk [vmem:[#allocation3 + $0x68] sm:$0xff] %vm3150_vm0, %v3081_v11  ;;  %v3079_v17 = vpop.permute.xlu0 %3078  ;;  %v3769_v11 = vld [vmem:[#allocation5 + $0x7a] sm:$0xff] }
 0x47f   : > { %3163 = vst.msk [vmem:[#allocation3 + $0x60] sm:$0xff] %vm3150_vm0, %v3079_v17  ;;  %3455 = vrot.lane.b32.xlu1 %v9440_v59, %s7849_s14  ;;  %v3577_v17 = vld [vmem:[#allocation5 + $0x81] sm:$0xff] }
 0x480   : > { %3453 = vrot.lane.b32.xlu0 %v9447_v3, %s7849_s14 }
 0x481   : > { %v3085_v60 = vpop.permute.xlu1 %3084 }
 0x482   : > { %3166 = vst.msk [vmem:[#allocation3 + $0x78] sm:$0xff] %vm3150_vm0, %v3085_v60  ;;  %v3083_v4 = vpop.permute.xlu0 %3082 }
 0x483   : > { %3165 = vst.msk [vmem:[#allocation3 + $0x70] sm:$0xff] %vm3150_vm0, %v3083_v4  ;;  %3459 = vrot.lane.b32.xlu1 %v9460_v7, %s7849_s14 }
 0x484   : > { %3457 = vrot.lane.b32.xlu0 %v9467_v9, %s7849_s14 }
 0x485   : > { %v3089_v47 = vpop.permute.xlu1 %3088 }
 0x486   : > { %3168 = vst.msk [vmem:[#allocation3 + $0x88] sm:$0xff] %vm3150_vm0, %v3089_v47  ;;  %v3087_v51 = vpop.permute.xlu0 %3086  ;;  %v3578_v47 = vld [vmem:[#allocation5 + $0x91] sm:$0xff] }
 0x487   : > { %3167 = vst.msk [vmem:[#allocation3 + $0x80] sm:$0xff] %vm3150_vm0, %v3087_v51  ;;  %3463 = vrot.lane.b32.xlu1 %v9480_v25, %s7849_s14  ;;  %v3770_v51 = vld [vmem:[#allocation5 + $0x82] sm:$0xff] }
 0x488   : > { %3461 = vrot.lane.b32.xlu0 %v9487_v28, %s7849_s14 }
 0x489   : > { %v3093_v59 = vpop.permute.xlu1 %3092 }
 0x48a   : > { %3170 = vst.msk [vmem:[#allocation3 + $0x98] sm:$0xff] %vm3150_vm0, %v3093_v59  ;;  %v3091_v3 = vpop.permute.xlu0 %3090 }
 0x48b   : > { %3169 = vst.msk [vmem:[#allocation3 + $0x90] sm:$0xff] %vm3150_vm0, %v3091_v3  ;;  %3467 = vrot.lane.b32.xlu1 %v9500_v36, %s7849_s14  ;;  %v3988_v36 = vld [vmem:[%s11577_s3] sm:$0xff] }
 0x48c   : > { %3465 = vrot.lane.b32.xlu0 %v9507_v38, %s7849_s14  ;;  %v3989_v38 = vld [vmem:[%s11577_s3 + $0x8] sm:$0xff] }
 0x48d   : > { %v3097_v7 = vpop.permute.xlu1 %3096 }
 0x48e   : > { %3172 = vst.msk [vmem:[#allocation3 + $0xa8] sm:$0xff] %vm3150_vm0, %v3097_v7  ;;  %v3095_v9 = vpop.permute.xlu0 %3094  ;;  %v3771_v7 = vld [vmem:[#allocation5 + $0x92] sm:$0xff] }
 0x48f   : > { %3171 = vst.msk [vmem:[#allocation3 + $0xa0] sm:$0xff] %vm3150_vm0, %v3095_v9  ;;  %3471 = vrot.lane.b32.xlu1 %v9520_v56, %s7849_s14  ;;  %v3579_v9 = vld [vmem:[#allocation5 + $0x99] sm:$0xff] }
 0x490   : > { %3469 = vrot.lane.b32.xlu0 %v9527_v14, %s7849_s14  ;;  %v7547_v14 = vpack.c.bf16 %v3989_v38, %v3988_v36  ;;  %v3580_v36 = vld [vmem:[#allocation5 + $0xa9] sm:$0xff]  ;;  %v3772_v38 = vld [vmem:[#allocation5 + $0x9a] sm:$0xff] }
 0x491   : > { %v3101_v25 = vpop.permute.xlu1 %3100 }
 0x492   : > { %3174 = vst.msk [vmem:[#allocation3 + $0xb8] sm:$0xff] %vm3150_vm0, %v3101_v25  ;;  %v3099_v28 = vpop.permute.xlu0 %3098  ;;  %7548 = vmatprep.subr.bf16.mxu1 %v7547_v14 }
 0x493   : > { %3173 = vst.msk [vmem:[#allocation3 + $0xb0] sm:$0xff] %vm3150_vm0, %v3099_v28  ;;  %3475 = vrot.lane.b32.xlu1 %v9540_v42, %s7849_s14  ;;  %7550 = vmatpush3.bf16.msra.mxu1 %v7547_v14  ;;  %v3990_v42 = vld [vmem:[%s11577_s3 + $0x10] sm:$0xff] }
 0x494   : > { %3473 = vrot.lane.b32.xlu0 %v9547_v54, %s7849_s14  ;;  %v3991_v54 = vld [vmem:[%s11577_s3 + $0x18] sm:$0xff] }
 0x495   : > { %v3105_v56 = vpop.permute.xlu1 %3104  ;;  %v7551_v13 = vpack.c.bf16 %v3991_v54, %v3990_v42  ;;  %v3581_v42 = vld [vmem:[#allocation5 + $0xb1] sm:$0xff] }
 0x496   : > { %3176 = vst.msk [vmem:[#allocation3 + $0xc8] sm:$0xff] %vm3150_vm0, %v3105_v56  ;;  %v3103_v18 = vpop.permute.xlu0 %3102 }
 0x497   : > { %3175 = vst.msk [vmem:[#allocation3 + $0xc0] sm:$0xff] %vm3150_vm0, %v3103_v18  ;;  %3479 = vrot.lane.b32.xlu1 %v9560_v2, %s7849_s14  ;;  %7552 = vmatprep.subr.bf16.mxu1 %v7551_v13  ;;  %v3992_v2 = vld [vmem:[%s11577_s3 + $0x20] sm:$0xff]  ;;  %v3773_v18 = vld [vmem:[#allocation5 + $0xaa] sm:$0xff] }
 0x498   : > { %3477 = vrot.lane.b32.xlu0 %v9567_v19, %s7849_s14  ;;  %7554 = vmatpush3.bf16.msra.mxu1 %v7551_v13  ;;  %v3993_v19 = vld [vmem:[%s11577_s3 + $0x28] sm:$0xff] }
 0x499   : > { %v3109_v49 = vpop.permute.xlu1 %3108  ;;  %v7555_v48 = vpack.c.bf16 %v3993_v19, %v3992_v2  ;;  %v3582_v13 = vld [vmem:[#allocation5 + $0xc1] sm:$0xff] }
 0x49a   : > { %3178 = vst.msk [vmem:[#allocation3 + $0xd8] sm:$0xff] %vm3150_vm0, %v3109_v49  ;;  %v3107_v27 = vpop.permute.xlu0 %3106 }
 0x49b   : > { %3177 = vst.msk [vmem:[#allocation3 + $0xd0] sm:$0xff] %vm3150_vm0, %v3107_v27  ;;  %3483 = vrot.lane.b32.xlu1 %v9580_v33, %s7849_s14  ;;  %7556 = vmatprep.subr.bf16.mxu1 %v7555_v48  ;;  %v3994_v33 = vld [vmem:[%s11577_s3 + $0x30] sm:$0xff] }
 0x49c   : > { %3481 = vrot.lane.b32.xlu0 %v9587_v39, %s7849_s14  ;;  %7558 = vmatpush3.bf16.msra.mxu1 %v7555_v48  ;;  %v3995_v39 = vld [vmem:[%s11577_s3 + $0x38] sm:$0xff]  ;;  %v3583_v48 = vld [vmem:[#allocation5 + $0xc9] sm:$0xff] }
 0x49d   : > { %v3113_v20 = vpop.permute.xlu1 %3112  ;;  %v7559_v45 = vpack.c.bf16 %v3995_v39, %v3994_v33  ;;  %v3774_v27 = vld [vmem:[#allocation5 + $0xb2] sm:$0xff] }
 0x49e   : > { %3180 = vst.msk [vmem:[#allocation3 + $0xe8] sm:$0xff] %vm3150_vm0, %v3113_v20  ;;  %v3111_v55 = vpop.permute.xlu0 %3110  ;;  %v3775_v20 = vld [vmem:[#allocation5 + $0xc2] sm:$0xff]  ;;  %v3584_v39 = vld [vmem:[#allocation5 + $0xd9] sm:$0xff] }
 0x49f   : > { %3179 = vst.msk [vmem:[#allocation3 + $0xe0] sm:$0xff] %vm3150_vm0, %v3111_v55  ;;  %3487 = vrot.lane.b32.xlu1 %v9600_v63, %s7849_s14  ;;  %7560 = vmatprep.subr.bf16.mxu1 %v7559_v45  ;;  %v3996_v63 = vld [vmem:[%s11577_s3 + $0x40] sm:$0xff] }
 0x4a0   : > { %3485 = vrot.lane.b32.xlu0 %v9607_v50, %s7849_s14  ;;  %7562 = vmatpush3.bf16.msra.mxu1 %v7559_v45 }
 0x4a1   : > { %v3117_v26 = vpop.permute.xlu1 %3116  ;;  %7423 = vmatprep.subr.mxu1 %v3996_v63 }
 0x4a2   : > { %3182 = vst.msk [vmem:[#allocation3 + $0xf8] sm:$0xff] %vm3150_vm0, %v3117_v26  ;;  %v3115_v41 = vpop.permute.xlu0 %3114  ;;  %v3776_v26 = vld [vmem:[#allocation5 + $0xca] sm:$0xff] }
 0x4a3   : > { %3181 = vst.msk [vmem:[#allocation3 + $0xf0] sm:$0xff] %vm3150_vm0, %v3115_v41  ;;  %3634 = vrot.lane.b32.xlu1 %v3570_v44, %s7850_s15  ;;  %v3777_v44 = vld [vmem:[#allocation5 + $0xda] sm:$0xff] }
 0x4a4   : > { %3489 = vrot.lane.b32.xlu0 %v9626_v37, %s7849_s14  ;;  %7424 = vmatpush3.msra.mxu1 %v3996_v63  ;;  %v3585_v63 = vld [vmem:[#allocation5 + $0xe1] sm:$0xff] }
 0x4a5   : > { %v3250_v50 = vpop.permute.xlu1 %3249 }
 0x4a6   : > { %3345 = vst.msk [vmem:[#allocation3 + $0x8] sm:$0xff] %vm3343_vm1, %v3250_v50  ;;  %v3248_v10 = vpop.permute.xlu0 %3247 }
 0x4a7   : > { %3344 = vst.msk [vmem:[#allocation3] sm:$0xff] %vm3343_vm1, %v3248_v10  ;;  %3827 = vrot.lane.b32.xlu1 %v3763_v57, %s7851_s20  ;;  %v3586_v57 = vld [vmem:[#allocation5 + $0xf1] sm:$0xff] }
 0x4a8   : > { %3636 = vrot.lane.b32.xlu0 %v3571_v21, %s7850_s15  ;;  %v3778_v21 = vld [vmem:[#allocation5 + $0xe2] sm:$0xff] }
 0x4a9   : > { %v3254_v37 = vpop.permute.xlu1 %3253 }
 0x4aa   : > { %3347 = vst.msk [vmem:[#allocation3 + $0x18] sm:$0xff] %vm3343_vm1, %v3254_v37  ;;  %v3252_v29 = vpop.permute.xlu0 %3251 }
 0x4ab   : > { %3346 = vst.msk [vmem:[#allocation3 + $0x10] sm:$0xff] %vm3343_vm1, %v3252_v29  ;;  %3638 = vrot.lane.b32.xlu1 %v3572_v43, %s7850_s15  ;;  %v3779_v43 = vld [vmem:[#allocation5 + $0xf2] sm:$0xff] }
 0x4ac   : > { %3829 = vrot.lane.b32.xlu0 %v3764_v46, %s7851_s20  ;;  %v3587_v46 = vld [vmem:[#allocation5 + $0xf9] sm:$0xff] }
 0x4ad   : > { %v3258_v16 = vpop.permute.xlu1 %3257 }
 0x4ae   : > { %3349 = vst.msk [vmem:[#allocation3 + $0x28] sm:$0xff] %vm3343_vm1, %v3258_v16  ;;  %v3256_v58 = vpop.permute.xlu0 %3255 }
 0x4af   : > { %3348 = vst.msk [vmem:[#allocation3 + $0x20] sm:$0xff] %vm3343_vm1, %v3256_v58  ;;  %3831 = vrot.lane.b32.xlu1 %v3765_v61, %s7851_s20  ;;  %v3588_v61 = vld [vmem:[#allocation5 + $0x109] sm:$0xff] }
 0x4b0   : > { %3640 = vrot.lane.b32.xlu0 %v3573_v62, %s7850_s15  ;;  %v3780_v62 = vld [vmem:[#allocation5 + $0xfa] sm:$0xff] }
 0x4b1   : > { %v3262_v23 = vpop.permute.xlu1 %3261 }
 0x4b2   : > { %3351 = vst.msk [vmem:[#allocation3 + $0x38] sm:$0xff] %vm3343_vm1, %v3262_v23  ;;  %v3260_v24 = vpop.permute.xlu0 %3259 }
 0x4b3   : > { %3350 = vst.msk [vmem:[#allocation3 + $0x30] sm:$0xff] %vm3343_vm1, %v3260_v24  ;;  %3642 = vrot.lane.b32.xlu1 %v3574_v34, %s7850_s15  ;;  %v3781_v34 = vld [vmem:[#allocation5 + $0x10a] sm:$0xff] }
 0x4b4   : > { %3833 = vrot.lane.b32.xlu0 %v3766_v35, %s7851_s20  ;;  %v3589_v35 = vld [vmem:[#allocation5 + $0x111] sm:$0xff] }
 0x4b5   : > { %v3266_v52 = vpop.permute.xlu1 %3265 }
 0x4b6   : > { %3353 = vst.msk [vmem:[#allocation3 + $0x48] sm:$0xff] %vm3343_vm1, %v3266_v52  ;;  %v3264_v53 = vpop.permute.xlu0 %3263 }
 0x4b7   : > { %3352 = vst.msk [vmem:[#allocation3 + $0x40] sm:$0xff] %vm3343_vm1, %v3264_v53  ;;  %3835 = vrot.lane.b32.xlu1 %v3767_v5, %s7851_s20  ;;  %v3590_v5 = vld [vmem:[#allocation5 + $0x121] sm:$0xff] }
 0x4b8   : > { %3644 = vrot.lane.b32.xlu0 %v3575_v30, %s7850_s15  ;;  %v3782_v30 = vld [vmem:[#allocation5 + $0x112] sm:$0xff] }
 0x4b9   : > { %v3270_v22 = vpop.permute.xlu1 %3269 }
 0x4ba   : > { %3355 = vst.msk [vmem:[#allocation3 + $0x58] sm:$0xff] %vm3343_vm1, %v3270_v22  ;;  %v3268_v1 = vpop.permute.xlu0 %3267 }
 0x4bb   : > { %3354 = vst.msk [vmem:[#allocation3 + $0x50] sm:$0xff] %vm3343_vm1, %v3268_v1  ;;  %3646 = vrot.lane.b32.xlu1 %v3576_v6, %s7850_s15  ;;  %v3783_v6 = vld [vmem:[#allocation5 + $0x122] sm:$0xff] }
 0x4bc   : > { %3837 = vrot.lane.b32.xlu0 %v3768_v31, %s7851_s20  ;;  %v3591_v31 = vld [vmem:[#allocation5 + $0x129] sm:$0xff] }
 0x4bd   : > { %v3274_v32 = vpop.permute.xlu1 %3273 }
 0x4be   : > { %3357 = vst.msk [vmem:[#allocation3 + $0x68] sm:$0xff] %vm3343_vm1, %v3274_v32  ;;  %v3272_v15 = vpop.permute.xlu0 %3271 }
 0x4bf   : > { %3356 = vst.msk [vmem:[#allocation3 + $0x60] sm:$0xff] %vm3343_vm1, %v3272_v15  ;;  %3839 = vrot.lane.b32.xlu1 %v3769_v11, %s7851_s20  ;;  %v3592_v11 = vld [vmem:[#allocation5 + $0x139] sm:$0xff] }
 0x4c0   : > { %3648 = vrot.lane.b32.xlu0 %v3577_v17, %s7850_s15  ;;  %v3784_v17 = vld [vmem:[#allocation5 + $0x12a] sm:$0xff] }
 0x4c1   : > { %v3278_v60 = vpop.permute.xlu1 %3277 }
 0x4c2   : > { %3359 = vst.msk [vmem:[#allocation3 + $0x78] sm:$0xff] %vm3343_vm1, %v3278_v60  ;;  %v3276_v4 = vpop.permute.xlu0 %3275 }
 0x4c3   : > { %3358 = vst.msk [vmem:[#allocation3 + $0x70] sm:$0xff] %vm3343_vm1, %v3276_v4  ;;  %3650 = vrot.lane.b32.xlu1 %v3578_v47, %s7850_s15  ;;  %v3785_v47 = vld [vmem:[#allocation5 + $0x13a] sm:$0xff] }
 0x4c4   : > { %3841 = vrot.lane.b32.xlu0 %v3770_v51, %s7851_s20  ;;  %v3593_v51 = vld [vmem:[#allocation5 + $0x141] sm:$0xff] }
 0x4c5   : > { %v3282_v59 = vpop.permute.xlu1 %3281 }
 0x4c6   : > { %3361 = vst.msk [vmem:[#allocation3 + $0x88] sm:$0xff] %vm3343_vm1, %v3282_v59  ;;  %v3280_v3 = vpop.permute.xlu0 %3279 }
 0x4c7   : > { %3360 = vst.msk [vmem:[#allocation3 + $0x80] sm:$0xff] %vm3343_vm1, %v3280_v3  ;;  %3843 = vrot.lane.b32.xlu1 %v3771_v7, %s7851_s20  ;;  %v3402_v7 = vld [vmem:[#allocation5 + $0x158] sm:$0xff] }
 0x4c8   : > { %3652 = vrot.lane.b32.xlu0 %v3579_v9, %s7850_s15  ;;  %v3786_v9 = vld [vmem:[#allocation5 + $0x142] sm:$0xff] }
 0x4c9   : > { %v3286_v25 = vpop.permute.xlu1 %3285 }
 0x4ca   : > { %3363 = vst.msk [vmem:[#allocation3 + $0x98] sm:$0xff] %vm3343_vm1, %v3286_v25  ;;  %v3284_v28 = vpop.permute.xlu0 %3283 }
 0x4cb   : > { %3362 = vst.msk [vmem:[#allocation3 + $0x90] sm:$0xff] %vm3343_vm1, %v3284_v28  ;;  %3654 = vrot.lane.b32.xlu1 %v3580_v36, %s7850_s15  ;;  %v3595_v36 = vld [vmem:[#allocation5 + $0x159] sm:$0xff] }
 0x4cc   : > { %3845 = vrot.lane.b32.xlu0 %v3772_v38, %s7851_s20  ;;  %v3594_v38 = vld [vmem:[#allocation5 + $0x151] sm:$0xff] }
 0x4cd   : > { %v3290_v56 = vpop.permute.xlu1 %3289 }
 0x4ce   : > { %3365 = vst.msk [vmem:[#allocation3 + $0xa8] sm:$0xff] %vm3343_vm1, %v3290_v56  ;;  %v3288_v14 = vpop.permute.xlu0 %3287 }
 0x4cf   : > { %3364 = vst.msk [vmem:[#allocation3 + $0xa0] sm:$0xff] %vm3343_vm1, %v3288_v14  ;;  %3847 = vrot.lane.b32.xlu1 %v3773_v18, %s7851_s20  ;;  %v3788_v18 = vld [vmem:[#allocation5 + $0x15a] sm:$0xff] }
 0x4d0   : > { %3656 = vrot.lane.b32.xlu0 %v3581_v42, %s7850_s15  ;;  %v3787_v42 = vld [vmem:[#allocation5 + $0x152] sm:$0xff] }
 0x4d1   : > { %v3294_v54 = vpop.permute.xlu1 %3293 }
 0x4d2   : > { %3367 = vst.msk [vmem:[#allocation3 + $0xb8] sm:$0xff] %vm3343_vm1, %v3294_v54  ;;  %v3292_v49 = vpop.permute.xlu0 %3291 }
 0x4d3   : > { %3366 = vst.msk [vmem:[#allocation3 + $0xb0] sm:$0xff] %vm3343_vm1, %v3292_v49  ;;  %3658 = vrot.lane.b32.xlu1 %v3582_v13, %s7850_s15  ;;  %v3404_v13 = vld [vmem:[#allocation5 + $0x170] sm:$0xff] }
 0x4d4   : > { %3849 = vrot.lane.b32.xlu0 %v3774_v27, %s7851_s20  ;;  %v3403_v27 = vld [vmem:[#allocation5 + $0x168] sm:$0xff] }
 0x4d5   : > { %v3298_v2 = vpop.permute.xlu1 %3297 }
 0x4d6   : > { %3369 = vst.msk [vmem:[#allocation3 + $0xc8] sm:$0xff] %vm3343_vm1, %v3298_v2  ;;  %v3296_v19 = vpop.permute.xlu0 %3295 }
 0x4d7   : > { %3368 = vst.msk [vmem:[#allocation3 + $0xc0] sm:$0xff] %vm3343_vm1, %v3296_v19  ;;  %3851 = vrot.lane.b32.xlu1 %v3775_v20, %s7851_s20  ;;  %v3597_v20 = vld [vmem:[#allocation5 + $0x171] sm:$0xff] }
 0x4d8   : > { %3660 = vrot.lane.b32.xlu0 %v3583_v48, %s7850_s15  ;;  %v3596_v48 = vld [vmem:[#allocation5 + $0x169] sm:$0xff] }
 0x4d9   : > { %v3302_v55 = vpop.permute.xlu1 %3301 }
 0x4da   : > { %3371 = vst.msk [vmem:[#allocation3 + $0xd8] sm:$0xff] %vm3343_vm1, %v3302_v55  ;;  %v3300_v33 = vpop.permute.xlu0 %3299 }
 0x4db   : > { %3370 = vst.msk [vmem:[#allocation3 + $0xd0] sm:$0xff] %vm3343_vm1, %v3300_v33  ;;  %3662 = vrot.lane.b32.xlu1 %v3584_v39, %s7850_s15  ;;  %v3790_v39 = vld [vmem:[#allocation5 + $0x172] sm:$0xff] }
 0x4dc   : > { %3853 = vrot.lane.b32.xlu0 %v3776_v26, %s7851_s20  ;;  %v3789_v26 = vld [vmem:[#allocation5 + $0x16a] sm:$0xff] }
 0x4dd   : > { %v3306_v45 = vpop.permute.xlu1 %3305 }
 0x4de   : > { %3373 = vst.msk [vmem:[#allocation3 + $0xe8] sm:$0xff] %vm3343_vm1, %v3306_v45  ;;  %v3304_v41 = vpop.permute.xlu0 %3303 }
 0x4df   : > { %3372 = vst.msk [vmem:[#allocation3 + $0xe0] sm:$0xff] %vm3343_vm1, %v3304_v41  ;;  %3855 = vrot.lane.b32.xlu1 %v3777_v44, %s7851_s20  ;;  %v3406_v44 = vld [vmem:[#allocation5 + $0x188] sm:$0xff] }
 0x4e0   : > { %3664 = vrot.lane.b32.xlu0 %v3585_v63, %s7850_s15  ;;  %v3405_v63 = vld [vmem:[#allocation5 + $0x180] sm:$0xff] }
 0x4e1   : > { %v3310_v50 = vpop.permute.xlu1 %3309 }
 0x4e2   : > { %3375 = vst.msk [vmem:[#allocation3 + $0xf8] sm:$0xff] %vm3343_vm1, %v3310_v50  ;;  %v3308_v10 = vpop.permute.xlu0 %3307 }
 0x4e3   : > { %3374 = vst.msk [vmem:[#allocation3 + $0xf0] sm:$0xff] %vm3343_vm1, %v3308_v10  ;;  %3666 = vrot.lane.b32.xlu1 %v3586_v57, %s7850_s15 }
 0x4e4   : > { %3857 = vrot.lane.b32.xlu0 %v3778_v21, %s7851_s20 }
 0x4e5   : > { %v3444_v37 = vpop.permute.xlu1 %3443 }
 0x4e6   : > { %3539 = vst.msk [vmem:[#allocation3 + $0x8] sm:$0xff] %vm3537_vm2, %v3444_v37  ;;  %v3442_v29 = vpop.permute.xlu0 %3441 }
 0x4e7   : > { %3538 = vst.msk [vmem:[#allocation3] sm:$0xff] %vm3537_vm2, %v3442_v29  ;;  %3859 = vrot.lane.b32.xlu1 %v3779_v43, %s7851_s20  ;;  %v3407_v43 = vld [vmem:[#allocation5 + $0x198] sm:$0xff] }
 0x4e8   : > { %3668 = vrot.lane.b32.xlu0 %v3587_v46, %s7850_s15 }
 0x4e9   : > { %v3448_v16 = vpop.permute.xlu1 %3447 }
 0x4ea   : > { %3541 = vst.msk [vmem:[#allocation3 + $0x18] sm:$0xff] %vm3537_vm2, %v3448_v16  ;;  %v3446_v58 = vpop.permute.xlu0 %3445  ;;  %v3601_v16 = vld [vmem:[#allocation5 + $0x1a1] sm:$0xff] }
 0x4eb   : > { %3540 = vst.msk [vmem:[#allocation3 + $0x10] sm:$0xff] %vm3537_vm2, %v3446_v58  ;;  %3670 = vrot.lane.b32.xlu1 %v3588_v61, %s7850_s15  ;;  %v3600_v61 = vld [vmem:[#allocation5 + $0x199] sm:$0xff] }
 0x4ec   : > { %3861 = vrot.lane.b32.xlu0 %v3780_v62, %s7851_s20  ;;  %v3794_v62 = vld [vmem:[#allocation5 + $0x1a2] sm:$0xff] }
 0x4ed   : > { %v3452_v23 = vpop.permute.xlu1 %3451 }
 0x4ee   : > { %3543 = vst.msk [vmem:[#allocation3 + $0x28] sm:$0xff] %vm3537_vm2, %v3452_v23  ;;  %v3450_v24 = vpop.permute.xlu0 %3449 }
 0x4ef   : > { %3542 = vst.msk [vmem:[#allocation3 + $0x20] sm:$0xff] %vm3537_vm2, %v3450_v24  ;;  %3863 = vrot.lane.b32.xlu1 %v3781_v34, %s7851_s20  ;;  %v3793_v24 = vld [vmem:[#allocation5 + $0x19a] sm:$0xff] }
 0x4f0   : > { %3672 = vrot.lane.b32.xlu0 %v3589_v35, %s7850_s15 }
 0x4f1   : > { %v3456_v52 = vpop.permute.xlu1 %3455 }
 0x4f2   : > { %3545 = vst.msk [vmem:[#allocation3 + $0x38] sm:$0xff] %vm3537_vm2, %v3456_v52  ;;  %v3454_v53 = vpop.permute.xlu0 %3453 }
 0x4f3   : > { %3544 = vst.msk [vmem:[#allocation3 + $0x30] sm:$0xff] %vm3537_vm2, %v3454_v53  ;;  %3674 = vrot.lane.b32.xlu1 %v3590_v5, %s7850_s15 }
 0x4f4   : > { %3865 = vrot.lane.b32.xlu0 %v3782_v30, %s7851_s20 }
 0x4f5   : > { %v3460_v22 = vpop.permute.xlu1 %3459 }
 0x4f6   : > { %3547 = vst.msk [vmem:[#allocation3 + $0x48] sm:$0xff] %vm3537_vm2, %v3460_v22  ;;  %v3458_v1 = vpop.permute.xlu0 %3457 }
 0x4f7   : > { %3546 = vst.msk [vmem:[#allocation3 + $0x40] sm:$0xff] %vm3537_vm2, %v3458_v1  ;;  %3867 = vrot.lane.b32.xlu1 %v3783_v6, %s7851_s20 }
 0x4f8   : > { %3676 = vrot.lane.b32.xlu0 %v3591_v31, %s7850_s15 }
 0x4f9   : > { %v3464_v32 = vpop.permute.xlu1 %3463 }
 0x4fa   : > { %3549 = vst.msk [vmem:[#allocation3 + $0x58] sm:$0xff] %vm3537_vm2, %v3464_v32  ;;  %v3462_v15 = vpop.permute.xlu0 %3461 }
 0x4fb   : > { %3548 = vst.msk [vmem:[#allocation3 + $0x50] sm:$0xff] %vm3537_vm2, %v3462_v15  ;;  %3678 = vrot.lane.b32.xlu1 %v3592_v11, %s7850_s15 }
 0x4fc   : > { %3869 = vrot.lane.b32.xlu0 %v3784_v17, %s7851_s20 }
 0x4fd   : > { %v3468_v60 = vpop.permute.xlu1 %3467 }
 0x4fe   : > { %3551 = vst.msk [vmem:[#allocation3 + $0x68] sm:$0xff] %vm3537_vm2, %v3468_v60  ;;  %v3466_v4 = vpop.permute.xlu0 %3465 }
 0x4ff   : > { %3550 = vst.msk [vmem:[#allocation3 + $0x60] sm:$0xff] %vm3537_vm2, %v3466_v4  ;;  %3871 = vrot.lane.b32.xlu1 %v3785_v47, %s7851_s20 }
 0x500   : > { %3680 = vrot.lane.b32.xlu0 %v3593_v51, %s7850_s15 }
 0x501   : > { %v3472_v59 = vpop.permute.xlu1 %3471 }
 0x502   : > { %3553 = vst.msk [vmem:[#allocation3 + $0x78] sm:$0xff] %vm3537_vm2, %v3472_v59  ;;  %v3470_v3 = vpop.permute.xlu0 %3469 }
 0x503   : > { %3552 = vst.msk [vmem:[#allocation3 + $0x70] sm:$0xff] %vm3537_vm2, %v3470_v3  ;;  %3491 = vrot.lane.b32.xlu1 %v3402_v7, %s7849_s14 }
 0x504   : > { %3873 = vrot.lane.b32.xlu0 %v3786_v9, %s7851_s20 }
 0x505   : > { %v3476_v25 = vpop.permute.xlu1 %3475 }
 0x506   : > { %3555 = vst.msk [vmem:[#allocation3 + $0x88] sm:$0xff] %vm3537_vm2, %v3476_v25  ;;  %v3474_v28 = vpop.permute.xlu0 %3473 }
 0x507   : > { %3554 = vst.msk [vmem:[#allocation3 + $0x80] sm:$0xff] %vm3537_vm2, %v3474_v28  ;;  %3684 = vrot.lane.b32.xlu1 %v3595_v36, %s7850_s15 }
 0x508   : > { %3682 = vrot.lane.b32.xlu0 %v3594_v38, %s7850_s15 }
 0x509   : > { %v3480_v56 = vpop.permute.xlu1 %3479 }
 0x50a   : > { %3557 = vst.msk [vmem:[#allocation3 + $0x98] sm:$0xff] %vm3537_vm2, %v3480_v56  ;;  %v3478_v14 = vpop.permute.xlu0 %3477 }
 0x50b   : > { %3556 = vst.msk [vmem:[#allocation3 + $0x90] sm:$0xff] %vm3537_vm2, %v3478_v14  ;;  %3877 = vrot.lane.b32.xlu1 %v3788_v18, %s7851_s20 }
 0x50c   : > { %3875 = vrot.lane.b32.xlu0 %v3787_v42, %s7851_s20 }
 0x50d   : > { %v3484_v54 = vpop.permute.xlu1 %3483 }
 0x50e   : > { %3559 = vst.msk [vmem:[#allocation3 + $0xa8] sm:$0xff] %vm3537_vm2, %v3484_v54  ;;  %v3482_v49 = vpop.permute.xlu0 %3481 }
 0x50f   : > { %3558 = vst.msk [vmem:[#allocation3 + $0xa0] sm:$0xff] %vm3537_vm2, %v3482_v49  ;;  %3495 = vrot.lane.b32.xlu1 %v3404_v13, %s7849_s14 }
 0x510   : > { %3493 = vrot.lane.b32.xlu0 %v3403_v27, %s7849_s14 }
 0x511   : > { %v3488_v2 = vpop.permute.xlu1 %3487 }
 0x512   : > { %3561 = vst.msk [vmem:[#allocation3 + $0xb8] sm:$0xff] %vm3537_vm2, %v3488_v2  ;;  %v3486_v19 = vpop.permute.xlu0 %3485 }
 0x513   : > { %3560 = vst.msk [vmem:[#allocation3 + $0xb0] sm:$0xff] %vm3537_vm2, %v3486_v19  ;;  %3688 = vrot.lane.b32.xlu1 %v3597_v20, %s7850_s15 }
 0x514   : > { %3686 = vrot.lane.b32.xlu0 %v3596_v48, %s7850_s15 }
 0x515   : > { %v3635_v55 = vpop.permute.xlu1 %3634 }
 0x516   : > { %3731 = vst.msk [vmem:[#allocation3] sm:$0xff] %vm3730_vm3, %v3635_v55  ;;  %v3490_v33 = vpop.permute.xlu0 %3489 }
 0x517   : > { %3562 = vst.msk [vmem:[#allocation3 + $0xc0] sm:$0xff] %vm3537_vm2, %v3490_v33  ;;  %3881 = vrot.lane.b32.xlu1 %v3790_v39, %s7851_s20 }
 0x518   : > { %3879 = vrot.lane.b32.xlu0 %v3789_v26, %s7851_s20 }
 0x519   : > { %v3828_v45 = vpop.permute.xlu1 %3827 }
 0x51a   : > { %3924 = vst.msk [vmem:[#allocation3] sm:$0xff] %vm3923_vm4, %v3828_v45  ;;  %v3637_v41 = vpop.permute.xlu0 %3636 }
 0x51b   : > { %3732 = vst.msk [vmem:[#allocation3 + $0x8] sm:$0xff] %vm3730_vm3, %v3637_v41  ;;  %3499 = vrot.lane.b32.xlu1 %v3406_v44, %s7849_s14 }
 0x51c   : > { %3497 = vrot.lane.b32.xlu0 %v3405_v63, %s7849_s14 }
 0x51d   : > { %v3639_v50 = vpop.permute.xlu1 %3638 }
 0x51e   : > { %3733 = vst.msk [vmem:[#allocation3 + $0x10] sm:$0xff] %vm3730_vm3, %v3639_v50  ;;  %v3830_v10 = vpop.permute.xlu0 %3829 }
 0x51f   : > { %3925 = vst.msk [vmem:[#allocation3 + $0x8] sm:$0xff] %vm3923_vm4, %v3830_v10  ;;  %3692 = vrot.lane.b32.xlu1 %v9958_v8, %s7850_s15  ;;  %v3408_v8 = vld [vmem:[#allocation5 + $0x1a0] sm:$0xff] }
 0x520   : > { %3690 = vrot.lane.b32.xlu0 %v9963_v12, %s7850_s15 }
 0x521   : > { %v3832_v57 = vpop.permute.xlu1 %3831  ;;  %v3956_v21 = vld [vmem:[#allocation3] sm:$0xff] }
 0x522   : > { %3926 = vst.msk [vmem:[#allocation3 + $0x10] sm:$0xff] %vm3923_vm4, %v3832_v57  ;;  %7425 = vmatprep.mubr.msk.f32.mxu1 %vm4004_vm5, %v3956_v21  ;;  %v3641_v37 = vpop.permute.xlu0 %3640 }
 0x523   : > { %3734 = vst.msk [vmem:[#allocation3 + $0x18] sm:$0xff] %vm3730_vm3, %v3641_v37  ;;  %3885 = vrot.lane.b32.xlu1 %v10058_v40, %s7851_s20 }
 0x524   : > { %3883 = vrot.lane.b32.xlu0 %v10063_v0, %s7851_s20 }
 0x525   : > { %v3643_v29 = vpop.permute.xlu1 %3642 }
 0x526   : > { %3735 = vst.msk [vmem:[#allocation3 + $0x20] sm:$0xff] %vm3730_vm3, %v3643_v29  ;;  %v3834_v12 = vpop.permute.xlu0 %3833  ;;  %v3957_v46 = vld [vmem:[#allocation3 + $0x8] sm:$0xff] }
 0x527   : > { %3927 = vst.msk [vmem:[#allocation3 + $0x18] sm:$0xff] %vm3923_vm4, %v3834_v12  ;;  %7426 = vmatmul.mubr.msk.f32.vlgmr.msra.gmra.mrb[16].mxu1 %vm4004_vm5, %v3957_v46  ;;  %3503 = vrot.lane.b32.xlu1 %v3408_v8, %s7849_s14 }
 0x528   : > { %3501 = vrot.lane.b32.xlu0 %v3407_v43, %s7849_s14 }
 0x529   : > { %v3836_v40 = vpop.permute.xlu1 %3835  ;;  %v3958_v58 = vld [vmem:[#allocation3 + $0x10] sm:$0xff] }
 0x52a   : > { %3928 = vst.msk [vmem:[#allocation3 + $0x20] sm:$0xff] %vm3923_vm4, %v3836_v40  ;;  %v3645_v0 = vpop.permute.xlu0 %3644  ;;  %7428 = vmatprep.mubr.msk.f32.mxu1 %vm4004_vm5, %v3958_v58 }
 0x52b   : > { %3736 = vst.msk [vmem:[#allocation3 + $0x28] sm:$0xff] %vm3730_vm3, %v3645_v0  ;;  %3696 = vrot.lane.b32.xlu1 %v3601_v16, %s7850_s15 }
 0x52c   : > { %3694 = vrot.lane.b32.xlu0 %v3600_v61, %s7850_s15 }
 0x52d   : > { %v3647_v23 = vpop.permute.xlu1 %3646 }
 0x52e   : > { %3737 = vst.msk [vmem:[#allocation3 + $0x30] sm:$0xff] %vm3730_vm3, %v3647_v23  ;;  %v3838_v34 = vpop.permute.xlu0 %3837  ;;  %v3959_v35 = vld [vmem:[#allocation3 + $0x18] sm:$0xff] }
 0x52f   : > { %3929 = vst.msk [vmem:[#allocation3 + $0x28] sm:$0xff] %vm3923_vm4, %v3838_v34  ;;  %7429 = vmatmul.mubr.msk.f32.gmra.mrb[18].mxu1 %vm4004_vm5, %v3959_v35  ;;  %3889 = vrot.lane.b32.xlu1 %v3794_v62, %s7851_s20 }
 0x530   : > { %3887 = vrot.lane.b32.xlu0 %v3793_v24, %s7851_s20 }
 0x531   : > { %v3840_v52 = vpop.permute.xlu1 %3839  ;;  %v3960_v53 = vld [vmem:[#allocation3 + $0x20] sm:$0xff] }
 0x532   : > { %3930 = vst.msk [vmem:[#allocation3 + $0x30] sm:$0xff] %vm3923_vm4, %v3840_v52  ;;  %v3649_v5 = vpop.permute.xlu0 %3648  ;;  %7431 = vmatprep.mubr.msk.f32.mxu1 %vm4004_vm5, %v3960_v53 }
 0x533   : > { %3738 = vst.msk [vmem:[#allocation3 + $0x38] sm:$0xff] %vm3730_vm3, %v3649_v5 }
 0x535   : > { %v3651_v30 = vpop.permute.xlu1 %3650 }
 0x536   : > { %3739 = vst.msk [vmem:[#allocation3 + $0x40] sm:$0xff] %vm3730_vm3, %v3651_v30  ;;  %v3842_v22 = vpop.permute.xlu0 %3841  ;;  %v3961_v1 = vld [vmem:[#allocation3 + $0x28] sm:$0xff] }
 0x537   : > { %3931 = vst.msk [vmem:[#allocation3 + $0x38] sm:$0xff] %vm3923_vm4, %v3842_v22  ;;  %7432 = vmatmul.mubr.msk.f32.gmra.mrb[20].mxu1 %vm4004_vm5, %v3961_v1 }
 0x539   : > { %v3844_v6 = vpop.permute.xlu1 %3843  ;;  %v3962_v31 = vld [vmem:[#allocation3 + $0x30] sm:$0xff] }
 0x53a   : > { %3932 = vst.msk [vmem:[#allocation3 + $0x40] sm:$0xff] %vm3923_vm4, %v3844_v6  ;;  %v3653_v32 = vpop.permute.xlu0 %3652  ;;  %7434 = vmatprep.mubr.msk.f32.mxu1 %vm4004_vm5, %v3962_v31 }
 0x53b   : > { %3740 = vst.msk [vmem:[#allocation3 + $0x48] sm:$0xff] %vm3730_vm3, %v3653_v32 }
 0x53d   : > { %v3655_v15 = vpop.permute.xlu1 %3654 }
 0x53e   : > { %3741 = vst.msk [vmem:[#allocation3 + $0x50] sm:$0xff] %vm3730_vm3, %v3655_v15  ;;  %v3846_v11 = vpop.permute.xlu0 %3845  ;;  %v3963_v17 = vld [vmem:[#allocation3 + $0x38] sm:$0xff] }
 0x53f   : > { %3933 = vst.msk [vmem:[#allocation3 + $0x48] sm:$0xff] %vm3923_vm4, %v3846_v11  ;;  %7435 = vmatmul.mubr.msk.f32.gmra.mrb[22].mxu1 %vm4004_vm5, %v3963_v17 }
 0x541   : > { %v3848_v60 = vpop.permute.xlu1 %3847  ;;  %v3964_v4 = vld [vmem:[#allocation3 + $0x40] sm:$0xff] }
 0x542   : > { %3934 = vst.msk [vmem:[#allocation3 + $0x50] sm:$0xff] %vm3923_vm4, %v3848_v60  ;;  %v3657_v47 = vpop.permute.xlu0 %3656  ;;  %7437 = vmatprep.mubr.msk.f32.mxu1 %vm4004_vm5, %v3964_v4 }
 0x543   : > { %3742 = vst.msk [vmem:[#allocation3 + $0x58] sm:$0xff] %vm3730_vm3, %v3657_v47 }
 0x545   : > { %v3659_v51 = vpop.permute.xlu1 %3658 }
 0x546   : > { %3743 = vst.msk [vmem:[#allocation3 + $0x60] sm:$0xff] %vm3730_vm3, %v3659_v51  ;;  %v3850_v59 = vpop.permute.xlu0 %3849  ;;  %v3965_v3 = vld [vmem:[#allocation3 + $0x48] sm:$0xff] }
 0x547   : > { %3935 = vst.msk [vmem:[#allocation3 + $0x58] sm:$0xff] %vm3923_vm4, %v3850_v59  ;;  %7438 = vmatmul.mubr.msk.f32.gmra.mrb[24].mxu1 %vm4004_vm5, %v3965_v3 }
 0x549   : > { %v3852_v7 = vpop.permute.xlu1 %3851  ;;  %v3966_v9 = vld [vmem:[#allocation3 + $0x50] sm:$0xff] }
 0x54a   : > { %3936 = vst.msk [vmem:[#allocation3 + $0x60] sm:$0xff] %vm3923_vm4, %v3852_v7  ;;  %v3661_v25 = vpop.permute.xlu0 %3660  ;;  %7440 = vmatprep.mubr.msk.f32.mxu1 %vm4004_vm5, %v3966_v9 }
 0x54b   : > { %3744 = vst.msk [vmem:[#allocation3 + $0x68] sm:$0xff] %vm3730_vm3, %v3661_v25 }
 0x54d   : > { %v3663_v28 = vpop.permute.xlu1 %3662 }
 0x54e   : > { %3745 = vst.msk [vmem:[#allocation3 + $0x70] sm:$0xff] %vm3730_vm3, %v3663_v28  ;;  %v3854_v36 = vpop.permute.xlu0 %3853  ;;  %v3967_v38 = vld [vmem:[#allocation3 + $0x58] sm:$0xff] }
 0x54f   : > { %3937 = vst.msk [vmem:[#allocation3 + $0x68] sm:$0xff] %vm3923_vm4, %v3854_v36  ;;  %7441 = vmatmul.mubr.msk.f32.gmra.mrb[26].mxu1 %vm4004_vm5, %v3967_v38  ;;  %v10408_v36 = vld [vmem:[%s11578_s4] ss:$0 sm:$0xff] }
 0x551   : > { %v3856_v56 = vpop.permute.xlu1 %3855  ;;  %v3968_v14 = vld [vmem:[#allocation3 + $0x60] sm:$0xff] }
 0x552   : > { %3938 = vst.msk [vmem:[#allocation3 + $0x70] sm:$0xff] %vm3923_vm4, %v3856_v56  ;;  %v3665_v18 = vpop.permute.xlu0 %3664  ;;  %7443 = vmatprep.mubr.msk.f32.mxu1 %vm4004_vm5, %v3968_v14 }
 0x553   : > { %3746 = vst.msk [vmem:[#allocation3 + $0x78] sm:$0xff] %vm3730_vm3, %v3665_v18 }
 0x555   : > { %v3667_v42 = vpop.permute.xlu1 %3666 }
 0x556   : > { %3747 = vst.msk [vmem:[#allocation3 + $0x80] sm:$0xff] %vm3730_vm3, %v3667_v42  ;;  %v3858_v54 = vpop.permute.xlu0 %3857  ;;  %v3969_v49 = vld [vmem:[#allocation3 + $0x68] sm:$0xff] }
 0x557   : > { %3939 = vst.msk [vmem:[#allocation3 + $0x78] sm:$0xff] %vm3923_vm4, %v3858_v54  ;;  %7444 = vmatmul.mubr.msk.f32.gmra.mrb[28].mxu1 %vm4004_vm5, %v3969_v49 }
 0x559   : > { %v3860_v13 = vpop.permute.xlu1 %3859  ;;  %v3970_v27 = vld [vmem:[#allocation3 + $0x70] sm:$0xff] }
 0x55a   : > { %3940 = vst.msk [vmem:[#allocation3 + $0x80] sm:$0xff] %vm3923_vm4, %v3860_v13  ;;  %v3669_v2 = vpop.permute.xlu0 %3668  ;;  %7446 = vmatprep.mubr.msk.f32.mxu1 %vm4004_vm5, %v3970_v27 }
 0x55b   : > { %3748 = vst.msk [vmem:[#allocation3 + $0x88] sm:$0xff] %vm3730_vm3, %v3669_v2 }
 0x55d   : > { %v3671_v19 = vpop.permute.xlu1 %3670 }
 0x55e   : > { %3749 = vst.msk [vmem:[#allocation3 + $0x90] sm:$0xff] %vm3730_vm3, %v3671_v19  ;;  %v3862_v20 = vpop.permute.xlu0 %3861  ;;  %v3971_v48 = vld [vmem:[#allocation3 + $0x78] sm:$0xff] }
 0x55f   : > { %3941 = vst.msk [vmem:[#allocation3 + $0x88] sm:$0xff] %vm3923_vm4, %v3862_v20  ;;  %7447 = vmatmul.mubr.msk.f32.gmra.mrb[30].mxu1 %vm4004_vm5, %v3971_v48 }
 0x561   : > { %v3864_v55 = vpop.permute.xlu1 %3863  ;;  %v3972_v33 = vld [vmem:[#allocation3 + $0x80] sm:$0xff] }
 0x562   : > { %3942 = vst.msk [vmem:[#allocation3 + $0x90] sm:$0xff] %vm3923_vm4, %v3864_v55  ;;  %v3673_v39 = vpop.permute.xlu0 %3672  ;;  %7449 = vmatprep.mubr.msk.f32.mxu1 %vm4004_vm5, %v3972_v33 }
 0x563   : > { %3750 = vst.msk [vmem:[#allocation3 + $0x98] sm:$0xff] %vm3730_vm3, %v3673_v39 }
 0x565   : > { %v3675_v26 = vpop.permute.xlu1 %3674 }
 0x566   : > { %3751 = vst.msk [vmem:[#allocation3 + $0xa0] sm:$0xff] %vm3730_vm3, %v3675_v26  ;;  %v3866_v45 = vpop.permute.xlu0 %3865  ;;  %v3973_v41 = vld [vmem:[#allocation3 + $0x88] sm:$0xff] }
 0x567   : > { %3943 = vst.msk [vmem:[#allocation3 + $0x98] sm:$0xff] %vm3923_vm4, %v3866_v45  ;;  %7450 = vmatmul.mubr.msk.f32.gmra.mrb[32].mxu1 %vm4004_vm5, %v3973_v41 }
 0x569   : > { %v3868_v44 = vpop.permute.xlu1 %3867  ;;  %v3974_v63 = vld [vmem:[#allocation3 + $0x90] sm:$0xff] }
 0x56a   : > { %3944 = vst.msk [vmem:[#allocation3 + $0xa0] sm:$0xff] %vm3923_vm4, %v3868_v44  ;;  %v3677_v50 = vpop.permute.xlu0 %3676  ;;  %7452 = vmatprep.mubr.msk.f32.mxu1 %vm4004_vm5, %v3974_v63 }
 0x56b   : > { %3752 = vst.msk [vmem:[#allocation3 + $0xa8] sm:$0xff] %vm3730_vm3, %v3677_v50 }
 0x56d   : > { %v3679_v10 = vpop.permute.xlu1 %3678 }
 0x56e   : > { %3753 = vst.msk [vmem:[#allocation3 + $0xb0] sm:$0xff] %vm3730_vm3, %v3679_v10  ;;  %v3870_v57 = vpop.permute.xlu0 %3869  ;;  %v3975_v21 = vld [vmem:[#allocation3 + $0x98] sm:$0xff] }
 0x56f   : > { %3945 = vst.msk [vmem:[#allocation3 + $0xa8] sm:$0xff] %vm3923_vm4, %v3870_v57  ;;  %7453 = vmatmul.mubr.msk.f32.gmra.mrb[34].mxu1 %vm4004_vm5, %v3975_v21 }
 0x571   : > { %v3872_v37 = vpop.permute.xlu1 %3871  ;;  %v3976_v8 = vld [vmem:[#allocation3 + $0xa0] sm:$0xff] }
 0x572   : > { %3946 = vst.msk [vmem:[#allocation3 + $0xb0] sm:$0xff] %vm3923_vm4, %v3872_v37  ;;  %v3681_v29 = vpop.permute.xlu0 %3680  ;;  %7455 = vmatprep.mubr.msk.f32.mxu1 %vm4004_vm5, %v3976_v8 }
 0x573   : > { %3754 = vst.msk [vmem:[#allocation3 + $0xb8] sm:$0xff] %vm3730_vm3, %v3681_v29 }
 0x575   : > { %v3492_v43 = vpop.permute.xlu1 %3491 }
 0x576   : > { %3563 = vst.msk [vmem:[#allocation3 + $0xc8] sm:$0xff] %vm3537_vm2, %v3492_v43  ;;  %v3874_v12 = vpop.permute.xlu0 %3873  ;;  %v3977_v46 = vld [vmem:[#allocation3 + $0xa8] sm:$0xff] }
 0x577   : > { %3947 = vst.msk [vmem:[#allocation3 + $0xb8] sm:$0xff] %vm3923_vm4, %v3874_v12  ;;  %7456 = vmatmul.mubr.msk.f32.gmra.mrb[36].mxu1 %vm4004_vm5, %v3977_v46 }
 0x579   : > { %v3685_v16 = vpop.permute.xlu1 %3684  ;;  %v3978_v40 = vld [vmem:[#allocation3 + $0xb0] sm:$0xff] }
 0x57a   : > { %3756 = vst.msk [vmem:[#allocation3 + $0xc8] sm:$0xff] %vm3730_vm3, %v3685_v16  ;;  %v3683_v58 = vpop.permute.xlu0 %3682  ;;  %7458 = vmatprep.mubr.msk.f32.mxu1 %vm4004_vm5, %v3978_v40 }
 0x57b   : > { %3755 = vst.msk [vmem:[#allocation3 + $0xc0] sm:$0xff] %vm3730_vm3, %v3683_v58 }
 0x57d   : > { %v3878_v61 = vpop.permute.xlu1 %3877 }
 0x57e   : > { %3949 = vst.msk [vmem:[#allocation3 + $0xc8] sm:$0xff] %vm3923_vm4, %v3878_v61  ;;  %v3876_v0 = vpop.permute.xlu0 %3875  ;;  %v3979_v62 = vld [vmem:[#allocation3 + $0xb8] sm:$0xff] }
 0x57f   : > { %3948 = vst.msk [vmem:[#allocation3 + $0xc0] sm:$0xff] %vm3923_vm4, %v3876_v0  ;;  %7459 = vmatmul.mubr.msk.f32.gmra.mrb[38].mxu1 %vm4004_vm5, %v3979_v62 }
 0x581   : > { %v3496_v23 = vpop.permute.xlu1 %3495 }
 0x582   : > { %3565 = vst.msk [vmem:[#allocation3 + $0xd8] sm:$0xff] %vm3537_vm2, %v3496_v23  ;;  %v3494_v24 = vpop.permute.xlu0 %3493 }
 0x583   : > { %3564 = vst.msk [vmem:[#allocation3 + $0xd0] sm:$0xff] %vm3537_vm2, %v3494_v24 }
 0x585   : > { %v3689_v34 = vpop.permute.xlu1 %3688  ;;  %v3981_v53 = vld [vmem:[#allocation3 + $0xc8] sm:$0xff] }
 0x586   : > { %3758 = vst.msk [vmem:[#allocation3 + $0xd8] sm:$0xff] %vm3730_vm3, %v3689_v34  ;;  %v3687_v35 = vpop.permute.xlu0 %3686  ;;  %v3980_v52 = vld [vmem:[#allocation3 + $0xc0] sm:$0xff] }
 0x587   : > { %3757 = vst.msk [vmem:[#allocation3 + $0xd0] sm:$0xff] %vm3730_vm3, %v3687_v35  ;;  %7461 = vmatprep.mubr.msk.f32.mxu1 %vm4004_vm5, %v3980_v52 }
 0x588   : > { %7462 = vmatmul.mubr.msk.f32.gmra.mrb[40].mxu1 %vm4004_vm5, %v3981_v53 }
 0x589   : > { %v3882_v5 = vpop.permute.xlu1 %3881 }
 0x58a   : > { %3951 = vst.msk [vmem:[#allocation3 + $0xd8] sm:$0xff] %vm3923_vm4, %v3882_v5  ;;  %v3880_v30 = vpop.permute.xlu0 %3879 }
 0x58b   : > { %3950 = vst.msk [vmem:[#allocation3 + $0xd0] sm:$0xff] %vm3923_vm4, %v3880_v30 }
 0x58d   : > { %v3500_v22 = vpop.permute.xlu1 %3499 }
 0x58e   : > { %3567 = vst.msk [vmem:[#allocation3 + $0xe8] sm:$0xff] %vm3537_vm2, %v3500_v22  ;;  %v3498_v1 = vpop.permute.xlu0 %3497 }
 0x58f   : > { %3566 = vst.msk [vmem:[#allocation3 + $0xe0] sm:$0xff] %vm3537_vm2, %v3498_v1 }
 0x591   : > { %v3693_v6 = vpop.permute.xlu1 %3692  ;;  %v3983_v15 = vld [vmem:[#allocation3 + $0xd8] sm:$0xff] }
 0x592   : > { %3760 = vst.msk [vmem:[#allocation3 + $0xe8] sm:$0xff] %vm3730_vm3, %v3693_v6  ;;  %v3691_v31 = vpop.permute.xlu0 %3690  ;;  %v3982_v32 = vld [vmem:[#allocation3 + $0xd0] sm:$0xff] }
 0x593   : > { %3759 = vst.msk [vmem:[#allocation3 + $0xe0] sm:$0xff] %vm3730_vm3, %v3691_v31  ;;  %7464 = vmatprep.mubr.msk.f32.mxu1 %vm4004_vm5, %v3982_v32 }
 0x594   : > { %7465 = vmatmul.mubr.msk.f32.gmra.mrb[42].mxu1 %vm4004_vm5, %v3983_v15 }
 0x595   : > { %v3886_v11 = vpop.permute.xlu1 %3885 }
 0x596   : > { %3953 = vst.msk [vmem:[#allocation3 + $0xe8] sm:$0xff] %vm3923_vm4, %v3886_v11  ;;  %v3884_v17 = vpop.permute.xlu0 %3883 }
 0x597   : > { %3952 = vst.msk [vmem:[#allocation3 + $0xe0] sm:$0xff] %vm3923_vm4, %v3884_v17 }
 0x599   : > { %v3504_v60 = vpop.permute.xlu1 %3503 }
 0x59a   : > { %v3502_v4 = vpop.permute.xlu0 %3501  ;;  %3569 = vst.msk [vmem:[#allocation3 + $0xf8] sm:$0xff] %vm3537_vm2, %v3504_v60 }
 0x59b   : > { %3568 = vst.msk [vmem:[#allocation3 + $0xf0] sm:$0xff] %vm3537_vm2, %v3502_v4 }
 0x59d   : > { %v3697_v47 = vpop.permute.xlu1 %3696  ;;  %v3985_v3 = vld [vmem:[#allocation3 + $0xe8] sm:$0xff] }
 0x59e   : > { %v3695_v51 = vpop.permute.xlu0 %3694  ;;  %3762 = vst.msk [vmem:[#allocation3 + $0xf8] sm:$0xff] %vm3730_vm3, %v3697_v47  ;;  %v3984_v59 = vld [vmem:[#allocation3 + $0xe0] sm:$0xff] }
 0x59f   : > { %3761 = vst.msk [vmem:[#allocation3 + $0xf0] sm:$0xff] %vm3730_vm3, %v3695_v51  ;;  %7467 = vmatprep.mubr.msk.f32.mxu1 %vm4004_vm5, %v3984_v59 }
 0x5a0   : > { %7468 = vmatmul.mubr.msk.f32.gmra.mrb[44].mxu1 %vm4004_vm5, %v3985_v3 }
 0x5a1   : > { %v3890_v7 = vpop.permute.xlu1 %3889 }
 0x5a2   : > { %v3888_v9 = vpop.permute.xlu0 %3887  ;;  %3955 = vst.msk [vmem:[#allocation3 + $0xf8] sm:$0xff] %vm3923_vm4, %v3890_v7 }
 0x5a3   : > { %3954 = vst.msk [vmem:[#allocation3 + $0xf0] sm:$0xff] %vm3923_vm4, %v3888_v9 }
 0x5a9   : > { %v3987_v25 = vld [vmem:[#allocation3 + $0xf8] sm:$0xff] }
 0x5aa   : > { %v3986_v28 = vld [vmem:[#allocation3 + $0xf0] sm:$0xff] }
 0x5ab   : > { %7470 = vmatprep.mubr.msk.f32.mxu1 %vm4004_vm5, %v3986_v28 }
 0x5ac   : > { %7471 = vmatmul.mubr.msk.f32.gmra.mrb[46].mxu1 %vm4004_vm5, %v3987_v25 }
 0x5fa   : > { %v7427_v38 = vpop.f32.mrb[16].mxu1 }
 0x5fb   : > { %v10411_v56 = vadd.f32 %v7427_v38, %v10408_v36  ;;  %v4167_v14 = vpop.f32.mrb[17].mxu1 }
 0x5fc   : > { %v10414_v18 = vadd.f32 %v10408_v36, %v4167_v14 }
 0x5fd   : > { %v7158_v42 = vmul.f32 -1.442695, %v10411_v56 }
 0x5fe   : > { %v7157_v54 = vmul.f32 -1.442695, %v10414_v18 }
 0x5ff   : > { %7639 = vpow2.f32 %v7158_v42 }
 0x600   : > { %7641 = vpow2.f32 %v7157_v54 }
 0x602   : > { %v7430_v49 = vpop.f32.mrb[18].mxu1 }
 0x603   : > { %v10419_v13 = vadd.f32 %v7430_v49, %v10408_v36  ;;  %v4177_v27 = vpop.f32.mrb[19].mxu1 }
 0x604   : > { %v10422_v2 = vadd.f32 %v10408_v36, %v4177_v27 }
 0x605   : > { %v7160_v19 = vmul.f32 -1.442695, %v10419_v13 }
 0x606   : > { %v7159_v20 = vmul.f32 -1.442695, %v10422_v2 }
 0x607   : > { %7643 = vpow2.f32 %v7160_v19 }
 0x608   : > { %7645 = vpow2.f32 %v7159_v20 }
 0x609   : > { %v7640_v48 = vpop.eup %7639 }
 0x60a   : > { %v7642_v55 = vpop.eup %7641  ;;  %v4423_v33 = vadd.f32 1.0, %v7640_v48  ;;  %v7433_v39 = vpop.f32.mrb[20].mxu1 }
 0x60b   : > { %v4422_v26 = vadd.f32 1.0, %v7642_v55  ;;  %v10427_v45 = vadd.f32 %v7433_v39, %v10408_v36  ;;  %v4187_v41 = vpop.f32.mrb[21].mxu1 }
 0x60c   : > { %7647 = vrcp.f32 %v4423_v33  ;;  %v10430_v44 = vadd.f32 %v10408_v36, %v4187_v41 }
 0x60d   : > { %7649 = vrcp.f32 %v4422_v26  ;;  %v7162_v63 = vmul.f32 -1.442695, %v10427_v45 }
 0x60e   : > { %v7161_v50 = vmul.f32 -1.442695, %v10430_v44 }
 0x60f   : > { %7651 = vpow2.f32 %v7162_v63 }
 0x610   : > { %7653 = vpow2.f32 %v7161_v50 }
 0x611   : > { %v7644_v10 = vpop.eup %7643 }
 0x612   : > { %v7646_v57 = vpop.eup %7645  ;;  %v4425_v21 = vadd.f32 1.0, %v7644_v10  ;;  %v7436_v37 = vpop.f32.mrb[22].mxu1 }
 0x613   : > { %v4424_v8 = vadd.f32 1.0, %v7646_v57  ;;  %v10435_v29 = vadd.f32 %v7436_v37, %v10408_v36  ;;  %v4197_v43 = vpop.f32.mrb[23].mxu1 }
 0x614   : > { %7655 = vrcp.f32 %v4425_v21  ;;  %v10438_v12 = vadd.f32 %v10408_v36, %v4197_v43 }
 0x615   : > { %7657 = vrcp.f32 %v4424_v8  ;;  %v7164_v46 = vmul.f32 -1.442695, %v10435_v29 }
 0x616   : > { %v7648_v16 = vpop.eup %7647  ;;  %v7163_v40 = vmul.f32 -1.442695, %v10438_v12 }
 0x617   : > { %v7650_v58 = vpop.eup %7649  ;;  %7659 = vpow2.f32 %v7164_v46  ;;  %4552 = vrot.lane.b32.xlu1 %v7648_v16, %s7852_s17 }
 0x618   : > { %7661 = vpow2.f32 %v7163_v40  ;;  %4550 = vrot.lane.b32.xlu0 %v7650_v58, %s7852_s17 }
 0x619   : > { %v7652_v61 = vpop.eup %7651 }
 0x61a   : > { %v7654_v0 = vpop.eup %7653  ;;  %v4427_v62 = vadd.f32 1.0, %v7652_v61  ;;  %v7439_v23 = vpop.f32.mrb[24].mxu1 }
 0x61b   : > { %v4426_v24 = vadd.f32 1.0, %v7654_v0  ;;  %v10445_v34 = vadd.f32 %v7439_v23, %v10408_v36  ;;  %v4207_v35 = vpop.f32.mrb[25].mxu1 }
 0x61c   : > { %7663 = vrcp.f32 %v4427_v62  ;;  %v10448_v52 = vadd.f32 %v10408_v36, %v4207_v35 }
 0x61d   : > { %7665 = vrcp.f32 %v4426_v24  ;;  %v7166_v53 = vmul.f32 -1.442695, %v10445_v34 }
 0x61e   : > { %v7656_v5 = vpop.eup %7655  ;;  %v7165_v30 = vmul.f32 -1.442695, %v10448_v52 }
 0x61f   : > { %v7658_v22 = vpop.eup %7657  ;;  %7667 = vpow2.f32 %v7166_v53  ;;  %4556 = vrot.lane.b32.xlu1 %v7656_v5, %s7852_s17 }
 0x620   : > { %7669 = vpow2.f32 %v7165_v30  ;;  %4554 = vrot.lane.b32.xlu0 %v7658_v22, %s7852_s17 }
 0x621   : > { %v7660_v1 = vpop.eup %7659 }
 0x622   : > { %v7662_v6 = vpop.eup %7661  ;;  %v4429_v31 = vadd.f32 1.0, %v7660_v1  ;;  %v7442_v32 = vpop.f32.mrb[26].mxu1 }
 0x623   : > { %v4428_v15 = vadd.f32 1.0, %v7662_v6  ;;  %v10455_v11 = vadd.f32 %v7442_v32, %v10408_v36  ;;  %v4217_v17 = vpop.f32.mrb[27].mxu1 }
 0x624   : > { %7671 = vrcp.f32 %v4429_v31  ;;  %v10458_v60 = vadd.f32 %v10408_v36, %v4217_v17 }
 0x625   : > { %7673 = vrcp.f32 %v4428_v15  ;;  %v7168_v4 = vmul.f32 -1.442695, %v10455_v11 }
 0x626   : > { %v7664_v47 = vpop.eup %7663  ;;  %v7167_v51 = vmul.f32 -1.442695, %v10458_v60 }
 0x627   : > { %v7666_v59 = vpop.eup %7665  ;;  %7675 = vpow2.f32 %v7168_v4  ;;  %4560 = vrot.lane.b32.xlu1 %v7664_v47, %s7852_s17 }
 0x628   : > { %7677 = vpow2.f32 %v7167_v51  ;;  %4558 = vrot.lane.b32.xlu0 %v7666_v59, %s7852_s17 }
 0x629   : > { %v7668_v3 = vpop.eup %7667 }
 0x62a   : > { %v7670_v7 = vpop.eup %7669  ;;  %v4431_v9 = vadd.f32 1.0, %v7668_v3  ;;  %v7445_v25 = vpop.f32.mrb[28].mxu1 }
 0x62b   : > { %v4430_v28 = vadd.f32 1.0, %v7670_v7  ;;  %v10465_v38 = vadd.f32 %v7445_v25, %v10408_v36  ;;  %v4227_v14 = vpop.f32.mrb[29].mxu1 }
 0x62c   : > { %7679 = vrcp.f32 %v4431_v9  ;;  %v10468_v42 = vadd.f32 %v10408_v36, %v4227_v14 }
 0x62d   : > { %7681 = vrcp.f32 %v4430_v28  ;;  %v7170_v54 = vmul.f32 -1.442695, %v10465_v38 }
 0x62e   : > { %v7672_v49 = vpop.eup %7671  ;;  %v7169_v27 = vmul.f32 -1.442695, %v10468_v42 }
 0x62f   : > { %v7674_v19 = vpop.eup %7673  ;;  %7683 = vpow2.f32 %v7170_v54  ;;  %4564 = vrot.lane.b32.xlu1 %v7672_v49, %s7852_s17 }
 0x630   : > { %7685 = vpow2.f32 %v7169_v27  ;;  %4562 = vrot.lane.b32.xlu0 %v7674_v19, %s7852_s17 }
 0x631   : > { %v7676_v20 = vpop.eup %7675 }
 0x632   : > { %v7678_v48 = vpop.eup %7677  ;;  %v4433_v55 = vadd.f32 1.0, %v7676_v20  ;;  %v7448_v33 = vpop.f32.mrb[30].mxu1 }
 0x633   : > { %v4432_v39 = vadd.f32 1.0, %v7678_v48  ;;  %v10475_v26 = vadd.f32 %v7448_v33, %v10408_v36  ;;  %v4237_v41 = vpop.f32.mrb[31].mxu1 }
 0x634   : > { %7687 = vrcp.f32 %v4433_v55  ;;  %v10478_v63 = vadd.f32 %v10408_v36, %v4237_v41 }
 0x635   : > { %7689 = vrcp.f32 %v4432_v39  ;;  %v7172_v50 = vmul.f32 -1.442695, %v10475_v26 }
 0x636   : > { %v7680_v10 = vpop.eup %7679  ;;  %v7171_v57 = vmul.f32 -1.442695, %v10478_v63 }
 0x637   : > { %v7682_v21 = vpop.eup %7681  ;;  %7691 = vpow2.f32 %v7172_v50  ;;  %4568 = vrot.lane.b32.xlu1 %v7680_v10, %s7852_s17 }
 0x638   : > { %7693 = vpow2.f32 %v7171_v57  ;;  %4566 = vrot.lane.b32.xlu0 %v7682_v21, %s7852_s17 }
 0x639   : > { %v7684_v37 = vpop.eup %7683 }
 0x63a   : > { %v7686_v8 = vpop.eup %7685  ;;  %v4435_v43 = vadd.f32 1.0, %v7684_v37  ;;  %v7451_v46 = vpop.f32.mrb[32].mxu1 }
 0x63b   : > { %v4434_v16 = vadd.f32 1.0, %v7686_v8  ;;  %v10485_v40 = vadd.f32 %v7451_v46, %v10408_v36  ;;  %v4247_v58 = vpop.f32.mrb[33].mxu1 }
 0x63c   : > { %7695 = vrcp.f32 %v4435_v43  ;;  %v10488_v61 = vadd.f32 %v10408_v36, %v4247_v58 }
 0x63d   : > { %7697 = vrcp.f32 %v4434_v16  ;;  %v7174_v0 = vmul.f32 -1.442695, %v10485_v40 }
 0x63e   : > { %v7688_v62 = vpop.eup %7687  ;;  %v7173_v23 = vmul.f32 -1.442695, %v10488_v61 }
 0x63f   : > { %v7690_v24 = vpop.eup %7689  ;;  %7699 = vpow2.f32 %v7174_v0  ;;  %4572 = vrot.lane.b32.xlu1 %v7688_v62, %s7852_s17 }
 0x640   : > { %7701 = vpow2.f32 %v7173_v23  ;;  %4570 = vrot.lane.b32.xlu0 %v7690_v24, %s7852_s17 }
 0x641   : > { %v7692_v35 = vpop.eup %7691 }
 0x642   : > { %v7694_v53 = vpop.eup %7693  ;;  %v4437_v5 = vadd.f32 1.0, %v7692_v35  ;;  %v7454_v30 = vpop.f32.mrb[34].mxu1 }
 0x643   : > { %v4436_v22 = vadd.f32 1.0, %v7694_v53  ;;  %v10495_v1 = vadd.f32 %v7454_v30, %v10408_v36  ;;  %v4257_v6 = vpop.f32.mrb[35].mxu1 }
 0x644   : > { %7703 = vrcp.f32 %v4437_v5  ;;  %v10498_v31 = vadd.f32 %v10408_v36, %v4257_v6 }
 0x645   : > { %7705 = vrcp.f32 %v4436_v22  ;;  %v7176_v32 = vmul.f32 -1.442695, %v10495_v1 }
 0x646   : > { %v7696_v15 = vpop.eup %7695  ;;  %v7175_v17 = vmul.f32 -1.442695, %v10498_v31 }
 0x647   : > { %v7698_v4 = vpop.eup %7697  ;;  %7707 = vpow2.f32 %v7176_v32  ;;  %4576 = vrot.lane.b32.xlu1 %v7696_v15, %s7852_s17 }
 0x648   : > { %7709 = vpow2.f32 %v7175_v17  ;;  %4574 = vrot.lane.b32.xlu0 %v7698_v4, %s7852_s17 }
 0x649   : > { %v7700_v47 = vpop.eup %7699 }
 0x64a   : > { %v7702_v51 = vpop.eup %7701  ;;  %v4439_v59 = vadd.f32 1.0, %v7700_v47  ;;  %v7457_v3 = vpop.f32.mrb[36].mxu1 }
 0x64b   : > { %v4438_v7 = vadd.f32 1.0, %v7702_v51  ;;  %v10505_v9 = vadd.f32 %v7457_v3, %v10408_v36  ;;  %v4267_v25 = vpop.f32.mrb[37].mxu1 }
 0x64c   : > { %7711 = vrcp.f32 %v4439_v59  ;;  %v10508_v28 = vadd.f32 %v10408_v36, %v4267_v25 }
 0x64d   : > { %7713 = vrcp.f32 %v4438_v7  ;;  %v7178_v14 = vmul.f32 -1.442695, %v10505_v9 }
 0x64e   : > { %v7704_v54 = vpop.eup %7703  ;;  %v7177_v49 = vmul.f32 -1.442695, %v10508_v28 }
 0x64f   : > { %v7706_v27 = vpop.eup %7705  ;;  %7715 = vpow2.f32 %v7178_v14  ;;  %4580 = vrot.lane.b32.xlu1 %v7704_v54, %s7852_s17 }
 0x650   : > { %7717 = vpow2.f32 %v7177_v49  ;;  %4578 = vrot.lane.b32.xlu0 %v7706_v27, %s7852_s17 }
 0x651   : > { %v7708_v19 = vpop.eup %7707 }
 0x652   : > { %v7710_v20 = vpop.eup %7709  ;;  %v4441_v48 = vadd.f32 1.0, %v7708_v19  ;;  %v7460_v55 = vpop.f32.mrb[38].mxu1 }
 0x653   : > { %v4440_v33 = vadd.f32 1.0, %v7710_v20  ;;  %v10515_v39 = vadd.f32 %v7460_v55, %v10408_v36  ;;  %v4277_v41 = vpop.f32.mrb[39].mxu1 }
 0x654   : > { %7719 = vrcp.f32 %v4441_v48  ;;  %v10518_v50 = vadd.f32 %v10408_v36, %v4277_v41 }
 0x655   : > { %7721 = vrcp.f32 %v4440_v33  ;;  %v7180_v10 = vmul.f32 -1.442695, %v10515_v39 }
 0x656   : > { %v7712_v57 = vpop.eup %7711  ;;  %v7179_v21 = vmul.f32 -1.442695, %v10518_v50 }
 0x657   : > { %v7714_v37 = vpop.eup %7713  ;;  %7723 = vpow2.f32 %v7180_v10  ;;  %4584 = vrot.lane.b32.xlu1 %v7712_v57, %s7852_s17 }
 0x658   : > { %7725 = vpow2.f32 %v7179_v21  ;;  %4582 = vrot.lane.b32.xlu0 %v7714_v37, %s7852_s17 }
 0x659   : > { %v7716_v8 = vpop.eup %7715 }
 0x65a   : > { %v7718_v43 = vpop.eup %7717  ;;  %v4443_v46 = vadd.f32 1.0, %v7716_v8 }
 0x65b   : > { %v4442_v16 = vadd.f32 1.0, %v7718_v43  ;;  %v7463_v58 = vpop.f32.mrb[40].mxu1 }
 0x65c   : > { %7727 = vrcp.f32 %v4443_v46  ;;  %v10525_v0 = vadd.f32 %v7463_v58, %v10408_v36  ;;  %v4287_v62 = vpop.f32.mrb[41].mxu1 }
 0x65d   : > { %7729 = vrcp.f32 %v4442_v16  ;;  %v10528_v23 = vadd.f32 %v10408_v36, %v4287_v62 }
 0x65e   : > { %v7720_v24 = vpop.eup %7719  ;;  %v7182_v35 = vmul.f32 -1.442695, %v10525_v0 }
 0x65f   : > { %v7722_v53 = vpop.eup %7721  ;;  %v7181_v5 = vmul.f32 -1.442695, %v10528_v23  ;;  %4588 = vrot.lane.b32.xlu1 %v7720_v24, %s7852_s17 }
 0x660   : > { %7731 = vpow2.f32 %v7182_v35  ;;  %4586 = vrot.lane.b32.xlu0 %v7722_v53, %s7852_s17 }
 0x661   : > { %v7724_v30 = vpop.eup %7723  ;;  %7733 = vpow2.f32 %v7181_v5 }
 0x662   : > { %v7726_v22 = vpop.eup %7725  ;;  %v4445_v6 = vadd.f32 1.0, %v7724_v30 }
 0x663   : > { %v4444_v32 = vadd.f32 1.0, %v7726_v22 }
 0x664   : > { %7735 = vrcp.f32 %v4445_v6 }
 0x665   : > { %7737 = vrcp.f32 %v4444_v32 }
 0x666   : > { %v7728_v15 = vpop.eup %7727 }
 0x667   : > { %v7730_v17 = vpop.eup %7729  ;;  %4592 = vrot.lane.b32.xlu1 %v7728_v15, %s7852_s17  ;;  %v7466_v4 = vpop.f32.mrb[42].mxu1 }
 0x668   : > { %v10536_v47 = vadd.f32 %v7466_v4, %v10408_v36  ;;  %v4297_v51 = vpop.f32.mrb[43].mxu1  ;;  %4590 = vrot.lane.b32.xlu0 %v7730_v17, %s7852_s17 }
 0x669   : > { %v10540_v59 = vadd.f32 %v10408_v36, %v4297_v51 }
 0x66a   : > { %v7732_v3 = vpop.eup %7731  ;;  %v7184_v7 = vmul.f32 -1.442695, %v10536_v47 }
 0x66b   : > { %v7734_v25 = vpop.eup %7733  ;;  %v4447_v14 = vadd.f32 1.0, %v7732_v3  ;;  %v7183_v54 = vmul.f32 -1.442695, %v10540_v59 }
 0x66c   : > { %v4446_v49 = vadd.f32 1.0, %v7734_v25  ;;  %7739 = vpow2.f32 %v7184_v7 }
 0x66d   : > { %7741 = vrcp.f32 %v4447_v14 }
 0x66e   : > { %v7736_v27 = vpop.eup %7735  ;;  %7743 = vrcp.f32 %v4446_v49 }
 0x66f   : > { %v7738_v19 = vpop.eup %7737  ;;  %7745 = vpow2.f32 %v7183_v54  ;;  %4596 = vrot.lane.b32.xlu1 %v7736_v27, %s7852_s17 }
 0x670   : > { %4594 = vrot.lane.b32.xlu0 %v7738_v19, %s7852_s17 }
 0x673   : > { %v7469_v20 = vpop.f32.mrb[44].mxu1 }
 0x674   : > { %v10547_v48 = vadd.f32 %v7469_v20, %v10408_v36  ;;  %v4307_v55 = vpop.f32.mrb[45].mxu1  ;;  %v4766_v20 = vld [vmem:[#allocation6 + $0x8] sm:$0xff] }
 0x675   : > { %v10550_v33 = vadd.f32 %v10408_v36, %v4307_v55  ;;  %4798 = vst.msk [vmem:[#allocation4 + $0x8] sm:$0xff] %vm2258_vm11, %v4766_v20  ;;  %v4765_v55 = vld [vmem:[#allocation6] sm:$0xff] }
 0x676   : > { %v7740_v41 = vpop.eup %7739  ;;  %v7186_v10 = vmul.f32 -1.442695, %v10547_v48  ;;  %4797 = vst.msk [vmem:[#allocation4] sm:$0xff] %vm2258_vm11, %v4765_v55 }
 0x677   : > { %v7742_v57 = vpop.eup %7741  ;;  %v4449_v21 = vadd.f32 1.0, %v7740_v41  ;;  %v7185_v37 = vmul.f32 -1.442695, %v10550_v33 }
 0x678   : > { %v7744_v8 = vpop.eup %7743  ;;  %7747 = vpow2.f32 %v7186_v10  ;;  %4600 = vrot.lane.b32.xlu1 %v7742_v57, %s7852_s17 }
 0x679   : > { %v7746_v43 = vpop.eup %7745  ;;  %7749 = vrcp.f32 %v4449_v21  ;;  %4598 = vrot.lane.b32.xlu0 %v7744_v8, %s7852_s17 }
 0x67a   : > { %v4448_v46 = vadd.f32 1.0, %v7746_v43  ;;  %7751 = vpow2.f32 %v7185_v37 }
 0x67c   : > { %7753 = vrcp.f32 %v4448_v46  ;;  %v4830_v46 = vld [vmem:[#allocation6 + $0x9] sm:$0xff] }
 0x67f   : > { %v7472_v16 = vpop.f32.mrb[46].mxu1 }
 0x680   : > { %v10557_v58 = vadd.f32 %v7472_v16, %v10408_v36  ;;  %v4317_v62 = vpop.f32.mrb[47].mxu1 }
 0x681   : > { %v10560_v24 = vadd.f32 %v10408_v36, %v4317_v62 }
 0x682   : > { %v7748_v35 = vpop.eup %7747  ;;  %v7188_v53 = vmul.f32 -1.442695, %v10557_v58 }
 0x683   : > { %v7750_v5 = vpop.eup %7749  ;;  %v4451_v30 = vadd.f32 1.0, %v7748_v35  ;;  %v7187_v22 = vmul.f32 -1.442695, %v10560_v24 }
 0x684   : > { %v7752_v6 = vpop.eup %7751  ;;  %7755 = vpow2.f32 %v7188_v53  ;;  %4604 = vrot.lane.b32.xlu1 %v7750_v5, %s7852_s17 }
 0x685   : > { %7757 = vrcp.f32 %v4451_v30  ;;  %v4450_v32 = vadd.f32 1.0, %v7752_v6 }
 0x686   : > { %v7754_v15 = vpop.eup %7753  ;;  %7759 = vpow2.f32 %v7187_v22 }
 0x687   : > { %7761 = vrcp.f32 %v4450_v32  ;;  %4602 = vrot.lane.b32.xlu0 %v7754_v15, %s7852_s17 }
 0x689   : > { %v4553_v36 = vpop.permute.xlu1 %4552 }
 0x68a   : > { %v4647_v17 = vmul.f32 %v4553_v36, %v10411_v56  ;;  %v4551_v4 = vpop.permute.xlu0 %4550 }
 0x68b   : > { %v4646_v51 = vmul.f32 %v4551_v4, %v10414_v18 }
 0x68c   : > { %4734 = vst.msk [vmem:[#allocation6 + $0x21] sm:$0xff] %vm2258_vm11, %v4647_v17 }
 0x68d   : > { %4733 = vst.msk [vmem:[#allocation6 + $0x19] sm:$0xff] %vm2258_vm11, %v4646_v51 }
 0x68e   : > { %v7756_v3 = vpop.eup %7755 }
 0x68f   : > { %v7758_v7 = vpop.eup %7757  ;;  %v4453_v25 = vadd.f32 1.0, %v7756_v3 }
 0x690   : > { %v7760_v14 = vpop.eup %7759  ;;  %4608 = vrot.lane.b32.xlu1 %v7758_v7, %s7852_s17 }
 0x691   : > { %v7762_v54 = vpop.eup %7761  ;;  %7763 = vrcp.f32 %v4453_v25  ;;  %v4452_v49 = vadd.f32 1.0, %v7760_v14  ;;  %v4557_v27 = vpop.permute.xlu1 %4556 }
 0x692   : > { %v4649_v19 = vmul.f32 %v4557_v27, %v10419_v13  ;;  %4606 = vrot.lane.b32.xlu0 %v7762_v54, %s7852_s17  ;;  %v4555_v56 = vpop.permute.xlu0 %4554 }
 0x693   : > { %7765 = vrcp.f32 %v4452_v49  ;;  %v4648_v18 = vmul.f32 %v4555_v56, %v10422_v2  ;;  %v10604_v5 = vld [vmem:[#allocation6 + $0x21] sm:$0xff] }
 0x694   : > { %4736 = vst.msk [vmem:[#allocation6 + $0x39] sm:$0xff] %vm2258_vm11, %v4649_v19  ;;  %v10578_v41 = vld [vmem:[#allocation6 + $0x20] sm:$0xff]  ;;  %v10582_v13 = vld [vmem:[#allocation6 + $0x18] sm:$0xff] }
 0x695   : > { %4735 = vst.msk [vmem:[#allocation6 + $0x31] sm:$0xff] %vm2258_vm11, %v4648_v18  ;;  %4800 = vst.msk [vmem:[#allocation4 + $0x18] sm:$0xff] %vm2258_vm11, %v10578_v41  ;;  %v10612_v22 = vld [vmem:[#allocation6 + $0x19] sm:$0xff] }
 0x696   : > { %4799 = vst.msk [vmem:[#allocation4 + $0x10] sm:$0xff] %vm2258_vm11, %v10582_v13 }
 0x699   : > { %v4561_v2 = vpop.permute.xlu1 %4560 }
 0x69a   : > { %v4651_v10 = vmul.f32 %v4561_v2, %v10427_v45  ;;  %v4559_v57 = vpop.permute.xlu0 %4558  ;;  %v4829_v45 = vld [vmem:[#allocation6 + $0x1] sm:$0xff] }
 0x69b   : > { %v7764_v21 = vpop.eup %7763  ;;  %v4650_v37 = vmul.f32 %v4559_v57, %v10430_v44 }
 0x69c   : > { %4738 = vst.msk [vmem:[#allocation6 + $0x51] sm:$0xff] %vm2258_vm11, %v4651_v10  ;;  %4612 = vrot.lane.b32.xlu1 %v7764_v21, %s7852_s17  ;;  %v10590_v8 = vld [vmem:[#allocation6 + $0x38] sm:$0xff]  ;;  %v10595_v16 = vld [vmem:[#allocation6 + $0x30] sm:$0xff] }
 0x69d   : > { %v7766_v43 = vpop.eup %7765  ;;  %4737 = vst.msk [vmem:[#allocation6 + $0x49] sm:$0xff] %vm2258_vm11, %v4650_v37  ;;  %4802 = vst.msk [vmem:[#allocation4 + $0x28] sm:$0xff] %vm2258_vm11, %v10590_v8  ;;  %v10626_v32 = vld [vmem:[#allocation6 + $0x31] sm:$0xff] }
 0x69e   : > { %4610 = vrot.lane.b32.xlu0 %v7766_v43, %s7852_s17  ;;  %4801 = vst.msk [vmem:[#allocation4 + $0x20] sm:$0xff] %vm2258_vm11, %v10595_v16 }
 0x6a0   : > { %4895 = vrot.lane.b32.xlu1 %v4830_v46, %s7840_s19 }
 0x6a1   : > { %v4565_v44 = vpop.permute.xlu1 %4564 }
 0x6a2   : > { %v4653_v62 = vmul.f32 %v4565_v44, %v10435_v29  ;;  %4893 = vrot.lane.b32.xlu0 %v4829_v45, %s7840_s19  ;;  %v4563_v35 = vpop.permute.xlu0 %4562 }
 0x6a3   : > { %v4652_v53 = vmul.f32 %v4563_v35, %v10438_v12  ;;  %v10622_v12 = vld [vmem:[#allocation6 + $0x39] sm:$0xff]  ;;  %v10632_v4 = vld [vmem:[#allocation6 + $0x51] sm:$0xff] }
 0x6a4   : > { %4740 = vst.msk [vmem:[#allocation6 + $0x69] sm:$0xff] %vm2258_vm11, %v4653_v62  ;;  %4899 = vrot.lane.b32.xlu1 %v10604_v5, %s7840_s19  ;;  %v10609_v30 = vld [vmem:[#allocation6 + $0x50] sm:$0xff]  ;;  %v10616_v29 = vld [vmem:[#allocation6 + $0x48] sm:$0xff] }
 0x6a5   : > { %4739 = vst.msk [vmem:[#allocation6 + $0x61] sm:$0xff] %vm2258_vm11, %v4652_v53  ;;  %4804 = vst.msk [vmem:[#allocation4 + $0x38] sm:$0xff] %vm2258_vm11, %v10609_v30  ;;  %v10640_v3 = vld [vmem:[#allocation6 + $0x49] sm:$0xff] }
 0x6a6   : > { %4897 = vrot.lane.b32.xlu0 %v10612_v22, %s7840_s19  ;;  %4803 = vst.msk [vmem:[#allocation4 + $0x30] sm:$0xff] %vm2258_vm11, %v10616_v29 }
 0x6a8   : > { %4903 = vrot.lane.b32.xlu1 %v10622_v12, %s7840_s19 }
 0x6a9   : > { %v4569_v6 = vpop.permute.xlu1 %4568 }
 0x6aa   : > { %v4655_v15 = vmul.f32 %v4569_v6, %v10445_v34  ;;  %4901 = vrot.lane.b32.xlu0 %v10626_v32, %s7840_s19  ;;  %v4567_v36 = vpop.permute.xlu0 %4566 }
 0x6ab   : > { %v4654_v17 = vmul.f32 %v4567_v36, %v10448_v52  ;;  %v10650_v52 = vld [vmem:[#allocation6 + $0x69] sm:$0xff] }
 0x6ac   : > { %4742 = vst.msk [vmem:[#allocation6 + $0x81] sm:$0xff] %vm2258_vm11, %v4655_v15  ;;  %4907 = vrot.lane.b32.xlu1 %v10632_v4, %s7840_s19  ;;  %v10637_v51 = vld [vmem:[#allocation6 + $0x68] sm:$0xff]  ;;  %v10644_v34 = vld [vmem:[#allocation6 + $0x60] sm:$0xff] }
 0x6ad   : > { %4741 = vst.msk [vmem:[#allocation6 + $0x79] sm:$0xff] %vm2258_vm11, %v4654_v17  ;;  %4806 = vst.msk [vmem:[#allocation4 + $0x48] sm:$0xff] %vm2258_vm11, %v10637_v51  ;;  %v10654_v25 = vld [vmem:[#allocation6 + $0x61] sm:$0xff] }
 0x6ae   : > { %4905 = vrot.lane.b32.xlu0 %v10640_v3, %s7840_s19  ;;  %4805 = vst.msk [vmem:[#allocation4 + $0x40] sm:$0xff] %vm2258_vm11, %v10644_v34 }
 0x6b0   : > { %4911 = vrot.lane.b32.xlu1 %v10650_v52, %s7840_s19 }
 0x6b1   : > { %v4573_v7 = vpop.permute.xlu1 %4572 }
 0x6b2   : > { %v4657_v14 = vmul.f32 %v4573_v7, %v10455_v11  ;;  %4909 = vrot.lane.b32.xlu0 %v10654_v25, %s7840_s19  ;;  %v4571_v54 = vpop.permute.xlu0 %4570 }
 0x6b3   : > { %v4656_v49 = vmul.f32 %v4571_v54, %v10458_v60  ;;  %v10660_v27 = vld [vmem:[#allocation6 + $0x81] sm:$0xff] }
 0x6b4   : > { %4744 = vst.msk [vmem:[#allocation6 + $0x99] sm:$0xff] %vm2258_vm11, %v4657_v14  ;;  %4915 = vrot.lane.b32.xlu1 %v10660_v27, %s7840_s19  ;;  %v10665_v19 = vld [vmem:[#allocation6 + $0x79] sm:$0xff] }
 0x6b5   : > { %v10667_v56 = vld [vmem:[#allocation6 + $0x80] sm:$0xff]  ;;  %4743 = vst.msk [vmem:[#allocation6 + $0x91] sm:$0xff] %vm2258_vm11, %v4656_v49  ;;  %v10672_v11 = vld [vmem:[#allocation6 + $0x78] sm:$0xff] }
 0x6b6   : > { %4808 = vst.msk [vmem:[#allocation4 + $0x58] sm:$0xff] %vm2258_vm11, %v10667_v56  ;;  %4913 = vrot.lane.b32.xlu0 %v10665_v19, %s7840_s19  ;;  %4807 = vst.msk [vmem:[#allocation4 + $0x50] sm:$0xff] %vm2258_vm11, %v10672_v11 }
 0x6b9   : > { %v4577_v60 = vpop.permute.xlu1 %4576 }
 0x6ba   : > { %v4659_v18 = vmul.f32 %v4577_v60, %v10465_v38  ;;  %v4575_v20 = vpop.permute.xlu0 %4574 }
 0x6bb   : > { %v4658_v55 = vmul.f32 %v4575_v20, %v10468_v42  ;;  %v4842_v2 = vld [vmem:[#allocation6 + $0x99] sm:$0xff] }
 0x6bc   : > { %4746 = vst.msk [vmem:[#allocation6 + $0xb1] sm:$0xff] %vm2258_vm11, %v4659_v18  ;;  %4919 = vrot.lane.b32.xlu1 %v4842_v2, %s7840_s19  ;;  %v10682_v10 = vld [vmem:[#allocation6 + $0x91] sm:$0xff] }
 0x6bd   : > { %v10684_v57 = vld [vmem:[#allocation6 + $0x98] sm:$0xff]  ;;  %4745 = vst.msk [vmem:[#allocation6 + $0xa9] sm:$0xff] %vm2258_vm11, %v4658_v55  ;;  %4917 = vrot.lane.b32.xlu0 %v10682_v10, %s7840_s19  ;;  %v10691_v38 = vld [vmem:[#allocation6 + $0x90] sm:$0xff] }
 0x6be   : > { %4810 = vst.msk [vmem:[#allocation4 + $0x68] sm:$0xff] %vm2258_vm11, %v10684_v57  ;;  %4809 = vst.msk [vmem:[#allocation4 + $0x60] sm:$0xff] %vm2258_vm11, %v10691_v38 }
 0x6c1   : > { %v4581_v42 = vpop.permute.xlu1 %4580 }
 0x6c2   : > { %v4661_v21 = vmul.f32 %v4581_v42, %v10475_v26  ;;  %v4579_v37 = vpop.permute.xlu0 %4578 }
 0x6c3   : > { %v4660_v43 = vmul.f32 %v4579_v37, %v10478_v63  ;;  %v4844_v46 = vld [vmem:[#allocation6 + $0xb1] sm:$0xff] }
 0x6c4   : > { %4748 = vst.msk [vmem:[#allocation6 + $0xc9] sm:$0xff] %vm2258_vm11, %v4661_v21  ;;  %4923 = vrot.lane.b32.xlu1 %v4844_v46, %s7840_s19  ;;  %v4843_v45 = vld [vmem:[#allocation6 + $0xa9] sm:$0xff] }
 0x6c5   : > { %v10699_v44 = vld [vmem:[#allocation6 + $0xb0] sm:$0xff]  ;;  %4747 = vst.msk [vmem:[#allocation6 + $0xc1] sm:$0xff] %vm2258_vm11, %v4660_v43  ;;  %4921 = vrot.lane.b32.xlu0 %v4843_v45, %s7840_s19  ;;  %v10705_v62 = vld [vmem:[#allocation6 + $0xa8] sm:$0xff] }
 0x6c6   : > { %4812 = vst.msk [vmem:[#allocation4 + $0x78] sm:$0xff] %vm2258_vm11, %v10699_v44  ;;  %4811 = vst.msk [vmem:[#allocation4 + $0x70] sm:$0xff] %vm2258_vm11, %v10705_v62 }
 0x6c9   : > { %v4585_v26 = vpop.permute.xlu1 %4584 }
 0x6ca   : > { %v4663_v63 = vmul.f32 %v4585_v26, %v10485_v40  ;;  %v4583_v35 = vpop.permute.xlu0 %4582 }
 0x6cb   : > { %v4662_v53 = vmul.f32 %v4583_v35, %v10488_v61  ;;  %v4846_v6 = vld [vmem:[#allocation6 + $0xc9] sm:$0xff] }
 0x6cc   : > { %4750 = vst.msk [vmem:[#allocation6 + $0xe1] sm:$0xff] %vm2258_vm11, %v4663_v63  ;;  %4927 = vrot.lane.b32.xlu1 %v4846_v6, %s7840_s19  ;;  %v4845_v15 = vld [vmem:[#allocation6 + $0xc1] sm:$0xff] }
 0x6cd   : > { %v10713_v36 = vld [vmem:[#allocation6 + $0xc8] sm:$0xff]  ;;  %4749 = vst.msk [vmem:[#allocation6 + $0xd9] sm:$0xff] %vm2258_vm11, %v4662_v53  ;;  %4925 = vrot.lane.b32.xlu0 %v4845_v15, %s7840_s19  ;;  %v10719_v17 = vld [vmem:[#allocation6 + $0xc0] sm:$0xff] }
 0x6ce   : > { %4814 = vst.msk [vmem:[#allocation4 + $0x88] sm:$0xff] %vm2258_vm11, %v10713_v36  ;;  %4813 = vst.msk [vmem:[#allocation4 + $0x80] sm:$0xff] %vm2258_vm11, %v10719_v17 }
 0x6d1   : > { %v4589_v40 = vpop.permute.xlu1 %4588 }
 0x6d2   : > { %v4665_v61 = vmul.f32 %v4589_v40, %v10495_v1  ;;  %v4587_v7 = vpop.permute.xlu0 %4586 }
 0x6d3   : > { %v4664_v14 = vmul.f32 %v4587_v7, %v10498_v31  ;;  %v4848_v54 = vld [vmem:[#allocation6 + $0xe1] sm:$0xff] }
 0x6d4   : > { %4752 = vst.msk [vmem:[#allocation6 + $0xf9] sm:$0xff] %vm2258_vm11, %v4665_v61  ;;  %4931 = vrot.lane.b32.xlu1 %v4848_v54, %s7840_s19  ;;  %v4847_v49 = vld [vmem:[#allocation6 + $0xd9] sm:$0xff] }
 0x6d5   : > { %v10727_v60 = vld [vmem:[#allocation6 + $0xe0] sm:$0xff]  ;;  %4751 = vst.msk [vmem:[#allocation6 + $0xf1] sm:$0xff] %vm2258_vm11, %v4664_v14  ;;  %4929 = vrot.lane.b32.xlu0 %v4847_v49, %s7840_s19  ;;  %v10733_v18 = vld [vmem:[#allocation6 + $0xd8] sm:$0xff] }
 0x6d6   : > { %4816 = vst.msk [vmem:[#allocation4 + $0x98] sm:$0xff] %vm2258_vm11, %v10727_v60  ;;  %4815 = vst.msk [vmem:[#allocation4 + $0x90] sm:$0xff] %vm2258_vm11, %v10733_v18 }
 0x6d9   : > { %v4593_v1 = vpop.permute.xlu1 %4592 }
 0x6da   : > { %v4667_v31 = vmul.f32 %v4593_v1, %v10505_v9  ;;  %v4591_v20 = vpop.permute.xlu0 %4590 }
 0x6db   : > { %v4666_v55 = vmul.f32 %v4591_v20, %v10508_v28  ;;  %v4850_v2 = vld [vmem:[#allocation6 + $0xf9] sm:$0xff] }
 0x6dc   : > { %4754 = vst.msk [vmem:[#allocation6 + $0x111] sm:$0xff] %vm2258_vm11, %v4667_v31  ;;  %4935 = vrot.lane.b32.xlu1 %v4850_v2, %s7840_s19  ;;  %v4849_v42 = vld [vmem:[#allocation6 + $0xf1] sm:$0xff] }
 0x6dd   : > { %v10741_v21 = vld [vmem:[#allocation6 + $0xf8] sm:$0xff]  ;;  %4753 = vst.msk [vmem:[#allocation6 + $0x109] sm:$0xff] %vm2258_vm11, %v4666_v55  ;;  %4933 = vrot.lane.b32.xlu0 %v4849_v42, %s7840_s19  ;;  %v10747_v37 = vld [vmem:[#allocation6 + $0xf0] sm:$0xff] }
 0x6de   : > { %4818 = vst.msk [vmem:[#allocation4 + $0xa8] sm:$0xff] %vm2258_vm11, %v10741_v21  ;;  %4817 = vst.msk [vmem:[#allocation4 + $0xa0] sm:$0xff] %vm2258_vm11, %v10747_v37 }
 0x6e1   : > { %v4597_v9 = vpop.permute.xlu1 %4596 }
 0x6e2   : > { %v4669_v28 = vmul.f32 %v4597_v9, %v10515_v39  ;;  %v4595_v43 = vpop.permute.xlu0 %4594 }
 0x6e3   : > { %v4668_v46 = vmul.f32 %v4595_v43, %v10518_v50  ;;  %v4852_v45 = vld [vmem:[#allocation6 + $0x111] sm:$0xff] }
 0x6e4   : > { %4756 = vst.msk [vmem:[#allocation6 + $0x129] sm:$0xff] %vm2258_vm11, %v4669_v28  ;;  %4939 = vrot.lane.b32.xlu1 %v4852_v45, %s7840_s19  ;;  %v4851_v26 = vld [vmem:[#allocation6 + $0x109] sm:$0xff] }
 0x6e5   : > { %v10755_v63 = vld [vmem:[#allocation6 + $0x110] sm:$0xff]  ;;  %4755 = vst.msk [vmem:[#allocation6 + $0x121] sm:$0xff] %vm2258_vm11, %v4668_v46  ;;  %4937 = vrot.lane.b32.xlu0 %v4851_v26, %s7840_s19  ;;  %v10761_v35 = vld [vmem:[#allocation6 + $0x108] sm:$0xff] }
 0x6e6   : > { %4820 = vst.msk [vmem:[#allocation4 + $0xb8] sm:$0xff] %vm2258_vm11, %v10755_v63  ;;  %4819 = vst.msk [vmem:[#allocation4 + $0xb0] sm:$0xff] %vm2258_vm11, %v10761_v35  ;;  %v5022_v26 = vld [vmem:[#allocation6 + $0xa] sm:$0xff] }
 0x6ea   : > { %v4601_v39 = vpop.permute.xlu1 %4600 }
 0x6eb   : > { %v4671_v50 = vmul.f32 %v4601_v39, %v10525_v0  ;;  %v4599_v53 = vpop.permute.xlu0 %4598  ;;  %v4854_v6 = vld [vmem:[#allocation6 + $0x129] sm:$0xff] }
 0x6ec   : > { %v4670_v15 = vmul.f32 %v4599_v53, %v10528_v23  ;;  %4943 = vrot.lane.b32.xlu1 %v4854_v6, %s7840_s19  ;;  %v4853_v40 = vld [vmem:[#allocation6 + $0x121] sm:$0xff] }
 0x6ed   : > { %v4790_v61 = vld [vmem:[#allocation6 + $0x128] sm:$0xff]  ;;  %4758 = vst.msk [vmem:[#allocation6 + $0x141] sm:$0xff] %vm2258_vm11, %v4671_v50  ;;  %4941 = vrot.lane.b32.xlu0 %v4853_v40, %s7840_s19  ;;  %v10771_v7 = vld [vmem:[#allocation6 + $0x120] sm:$0xff] }
 0x6ee   : > { %4822 = vst.msk [vmem:[#allocation4 + $0xc8] sm:$0xff] %vm2258_vm11, %v4790_v61  ;;  %4757 = vst.msk [vmem:[#allocation6 + $0x139] sm:$0xff] %vm2258_vm11, %v4670_v15  ;;  %v10803_v61 = vld [vmem:[#allocation6 + $0x22] sm:$0xff] }
 0x6ef   : > { %4821 = vst.msk [vmem:[#allocation4 + $0xc0] sm:$0xff] %vm2258_vm11, %v10771_v7 }
 0x6f4   : > { %v4856_v0 = vld [vmem:[#allocation6 + $0x141] sm:$0xff] }
 0x6f5   : > { %4947 = vrot.lane.b32.xlu1 %v4856_v0, %s7840_s19  ;;  %v4855_v23 = vld [vmem:[#allocation6 + $0x139] sm:$0xff] }
 0x6f6   : > { %v4792_v14 = vld [vmem:[#allocation6 + $0x140] sm:$0xff]  ;;  %v4605_v54 = vpop.permute.xlu1 %4604  ;;  %4945 = vrot.lane.b32.xlu0 %v4855_v23, %s7840_s19  ;;  %v4791_v49 = vld [vmem:[#allocation6 + $0x138] sm:$0xff] }
 0x6f7   : > { %4824 = vst.msk [vmem:[#allocation4 + $0xd8] sm:$0xff] %vm2258_vm11, %v4792_v14  ;;  %v4673_v1 = vmul.f32 %v4605_v54, %v10536_v47  ;;  %4823 = vst.msk [vmem:[#allocation4 + $0xd0] sm:$0xff] %vm2258_vm11, %v4791_v49  ;;  %v10808_v23 = vld [vmem:[#allocation6 + $0x1a] sm:$0xff]  ;;  %v10818_v49 = vld [vmem:[#allocation6 + $0x32] sm:$0xff] }
 0x6f8   : > { %v10813_v14 = vld [vmem:[#allocation6 + $0x3a] sm:$0xff] }
 0x6f9   : > { %4760 = vst.msk [vmem:[#allocation6 + $0x159] sm:$0xff] %vm2258_vm11, %v4673_v1  ;;  %v4603_v31 = vpop.permute.xlu0 %4602 }
 0x6fa   : > { %v4672_v20 = vmul.f32 %v4603_v31, %v10540_v59  ;;  %v10823_v31 = vld [vmem:[#allocation6 + $0x52] sm:$0xff] }
 0x6fc   : > { %4759 = vst.msk [vmem:[#allocation6 + $0x151] sm:$0xff] %vm2258_vm11, %v4672_v20 }
 0x700   : > { %v4858_v55 = vld [vmem:[#allocation6 + $0x159] sm:$0xff] }
 0x701   : > { %4951 = vrot.lane.b32.xlu1 %v4858_v55, %s7840_s19  ;;  %v10828_v55 = vld [vmem:[#allocation6 + $0x4a] sm:$0xff] }
 0x702   : > { %v4609_v2 = vpop.permute.xlu1 %4608 }
 0x703   : > { %v4675_v42 = vmul.f32 %v4609_v2, %v10547_v48  ;;  %v4857_v9 = vld [vmem:[#allocation6 + $0x151] sm:$0xff] }
 0x704   : > { %v4794_v28 = vld [vmem:[#allocation6 + $0x158] sm:$0xff]  ;;  %4949 = vrot.lane.b32.xlu0 %v4857_v9, %s7840_s19  ;;  %v4607_v47 = vpop.permute.xlu0 %4606  ;;  %v4793_v43 = vld [vmem:[#allocation6 + $0x150] sm:$0xff] }
 0x705   : > { %4826 = vst.msk [vmem:[#allocation4 + $0xe8] sm:$0xff] %vm2258_vm11, %v4794_v28  ;;  %4762 = vst.msk [vmem:[#allocation6 + $0x171] sm:$0xff] %vm2258_vm11, %v4675_v42  ;;  %v4674_v59 = vmul.f32 %v4607_v47, %v10550_v33  ;;  %v5021_v33 = vld [vmem:[#allocation6 + $0x2] sm:$0xff]  ;;  %v10833_v42 = vld [vmem:[#allocation6 + $0x6a] sm:$0xff] }
 0x706   : > { %4825 = vst.msk [vmem:[#allocation4 + $0xe0] sm:$0xff] %vm2258_vm11, %v4793_v43  ;;  %v10838_v28 = vld [vmem:[#allocation6 + $0x62] sm:$0xff] }
 0x707   : > { %4761 = vst.msk [vmem:[#allocation6 + $0x169] sm:$0xff] %vm2258_vm11, %v4674_v59  ;;  %v10843_v43 = vld [vmem:[#allocation6 + $0x82] sm:$0xff] }
 0x70c   : > { %v4860_v46 = vld [vmem:[#allocation6 + $0x171] sm:$0xff] }
 0x70d   : > { %4955 = vrot.lane.b32.xlu1 %v4860_v46, %s7840_s19  ;;  %v10848_v46 = vld [vmem:[#allocation6 + $0x7a] sm:$0xff] }
 0x70e   : > { %v4613_v48 = vpop.permute.xlu1 %4612  ;;  %v4859_v45 = vld [vmem:[#allocation6 + $0x169] sm:$0xff] }
 0x70f   : > { %v4796_v39 = vld [vmem:[#allocation6 + $0x170] sm:$0xff]  ;;  %v4677_v50 = vmul.f32 %v4613_v48, %v10557_v58  ;;  %4953 = vrot.lane.b32.xlu0 %v4859_v45, %s7840_s19  ;;  %v4795_v53 = vld [vmem:[#allocation6 + $0x168] sm:$0xff]  ;;  %v10853_v45 = vld [vmem:[#allocation6 + $0x9a] sm:$0xff] }
 0x710   : > { %4828 = vst.msk [vmem:[#allocation4 + $0xf8] sm:$0xff] %vm2258_vm11, %v4796_v39  ;;  %v4611_v6 = vpop.permute.xlu0 %4610  ;;  %4827 = vst.msk [vmem:[#allocation4 + $0xf0] sm:$0xff] %vm2258_vm11, %v4795_v53  ;;  %v10862_v39 = vld [vmem:[#allocation6 + $0xb2] sm:$0xff]  ;;  %v10866_v53 = vld [vmem:[#allocation6 + $0xaa] sm:$0xff] }
 0x711   : > { %4764 = vst.msk [vmem:[#allocation6 + $0x189] sm:$0xff] %vm2258_vm11, %v4677_v50  ;;  %v4676_v15 = vmul.f32 %v4611_v6, %v10560_v24  ;;  %5087 = vrot.lane.b32.xlu1 %v5022_v26, %s7842_s21  ;;  %v10858_v26 = vld [vmem:[#allocation6 + $0x92] sm:$0xff] }
 0x712   : > { %v4896_v40 = vpop.permute.xlu1 %4895 }
 0x713   : > { %4763 = vst.msk [vmem:[#allocation6 + $0x181] sm:$0xff] %vm2258_vm11, %v4676_v15  ;;  %5085 = vrot.lane.b32.xlu0 %v5021_v33, %s7842_s21  ;;  %v10872_v33 = vld [vmem:[#allocation6 + $0xca] sm:$0xff]  ;;  %v10876_v15 = vld [vmem:[#allocation6 + $0xc2] sm:$0xff] }
 0x714   : > { %4990 = vst.msk [vmem:[#allocation4 + $0x8] sm:$0xff] %vm2571_vm13, %v4896_v40  ;;  %v4894_v58 = vpop.permute.xlu0 %4893  ;;  %v10880_v40 = vld [vmem:[#allocation6 + $0xe2] sm:$0xff] }
 0x715   : > { %4989 = vst.msk [vmem:[#allocation4] sm:$0xff] %vm2571_vm13, %v4894_v58  ;;  %5091 = vrot.lane.b32.xlu1 %v10803_v61, %s7842_s21 }
 0x716   : > { %v4900_v0 = vpop.permute.xlu1 %4899 }
 0x717   : > { %4992 = vst.msk [vmem:[#allocation4 + $0x18] sm:$0xff] %vm2571_vm13, %v4900_v0  ;;  %5089 = vrot.lane.b32.xlu0 %v10808_v23, %s7842_s21  ;;  %v10884_v0 = vld [vmem:[#allocation6 + $0xda] sm:$0xff] }
 0x718   : > { %v4898_v24 = vpop.permute.xlu0 %4897 }
 0x719   : > { %4991 = vst.msk [vmem:[#allocation4 + $0x10] sm:$0xff] %vm2571_vm13, %v4898_v24  ;;  %5095 = vrot.lane.b32.xlu1 %v10813_v14, %s7842_s21 }
 0x71a   : > { %v4904_v54 = vpop.permute.xlu1 %4903 }
 0x71b   : > { %4994 = vst.msk [vmem:[#allocation4 + $0x28] sm:$0xff] %vm2571_vm13, %v4904_v54  ;;  %5093 = vrot.lane.b32.xlu0 %v10818_v49, %s7842_s21  ;;  %v5042_v54 = vld [vmem:[#allocation6 + $0xfa] sm:$0xff] }
 0x71c   : > { %v4902_v1 = vpop.permute.xlu0 %4901 }
 0x71d   : > { %4993 = vst.msk [vmem:[#allocation4 + $0x20] sm:$0xff] %vm2571_vm13, %v4902_v1  ;;  %5099 = vrot.lane.b32.xlu1 %v10823_v31, %s7842_s21  ;;  %v5041_v1 = vld [vmem:[#allocation6 + $0xf2] sm:$0xff] }
 0x71e   : > { %v4908_v20 = vpop.permute.xlu1 %4907 }
 0x71f   : > { %4996 = vst.msk [vmem:[#allocation4 + $0x38] sm:$0xff] %vm2571_vm13, %v4908_v20  ;;  %5097 = vrot.lane.b32.xlu0 %v10828_v55, %s7842_s21  ;;  %v5044_v20 = vld [vmem:[#allocation6 + $0x112] sm:$0xff] }
 0x720   : > { %v4906_v2 = vpop.permute.xlu0 %4905 }
 0x721   : > { %4995 = vst.msk [vmem:[#allocation4 + $0x30] sm:$0xff] %vm2571_vm13, %v4906_v2  ;;  %5103 = vrot.lane.b32.xlu1 %v10833_v42, %s7842_s21 }
 0x722   : > { %v4912_v9 = vpop.permute.xlu1 %4911 }
 0x723   : > { %4998 = vst.msk [vmem:[#allocation4 + $0x48] sm:$0xff] %vm2571_vm13, %v4912_v9  ;;  %5101 = vrot.lane.b32.xlu0 %v10838_v28, %s7842_s21  ;;  %v5043_v9 = vld [vmem:[#allocation6 + $0x10a] sm:$0xff] }
 0x724   : > { %v4910_v47 = vpop.permute.xlu0 %4909 }
 0x725   : > { %4997 = vst.msk [vmem:[#allocation4 + $0x40] sm:$0xff] %vm2571_vm13, %v4910_v47  ;;  %5107 = vrot.lane.b32.xlu1 %v10843_v43, %s7842_s21 }
 0x726   : > { %v4916_v59 = vpop.permute.xlu1 %4915 }
 0x727   : > { %5000 = vst.msk [vmem:[#allocation4 + $0x58] sm:$0xff] %vm2571_vm13, %v4916_v59  ;;  %5105 = vrot.lane.b32.xlu0 %v10848_v46, %s7842_s21  ;;  %v5046_v59 = vld [vmem:[#allocation6 + $0x12a] sm:$0xff] }
 0x728   : > { %v4914_v48 = vpop.permute.xlu0 %4913 }
 0x729   : > { %4999 = vst.msk [vmem:[#allocation4 + $0x50] sm:$0xff] %vm2571_vm13, %v4914_v48  ;;  %5111 = vrot.lane.b32.xlu1 %v10853_v45, %s7842_s21  ;;  %v5045_v48 = vld [vmem:[#allocation6 + $0x122] sm:$0xff] }
 0x72b   : > { %5109 = vrot.lane.b32.xlu0 %v10858_v26, %s7842_s21 }
 0x72d   : > { %5115 = vrot.lane.b32.xlu1 %v10862_v39, %s7842_s21 }
 0x72e   : > { %v4920_v50 = vpop.permute.xlu1 %4919 }
 0x72f   : > { %5002 = vst.msk [vmem:[#allocation4 + $0x68] sm:$0xff] %vm2571_vm13, %v4920_v50  ;;  %5113 = vrot.lane.b32.xlu0 %v10866_v53, %s7842_s21  ;;  %v4918_v6 = vpop.permute.xlu0 %4917  ;;  %v5048_v50 = vld [vmem:[#allocation6 + $0x142] sm:$0xff] }
 0x730   : > { %5001 = vst.msk [vmem:[#allocation4 + $0x60] sm:$0xff] %vm2571_vm13, %v4918_v6 }
 0x731   : > { %5119 = vrot.lane.b32.xlu1 %v10872_v33, %s7842_s21 }
 0x733   : > { %5117 = vrot.lane.b32.xlu0 %v10876_v15, %s7842_s21 }
 0x735   : > { %5123 = vrot.lane.b32.xlu1 %v10880_v40, %s7842_s21 }
 0x736   : > { %v4924_v58 = vpop.permute.xlu1 %4923 }
 0x737   : > { %5004 = vst.msk [vmem:[#allocation4 + $0x78] sm:$0xff] %vm2571_vm13, %v4924_v58  ;;  %5121 = vrot.lane.b32.xlu0 %v10884_v0, %s7842_s21  ;;  %v4922_v24 = vpop.permute.xlu0 %4921  ;;  %v5047_v58 = vld [vmem:[#allocation6 + $0x13a] sm:$0xff] }
 0x738   : > { %5003 = vst.msk [vmem:[#allocation4 + $0x70] sm:$0xff] %vm2571_vm13, %v4922_v24 }
 0x739   : > { %5127 = vrot.lane.b32.xlu1 %v5042_v54, %s7842_s21  ;;  %v5050_v54 = vld [vmem:[#allocation6 + $0x15a] sm:$0xff] }
 0x73b   : > { %5125 = vrot.lane.b32.xlu0 %v5041_v1, %s7842_s21  ;;  %v5049_v1 = vld [vmem:[#allocation6 + $0x152] sm:$0xff] }
 0x73d   : > { %5131 = vrot.lane.b32.xlu1 %v5044_v20, %s7842_s21  ;;  %v5052_v20 = vld [vmem:[#allocation6 + $0x172] sm:$0xff] }
 0x73e   : > { %v4928_v2 = vpop.permute.xlu1 %4927 }
 0x73f   : > { %5006 = vst.msk [vmem:[#allocation4 + $0x88] sm:$0xff] %vm2571_vm13, %v4928_v2  ;;  %5129 = vrot.lane.b32.xlu0 %v5043_v9, %s7842_s21  ;;  %v4926_v47 = vpop.permute.xlu0 %4925  ;;  %v5051_v9 = vld [vmem:[#allocation6 + $0x16a] sm:$0xff] }
 0x740   : > { %5005 = vst.msk [vmem:[#allocation4 + $0x80] sm:$0xff] %vm2571_vm13, %v4926_v47 }
 0x741   : > { %5135 = vrot.lane.b32.xlu1 %v5046_v59, %s7842_s21 }
 0x743   : > { %5133 = vrot.lane.b32.xlu0 %v5045_v48, %s7842_s21 }
 0x745   : > { %5139 = vrot.lane.b32.xlu1 %v5048_v50, %s7842_s21 }
 0x746   : > { %v4932_v6 = vpop.permute.xlu1 %4931 }
 0x747   : > { %5008 = vst.msk [vmem:[#allocation4 + $0x98] sm:$0xff] %vm2571_vm13, %v4932_v6  ;;  %5137 = vrot.lane.b32.xlu0 %v5047_v58, %s7842_s21  ;;  %v4930_v24 = vpop.permute.xlu0 %4929 }
 0x748   : > { %5007 = vst.msk [vmem:[#allocation4 + $0x90] sm:$0xff] %vm2571_vm13, %v4930_v24 }
 0x749   : > { %5143 = vrot.lane.b32.xlu1 %v5050_v54, %s7842_s21  ;;  %v6398_v54 = vld [vmem:[%s11579_s5] sm:$0xff] }
 0x74b   : > { %5141 = vrot.lane.b32.xlu0 %v5049_v1, %s7842_s21  ;;  %v6399_v1 = vld [vmem:[%s11579_s5 + $0x8] sm:$0xff] }
 0x74d   : > { %5147 = vrot.lane.b32.xlu1 %v5052_v20, %s7842_s21 }
 0x74e   : > { %v4936_v2 = vpop.permute.xlu1 %4935 }
 0x74f   : > { %5010 = vst.msk [vmem:[#allocation4 + $0xa8] sm:$0xff] %vm2571_vm13, %v4936_v2  ;;  %5145 = vrot.lane.b32.xlu0 %v5051_v9, %s7842_s21  ;;  %v4934_v47 = vpop.permute.xlu0 %4933  ;;  %v7563_v2 = vpack.c.bf16 %v6399_v1, %v6398_v54  ;;  %v6406_v1 = vld [vmem:[%s11579_s5 + $0x40] sm:$0xff] }
 0x750   : > { %5009 = vst.msk [vmem:[#allocation4 + $0xa0] sm:$0xff] %vm2571_vm13, %v4934_v47  ;;  %v6401_v47 = vld [vmem:[%s11579_s5 + $0x18] sm:$0xff] }
 0x751   : > { %5279 = vrot.lane.b32.xlu1 %v10578_v41, %s7844_s23  ;;  %7564 = vmatprep.subr.bf16.mxu0 %v7563_v2 }
 0x752   : > { %7566 = vmatpush3.bf16.msra.mxu0 %v7563_v2 }
 0x753   : > { %5277 = vrot.lane.b32.xlu0 %v10582_v13, %s7844_s23 }
 0x755   : > { %5283 = vrot.lane.b32.xlu1 %v10590_v8, %s7844_s23 }
 0x756   : > { %v4940_v59 = vpop.permute.xlu1 %4939 }
 0x757   : > { %5012 = vst.msk [vmem:[#allocation4 + $0xb8] sm:$0xff] %vm2571_vm13, %v4940_v59  ;;  %5281 = vrot.lane.b32.xlu0 %v10595_v16, %s7844_s23  ;;  %v4938_v48 = vpop.permute.xlu0 %4937 }
 0x758   : > { %5011 = vst.msk [vmem:[#allocation4 + $0xb0] sm:$0xff] %vm2571_vm13, %v4938_v48 }
 0x759   : > { %5287 = vrot.lane.b32.xlu1 %v10609_v30, %s7844_s23 }
 0x75b   : > { %5285 = vrot.lane.b32.xlu0 %v10616_v29, %s7844_s23 }
 0x75d   : > { %5291 = vrot.lane.b32.xlu1 %v10637_v51, %s7844_s23 }
 0x75e   : > { %v4944_v41 = vpop.permute.xlu1 %4943 }
 0x75f   : > { %5014 = vst.msk [vmem:[#allocation4 + $0xc8] sm:$0xff] %vm2571_vm13, %v4944_v41  ;;  %5289 = vrot.lane.b32.xlu0 %v10644_v34, %s7844_s23  ;;  %v4942_v13 = vpop.permute.xlu0 %4941  ;;  %v6402_v41 = vld [vmem:[%s11579_s5 + $0x20] sm:$0xff] }
 0x760   : > { %5013 = vst.msk [vmem:[#allocation4 + $0xc0] sm:$0xff] %vm2571_vm13, %v4942_v13 }
 0x761   : > { %5295 = vrot.lane.b32.xlu1 %v10667_v56, %s7844_s23 }
 0x763   : > { %5293 = vrot.lane.b32.xlu0 %v10672_v11, %s7844_s23 }
 0x765   : > { %5299 = vrot.lane.b32.xlu1 %v10684_v57, %s7844_s23 }
 0x767   : > { %5297 = vrot.lane.b32.xlu0 %v10691_v38, %s7844_s23  ;;  %v4948_v50 = vpop.permute.xlu1 %4947 }
 0x768   : > { %5016 = vst.msk [vmem:[#allocation4 + $0xd8] sm:$0xff] %vm2571_vm13, %v4948_v50  ;;  %v4946_v6 = vpop.permute.xlu0 %4945 }
 0x769   : > { %5015 = vst.msk [vmem:[#allocation4 + $0xd0] sm:$0xff] %vm2571_vm13, %v4946_v6  ;;  %5303 = vrot.lane.b32.xlu1 %v10699_v44, %s7844_s23  ;;  %v6404_v6 = vld [vmem:[%s11579_s5 + $0x30] sm:$0xff] }
 0x76b   : > { %5301 = vrot.lane.b32.xlu0 %v10705_v62, %s7844_s23 }
 0x76d   : > { %5307 = vrot.lane.b32.xlu1 %v10713_v36, %s7844_s23 }
 0x76f   : > { %5305 = vrot.lane.b32.xlu0 %v10719_v17, %s7844_s23 }
 0x771   : > { %5311 = vrot.lane.b32.xlu1 %v10727_v60, %s7844_s23 }
 0x773   : > { %5309 = vrot.lane.b32.xlu0 %v10733_v18, %s7844_s23  ;;  %v4952_v58 = vpop.permute.xlu1 %4951 }
 0x774   : > { %5018 = vst.msk [vmem:[#allocation4 + $0xe8] sm:$0xff] %vm2571_vm13, %v4952_v58 }
 0x775   : > { %5315 = vrot.lane.b32.xlu1 %v10741_v21, %s7844_s23 }
 0x776   : > { %v4950_v24 = vpop.permute.xlu0 %4949 }
 0x777   : > { %5017 = vst.msk [vmem:[#allocation4 + $0xe0] sm:$0xff] %vm2571_vm13, %v4950_v24  ;;  %5313 = vrot.lane.b32.xlu0 %v10747_v37, %s7844_s23 }
 0x779   : > { %5319 = vrot.lane.b32.xlu1 %v10755_v63, %s7844_s23 }
 0x77b   : > { %5317 = vrot.lane.b32.xlu0 %v10761_v35, %s7844_s23 }
 0x77d   : > { %5469 = vrot.lane.b32.xlu1 %v10612_v22, %s7846_s9  ;;  %v6400_v22 = vld [vmem:[%s11579_s5 + $0x10] sm:$0xff] }
 0x77e   : > { %v7567_v48 = vpack.c.bf16 %v6401_v47, %v6400_v22 }
 0x77f   : > { %5321 = vrot.lane.b32.xlu0 %v10771_v7, %s7844_s23  ;;  %v4956_v20 = vpop.permute.xlu1 %4955 }
 0x780   : > { %5020 = vst.msk [vmem:[#allocation4 + $0xf8] sm:$0xff] %vm2571_vm13, %v4956_v20  ;;  %7568 = vmatprep.subr.bf16.mxu0 %v7567_v48 }
 0x781   : > { %v4954_v9 = vpop.permute.xlu0 %4953  ;;  %5661 = vrot.lane.b32.xlu1 %v10808_v23, %s7848_s13  ;;  %7570 = vmatpush3.bf16.msra.mxu0 %v7567_v48 }
 0x782   : > { %5019 = vst.msk [vmem:[#allocation4 + $0xf0] sm:$0xff] %vm2571_vm13, %v4954_v9 }
 0x783   : > { %5471 = vrot.lane.b32.xlu0 %v10604_v5, %s7846_s9  ;;  %v5088_v59 = vpop.permute.xlu1 %5087  ;;  %v6403_v5 = vld [vmem:[%s11579_s5 + $0x28] sm:$0xff] }
 0x784   : > { %5182 = vst.msk [vmem:[#allocation4 + $0x8] sm:$0xff] %vm2764_vm14, %v5088_v59  ;;  %v7571_v50 = vpack.c.bf16 %v6403_v5, %v6402_v41 }
 0x785   : > { %v5086_v23 = vpop.permute.xlu0 %5085  ;;  %5854 = vrot.lane.b32.xlu1 %v10595_v16, %s7849_s14 }
 0x786   : > { %5181 = vst.msk [vmem:[#allocation4] sm:$0xff] %vm2764_vm14, %v5086_v23  ;;  %7572 = vmatprep.subr.bf16.mxu0 %v7571_v50 }
 0x787   : > { %5663 = vrot.lane.b32.xlu0 %v10803_v61, %s7848_s13  ;;  %v5092_v13 = vpop.permute.xlu1 %5091  ;;  %7574 = vmatpush3.bf16.msra.mxu0 %v7571_v50  ;;  %v6405_v61 = vld [vmem:[%s11579_s5 + $0x38] sm:$0xff] }
 0x788   : > { %5184 = vst.msk [vmem:[#allocation4 + $0x18] sm:$0xff] %vm2764_vm14, %v5092_v13  ;;  %v7575_v24 = vpack.c.bf16 %v6405_v61, %v6404_v6 }
 0x789   : > { %v5090_v16 = vpop.permute.xlu0 %5089  ;;  %6046 = vrot.lane.b32.xlu1 %v10626_v32, %s7850_s15 }
 0x78a   : > { %5183 = vst.msk [vmem:[#allocation4 + $0x10] sm:$0xff] %vm2764_vm14, %v5090_v16  ;;  %7576 = vmatprep.subr.bf16.mxu0 %v7575_v24 }
 0x78b   : > { %5856 = vrot.lane.b32.xlu0 %v10590_v8, %s7849_s14  ;;  %v5096_v58 = vpop.permute.xlu1 %5095  ;;  %7578 = vmatpush3.bf16.msra.mxu0 %v7575_v24 }
 0x78c   : > { %5186 = vst.msk [vmem:[#allocation4 + $0x28] sm:$0xff] %vm2764_vm14, %v5096_v58  ;;  %7489 = vmatprep.subr.mxu0 %v6406_v1 }
 0x78d   : > { %v5094_v54 = vpop.permute.xlu0 %5093  ;;  %6048 = vrot.lane.b32.xlu1 %v10622_v12, %s7850_s15 }
 0x78e   : > { %5185 = vst.msk [vmem:[#allocation4 + $0x20] sm:$0xff] %vm2764_vm14, %v5094_v54 }
 0x78f   : > { %5473 = vrot.lane.b32.xlu0 %v10626_v32, %s7846_s9  ;;  %v5100_v8 = vpop.permute.xlu1 %5099  ;;  %7490 = vmatpush3.msra.mxu0 %v6406_v1 }
 0x790   : > { %5188 = vst.msk [vmem:[#allocation4 + $0x38] sm:$0xff] %vm2764_vm14, %v5100_v8 }
 0x791   : > { %v5098_v20 = vpop.permute.xlu0 %5097  ;;  %5475 = vrot.lane.b32.xlu1 %v10622_v12, %s7846_s9 }
 0x792   : > { %5187 = vst.msk [vmem:[#allocation4 + $0x30] sm:$0xff] %vm2764_vm14, %v5098_v20 }
 0x793   : > { %6238 = vrot.lane.b32.xlu0 %v10818_v49, %s7851_s20  ;;  %v5104_v2 = vpop.permute.xlu1 %5103 }
 0x794   : > { %5190 = vst.msk [vmem:[#allocation4 + $0x48] sm:$0xff] %vm2764_vm14, %v5104_v2 }
 0x795   : > { %v5102_v9 = vpop.permute.xlu0 %5101  ;;  %6240 = vrot.lane.b32.xlu1 %v10813_v14, %s7851_s20 }
 0x796   : > { %5189 = vst.msk [vmem:[#allocation4 + $0x40] sm:$0xff] %vm2764_vm14, %v5102_v9 }
 0x797   : > { %5665 = vrot.lane.b32.xlu0 %v10818_v49, %s7848_s13  ;;  %v5108_v32 = vpop.permute.xlu1 %5107 }
 0x798   : > { %5192 = vst.msk [vmem:[#allocation4 + $0x58] sm:$0xff] %vm2764_vm14, %v5108_v32  ;;  %v5992_v32 = vld [vmem:[#allocation6 + $0xa9] sm:$0xff] }
 0x799   : > { %v5106_v12 = vpop.permute.xlu0 %5105  ;;  %5858 = vrot.lane.b32.xlu1 %v10616_v29, %s7849_s14 }
 0x79a   : > { %5191 = vst.msk [vmem:[#allocation4 + $0x50] sm:$0xff] %vm2764_vm14, %v5106_v12 }
 0x79b   : > { %5667 = vrot.lane.b32.xlu0 %v10813_v14, %s7848_s13  ;;  %v5112_v22 = vpop.permute.xlu1 %5111 }
 0x79c   : > { %5194 = vst.msk [vmem:[#allocation4 + $0x68] sm:$0xff] %vm2764_vm14, %v5112_v22 }
 0x79d   : > { %v5110_v47 = vpop.permute.xlu0 %5109  ;;  %6050 = vrot.lane.b32.xlu1 %v10640_v3, %s7850_s15 }
 0x79e   : > { %5193 = vst.msk [vmem:[#allocation4 + $0x60] sm:$0xff] %vm2764_vm14, %v5110_v47 }
 0x79f   : > { %5860 = vrot.lane.b32.xlu0 %v10609_v30, %s7849_s14  ;;  %v5116_v49 = vpop.permute.xlu1 %5115 }
 0x7a0   : > { %5196 = vst.msk [vmem:[#allocation4 + $0x78] sm:$0xff] %vm2764_vm14, %v5116_v49 }
 0x7a1   : > { %v5114_v29 = vpop.permute.xlu0 %5113  ;;  %6052 = vrot.lane.b32.xlu1 %v10632_v4, %s7850_s15 }
 0x7a2   : > { %5195 = vst.msk [vmem:[#allocation4 + $0x70] sm:$0xff] %vm2764_vm14, %v5114_v29 }
 0x7a3   : > { %5477 = vrot.lane.b32.xlu0 %v10640_v3, %s7846_s9  ;;  %v5120_v14 = vpop.permute.xlu1 %5119 }
 0x7a4   : > { %5198 = vst.msk [vmem:[#allocation4 + $0x88] sm:$0xff] %vm2764_vm14, %v5120_v14 }
 0x7a5   : > { %v5118_v59 = vpop.permute.xlu0 %5117  ;;  %5479 = vrot.lane.b32.xlu1 %v10632_v4, %s7846_s9 }
 0x7a6   : > { %5197 = vst.msk [vmem:[#allocation4 + $0x80] sm:$0xff] %vm2764_vm14, %v5118_v59 }
 0x7a7   : > { %6242 = vrot.lane.b32.xlu0 %v10828_v55, %s7851_s20  ;;  %v5124_v30 = vpop.permute.xlu1 %5123 }
 0x7a8   : > { %5200 = vst.msk [vmem:[#allocation4 + $0x98] sm:$0xff] %vm2764_vm14, %v5124_v30  ;;  %v5994_v30 = vld [vmem:[#allocation6 + $0xc1] sm:$0xff] }
 0x7a9   : > { %v5122_v48 = vpop.permute.xlu0 %5121  ;;  %6244 = vrot.lane.b32.xlu1 %v10823_v31, %s7851_s20 }
 0x7aa   : > { %5199 = vst.msk [vmem:[#allocation4 + $0x90] sm:$0xff] %vm2764_vm14, %v5122_v48 }
 0x7ab   : > { %5669 = vrot.lane.b32.xlu0 %v10828_v55, %s7848_s13  ;;  %v5128_v3 = vpop.permute.xlu1 %5127 }
 0x7ac   : > { %5202 = vst.msk [vmem:[#allocation4 + $0xa8] sm:$0xff] %vm2764_vm14, %v5128_v3 }
 0x7ad   : > { %v5126_v4 = vpop.permute.xlu0 %5125  ;;  %5862 = vrot.lane.b32.xlu1 %v10644_v34, %s7849_s14 }
 0x7ae   : > { %5201 = vst.msk [vmem:[#allocation4 + $0xa0] sm:$0xff] %vm2764_vm14, %v5126_v4 }
 0x7af   : > { %5671 = vrot.lane.b32.xlu0 %v10823_v31, %s7848_s13  ;;  %v5132_v23 = vpop.permute.xlu1 %5131 }
 0x7b0   : > { %5204 = vst.msk [vmem:[#allocation4 + $0xb8] sm:$0xff] %vm2764_vm14, %v5132_v23 }
 0x7b1   : > { %v5130_v41 = vpop.permute.xlu0 %5129  ;;  %6054 = vrot.lane.b32.xlu1 %v10654_v25, %s7850_s15 }
 0x7b2   : > { %5203 = vst.msk [vmem:[#allocation4 + $0xb0] sm:$0xff] %vm2764_vm14, %v5130_v41 }
 0x7b3   : > { %5864 = vrot.lane.b32.xlu0 %v10637_v51, %s7849_s14  ;;  %v5136_v55 = vpop.permute.xlu1 %5135 }
 0x7b4   : > { %5206 = vst.msk [vmem:[#allocation4 + $0xc8] sm:$0xff] %vm2764_vm14, %v5136_v55 }
 0x7b5   : > { %v5134_v34 = vpop.permute.xlu0 %5133  ;;  %6056 = vrot.lane.b32.xlu1 %v10650_v52, %s7850_s15 }
 0x7b6   : > { %5205 = vst.msk [vmem:[#allocation4 + $0xc0] sm:$0xff] %vm2764_vm14, %v5134_v34 }
 0x7b7   : > { %5481 = vrot.lane.b32.xlu0 %v10654_v25, %s7846_s9  ;;  %v5140_v31 = vpop.permute.xlu1 %5139 }
 0x7b8   : > { %5208 = vst.msk [vmem:[#allocation4 + $0xd8] sm:$0xff] %vm2764_vm14, %v5140_v31 }
 0x7b9   : > { %v5138_v5 = vpop.permute.xlu0 %5137  ;;  %5483 = vrot.lane.b32.xlu1 %v10650_v52, %s7846_s9 }
 0x7ba   : > { %5207 = vst.msk [vmem:[#allocation4 + $0xd0] sm:$0xff] %vm2764_vm14, %v5138_v5 }
 0x7bb   : > { %6246 = vrot.lane.b32.xlu0 %v10838_v28, %s7851_s20  ;;  %v5144_v51 = vpop.permute.xlu1 %5143 }
 0x7bc   : > { %5210 = vst.msk [vmem:[#allocation4 + $0xe8] sm:$0xff] %vm2764_vm14, %v5144_v51  ;;  %v5996_v51 = vld [vmem:[#allocation6 + $0xd9] sm:$0xff] }
 0x7bd   : > { %v5142_v13 = vpop.permute.xlu0 %5141  ;;  %6248 = vrot.lane.b32.xlu1 %v10833_v42, %s7851_s20 }
 0x7be   : > { %5209 = vst.msk [vmem:[#allocation4 + $0xe0] sm:$0xff] %vm2764_vm14, %v5142_v13 }
 0x7bf   : > { %5673 = vrot.lane.b32.xlu0 %v10838_v28, %s7848_s13  ;;  %v5148_v25 = vpop.permute.xlu1 %5147 }
 0x7c0   : > { %5212 = vst.msk [vmem:[#allocation4 + $0xf8] sm:$0xff] %vm2764_vm14, %v5148_v25 }
 0x7c1   : > { %v5146_v52 = vpop.permute.xlu0 %5145  ;;  %5866 = vrot.lane.b32.xlu1 %v10672_v11, %s7849_s14 }
 0x7c2   : > { %5211 = vst.msk [vmem:[#allocation4 + $0xf0] sm:$0xff] %vm2764_vm14, %v5146_v52 }
 0x7c3   : > { %5675 = vrot.lane.b32.xlu0 %v10833_v42, %s7848_s13  ;;  %v5280_v50 = vpop.permute.xlu1 %5279 }
 0x7c4   : > { %5374 = vst.msk [vmem:[#allocation4 + $0x8] sm:$0xff] %vm2957_vm15, %v5280_v50 }
 0x7c5   : > { %v5278_v16 = vpop.permute.xlu0 %5277  ;;  %6058 = vrot.lane.b32.xlu1 %v10665_v19, %s7850_s15 }
 0x7c6   : > { %5373 = vst.msk [vmem:[#allocation4] sm:$0xff] %vm2957_vm15, %v5278_v16 }
 0x7c7   : > { %5868 = vrot.lane.b32.xlu0 %v10667_v56, %s7849_s14  ;;  %v5284_v28 = vpop.permute.xlu1 %5283 }
 0x7c8   : > { %5376 = vst.msk [vmem:[#allocation4 + $0x18] sm:$0xff] %vm2957_vm15, %v5284_v28 }
 0x7c9   : > { %v5282_v11 = vpop.permute.xlu0 %5281  ;;  %6060 = vrot.lane.b32.xlu1 %v10660_v27, %s7850_s15 }
 0x7ca   : > { %5375 = vst.msk [vmem:[#allocation4 + $0x10] sm:$0xff] %vm2957_vm15, %v5282_v11 }
 0x7cb   : > { %5485 = vrot.lane.b32.xlu0 %v10665_v19, %s7846_s9  ;;  %v5288_v42 = vpop.permute.xlu1 %5287 }
 0x7cc   : > { %5378 = vst.msk [vmem:[#allocation4 + $0x28] sm:$0xff] %vm2957_vm15, %v5288_v42 }
 0x7cd   : > { %v5286_v6 = vpop.permute.xlu0 %5285  ;;  %5487 = vrot.lane.b32.xlu1 %v10660_v27, %s7846_s9 }
 0x7ce   : > { %5377 = vst.msk [vmem:[#allocation4 + $0x20] sm:$0xff] %vm2957_vm15, %v5286_v6 }
 0x7cf   : > { %6250 = vrot.lane.b32.xlu0 %v10848_v46, %s7851_s20  ;;  %v5292_v56 = vpop.permute.xlu1 %5291 }
 0x7d0   : > { %5380 = vst.msk [vmem:[#allocation4 + $0x38] sm:$0xff] %vm2957_vm15, %v5292_v56  ;;  %v5998_v56 = vld [vmem:[#allocation6 + $0xf1] sm:$0xff] }
 0x7d1   : > { %v5290_v61 = vpop.permute.xlu0 %5289  ;;  %6252 = vrot.lane.b32.xlu1 %v10843_v43, %s7851_s20 }
 0x7d2   : > { %5379 = vst.msk [vmem:[#allocation4 + $0x30] sm:$0xff] %vm2957_vm15, %v5290_v61 }
 0x7d3   : > { %5677 = vrot.lane.b32.xlu0 %v10848_v46, %s7848_s13  ;;  %v5296_v19 = vpop.permute.xlu1 %5295 }
 0x7d4   : > { %5382 = vst.msk [vmem:[#allocation4 + $0x48] sm:$0xff] %vm2957_vm15, %v5296_v19 }
 0x7d5   : > { %v5294_v27 = vpop.permute.xlu0 %5293  ;;  %5870 = vrot.lane.b32.xlu1 %v10691_v38, %s7849_s14  ;;  %v5991_v38 = vld [vmem:[#allocation6 + $0x99] sm:$0xff] }
 0x7d6   : > { %5381 = vst.msk [vmem:[#allocation4 + $0x40] sm:$0xff] %vm2957_vm15, %v5294_v27 }
 0x7d7   : > { %5679 = vrot.lane.b32.xlu0 %v10843_v43, %s7848_s13  ;;  %v5300_v58 = vpop.permute.xlu1 %5299  ;;  %v5415_v43 = vld [vmem:[#allocation6 + $0x91] sm:$0xff] }
 0x7d8   : > { %5384 = vst.msk [vmem:[#allocation4 + $0x58] sm:$0xff] %vm2957_vm15, %v5300_v58 }
 0x7d9   : > { %v5298_v24 = vpop.permute.xlu0 %5297  ;;  %6062 = vrot.lane.b32.xlu1 %v10682_v10, %s7850_s15 }
 0x7da   : > { %5383 = vst.msk [vmem:[#allocation4 + $0x50] sm:$0xff] %vm2957_vm15, %v5298_v24  ;;  %v6191_v24 = vld [vmem:[#allocation6 + $0xfa] sm:$0xff] }
 0x7db   : > { %5872 = vrot.lane.b32.xlu0 %v10684_v57, %s7849_s14  ;;  %v5304_v46 = vpop.permute.xlu1 %5303 }
 0x7dc   : > { %5386 = vst.msk [vmem:[#allocation4 + $0x68] sm:$0xff] %vm2957_vm15, %v5304_v46 }
 0x7dd   : > { %v5302_v54 = vpop.permute.xlu0 %5301  ;;  %6064 = vrot.lane.b32.xlu1 %v5991_v38, %s7850_s15 }
 0x7de   : > { %5385 = vst.msk [vmem:[#allocation4 + $0x60] sm:$0xff] %vm2957_vm15, %v5302_v54 }
 0x7df   : > { %5489 = vrot.lane.b32.xlu0 %v5415_v43, %s7846_s9  ;;  %v5308_v1 = vpop.permute.xlu1 %5307 }
 0x7e0   : > { %5388 = vst.msk [vmem:[#allocation4 + $0x78] sm:$0xff] %vm2957_vm15, %v5308_v1 }
 0x7e1   : > { %v5306_v10 = vpop.permute.xlu0 %5305  ;;  %5491 = vrot.lane.b32.xlu1 %v5991_v38, %s7846_s9 }
 0x7e2   : > { %5387 = vst.msk [vmem:[#allocation4 + $0x70] sm:$0xff] %vm2957_vm15, %v5306_v10 }
 0x7e3   : > { %6254 = vrot.lane.b32.xlu0 %v10858_v26, %s7851_s20  ;;  %v5312_v57 = vpop.permute.xlu1 %5311 }
 0x7e4   : > { %5390 = vst.msk [vmem:[#allocation4 + $0x88] sm:$0xff] %vm2957_vm15, %v5312_v57  ;;  %v6000_v57 = vld [vmem:[#allocation6 + $0x109] sm:$0xff] }
 0x7e5   : > { %v5310_v8 = vpop.permute.xlu0 %5309  ;;  %6256 = vrot.lane.b32.xlu1 %v10853_v45, %s7851_s20 }
 0x7e6   : > { %5389 = vst.msk [vmem:[#allocation4 + $0x80] sm:$0xff] %vm2957_vm15, %v5310_v8 }
 0x7e7   : > { %5681 = vrot.lane.b32.xlu0 %v10858_v26, %s7848_s13  ;;  %v5316_v20 = vpop.permute.xlu1 %5315 }
 0x7e8   : > { %5392 = vst.msk [vmem:[#allocation4 + $0x98] sm:$0xff] %vm2957_vm15, %v5316_v20 }
 0x7e9   : > { %v5314_v2 = vpop.permute.xlu0 %5313  ;;  %5874 = vrot.lane.b32.xlu1 %v10705_v62, %s7849_s14  ;;  %v5993_v62 = vld [vmem:[#allocation6 + $0xb1] sm:$0xff] }
 0x7ea   : > { %5391 = vst.msk [vmem:[#allocation4 + $0x90] sm:$0xff] %vm2957_vm15, %v5314_v2 }
 0x7eb   : > { %5683 = vrot.lane.b32.xlu0 %v10853_v45, %s7848_s13  ;;  %v5320_v9 = vpop.permute.xlu1 %5319 }
 0x7ec   : > { %5394 = vst.msk [vmem:[#allocation4 + $0xa8] sm:$0xff] %vm2957_vm15, %v5320_v9 }
 0x7ed   : > { %v5318_v12 = vpop.permute.xlu0 %5317  ;;  %6066 = vrot.lane.b32.xlu1 %v5992_v32, %s7850_s15 }
 0x7ee   : > { %5393 = vst.msk [vmem:[#allocation4 + $0xa0] sm:$0xff] %vm2957_vm15, %v5318_v12 }
 0x7ef   : > { %5876 = vrot.lane.b32.xlu0 %v10699_v44, %s7849_s14  ;;  %v5470_v26 = vpop.permute.xlu1 %5469 }
 0x7f0   : > { %5565 = vst.msk [vmem:[#allocation4] sm:$0xff] %vm3150_vm0, %v5470_v26  ;;  %v6193_v26 = vld [vmem:[#allocation6 + $0x112] sm:$0xff] }
 0x7f1   : > { %v5322_v22 = vpop.permute.xlu0 %5321  ;;  %6068 = vrot.lane.b32.xlu1 %v5993_v62, %s7850_s15 }
 0x7f2   : > { %5395 = vst.msk [vmem:[#allocation4 + $0xb0] sm:$0xff] %vm2957_vm15, %v5322_v22 }
 0x7f3   : > { %5493 = vrot.lane.b32.xlu0 %v5992_v32, %s7846_s9  ;;  %v5662_v45 = vpop.permute.xlu1 %5661 }
 0x7f4   : > { %5757 = vst.msk [vmem:[#allocation4] sm:$0xff] %vm3343_vm1, %v5662_v45 }
 0x7f5   : > { %v5472_v47 = vpop.permute.xlu0 %5471  ;;  %5495 = vrot.lane.b32.xlu1 %v5993_v62, %s7846_s9 }
 0x7f6   : > { %5566 = vst.msk [vmem:[#allocation4 + $0x8] sm:$0xff] %vm3150_vm0, %v5472_v47 }
 0x7f7   : > { %6258 = vrot.lane.b32.xlu0 %v10866_v53, %s7851_s20  ;;  %v5855_v44 = vpop.permute.xlu1 %5854 }
 0x7f8   : > { %5950 = vst.msk [vmem:[#allocation4] sm:$0xff] %vm3537_vm2, %v5855_v44 }
 0x7f9   : > { %v5664_v49 = vpop.permute.xlu0 %5663  ;;  %6260 = vrot.lane.b32.xlu1 %v10862_v39, %s7851_s20 }
 0x7fa   : > { %5758 = vst.msk [vmem:[#allocation4 + $0x8] sm:$0xff] %vm3343_vm1, %v5664_v49 }
 0x7fb   : > { %5685 = vrot.lane.b32.xlu0 %v10866_v53, %s7848_s13  ;;  %v6047_v29 = vpop.permute.xlu1 %6046 }
 0x7fc   : > { %6142 = vst.msk [vmem:[#allocation4] sm:$0xff] %vm3730_vm3, %v6047_v29  ;;  %v6002_v29 = vld [vmem:[#allocation6 + $0x121] sm:$0xff] }
 0x7fd   : > { %v5857_v14 = vpop.permute.xlu0 %5856  ;;  %5878 = vrot.lane.b32.xlu1 %v10719_v17, %s7849_s14  ;;  %v5995_v17 = vld [vmem:[#allocation6 + $0xc9] sm:$0xff] }
 0x7fe   : > { %5951 = vst.msk [vmem:[#allocation4 + $0x8] sm:$0xff] %vm3537_vm2, %v5857_v14 }
 0x7ff   : > { %5687 = vrot.lane.b32.xlu0 %v10862_v39, %s7848_s13  ;;  %v6049_v59 = vpop.permute.xlu1 %6048 }
 0x800   : > { %6143 = vst.msk [vmem:[#allocation4 + $0x8] sm:$0xff] %vm3730_vm3, %v6049_v59  ;;  %v5811_v59 = vld [vmem:[#allocation6 + $0x128] sm:$0xff] }
 0x801   : > { %v5474_v48 = vpop.permute.xlu0 %5473  ;;  %6070 = vrot.lane.b32.xlu1 %v5994_v30, %s7850_s15 }
 0x802   : > { %5567 = vst.msk [vmem:[#allocation4 + $0x10] sm:$0xff] %vm3150_vm0, %v5474_v48 }
 0x803   : > { %5880 = vrot.lane.b32.xlu0 %v10713_v36, %s7849_s14  ;;  %v5476_v53 = vpop.permute.xlu1 %5475 }
 0x804   : > { %5568 = vst.msk [vmem:[#allocation4 + $0x18] sm:$0xff] %vm3150_vm0, %v5476_v53  ;;  %v6194_v53 = vld [vmem:[#allocation6 + $0x122] sm:$0xff] }
 0x805   : > { %v6239_v3 = vpop.permute.xlu0 %6238  ;;  %6072 = vrot.lane.b32.xlu1 %v5995_v17, %s7850_s15 }
 0x806   : > { %6334 = vst.msk [vmem:[#allocation4] sm:$0xff] %vm3923_vm4, %v6239_v3  ;;  %v6003_v3 = vld [vmem:[#allocation6 + $0x129] sm:$0xff] }
 0x807   : > { %5497 = vrot.lane.b32.xlu0 %v5994_v30, %s7846_s9  ;;  %v6241_v39 = vpop.permute.xlu1 %6240 }
 0x808   : > { %6335 = vst.msk [vmem:[#allocation4 + $0x8] sm:$0xff] %vm3923_vm4, %v6241_v39 }
 0x809   : > { %v5666_v4 = vpop.permute.xlu0 %5665  ;;  %5499 = vrot.lane.b32.xlu1 %v5995_v17, %s7846_s9 }
 0x80a   : > { %5759 = vst.msk [vmem:[#allocation4 + $0x10] sm:$0xff] %vm3343_vm1, %v5666_v4 }
 0x80b   : > { %6262 = vrot.lane.b32.xlu0 %v10876_v15, %s7851_s20  ;;  %v5859_v36 = vpop.permute.xlu1 %5858 }
 0x80c   : > { %5952 = vst.msk [vmem:[#allocation4 + $0x10] sm:$0xff] %vm3537_vm2, %v5859_v36 }
 0x80d   : > { %v5668_v23 = vpop.permute.xlu0 %5667  ;;  %6264 = vrot.lane.b32.xlu1 %v10872_v33, %s7851_s20  ;;  %v6366_v41 = vld [vmem:[#allocation4] sm:$0xff] }
 0x80e   : > { %5760 = vst.msk [vmem:[#allocation4 + $0x18] sm:$0xff] %vm3343_vm1, %v5668_v23  ;;  %7491 = vmatprep.mubr.msk.f32.mxu0 %vm4004_vm5, %v6366_v41 }
 0x80f   : > { %5689 = vrot.lane.b32.xlu0 %v10876_v15, %s7848_s13  ;;  %v6051_v55 = vpop.permute.xlu1 %6050  ;;  %v6367_v34 = vld [vmem:[#allocation4 + $0x8] sm:$0xff] }
 0x810   : > { %6144 = vst.msk [vmem:[#allocation4 + $0x10] sm:$0xff] %vm3730_vm3, %v6051_v55  ;;  %7492 = vmatmul.mubr.msk.f32.vlgmr.msra.gmra.mrb[16].mxu0 %vm4004_vm5, %v6367_v34  ;;  %v5620_v55 = vld [vmem:[#allocation6 + $0x12a] sm:$0xff] }
 0x811   : > { %v5861_v31 = vpop.permute.xlu0 %5860  ;;  %5882 = vrot.lane.b32.xlu1 %v10733_v18, %s7849_s14  ;;  %v5997_v18 = vld [vmem:[#allocation6 + $0xe1] sm:$0xff] }
 0x812   : > { %5953 = vst.msk [vmem:[#allocation4 + $0x18] sm:$0xff] %vm3537_vm2, %v5861_v31 }
 0x813   : > { %5691 = vrot.lane.b32.xlu0 %v10872_v33, %s7848_s13  ;;  %v6053_v5 = vpop.permute.xlu1 %6052 }
 0x814   : > { %6145 = vst.msk [vmem:[#allocation4 + $0x18] sm:$0xff] %vm3730_vm3, %v6053_v5  ;;  %v5237_v5 = vld [vmem:[#allocation6 + $0x138] sm:$0xff] }
 0x815   : > { %v5478_v15 = vpop.permute.xlu0 %5477  ;;  %6074 = vrot.lane.b32.xlu1 %v5996_v51, %s7850_s15 }
 0x816   : > { %5569 = vst.msk [vmem:[#allocation4 + $0x20] sm:$0xff] %vm3150_vm0, %v5478_v15 }
 0x817   : > { %5884 = vrot.lane.b32.xlu0 %v10727_v60, %s7849_s14  ;;  %v5480_v13 = vpop.permute.xlu1 %5479 }
 0x818   : > { %5570 = vst.msk [vmem:[#allocation4 + $0x28] sm:$0xff] %vm3150_vm0, %v5480_v13  ;;  %v6004_v13 = vld [vmem:[#allocation6 + $0x139] sm:$0xff] }
 0x819   : > { %v6243_v25 = vpop.permute.xlu0 %6242  ;;  %6076 = vrot.lane.b32.xlu1 %v5997_v18, %s7850_s15 }
 0x81a   : > { %6336 = vst.msk [vmem:[#allocation4 + $0x10] sm:$0xff] %vm3923_vm4, %v6243_v25  ;;  %v5813_v25 = vld [vmem:[#allocation6 + $0x140] sm:$0xff] }
 0x81b   : > { %5501 = vrot.lane.b32.xlu0 %v5996_v51, %s7846_s9  ;;  %v6245_v33 = vpop.permute.xlu1 %6244 }
 0x81c   : > { %6337 = vst.msk [vmem:[#allocation4 + $0x18] sm:$0xff] %vm3923_vm4, %v6245_v33 }
 0x81d   : > { %v5670_v52 = vpop.permute.xlu0 %5669  ;;  %5503 = vrot.lane.b32.xlu1 %v5997_v18, %s7846_s9 }
 0x81e   : > { %5761 = vst.msk [vmem:[#allocation4 + $0x20] sm:$0xff] %vm3343_vm1, %v5670_v52 }
 0x81f   : > { %6266 = vrot.lane.b32.xlu0 %v10884_v0, %s7851_s20  ;;  %v5863_v60 = vpop.permute.xlu1 %5862 }
 0x820   : > { %5954 = vst.msk [vmem:[#allocation4 + $0x20] sm:$0xff] %vm3537_vm2, %v5863_v60 }
 0x821   : > { %v5672_v50 = vpop.permute.xlu0 %5671  ;;  %6268 = vrot.lane.b32.xlu1 %v10880_v40, %s7851_s20  ;;  %v6368_v16 = vld [vmem:[#allocation4 + $0x10] sm:$0xff] }
 0x822   : > { %5762 = vst.msk [vmem:[#allocation4 + $0x28] sm:$0xff] %vm3343_vm1, %v5672_v50  ;;  %7494 = vmatprep.mubr.msk.f32.mxu0 %vm4004_vm5, %v6368_v16  ;;  %v6196_v50 = vld [vmem:[#allocation6 + $0x13a] sm:$0xff] }
 0x823   : > { %5693 = vrot.lane.b32.xlu0 %v10884_v0, %s7848_s13  ;;  %v6055_v28 = vpop.permute.xlu1 %6054  ;;  %v6369_v11 = vld [vmem:[#allocation4 + $0x18] sm:$0xff] }
 0x824   : > { %6146 = vst.msk [vmem:[#allocation4 + $0x20] sm:$0xff] %vm3730_vm3, %v6055_v28  ;;  %7495 = vmatmul.mubr.msk.f32.gmra.mrb[18].mxu0 %vm4004_vm5, %v6369_v11  ;;  %v6005_v11 = vld [vmem:[#allocation6 + $0x141] sm:$0xff] }
 0x825   : > { %v5865_v42 = vpop.permute.xlu0 %5864  ;;  %5886 = vrot.lane.b32.xlu1 %v10747_v37, %s7849_s14  ;;  %v5999_v37 = vld [vmem:[#allocation6 + $0xf9] sm:$0xff] }
 0x826   : > { %5955 = vst.msk [vmem:[#allocation4 + $0x28] sm:$0xff] %vm3537_vm2, %v5865_v42 }
 0x827   : > { %5695 = vrot.lane.b32.xlu0 %v10880_v40, %s7848_s13  ;;  %v6057_v6 = vpop.permute.xlu1 %6056 }
 0x828   : > { %6147 = vst.msk [vmem:[#allocation4 + $0x28] sm:$0xff] %vm3730_vm3, %v6057_v6 }
 0x829   : > { %v5482_v0 = vpop.permute.xlu0 %5481  ;;  %6078 = vrot.lane.b32.xlu1 %v5998_v56, %s7850_s15 }
 0x82a   : > { %5571 = vst.msk [vmem:[#allocation4 + $0x30] sm:$0xff] %vm3150_vm0, %v5482_v0 }
 0x82b   : > { %5888 = vrot.lane.b32.xlu0 %v10741_v21, %s7849_s14  ;;  %v5484_v61 = vpop.permute.xlu1 %5483  ;;  %v6190_v21 = vld [vmem:[#allocation6 + $0xf2] sm:$0xff] }
 0x82c   : > { %5572 = vst.msk [vmem:[#allocation4 + $0x38] sm:$0xff] %vm3150_vm0, %v5484_v61  ;;  %v5622_v61 = vld [vmem:[#allocation6 + $0x142] sm:$0xff] }
 0x82d   : > { %v6247_v19 = vpop.permute.xlu0 %6246  ;;  %6080 = vrot.lane.b32.xlu1 %v5999_v37, %s7850_s15 }
 0x82e   : > { %6338 = vst.msk [vmem:[#allocation4 + $0x20] sm:$0xff] %vm3923_vm4, %v6247_v19 }
 0x82f   : > { %5505 = vrot.lane.b32.xlu0 %v5998_v56, %s7846_s9  ;;  %v6249_v40 = vpop.permute.xlu1 %6248 }
 0x830   : > { %6339 = vst.msk [vmem:[#allocation4 + $0x28] sm:$0xff] %vm3923_vm4, %v6249_v40  ;;  %v5239_v40 = vld [vmem:[#allocation6 + $0x150] sm:$0xff] }
 0x831   : > { %v5674_v27 = vpop.permute.xlu0 %5673  ;;  %5507 = vrot.lane.b32.xlu1 %v5999_v37, %s7846_s9 }
 0x832   : > { %5763 = vst.msk [vmem:[#allocation4 + $0x30] sm:$0xff] %vm3343_vm1, %v5674_v27 }
 0x833   : > { %6270 = vrot.lane.b32.xlu0 %v6190_v21, %s7851_s20  ;;  %v5867_v58 = vpop.permute.xlu1 %5866 }
 0x834   : > { %5956 = vst.msk [vmem:[#allocation4 + $0x30] sm:$0xff] %vm3537_vm2, %v5867_v58  ;;  %v6006_v58 = vld [vmem:[#allocation6 + $0x151] sm:$0xff] }
 0x835   : > { %v5676_v46 = vpop.permute.xlu0 %5675  ;;  %6272 = vrot.lane.b32.xlu1 %v6191_v24, %s7851_s20  ;;  %v6370_v38 = vld [vmem:[#allocation4 + $0x20] sm:$0xff] }
 0x836   : > { %5764 = vst.msk [vmem:[#allocation4 + $0x38] sm:$0xff] %vm3343_vm1, %v5676_v46  ;;  %7497 = vmatprep.mubr.msk.f32.mxu0 %vm4004_vm5, %v6370_v38  ;;  %v5815_v46 = vld [vmem:[#allocation6 + $0x158] sm:$0xff] }
 0x837   : > { %5697 = vrot.lane.b32.xlu0 %v6190_v21, %s7848_s13  ;;  %v6059_v54 = vpop.permute.xlu1 %6058  ;;  %v6371_v43 = vld [vmem:[#allocation4 + $0x28] sm:$0xff] }
 0x838   : > { %6148 = vst.msk [vmem:[#allocation4 + $0x30] sm:$0xff] %vm3730_vm3, %v6059_v54  ;;  %7498 = vmatmul.mubr.msk.f32.gmra.mrb[20].mxu0 %vm4004_vm5, %v6371_v43 }
 0x839   : > { %v5869_v1 = vpop.permute.xlu0 %5868  ;;  %5890 = vrot.lane.b32.xlu1 %v10761_v35, %s7849_s14  ;;  %v6001_v35 = vld [vmem:[#allocation6 + $0x111] sm:$0xff] }
 0x83a   : > { %5957 = vst.msk [vmem:[#allocation4 + $0x38] sm:$0xff] %vm3537_vm2, %v5869_v1 }
 0x83b   : > { %5699 = vrot.lane.b32.xlu0 %v6191_v24, %s7848_s13  ;;  %v6061_v10 = vpop.permute.xlu1 %6060 }
 0x83c   : > { %6149 = vst.msk [vmem:[#allocation4 + $0x38] sm:$0xff] %vm3730_vm3, %v6061_v10 }
 0x83d   : > { %v5486_v8 = vpop.permute.xlu0 %5485  ;;  %6082 = vrot.lane.b32.xlu1 %v6000_v57, %s7850_s15 }
 0x83e   : > { %5573 = vst.msk [vmem:[#allocation4 + $0x40] sm:$0xff] %vm3150_vm0, %v5486_v8 }
 0x83f   : > { %5892 = vrot.lane.b32.xlu0 %v10755_v63, %s7849_s14  ;;  %v5488_v20 = vpop.permute.xlu1 %5487  ;;  %v6192_v63 = vld [vmem:[#allocation6 + $0x10a] sm:$0xff] }
 0x840   : > { %5574 = vst.msk [vmem:[#allocation4 + $0x48] sm:$0xff] %vm3150_vm0, %v5488_v20  ;;  %v6007_v20 = vld [vmem:[#allocation6 + $0x159] sm:$0xff] }
 0x841   : > { %v6251_v2 = vpop.permute.xlu0 %6250  ;;  %6084 = vrot.lane.b32.xlu1 %v6001_v35, %s7850_s15 }
 0x842   : > { %6340 = vst.msk [vmem:[#allocation4 + $0x30] sm:$0xff] %vm3923_vm4, %v6251_v2 }
 0x843   : > { %5509 = vrot.lane.b32.xlu0 %v6000_v57, %s7846_s9  ;;  %v6253_v9 = vpop.permute.xlu1 %6252  ;;  %v6198_v57 = vld [vmem:[#allocation6 + $0x152] sm:$0xff] }
 0x844   : > { %6341 = vst.msk [vmem:[#allocation4 + $0x38] sm:$0xff] %vm3923_vm4, %v6253_v9 }
 0x845   : > { %v5678_v32 = vpop.permute.xlu0 %5677  ;;  %5511 = vrot.lane.b32.xlu1 %v6001_v35, %s7846_s9 }
 0x846   : > { %5765 = vst.msk [vmem:[#allocation4 + $0x40] sm:$0xff] %vm3343_vm1, %v5678_v32  ;;  %v5624_v32 = vld [vmem:[#allocation6 + $0x15a] sm:$0xff] }
 0x847   : > { %6274 = vrot.lane.b32.xlu0 %v6192_v63, %s7851_s20  ;;  %v5871_v12 = vpop.permute.xlu1 %5870 }
 0x848   : > { %5958 = vst.msk [vmem:[#allocation4 + $0x40] sm:$0xff] %vm3537_vm2, %v5871_v12 }
 0x849   : > { %v5680_v62 = vpop.permute.xlu0 %5679  ;;  %6276 = vrot.lane.b32.xlu1 %v6193_v26, %s7851_s20  ;;  %v6372_v22 = vld [vmem:[#allocation4 + $0x30] sm:$0xff] }
 0x84a   : > { %5766 = vst.msk [vmem:[#allocation4 + $0x48] sm:$0xff] %vm3343_vm1, %v5680_v62  ;;  %7500 = vmatprep.mubr.msk.f32.mxu0 %vm4004_vm5, %v6372_v22 }
 0x84b   : > { %5701 = vrot.lane.b32.xlu0 %v6192_v63, %s7848_s13  ;;  %v6063_v45 = vpop.permute.xlu1 %6062  ;;  %v6373_v47 = vld [vmem:[#allocation4 + $0x38] sm:$0xff] }
 0x84c   : > { %6150 = vst.msk [vmem:[#allocation4 + $0x40] sm:$0xff] %vm3730_vm3, %v6063_v45  ;;  %7501 = vmatmul.mubr.msk.f32.gmra.mrb[22].mxu0 %vm4004_vm5, %v6373_v47  ;;  %v6008_v45 = vld [vmem:[#allocation6 + $0x169] sm:$0xff] }
 0x84d   : > { %v5873_v44 = vpop.permute.xlu0 %5872  ;;  %5894 = vrot.lane.b32.xlu1 %v10771_v7, %s7849_s14 }
 0x84e   : > { %5959 = vst.msk [vmem:[#allocation4 + $0x48] sm:$0xff] %vm3537_vm2, %v5873_v44 }
 0x84f   : > { %5703 = vrot.lane.b32.xlu0 %v6193_v26, %s7848_s13  ;;  %v6065_v49 = vpop.permute.xlu1 %6064  ;;  %v5241_v26 = vld [vmem:[#allocation6 + $0x168] sm:$0xff] }
 0x850   : > { %6151 = vst.msk [vmem:[#allocation4 + $0x48] sm:$0xff] %vm3730_vm3, %v6065_v49  ;;  %v5817_v49 = vld [vmem:[#allocation6 + $0x170] sm:$0xff] }
 0x851   : > { %v5490_v14 = vpop.permute.xlu0 %5489  ;;  %6086 = vrot.lane.b32.xlu1 %v6002_v29, %s7850_s15 }
 0x852   : > { %5575 = vst.msk [vmem:[#allocation4 + $0x50] sm:$0xff] %vm3150_vm0, %v5490_v14 }
 0x853   : > { %5896 = vrot.lane.b32.xlu0 %v5811_v59, %s7849_s14  ;;  %v5492_v30 = vpop.permute.xlu1 %5491 }
 0x854   : > { %5576 = vst.msk [vmem:[#allocation4 + $0x58] sm:$0xff] %vm3150_vm0, %v5492_v30 }
 0x855   : > { %v6255_v7 = vpop.permute.xlu0 %6254  ;;  %5513 = vrot.lane.b32.xlu1 %v6002_v29, %s7846_s9 }
 0x856   : > { %6342 = vst.msk [vmem:[#allocation4 + $0x40] sm:$0xff] %vm3923_vm4, %v6255_v7  ;;  %v6200_v7 = vld [vmem:[#allocation6 + $0x16a] sm:$0xff] }
 0x857   : > { %5323 = vrot.lane.b32.xlu0 %v5811_v59, %s7844_s23  ;;  %v6257_v48 = vpop.permute.xlu1 %6256 }
 0x858   : > { %6343 = vst.msk [vmem:[#allocation4 + $0x48] sm:$0xff] %vm3923_vm4, %v6257_v48 }
 0x859   : > { %v5682_v17 = vpop.permute.xlu0 %5681  ;;  %6278 = vrot.lane.b32.xlu1 %v6194_v53, %s7851_s20 }
 0x85a   : > { %5767 = vst.msk [vmem:[#allocation4 + $0x50] sm:$0xff] %vm3343_vm1, %v5682_v17 }
 0x85b   : > { %6088 = vrot.lane.b32.xlu0 %v6003_v3, %s7850_s15  ;;  %v5875_v39 = vpop.permute.xlu1 %5874 }
 0x85c   : > { %5960 = vst.msk [vmem:[#allocation4 + $0x50] sm:$0xff] %vm3537_vm2, %v5875_v39 }
 0x85d   : > { %v5684_v4 = vpop.permute.xlu0 %5683  ;;  %5705 = vrot.lane.b32.xlu1 %v6194_v53, %s7848_s13  ;;  %v6374_v36 = vld [vmem:[#allocation4 + $0x40] sm:$0xff] }
 0x85e   : > { %5768 = vst.msk [vmem:[#allocation4 + $0x58] sm:$0xff] %vm3343_vm1, %v5684_v4  ;;  %7503 = vmatprep.mubr.msk.f32.mxu0 %vm4004_vm5, %v6374_v36  ;;  %v6009_v53 = vld [vmem:[#allocation6 + $0x171] sm:$0xff] }
 0x85f   : > { %5515 = vrot.lane.b32.xlu0 %v6003_v3, %s7846_s9  ;;  %v6067_v23 = vpop.permute.xlu1 %6066  ;;  %v6375_v41 = vld [vmem:[#allocation4 + $0x48] sm:$0xff] }
 0x860   : > { %6152 = vst.msk [vmem:[#allocation4 + $0x50] sm:$0xff] %vm3730_vm3, %v6067_v23  ;;  %7504 = vmatmul.mubr.msk.f32.gmra.mrb[24].mxu0 %vm4004_vm5, %v6375_v41  ;;  %v5626_v4 = vld [vmem:[#allocation6 + $0x172] sm:$0xff]  ;;  %v5243_v41 = vld [vmem:[#allocation6 + $0x180] sm:$0xff] }
 0x861   : > { %v5877_v34 = vpop.permute.xlu0 %5876  ;;  %5707 = vrot.lane.b32.xlu1 %v5620_v55, %s7848_s13 }
 0x862   : > { %5961 = vst.msk [vmem:[#allocation4 + $0x58] sm:$0xff] %vm3537_vm2, %v5877_v34 }
 0x863   : > { %6280 = vrot.lane.b32.xlu0 %v5620_v55, %s7851_s20  ;;  %v6069_v31 = vpop.permute.xlu1 %6068 }
 0x864   : > { %6153 = vst.msk [vmem:[#allocation4 + $0x58] sm:$0xff] %vm3730_vm3, %v6069_v31 }
 0x865   : > { %v5494_v51 = vpop.permute.xlu0 %5493  ;;  %5325 = vrot.lane.b32.xlu1 %v5237_v5, %s7844_s23 }
 0x866   : > { %5577 = vst.msk [vmem:[#allocation4 + $0x60] sm:$0xff] %vm3150_vm0, %v5494_v51  ;;  %v6010_v51 = vld [vmem:[#allocation6 + $0x181] sm:$0xff] }
 0x867   : > { %5898 = vrot.lane.b32.xlu0 %v5237_v5, %s7849_s14  ;;  %v5496_v15 = vpop.permute.xlu1 %5495 }
 0x868   : > { %5578 = vst.msk [vmem:[#allocation4 + $0x68] sm:$0xff] %vm3150_vm0, %v5496_v15 }
 0x869   : > { %v6259_v18 = vpop.permute.xlu0 %6258  ;;  %6090 = vrot.lane.b32.xlu1 %v6004_v13, %s7850_s15 }
 0x86a   : > { %6344 = vst.msk [vmem:[#allocation4 + $0x50] sm:$0xff] %vm3923_vm4, %v6259_v18 }
 0x86b   : > { %5900 = vrot.lane.b32.xlu0 %v5813_v25, %s7849_s14  ;;  %v6261_v33 = vpop.permute.xlu1 %6260 }
 0x86c   : > { %6345 = vst.msk [vmem:[#allocation4 + $0x58] sm:$0xff] %vm3923_vm4, %v6261_v33 }
 0x86d   : > { %v5686_v52 = vpop.permute.xlu0 %5685  ;;  %5517 = vrot.lane.b32.xlu1 %v6004_v13, %s7846_s9  ;;  %v5819_v13 = vld [vmem:[#allocation6 + $0x188] sm:$0xff] }
 0x86e   : > { %5769 = vst.msk [vmem:[#allocation4 + $0x60] sm:$0xff] %vm3343_vm1, %v5686_v52  ;;  %v6202_v52 = vld [vmem:[#allocation6 + $0x182] sm:$0xff] }
 0x86f   : > { %5327 = vrot.lane.b32.xlu0 %v5813_v25, %s7844_s23  ;;  %v5879_v60 = vpop.permute.xlu1 %5878 }
 0x870   : > { %5962 = vst.msk [vmem:[#allocation4 + $0x60] sm:$0xff] %vm3537_vm2, %v5879_v60 }
 0x871   : > { %v5688_v16 = vpop.permute.xlu0 %5687  ;;  %6282 = vrot.lane.b32.xlu1 %v6196_v50, %s7851_s20  ;;  %v6376_v28 = vld [vmem:[#allocation4 + $0x50] sm:$0xff] }
 0x872   : > { %5770 = vst.msk [vmem:[#allocation4 + $0x68] sm:$0xff] %vm3343_vm1, %v5688_v16  ;;  %7506 = vmatprep.mubr.msk.f32.mxu0 %vm4004_vm5, %v6376_v28 }
 0x873   : > { %6092 = vrot.lane.b32.xlu0 %v6005_v11, %s7850_s15  ;;  %v6071_v42 = vpop.permute.xlu1 %6070  ;;  %v6377_v6 = vld [vmem:[#allocation4 + $0x58] sm:$0xff] }
 0x874   : > { %6154 = vst.msk [vmem:[#allocation4 + $0x60] sm:$0xff] %vm3730_vm3, %v6071_v42  ;;  %7507 = vmatmul.mubr.msk.f32.gmra.mrb[26].mxu0 %vm4004_vm5, %v6377_v6  ;;  %v5628_v42 = vld [vmem:[#allocation6 + $0x18a] sm:$0xff] }
 0x875   : > { %v5881_v56 = vpop.permute.xlu0 %5880  ;;  %5709 = vrot.lane.b32.xlu1 %v6196_v50, %s7848_s13  ;;  %v6011_v50 = vld [vmem:[#allocation6 + $0x189] sm:$0xff] }
 0x876   : > { %5963 = vst.msk [vmem:[#allocation4 + $0x68] sm:$0xff] %vm3537_vm2, %v5881_v56 }
 0x877   : > { %5519 = vrot.lane.b32.xlu0 %v6005_v11, %s7846_s9  ;;  %v6073_v0 = vpop.permute.xlu1 %6072 }
 0x878   : > { %6155 = vst.msk [vmem:[#allocation4 + $0x68] sm:$0xff] %vm3730_vm3, %v6073_v0  ;;  %v5821_v0 = vld [vmem:[#allocation6 + $0x1a0] sm:$0xff] }
 0x879   : > { %v5498_v37 = vpop.permute.xlu0 %5497  ;;  %5711 = vrot.lane.b32.xlu1 %v5622_v61, %s7848_s13 }
 0x87a   : > { %5579 = vst.msk [vmem:[#allocation4 + $0x70] sm:$0xff] %vm3150_vm0, %v5498_v37 }
 0x87b   : > { %6284 = vrot.lane.b32.xlu0 %v5622_v61, %s7851_s20  ;;  %v5500_v19 = vpop.permute.xlu1 %5499 }
 0x87c   : > { %5580 = vst.msk [vmem:[#allocation4 + $0x78] sm:$0xff] %vm3150_vm0, %v5500_v19  ;;  %v5820_v19 = vld [vmem:[#allocation6 + $0x198] sm:$0xff] }
 0x87d   : > { %v6263_v27 = vpop.permute.xlu0 %6262  ;;  %5329 = vrot.lane.b32.xlu1 %v5239_v40, %s7844_s23 }
 0x87e   : > { %6346 = vst.msk [vmem:[#allocation4 + $0x60] sm:$0xff] %vm3923_vm4, %v6263_v27  ;;  %v6013_v27 = vld [vmem:[#allocation6 + $0x1a1] sm:$0xff] }
 0x87f   : > { %5902 = vrot.lane.b32.xlu0 %v5239_v40, %s7849_s14  ;;  %v6265_v21 = vpop.permute.xlu1 %6264 }
 0x880   : > { %6347 = vst.msk [vmem:[#allocation4 + $0x68] sm:$0xff] %vm3923_vm4, %v6265_v21 }
 0x881   : > { %v5690_v24 = vpop.permute.xlu0 %5689  ;;  %6094 = vrot.lane.b32.xlu1 %v6006_v58, %s7850_s15 }
 0x882   : > { %5771 = vst.msk [vmem:[#allocation4 + $0x70] sm:$0xff] %vm3343_vm1, %v5690_v24 }
 0x883   : > { %5904 = vrot.lane.b32.xlu0 %v5815_v46, %s7849_s14  ;;  %v5883_v38 = vpop.permute.xlu1 %5882 }
 0x884   : > { %5964 = vst.msk [vmem:[#allocation4 + $0x70] sm:$0xff] %vm3537_vm2, %v5883_v38 }
 0x885   : > { %v5692_v54 = vpop.permute.xlu0 %5691  ;;  %5521 = vrot.lane.b32.xlu1 %v6006_v58, %s7846_s9  ;;  %v6378_v43 = vld [vmem:[#allocation4 + $0x60] sm:$0xff]  ;;  %v6012_v58 = vld [vmem:[#allocation6 + $0x199] sm:$0xff] }
 0x886   : > { %5772 = vst.msk [vmem:[#allocation4 + $0x78] sm:$0xff] %vm3343_vm1, %v5692_v54  ;;  %7509 = vmatprep.mubr.msk.f32.mxu0 %vm4004_vm5, %v6378_v43  ;;  %v6204_v54 = vld [vmem:[#allocation6 + $0x19a] sm:$0xff] }
 0x887   : > { %5331 = vrot.lane.b32.xlu0 %v5815_v46, %s7844_s23  ;;  %v6075_v1 = vpop.permute.xlu1 %6074  ;;  %v6379_v10 = vld [vmem:[#allocation4 + $0x68] sm:$0xff]  ;;  %v6205_v46 = vld [vmem:[#allocation6 + $0x1a2] sm:$0xff] }
 0x888   : > { %6156 = vst.msk [vmem:[#allocation4 + $0x70] sm:$0xff] %vm3730_vm3, %v6075_v1  ;;  %7510 = vmatmul.mubr.msk.f32.gmra.mrb[28].mxu0 %vm4004_vm5, %v6379_v10 }
 0x889   : > { %v5885_v8 = vpop.permute.xlu0 %5884  ;;  %6286 = vrot.lane.b32.xlu1 %v6198_v57, %s7851_s20 }
 0x88a   : > { %5965 = vst.msk [vmem:[#allocation4 + $0x78] sm:$0xff] %vm3537_vm2, %v5885_v8 }
 0x88b   : > { %6096 = vrot.lane.b32.xlu0 %v6007_v20, %s7850_s15  ;;  %v6077_v35 = vpop.permute.xlu1 %6076 }
 0x88c   : > { %6157 = vst.msk [vmem:[#allocation4 + $0x78] sm:$0xff] %vm3730_vm3, %v6077_v35 }
 0x88d   : > { %v5502_v2 = vpop.permute.xlu0 %5501  ;;  %5713 = vrot.lane.b32.xlu1 %v6198_v57, %s7848_s13 }
 0x88e   : > { %5581 = vst.msk [vmem:[#allocation4 + $0x80] sm:$0xff] %vm3150_vm0, %v5502_v2 }
 0x88f   : > { %5523 = vrot.lane.b32.xlu0 %v6007_v20, %s7846_s9  ;;  %v5504_v9 = vpop.permute.xlu1 %5503 }
 0x890   : > { %5582 = vst.msk [vmem:[#allocation4 + $0x88] sm:$0xff] %vm3150_vm0, %v5504_v9 }
 0x891   : > { %v6267_v63 = vpop.permute.xlu0 %6266  ;;  %5715 = vrot.lane.b32.xlu1 %v5624_v32, %s7848_s13 }
 0x892   : > { %6348 = vst.msk [vmem:[#allocation4 + $0x70] sm:$0xff] %vm3923_vm4, %v6267_v63 }
 0x893   : > { %6288 = vrot.lane.b32.xlu0 %v5624_v32, %s7851_s20  ;;  %v6269_v12 = vpop.permute.xlu1 %6268 }
 0x894   : > { %6349 = vst.msk [vmem:[#allocation4 + $0x78] sm:$0xff] %vm3923_vm4, %v6269_v12 }
 0x895   : > { %v5694_v62 = vpop.permute.xlu0 %5693  ;;  %5333 = vrot.lane.b32.xlu1 %v5241_v26, %s7844_s23 }
 0x896   : > { %5773 = vst.msk [vmem:[#allocation4 + $0x80] sm:$0xff] %vm3343_vm1, %v5694_v62 }
 0x897   : > { %5906 = vrot.lane.b32.xlu0 %v5241_v26, %s7849_s14  ;;  %v5887_v22 = vpop.permute.xlu1 %5886 }
 0x898   : > { %5966 = vst.msk [vmem:[#allocation4 + $0x80] sm:$0xff] %vm3537_vm2, %v5887_v22 }
 0x899   : > { %v5696_v47 = vpop.permute.xlu0 %5695  ;;  %6098 = vrot.lane.b32.xlu1 %v6008_v45, %s7850_s15  ;;  %v6380_v44 = vld [vmem:[#allocation4 + $0x70] sm:$0xff] }
 0x89a   : > { %5774 = vst.msk [vmem:[#allocation4 + $0x88] sm:$0xff] %vm3343_vm1, %v5696_v47  ;;  %7512 = vmatprep.mubr.msk.f32.mxu0 %vm4004_vm5, %v6380_v44 }
 0x89b   : > { %5908 = vrot.lane.b32.xlu0 %v5817_v49, %s7849_s14  ;;  %v6079_v29 = vpop.permute.xlu1 %6078  ;;  %v6381_v14 = vld [vmem:[#allocation4 + $0x78] sm:$0xff] }
 0x89c   : > { %6158 = vst.msk [vmem:[#allocation4 + $0x80] sm:$0xff] %vm3730_vm3, %v6079_v29  ;;  %7513 = vmatmul.mubr.msk.f32.gmra.mrb[30].mxu0 %vm4004_vm5, %v6381_v14 }
 0x89d   : > { %v5889_v59 = vpop.permute.xlu0 %5888  ;;  %5525 = vrot.lane.b32.xlu1 %v6008_v45, %s7846_s9 }
 0x89e   : > { %5967 = vst.msk [vmem:[#allocation4 + $0x88] sm:$0xff] %vm3537_vm2, %v5889_v59 }
 0x89f   : > { %5335 = vrot.lane.b32.xlu0 %v5817_v49, %s7844_s23  ;;  %v6081_v30 = vpop.permute.xlu1 %6080  ;;  %v11437_v49 = vld [vmem:[%s11580_s6] ss:$0 sm:$0xff] }
 0x8a0   : > { %6159 = vst.msk [vmem:[#allocation4 + $0x88] sm:$0xff] %vm3730_vm3, %v6081_v30 }
 0x8a1   : > { %v5506_v48 = vpop.permute.xlu0 %5505  ;;  %6290 = vrot.lane.b32.xlu1 %v6200_v7, %s7851_s20 }
 0x8a2   : > { %5583 = vst.msk [vmem:[#allocation4 + $0x90] sm:$0xff] %vm3150_vm0, %v5506_v48 }
 0x8a3   : > { %6100 = vrot.lane.b32.xlu0 %v6009_v53, %s7850_s15  ;;  %v5508_v17 = vpop.permute.xlu1 %5507 }
 0x8a4   : > { %5584 = vst.msk [vmem:[#allocation4 + $0x98] sm:$0xff] %vm3150_vm0, %v5508_v17 }
 0x8a5   : > { %v6271_v3 = vpop.permute.xlu0 %6270  ;;  %5717 = vrot.lane.b32.xlu1 %v6200_v7, %s7848_s13 }
 0x8a6   : > { %6350 = vst.msk [vmem:[#allocation4 + $0x80] sm:$0xff] %vm3923_vm4, %v6271_v3 }
 0x8a7   : > { %5527 = vrot.lane.b32.xlu0 %v6009_v53, %s7846_s9  ;;  %v6273_v39 = vpop.permute.xlu1 %6272 }
 0x8a8   : > { %6351 = vst.msk [vmem:[#allocation4 + $0x88] sm:$0xff] %vm3923_vm4, %v6273_v39 }
 0x8a9   : > { %v5698_v36 = vpop.permute.xlu0 %5697  ;;  %5719 = vrot.lane.b32.xlu1 %v5626_v4, %s7848_s13 }
 0x8aa   : > { %5775 = vst.msk [vmem:[#allocation4 + $0x90] sm:$0xff] %vm3343_vm1, %v5698_v36 }
 0x8ab   : > { %6292 = vrot.lane.b32.xlu0 %v5626_v4, %s7851_s20  ;;  %v5891_v23 = vpop.permute.xlu1 %5890 }
 0x8ac   : > { %5968 = vst.msk [vmem:[#allocation4 + $0x90] sm:$0xff] %vm3537_vm2, %v5891_v23 }
 0x8ad   : > { %v5700_v55 = vpop.permute.xlu0 %5699  ;;  %5337 = vrot.lane.b32.xlu1 %v5243_v41, %s7844_s23  ;;  %v6382_v34 = vld [vmem:[#allocation4 + $0x80] sm:$0xff] }
 0x8ae   : > { %5776 = vst.msk [vmem:[#allocation4 + $0x98] sm:$0xff] %vm3343_vm1, %v5700_v55  ;;  %7515 = vmatprep.mubr.msk.f32.mxu0 %vm4004_vm5, %v6382_v34 }
 0x8af   : > { %5910 = vrot.lane.b32.xlu0 %v5243_v41, %s7849_s14  ;;  %v6083_v31 = vpop.permute.xlu1 %6082  ;;  %v6383_v5 = vld [vmem:[#allocation4 + $0x88] sm:$0xff] }
 0x8b0   : > { %6160 = vst.msk [vmem:[#allocation4 + $0x90] sm:$0xff] %vm3730_vm3, %v6083_v31  ;;  %7516 = vmatmul.mubr.msk.f32.gmra.mrb[32].mxu0 %vm4004_vm5, %v6383_v5 }
 0x8b1   : > { %v5893_v15 = vpop.permute.xlu0 %5892  ;;  %6102 = vrot.lane.b32.xlu1 %v6010_v51, %s7850_s15 }
 0x8b2   : > { %5969 = vst.msk [vmem:[#allocation4 + $0x98] sm:$0xff] %vm3537_vm2, %v5893_v15 }
 0x8b3   : > { %5912 = vrot.lane.b32.xlu0 %v5819_v13, %s7849_s14  ;;  %v6085_v18 = vpop.permute.xlu1 %6084 }
 0x8b4   : > { %6161 = vst.msk [vmem:[#allocation4 + $0x98] sm:$0xff] %vm3730_vm3, %v6085_v18 }
 0x8b5   : > { %v5510_v25 = vpop.permute.xlu0 %5509  ;;  %5529 = vrot.lane.b32.xlu1 %v6010_v51, %s7846_s9 }
 0x8b6   : > { %5585 = vst.msk [vmem:[#allocation4 + $0xa0] sm:$0xff] %vm3150_vm0, %v5510_v25 }
 0x8b7   : > { %5339 = vrot.lane.b32.xlu0 %v5819_v13, %s7844_s23  ;;  %v5512_v33 = vpop.permute.xlu1 %5511 }
 0x8b8   : > { %5586 = vst.msk [vmem:[#allocation4 + $0xa8] sm:$0xff] %vm3150_vm0, %v5512_v33 }
 0x8b9   : > { %v6275_v60 = vpop.permute.xlu0 %6274  ;;  %6294 = vrot.lane.b32.xlu1 %v6202_v52, %s7851_s20 }
 0x8ba   : > { %6352 = vst.msk [vmem:[#allocation4 + $0x90] sm:$0xff] %vm3923_vm4, %v6275_v60 }
 0x8bb   : > { %6104 = vrot.lane.b32.xlu0 %v6011_v50, %s7850_s15  ;;  %v6277_v16 = vpop.permute.xlu1 %6276 }
 0x8bc   : > { %6353 = vst.msk [vmem:[#allocation4 + $0x98] sm:$0xff] %vm3923_vm4, %v6277_v16 }
 0x8bd   : > { %v5702_v28 = vpop.permute.xlu0 %5701  ;;  %5721 = vrot.lane.b32.xlu1 %v6202_v52, %s7848_s13 }
 0x8be   : > { %5777 = vst.msk [vmem:[#allocation4 + $0xa0] sm:$0xff] %vm3343_vm1, %v5702_v28 }
 0x8bf   : > { %5531 = vrot.lane.b32.xlu0 %v6011_v50, %s7846_s9  ;;  %v5895_v11 = vpop.permute.xlu1 %5894 }
 0x8c0   : > { %5970 = vst.msk [vmem:[#allocation4 + $0xa0] sm:$0xff] %vm3537_vm2, %v5895_v11 }
 0x8c1   : > { %v5704_v6 = vpop.permute.xlu0 %5703  ;;  %5723 = vrot.lane.b32.xlu1 %v5628_v42, %s7848_s13  ;;  %v6384_v56 = vld [vmem:[#allocation4 + $0x90] sm:$0xff]  ;;  %s269_s13 = sand.u32 1, %s7829_s25  }
 0x8c2   : > { %5778 = vst.msk [vmem:[#allocation4 + $0xa8] sm:$0xff] %vm3343_vm1, %v5704_v6  ;;  %7518 = vmatprep.mubr.msk.f32.mxu0 %vm4004_vm5, %v6384_v56  ;;  %s6819_s8 = scalar_lea.sflag [#allocation8], %s269_s13 }
 0x8c3   : > { %6296 = vrot.lane.b32.xlu0 %v5628_v42, %s7851_s20  ;;  %v6087_v61 = vpop.permute.xlu1 %6086  ;;  %v6385_v37 = vld [vmem:[#allocation4 + $0x98] sm:$0xff] }
 0x8c4   : > { %6162 = vst.msk [vmem:[#allocation4 + $0xa0] sm:$0xff] %vm3730_vm3, %v6087_v61  ;;  %7519 = vmatmul.mubr.msk.f32.gmra.mrb[34].mxu0 %vm4004_vm5, %v6385_v37 }
 0x8c5   : > { %v5897_v40 = vpop.permute.xlu0 %5896  ;;  %5916 = vrot.lane.b32.xlu1 %v5821_v0, %s7849_s14 }
 0x8c6   : > { %5971 = vst.msk [vmem:[#allocation4 + $0xa8] sm:$0xff] %vm3537_vm2, %v5897_v40 }
 0x8c7   : > { %5914 = vrot.lane.b32.xlu0 %v5820_v19, %s7849_s14  ;;  %v5514_v21 = vpop.permute.xlu1 %5513  ;;  %s6896_s14 = sshll.u32 %s269_s13, 3 }
 0x8c8   : > { %5587 = vst.msk [vmem:[#allocation4 + $0xb0] sm:$0xff] %vm3150_vm0, %v5514_v21 }
 0x8c9   : > { %v5324_v24 = vpop.permute.xlu0 %5323  ;;  %6108 = vrot.lane.b32.xlu1 %v6013_v27, %s7850_s15 }
 0x8ca   : > { %5396 = vst.msk [vmem:[#allocation4 + $0xb8] sm:$0xff] %vm2957_vm15, %v5324_v24 }
 0x8cb   : > { %6106 = vrot.lane.b32.xlu0 %v6012_v58, %s7850_s15  ;;  %v6279_v38 = vpop.permute.xlu1 %6278  ;;  %s7229_s15 = sshll.u32 %s7915_s28, 7  ;;  %s7853_s28 = smov [#allocation7]  }
 0x8cc   : > { %6354 = vst.msk [vmem:[#allocation4 + $0xa0] sm:$0xff] %vm3923_vm4, %v6279_v38  ;;  %s11532_s22 = scalar_lea.hbm %s11581_s7, %s7229_s15  ;;  %s7779_s19 = sshll.u32 %s7853_s28, 4  ;;  %s7780_s19 = int_to_ptr.vmem [resolvable:$false] %s7779_s19 }
 0x8cd   : > { %v6089_v43 = vpop.permute.xlu0 %6088  ;;  %6300 = vrot.lane.b32.xlu1 %v6205_v46, %s7851_s20  ;;  %s7781_s21 = scalar_lea.vmem %s7780_s19, 256 }
 0x8ce   : > { %6163 = vst.msk [vmem:[#allocation4 + $0xa8] sm:$0xff] %vm3730_vm3, %v6089_v43 }
 0x8cf   : > { %6298 = vrot.lane.b32.xlu0 %v6204_v54, %s7851_s20  ;;  %v5706_v1 = vpop.permute.xlu1 %5705  ;;  %s271_s20 = scalar_lea.vmem [#allocation7], %s6896_s14 }
 0x8d0   : > { %5779 = vst.msk [vmem:[#allocation4 + $0xb0] sm:$0xff] %vm3343_vm1, %v5706_v1  ;;  %s6833_s29 = sshll.u32 %s271_s20, 4  ;;  %s11534_s29 = int_to_ptr.vmem [resolvable:$true] %s6833_s29 }
 0x8d1   : > { %v5516_v10 = vpop.permute.xlu0 %5515  ;;  %s7775_s17 = scalar_lea.vmem %s11534_s29, 128  ;;  %p7782_p0 = scmp.lt.s32.totalorder %s11534_s29, %s7780_s19 }
 0x8d2   : > { %5588 = vst.msk [vmem:[#allocation4 + $0xb8] sm:$0xff] %vm3150_vm0, %v5516_v10  ;;  %p7776_p11 = scmp.ne.s32.totalorder %s11534_s29, %s7775_s17  ;;  %p7783_p1 = scmp.lt.s32.totalorder %s7781_s21, %s7775_s17 }
 0x8d3   : > { %v5708_v57 = vpop.permute.xlu1 %5707  ;;  %v6386_v8 = vld [vmem:[#allocation4 + $0xa0] sm:$0xff] }
 0x8d4   : > { %5780 = vst.msk [vmem:[#allocation4 + $0xb8] sm:$0xff] %vm3343_vm1, %v5708_v57  ;;  %7521 = vmatprep.mubr.msk.f32.mxu0 %vm4004_vm5, %v6386_v8  ;;  %p7777_p12 = pnand %p7776_p11, %p7932_p5  ;;  %p7784_p2 = por %p7783_p1, %p7782_p0 }
 0x8d5   : > { %v6281_v20 = vpop.permute.xlu0 %6280 }
 0x8d6   : > { %6355 = vst.msk [vmem:[#allocation4 + $0xa8] sm:$0xff] %vm3923_vm4, %v6281_v20  ;;  %p7778_p13 = pneg %p7777_p12 }
 0x8d7   : > { %v5326_v35 = vpop.permute.xlu1 %5325 }
 0x8d8   : > { %5397 = vst.msk [vmem:[#allocation4 + $0xc0] sm:$0xff] %vm2957_vm15, %v5326_v35  ;;  %p7785_p3 = pnand %p7784_p2, %p7778_p13 }
 0x8d9   : > { %v5899_v2 = vpop.permute.xlu0 %5898 }
 0x8da   : > { %5972 = vst.msk [vmem:[#allocation4 + $0xb0] sm:$0xff] %vm3537_vm2, %v5899_v2 }
 0x8db   : > { %v6091_v9 = vpop.permute.xlu1 %6090 }
 0x8dc   : > { %6164 = vst.msk [vmem:[#allocation4 + $0xb0] sm:$0xff] %vm3730_vm3, %v6091_v9 }
 0x8dd   : > { %v5901_v32 = vpop.permute.xlu0 %5900  ;;  %v6387_v63 = vld [vmem:[#allocation4 + $0xa8] sm:$0xff] }
 0x8de   : > { %5973 = vst.msk [vmem:[#allocation4 + $0xb8] sm:$0xff] %vm3537_vm2, %v5901_v32  ;;  %7522 = vmatmul.mubr.msk.f32.gmra.mrb[36].mxu0 %vm4004_vm5, %v6387_v63 }
 0x8df   : > { %v5518_v12 = vpop.permute.xlu1 %5517 }
 0x8e0   : > { %5589 = vst.msk [vmem:[#allocation4 + $0xc0] sm:$0xff] %vm3150_vm0, %v5518_v12 }
 0x8e1   : > { %v5328_v26 = vpop.permute.xlu0 %5327 }
 0x8e2   : > { %5398 = vst.msk [vmem:[#allocation4 + $0xc8] sm:$0xff] %vm2957_vm15, %v5328_v26 }
 0x8e3   : > { %v6283_v62 = vpop.permute.xlu1 %6282  ;;  %v7493_v22 = vpop.f32.mrb[16].mxu0 }
 0x8e4   : > { %6356 = vst.msk [vmem:[#allocation4 + $0xb0] sm:$0xff] %vm3923_vm4, %v6283_v62  ;;  %v6576_v45 = vpop.f32.mrb[17].mxu0  ;;  %v6582_v48 = vadd.f32 %v7493_v22, %v11437_v49 }
 0x8e5   : > { %v6093_v47 = vpop.permute.xlu0 %6092  ;;  %v6577_v14 = vadd.f32 %v11437_v49, %v6576_v45 }
 0x8e6   : > { %6165 = vst.msk [vmem:[#allocation4 + $0xb8] sm:$0xff] %vm3730_vm3, %v6093_v47 }
 0x8e7   : > { %v5710_v44 = vpop.permute.xlu1 %5709 }
 0x8e8   : > { %5781 = vst.msk [vmem:[#allocation4 + $0xc0] sm:$0xff] %vm3343_vm1, %v5710_v44 }
 0x8e9   : > { %v5520_v29 = vpop.permute.xlu0 %5519 }
 0x8ea   : > { %5590 = vst.msk [vmem:[#allocation4 + $0xc8] sm:$0xff] %vm3150_vm0, %v5520_v29 }
 0x8eb   : > { %v5712_v59 = vpop.permute.xlu1 %5711  ;;  %v6388_v30 = vld [vmem:[#allocation4 + $0xb0] sm:$0xff] }
 0x8ec   : > { %5782 = vst.msk [vmem:[#allocation4 + $0xc8] sm:$0xff] %vm3343_vm1, %v5712_v59  ;;  %7524 = vmatprep.mubr.msk.f32.mxu0 %vm4004_vm5, %v6388_v30 }
 0x8ed   : > { %6735 = vxpose.xlu0.b32.start [1/16] (narrow) %v6577_v14, 16  ;;  %v6285_v7 = vpop.permute.xlu0 %6284 }
 0x8ee   : > { %6357 = vst.msk [vmem:[#allocation4 + $0xb8] sm:$0xff] %vm3923_vm4, %v6285_v7 }
 0x8ef   : > { %v5330_v53 = vpop.permute.xlu1 %5329 }
 0x8f0   : > { %5399 = vst.msk [vmem:[#allocation4 + $0xd0] sm:$0xff] %vm2957_vm15, %v5330_v53 }
 0x8f1   : > { %6736 = vxpose.xlu0.b32.cont [2/16] (narrow) %v6582_v48, 16  ;;  %v5903_v17 = vpop.permute.xlu0 %5902 }
 0x8f2   : > { %5974 = vst.msk [vmem:[#allocation4 + $0xc0] sm:$0xff] %vm3537_vm2, %v5903_v17 }
 0x8f3   : > { %v6095_v3 = vpop.permute.xlu1 %6094 }
 0x8f4   : > { %6166 = vst.msk [vmem:[#allocation4 + $0xc0] sm:$0xff] %vm3730_vm3, %v6095_v3 }
 0x8f5   : > { %v5905_v39 = vpop.permute.xlu0 %5904  ;;  %v6389_v4 = vld [vmem:[#allocation4 + $0xb8] sm:$0xff] }
 0x8f6   : > { %5975 = vst.msk [vmem:[#allocation4 + $0xc8] sm:$0xff] %vm3537_vm2, %v5905_v39  ;;  %7525 = vmatmul.mubr.msk.f32.gmra.mrb[38].mxu0 %vm4004_vm5, %v6389_v4 }
 0x8f7   : > { %v5522_v36 = vpop.permute.xlu1 %5521  ;;  %v7496_v23 = vpop.f32.mrb[18].mxu0 }
 0x8f8   : > { %5591 = vst.msk [vmem:[#allocation4 + $0xd0] sm:$0xff] %vm3150_vm0, %v5522_v36  ;;  %v6586_v41 = vpop.f32.mrb[19].mxu0  ;;  %v6592_v5 = vadd.f32 %v7496_v23, %v11437_v49 }
 0x8f9   : > { %v6587_v55 = vadd.f32 %v11437_v49, %v6586_v41  ;;  %v5332_v34 = vpop.permute.xlu0 %5331 }
 0x8fa   : > { %5400 = vst.msk [vmem:[#allocation4 + $0xd8] sm:$0xff] %vm2957_vm15, %v5332_v34 }
 0x8fb   : > { %v6287_v31 = vpop.permute.xlu1 %6286  ;;  %6737 = vxpose.xlu0.b32.cont [3/16] (narrow) %v6587_v55, 16 }
 0x8fc   : > { %6358 = vst.msk [vmem:[#allocation4 + $0xc0] sm:$0xff] %vm3923_vm4, %v6287_v31 }
 0x8fd   : > { %v6097_v51 = vpop.permute.xlu0 %6096 }
 0x8fe   : > { %6167 = vst.msk [vmem:[#allocation4 + $0xc8] sm:$0xff] %vm3730_vm3, %v6097_v51 }
 0x8ff   : > { %v5714_v15 = vpop.permute.xlu1 %5713  ;;  %6738 = vxpose.xlu0.b32.cont [4/16] (narrow) %v6592_v5, 16 }
 0x900   : > { %5783 = vst.msk [vmem:[#allocation4 + $0xd0] sm:$0xff] %vm3343_vm1, %v5714_v15 }
 0x901   : > { %v5524_v13 = vpop.permute.xlu0 %5523 }
 0x902   : > { %5592 = vst.msk [vmem:[#allocation4 + $0xd8] sm:$0xff] %vm3150_vm0, %v5524_v13 }
 0x903   : > { %v5716_v18 = vpop.permute.xlu1 %5715  ;;  %v6390_v25 = vld [vmem:[#allocation4 + $0xc0] sm:$0xff] }
 0x904   : > { %5784 = vst.msk [vmem:[#allocation4 + $0xd8] sm:$0xff] %vm3343_vm1, %v5716_v18  ;;  %7527 = vmatprep.mubr.msk.f32.mxu0 %vm4004_vm5, %v6390_v25 }
 0x905   : > { %v6289_v33 = vpop.permute.xlu0 %6288 }
 0x906   : > { %6359 = vst.msk [vmem:[#allocation4 + $0xc8] sm:$0xff] %vm3923_vm4, %v6289_v33 }
 0x907   : > { %v5334_v52 = vpop.permute.xlu1 %5333 }
 0x908   : > { %5401 = vst.msk [vmem:[#allocation4 + $0xe0] sm:$0xff] %vm2957_vm15, %v5334_v52 }
 0x909   : > { %v5907_v60 = vpop.permute.xlu0 %5906 }
 0x90a   : > { %5976 = vst.msk [vmem:[#allocation4 + $0xd0] sm:$0xff] %vm3537_vm2, %v5907_v60 }
 0x90b   : > { %v6099_v50 = vpop.permute.xlu1 %6098  ;;  %v7499_v16 = vpop.f32.mrb[20].mxu0 }
 0x90c   : > { %6168 = vst.msk [vmem:[#allocation4 + $0xd0] sm:$0xff] %vm3730_vm3, %v6099_v50  ;;  %v6596_v28 = vpop.f32.mrb[21].mxu0  ;;  %v6602_v0 = vadd.f32 %v7499_v16, %v11437_v49 }
 0x90d   : > { %v6597_v11 = vadd.f32 %v11437_v49, %v6596_v28  ;;  %v5909_v42 = vpop.permute.xlu0 %5908  ;;  %v6391_v6 = vld [vmem:[#allocation4 + $0xc8] sm:$0xff] }
 0x90e   : > { %5977 = vst.msk [vmem:[#allocation4 + $0xd8] sm:$0xff] %vm3537_vm2, %v5909_v42  ;;  %7528 = vmatmul.mubr.msk.f32.gmra.mrb[40].mxu0 %vm4004_vm5, %v6391_v6 }
 0x90f   : > { %v5526_v56 = vpop.permute.xlu1 %5525  ;;  %6739 = vxpose.xlu0.b32.cont [5/16] (narrow) %v6597_v11, 16 }
 0x910   : > { %5593 = vst.msk [vmem:[#allocation4 + $0xe0] sm:$0xff] %vm3150_vm0, %v5526_v56 }
 0x911   : > { %v5336_v61 = vpop.permute.xlu0 %5335 }
 0x912   : > { %5402 = vst.msk [vmem:[#allocation4 + $0xe8] sm:$0xff] %vm2957_vm15, %v5336_v61 }
 0x913   : > { %v6291_v37 = vpop.permute.xlu1 %6290  ;;  %6740 = vxpose.xlu0.b32.cont [6/16] (narrow) %v6602_v0, 16 }
 0x914   : > { %6360 = vst.msk [vmem:[#allocation4 + $0xd0] sm:$0xff] %vm3923_vm4, %v6291_v37 }
 0x915   : > { %v6101_v19 = vpop.permute.xlu0 %6100 }
 0x916   : > { %6169 = vst.msk [vmem:[#allocation4 + $0xd8] sm:$0xff] %vm3730_vm3, %v6101_v19 }
 0x917   : > { %v5718_v40 = vpop.permute.xlu1 %5717 }
 0x918   : > { %5785 = vst.msk [vmem:[#allocation4 + $0xe0] sm:$0xff] %vm3343_vm1, %v5718_v40 }
 0x919   : > { %v5528_v27 = vpop.permute.xlu0 %5527 }
 0x91a   : > { %5594 = vst.msk [vmem:[#allocation4 + $0xe8] sm:$0xff] %vm3150_vm0, %v5528_v27 }
 0x91b   : > { %v5720_v21 = vpop.permute.xlu1 %5719  ;;  %v6392_v58 = vld [vmem:[#allocation4 + $0xd0] sm:$0xff] }
 0x91c   : > { %5786 = vst.msk [vmem:[#allocation4 + $0xe8] sm:$0xff] %vm3343_vm1, %v5720_v21  ;;  %7530 = vmatprep.mubr.msk.f32.mxu0 %vm4004_vm5, %v6392_v58 }
 0x91d   : > { %v6293_v24 = vpop.permute.xlu0 %6292 }
 0x91e   : > { %6361 = vst.msk [vmem:[#allocation4 + $0xd8] sm:$0xff] %vm3923_vm4, %v6293_v24 }
 0x91f   : > { %v5338_v46 = vpop.permute.xlu1 %5337  ;;  %v7502_v38 = vpop.f32.mrb[22].mxu0 }
 0x920   : > { %5403 = vst.msk [vmem:[#allocation4 + $0xf0] sm:$0xff] %vm2957_vm15, %v5338_v46  ;;  %v6606_v54 = vpop.f32.mrb[23].mxu0  ;;  %v6612_v57 = vadd.f32 %v7502_v38, %v11437_v49 }
 0x921   : > { %v6607_v43 = vadd.f32 %v11437_v49, %v6606_v54  ;;  %v5911_v1 = vpop.permute.xlu0 %5910 }
 0x922   : > { %5978 = vst.msk [vmem:[#allocation4 + $0xe0] sm:$0xff] %vm3537_vm2, %v5911_v1 }
 0x923   : > { %v6103_v10 = vpop.permute.xlu1 %6102  ;;  %6741 = vxpose.xlu0.b32.cont [7/16] (narrow) %v6607_v43, 16 }
 0x924   : > { %6170 = vst.msk [vmem:[#allocation4 + $0xe0] sm:$0xff] %vm3730_vm3, %v6103_v10 }
 0x925   : > { %v5913_v8 = vpop.permute.xlu0 %5912  ;;  %v6393_v20 = vld [vmem:[#allocation4 + $0xd8] sm:$0xff] }
 0x926   : > { %5979 = vst.msk [vmem:[#allocation4 + $0xe8] sm:$0xff] %vm3537_vm2, %v5913_v8  ;;  %7531 = vmatmul.mubr.msk.f32.gmra.mrb[42].mxu0 %vm4004_vm5, %v6393_v20 }
 0x927   : > { %v5530_v35 = vpop.permute.xlu1 %5529  ;;  %6742 = vxpose.xlu0.b32.cont [8/16] (narrow) %v6612_v57, 16 }
 0x928   : > { %5595 = vst.msk [vmem:[#allocation4 + $0xf0] sm:$0xff] %vm3150_vm0, %v5530_v35 }
 0x929   : > { %v5340_v2 = vpop.permute.xlu0 %5339 }
 0x92a   : > { %5404 = vst.msk [vmem:[#allocation4 + $0xf8] sm:$0xff] %vm2957_vm15, %v5340_v2 }
 0x92b   : > { %v6295_v9 = vpop.permute.xlu1 %6294 }
 0x92c   : > { %6362 = vst.msk [vmem:[#allocation4 + $0xe0] sm:$0xff] %vm3923_vm4, %v6295_v9 }
 0x92d   : > { %v6105_v32 = vpop.permute.xlu0 %6104 }
 0x92e   : > { %6171 = vst.msk [vmem:[#allocation4 + $0xe8] sm:$0xff] %vm3730_vm3, %v6105_v32 }
 0x92f   : > { %v5722_v63 = vpop.permute.xlu1 %5721 }
 0x930   : > { %5787 = vst.msk [vmem:[#allocation4 + $0xf0] sm:$0xff] %vm3343_vm1, %v5722_v63 }
 0x931   : > { %v5532_v12 = vpop.permute.xlu0 %5531 }
 0x932   : > { %5596 = vst.msk [vmem:[#allocation4 + $0xf8] sm:$0xff] %vm3150_vm0, %v5532_v12 }
 0x933   : > { %v5724_v26 = vpop.permute.xlu1 %5723  ;;  %v7505_v62 = vpop.f32.mrb[24].mxu0  ;;  %v6394_v22 = vld [vmem:[#allocation4 + $0xe0] sm:$0xff] }
 0x934   : > { %5788 = vst.msk [vmem:[#allocation4 + $0xf8] sm:$0xff] %vm3343_vm1, %v5724_v26  ;;  %v6616_v45 = vpop.f32.mrb[25].mxu0  ;;  %7533 = vmatprep.mubr.msk.f32.mxu0 %vm4004_vm5, %v6394_v22  ;;  %v6622_v14 = vadd.f32 %v7505_v62, %v11437_v49 }
 0x935   : > { %v6617_v47 = vadd.f32 %v11437_v49, %v6616_v45  ;;  %v6297_v44 = vpop.permute.xlu0 %6296 }
 0x936   : > { %6363 = vst.msk [vmem:[#allocation4 + $0xe8] sm:$0xff] %vm3923_vm4, %v6297_v44 }
 0x937   : > { %6743 = vxpose.xlu0.b32.cont [9/16] (narrow) %v6617_v47, 16  ;;  %v5917_v29 = vpop.permute.xlu1 %5916 }
 0x938   : > { %5981 = vst.msk [vmem:[#allocation4 + $0xf8] sm:$0xff] %vm3537_vm2, %v5917_v29 }
 0x939   : > { %v5915_v59 = vpop.permute.xlu0 %5914 }
 0x93a   : > { %5980 = vst.msk [vmem:[#allocation4 + $0xf0] sm:$0xff] %vm3537_vm2, %v5915_v59 }
 0x93b   : > { %6744 = vxpose.xlu0.b32.cont [10/16] (narrow) %v6622_v14, 16  ;;  %v6109_v30 = vpop.permute.xlu1 %6108 }
 0x93c   : > { %6173 = vst.msk [vmem:[#allocation4 + $0xf8] sm:$0xff] %vm3730_vm3, %v6109_v30 }
 0x93d   : > { %v6107_v7 = vpop.permute.xlu0 %6106  ;;  %v6395_v48 = vld [vmem:[#allocation4 + $0xe8] sm:$0xff] }
 0x93e   : > { %6172 = vst.msk [vmem:[#allocation4 + $0xf0] sm:$0xff] %vm3730_vm3, %v6107_v7  ;;  %7534 = vmatmul.mubr.msk.f32.gmra.mrb[44].mxu0 %vm4004_vm5, %v6395_v48 }
 0x93f   : > { %v6301_v53 = vpop.permute.xlu1 %6300 }
 0x940   : > { %6365 = vst.msk [vmem:[#allocation4 + $0xf8] sm:$0xff] %vm3923_vm4, %v6301_v53 }
 0x941   : > { %v6299_v17 = vpop.permute.xlu0 %6298 }
 0x942   : > { %6364 = vst.msk [vmem:[#allocation4 + $0xf0] sm:$0xff] %vm3923_vm4, %v6299_v17 }
 0x947   : > { %v7508_v3 = vpop.f32.mrb[26].mxu0  ;;  %v6397_v4 = vld [vmem:[#allocation4 + $0xf8] sm:$0xff] }
 0x948   : > { %v6626_v39 = vpop.f32.mrb[27].mxu0  ;;  %v6632_v41 = vadd.f32 %v7508_v3, %v11437_v49 }
 0x949   : > { %v6627_v36 = vadd.f32 %v11437_v49, %v6626_v39  ;;  %v6396_v23 = vld [vmem:[#allocation4 + $0xf0] sm:$0xff] }
 0x94a   : > { %7536 = vmatprep.mubr.msk.f32.mxu0 %vm4004_vm5, %v6396_v23 }
 0x94b   : > { %7537 = vmatmul.mubr.msk.f32.gmra.mrb[46].mxu0 %vm4004_vm5, %v6397_v4  ;;  %6745 = vxpose.xlu0.b32.cont [11/16] (narrow) %v6627_v36, 16 }
 0x94f   : > { %6746 = vxpose.xlu0.b32.cont [12/16] (narrow) %v6632_v41, 16 }
 0x95b   : > { %v7511_v55 = vpop.f32.mrb[28].mxu0 }
 0x95c   : > { %v6636_v34 = vpop.f32.mrb[29].mxu0  ;;  %v6642_v5 = vadd.f32 %v7511_v55, %v11437_v49 }
 0x95d   : > { %v6637_v31 = vadd.f32 %v11437_v49, %v6636_v34 }
 0x95f   : > { %6747 = vxpose.xlu0.b32.cont [13/16] (narrow) %v6637_v31, 16 }
 0x963   : > { %6748 = vxpose.xlu0.b32.cont [14/16] (narrow) %v6642_v5, 16 }
 0x96f   : > { %v7514_v51 = vpop.f32.mrb[30].mxu0 }
 0x970   : > { %v6646_v15 = vpop.f32.mrb[31].mxu0  ;;  %v6652_v18 = vadd.f32 %v7514_v51, %v11437_v49 }
 0x971   : > { %v6647_v13 = vadd.f32 %v11437_v49, %v6646_v15 }
 0x973   : > { %6749 = vxpose.xlu0.b32.cont [15/16] (narrow) %v6647_v13, 16 }
 0x977   : > { %6750 = vxpose.xlu0.b32.end [16/16] (narrow) %v6652_v18, 16 }
 0x983   : > { %v7517_v25 = vpop.f32.mrb[32].mxu0 }
 0x984   : > { %v6656_v33 = vpop.f32.mrb[33].mxu0  ;;  %v6662_v60 = vadd.f32 %v7517_v25, %v11437_v49 }
 0x985   : > { %v6657_v52 = vadd.f32 %v11437_v49, %v6656_v33 }
 0x987   : > { %6767 = vxpose.xlu1.b32.start [1/16] (narrow) %v6657_v52, 16 }
 0x98b   : > { %6768 = vxpose.xlu1.b32.cont [2/16] (narrow) %v6662_v60, 16 }
 0x997   : > { %v7520_v50 = vpop.f32.mrb[34].mxu0 }
 0x998   : > { %v6666_v16 = vpop.f32.mrb[35].mxu0  ;;  %v6672_v11 = vadd.f32 %v7520_v50, %v11437_v49 }
 0x999   : > { %v6667_v28 = vadd.f32 %v11437_v49, %v6666_v16 }
 0x99b   : > { %6769 = vxpose.xlu1.b32.cont [3/16] (narrow) %v6667_v28, 16 }
 0x99f   : > { %6770 = vxpose.xlu1.b32.cont [4/16] (narrow) %v6672_v11, 16 }
 0x9b1   : > { %v7523_v42 = vpop.f32.mrb[36].mxu0 }
 0x9b2   : > { %v6676_v6 = vpop.f32.mrb[37].mxu0  ;;  %v6682_v0 = vadd.f32 %v7523_v42, %v11437_v49 }
 0x9b3   : > { %v6677_v56 = vadd.f32 %v11437_v49, %v6676_v6 }
 0x9b5   : > { %6771 = vxpose.xlu1.b32.cont [5/16] (narrow) %v6677_v56, 16 }
 0x9b9   : > { %6772 = vxpose.xlu1.b32.cont [6/16] (narrow) %v6682_v0, 16 }
 0x9bb   : > { %v6751_v32 = vpop.trf.xlu0 }
 0x9bf   : > { %v6752_v63 = vpop.trf.xlu0 }
 0x9c0   : > { %v7222_v12 = vmul.f32 -1.442695, %v6752_v63 }
 0x9c2   : > { %7767 = vpow2.f32 %v7222_v12 }
 0x9c9   : > { %v7526_v61 = vpop.f32.mrb[38].mxu0 }
 0x9ca   : > { %v6686_v37 = vpop.f32.mrb[39].mxu0  ;;  %v6692_v40 = vadd.f32 %v7526_v61, %v11437_v49 }
 0x9cb   : > { %v6687_v19 = vadd.f32 %v11437_v49, %v6686_v37 }
 0x9cc   : > { %v7768_v45 = vpop.eup %7767 }
 0x9cd   : > { %6773 = vxpose.xlu1.b32.cont [7/16] (narrow) %v6687_v19, 16  ;;  %v6805_v47 = vadd.f32 1.0, %v7768_v45 }
 0x9d1   : > { %6774 = vxpose.xlu1.b32.cont [8/16] (narrow) %v6692_v40, 16 }
 0x9e1   : > { %v7529_v27 = vpop.f32.mrb[40].mxu0 }
 0x9e2   : > { %v6696_v21 = vpop.f32.mrb[41].mxu0  ;;  %v6702_v24 = vadd.f32 %v7529_v27, %v11437_v49 }
 0x9e3   : > { %v6697_v58 = vadd.f32 %v11437_v49, %v6696_v21 }
 0x9e5   : > { %6775 = vxpose.xlu1.b32.cont [9/16] (narrow) %v6697_v58, 16 }
 0x9e9   : > { %6776 = vxpose.xlu1.b32.cont [10/16] (narrow) %v6702_v24, 16 }
 0x9f9   : > { %v7532_v46 = vpop.f32.mrb[42].mxu0 }
 0x9fa   : > { %v6706_v38 = vpop.f32.mrb[43].mxu0  ;;  %v6712_v43 = vadd.f32 %v7532_v46, %v11437_v49 }
 0x9fb   : > { %v6707_v54 = vadd.f32 %v11437_v49, %v6706_v38 }
 0x9fd   : > { %6777 = vxpose.xlu1.b32.cont [11/16] (narrow) %v6707_v54, 16 }
 0xa01   : > { %6778 = vxpose.xlu1.b32.cont [12/16] (narrow) %v6712_v43, 16 }
 0xa11   : > { %v7535_v1 = vpop.f32.mrb[44].mxu0 }
 0xa12   : > { %v6716_v10 = vpop.f32.mrb[45].mxu0  ;;  %v6722_v8 = vadd.f32 %v7535_v1, %v11437_v49 }
 0xa13   : > { %v6717_v57 = vadd.f32 %v11437_v49, %v6716_v10 }
 0xa15   : > { %6779 = vxpose.xlu1.b32.cont [13/16] (narrow) %v6717_v57, 16 }
 0xa19   : > { %6780 = vxpose.xlu1.b32.cont [14/16] (narrow) %v6722_v8, 16 }
 0xa1e   : > { %v7538_v20 = vpop.f32.mrb[46].mxu0 }
 0xa1f   : > { %v6726_v35 = vpop.f32.mrb[47].mxu0  ;;  %v6732_v9 = vadd.f32 %v7538_v20, %v11437_v49 }
 0xa20   : > { %v6727_v2 = vadd.f32 %v11437_v49, %v6726_v35 }
 0xa22   : > { %6781 = vxpose.xlu1.b32.cont [15/16] (narrow) %v6727_v2, 16 }
 0xa26   : > { %6782 = vxpose.xlu1.b32.end [16/16] (narrow) %v6732_v9, 16 }
 0xa6a   : > { %v6783_v26 = vpop.trf.xlu1 }
 0xa6e   : > { %v6784_v62 = vpop.trf.xlu1 }
 0xa6f   : > { %v7223_v22 = vmul.f32 -1.442695, %v6784_v62 }
 0xa71   : > { %7769 = vpow2.f32 %v7223_v22 }
 0xa72   : > { %7771 = vrcp.f32 %v6805_v47 }
 0xa7b   : > { %v7770_v44 = vpop.eup %7769 }
 0xa7c   : > { %v6806_v29 = vadd.f32 1.0, %v7770_v44  ;;  %v7772_v49 = vpop.eup %7771 }
 0xa7d   : > { %v6811_v59 = vmul.f32 %v7772_v49, %v6751_v32 }
 0xa7e   : > { %7773 = vrcp.f32 %v6806_v29 }
 0xa88   : > { %v7774_v14 = vpop.eup %7773 }
 0xa89   : > { %v6812_v30 = vmul.f32 %v7774_v14, %v6783_v26 }
 0xa8b   : > { %v6815_v7 = vcombine.low %v6811_v59, %v6812_v30 }
 0xa8d   : > { %6817 = vst [vmem:[%s271_s20] sm:$0xff] %v6815_v7 }
 0xa8e   : > { %7788 = shalt.err (!%p7785_p3)
}
 0xa8f   : > { %s7789_s23 = scalar_lea.hbm %s11532_s22, 128  ;;  %s7793_s14 = scalar_lea.hbm %s11581_s7, 256 }
 0xa90   : > { %p7790_p4 = scmp.ne.s32.totalorder %s11532_s22, %s7789_s23  ;;  %p7794_p9 = scmp.lt.u32.totalorder %s11532_s22, %s11581_s7 }
 0xa91   : > { %p7795_p10 = scmp.lt.u32.totalorder %s7793_s14, %s7789_s23  ;;  %p7797_p12 = scmp.lt.u32.totalorder %s7789_s23, %s11532_s22 }
 0xa92   : > { %p7791_p7 = pnand %p7790_p4, %p7932_p5 }
 0xa93   : > { %p7796_p11 = por %p7795_p10, %p7794_p9 }
 0xa94   : > { %p7792_p8 = pneg %p7791_p7 }
 0xa95   : > { %p7798_p13 = por %p7797_p12, %p7796_p11 }
 0xa97   : > { %p7799_p0 = pnand %p7798_p13, %p7792_p8 }
 0xa99   : > { %7802 = shalt.err (!%p7799_p0)
}
 0xa9a   : > { %7586 = dma.vmem_to_hbm [thread:$0]  (%p7932_p5), %s11534_s29, 128, %s11532_s22, %s6819_s8  }
 0xa9b PF: > { %p7592_p1 = scmp.ge.s32.totalorder %s7837_s27, 2  ;;  %s6845_s16 = sand.u32 1, %s7825_s24  }
 0xa9c   : > { %s6846_s18 = scalar_lea.sflag [#allocation8], %s6845_s16 }
 0xa9d   : > { %p7589_p2 = pnand %p7592_p1, %p7936_p6 }
 0xa9f   : > { %7820 = dma.done.wait (!%p7589_p2), %s6846_s18, 128  }
 0xaa0   : > { %7822 = vsyncadd (!%p7589_p2), %s6846_s18, 4294967168  ;;  %p17_p3 = scmp.ge.s32.totalorder %s7919_s30, 4   ;;  %s11764_s24 = smov %s7829_s25 }
 0xaa1   : > { %s11765_s25 = smov %s7833_s26  ;;  %s11766_s26 = smov %s7930_s10 }
 0xaa2   : > { %s11767_s27 = smov %s7919_s30  ;;  %19 = sbr.rel (!%p17_p3) target bundleno = 3 (0x3), region = 89 }
 0xaa9   :  { %6851 = vsyncpa [#allocation8], 1 }
 0xaaa   :  { %6853 = vsyncpa [#allocation8 + $0x1], 1 }

</bundles_post_ra>
